<compile_context>
chip_gen: v5e
topology: v5e:2x2
jax: 0.10.0
libtpu: 0.0.40
codegen_flags: <defaults>
</compile_context>

<pallas_src>
import math
from functools import partial

import jax
import jax.numpy as jnp
from jax.experimental import pallas as pl
from jax.experimental.pallas import tpu as pltpu


def _round_up(x, m):
    return ((x + m - 1) // m) * m


# ---------------------------------------------------------------------------
# Fused kernel (one grid step per batch tile of B images):
#   y   = celu(conv3x3(x) + shift1)     (BN1 scale pre-folded into w1)
#   out = celu(conv3x3(y) + shift2)     (BN2 scale pre-folded into w2)
# Each conv is one matmul: (B*H*W, 9*C) @ (9*C, cp), slab built in VMEM.
# ---------------------------------------------------------------------------
def _conv_block_kernel(x_ref, w1_ref, b1_ref, w2_ref, b2_ref, o_ref,
                       xpad_ref, mid_ref, slab1_ref, slab2_ref,
                       *, B, H, W, cin, cin_p, cp):
    Hp, Wp = H + 2, W + 2
    M = B * H * W

    def celu(v):
        # CELU(alpha=1): v if v>0 else exp(v)-1 (the exp branch is never
        # selected for v>0, so no clamp needed).
        # TODO(synk): use jnp.expm1 once confirmed in the Mosaic lowering set;
        # exp(v)-1 in f32 is well within tolerance here and always lowers.
        return jnp.where(v > 0.0, v, jnp.exp(v) - 1.0)

    # ---- in-kernel halo + channel zero-pad of the input (no HBM pad pass) --
    xpad_ref[...] = jnp.zeros_like(xpad_ref)              # tiny (cin_p lanes)
    xpad_ref[:, 1:1 + H, 1:1 + W, :cin] = x_ref[...]

    # ---- conv1: im2col slab in VMEM -> ONE MXU matmul (K = 9*cin_p) --------
    for t in range(9):                                    # unrolled slab build
        dy, dx = t // 3, t % 3
        win = xpad_ref[:, dy:dy + H, dx:dx + W, :].reshape(M, cin_p)
        slab1_ref[:, t * cin_p:(t + 1) * cin_p] = win
    y = jnp.dot(slab1_ref[...], w1_ref[...],
                preferred_element_type=jnp.float32)       # (M, cp) f32
    y = celu(y + b1_ref[...])                             # folded BN1 shift

    # ---- re-pad intermediate in VMEM: zero only the 1-px halo ring ---------
    mid_ref[:, 0:1, :, :] = jnp.zeros((B, 1, Wp, cp), mid_ref.dtype)
    mid_ref[:, Hp - 1:Hp, :, :] = jnp.zeros((B, 1, Wp, cp), mid_ref.dtype)
    mid_ref[:, :, 0:1, :] = jnp.zeros((B, Hp, 1, cp), mid_ref.dtype)
    mid_ref[:, :, Wp - 1:Wp, :] = jnp.zeros((B, Hp, 1, cp), mid_ref.dtype)
    mid_ref[:, 1:1 + H, 1:1 + W, :] = (
        y.reshape(B, H, W, cp).astype(mid_ref.dtype))

    # ---- conv2: second im2col slab -> ONE MXU matmul (K = 9*cp) ------------
    for t in range(9):
        dy, dx = t // 3, t % 3
        win = mid_ref[:, dy:dy + H, dx:dx + W, :].reshape(M, cp)
        slab2_ref[:, t * cp:(t + 1) * cp] = win           # lane-aligned stores
    z = jnp.dot(slab2_ref[...], w2_ref[...],
                preferred_element_type=jnp.float32)
    z = celu(z + b2_ref[...])                             # folded BN2 shift
    o_ref[...] = z.reshape(B, H, W, cp).astype(o_ref.dtype)


# ---------------------------------------------------------------------------
# Batch-tile picker: largest divisor B of N that (a) leaves >= 2 grid steps
# (keeps both v7x TensorCores busy) and (b) fits a ~24 MiB VMEM budget
# (safe on v7x's 64 MiB physical / 32 MiB scoped VMEM; roomy on v5e/v6e).
# ---------------------------------------------------------------------------
def _pick_batch_tile(N, H, W, cin_p, cp, budget_bytes=24 << 20):
    Hp, Wp = H + 2, W + 2
    weight_bytes = 2 * ((9 * cin_p * cp + 9 * cp * cp) * 2 + 2 * cp * 4)
    per_img = (
        Hp * Wp * cin_p * 2          # xpad scratch (bf16)
        + Hp * Wp * cp * 2           # mid scratch (bf16)
        + H * W * 9 * cin_p * 2      # slab1 (bf16)
        + H * W * 9 * cp * 2         # slab2 (bf16)
        + 2 * H * W * cin_p * 2      # double-buffered input block
        + 2 * H * W * cp * 2         # double-buffered output block (bf16)
        + 2 * H * W * cp * 4         # f32 activations in flight
    )
    best = 1
    for b in range(1, N + 1):
        if N % b:
            continue
        if N >= 2 and N // b < 2:
            continue
        if weight_bytes + b * per_img <= budget_bytes:
            best = b
    return best


# ---------------------------------------------------------------------------
# Wrapper
# ---------------------------------------------------------------------------
def conv_block_apply(kp, x_nhwc):
    N, H, W, Cin = x_nhwc.shape
    cin_p, cp, cin = kp["cin_p"], kp["cp"], kp["cin"]
    assert Cin == cin
    assert H % 8 == 0 and W % 8 == 0, "spatial dims must be multiples of 8"
    Hp, Wp = H + 2, W + 2

    B = _pick_batch_tile(N, H, W, cin_p, cp)
    M = B * H * W

    out = pl.pallas_call(
        partial(_conv_block_kernel, B=B, H=H, W=W,
                cin=Cin, cin_p=cin_p, cp=cp),
        out_shape=jax.ShapeDtypeStruct((N, H, W, cp), jnp.bfloat16),
        grid=(N // B,),
        in_specs=[
            pl.BlockSpec((B, H, W, Cin), lambda n: (n, 0, 0, 0)),
            pl.BlockSpec((9 * cin_p, cp), lambda n: (0, 0)),
            pl.BlockSpec((1, cp), lambda n: (0, 0)),
            pl.BlockSpec((9 * cp, cp), lambda n: (0, 0)),
            pl.BlockSpec((1, cp), lambda n: (0, 0)),
        ],
        out_specs=pl.BlockSpec((B, H, W, cp), lambda n: (n, 0, 0, 0)),
        scratch_shapes=[
            pltpu.VMEM((B, Hp, Wp, cin_p), jnp.bfloat16),   # padded input
            pltpu.VMEM((B, Hp, Wp, cp), jnp.bfloat16),      # padded intermediate
            pltpu.VMEM((M, 9 * cin_p), jnp.bfloat16),       # conv1 im2col slab
            pltpu.VMEM((M, 9 * cp), jnp.bfloat16),          # conv2 im2col slab
        ],
        compiler_params=pltpu.CompilerParams(
            dimension_semantics=("parallel",),
            vmem_limit_bytes=32 * 1024 * 1024),
    )(x_nhwc.astype(jnp.bfloat16), kp["w1"], kp["b1"], kp["w2"], kp["b2"])
    return out                                             # (N, H, W, cp) bf16


def conv_block_forward(kp, x_nchw):
    """PyTorch-facing NCHW f32 in / NCHW f32 out."""
    x = jnp.transpose(x_nchw, (0, 2, 3, 1))                # NHWC
    y = conv_block_apply(kp, x)
    # TODO(synk): in a full network keep the padded NHWC bf16 layout between
    # Conv_Blocks and drop this per-layer channel slice / transpose.
    y = y[..., :kp["cout"]].astype(jnp.float32)
    return jnp.transpose(y, (0, 3, 1, 2))


# ---------------------------------------------------------------------------
# Parameter construction (deterministic, synthetic) + BN folding
# ---------------------------------------------------------------------------
def make_conv_block_params(key, cin, cout, eps=1e-5):
    cp = _round_up(max(cout, 128), 128)        # lane-dense padded Cout
    cin_p = _round_up(max(cin, 16), 16)        # bf16 sublane-packed K chunk
    ks = jax.random.split(key, 10)

    w1 = jax.random.normal(ks[0], (cout, cin, 3, 3), jnp.float32) / math.sqrt(9 * cin)
    w2 = jax.random.normal(ks[1], (cout, cout, 3, 3), jnp.float32) / math.sqrt(9 * cout)

    def bn(kg, kb, km, kv):
        gamma = 1.0 + 0.1 * jax.random.normal(kg, (cout,), jnp.float32)
        beta = 0.1 * jax.random.normal(kb, (cout,), jnp.float32)
        mean = 0.1 * jax.random.normal(km, (cout,), jnp.float32)
        var = 1.0 + 0.1 * jax.random.uniform(kv, (cout,), jnp.float32)
        return gamma, beta, mean, var

    bn1 = bn(*ks[2:6])
    bn2 = bn(*ks[6:10])
    raw = dict(w1=w1, w2=w2, bn1=bn1, bn2=bn2, eps=eps)

    def fold(w, g, b, mu, var, ci_pad):
        co, ci = w.shape[0], w.shape[1]
        s = g / jnp.sqrt(var + eps)            # BN scale
        shift = b - mu * s                     # BN shift
        # (co, ci, 3, 3) -> taps ordered (dy, dx), then K = tap-major,
        # channel-minor, matching the in-kernel slab layout.
        wt = jnp.transpose(w, (2, 3, 1, 0)).reshape(9, ci, co) * s
        wt = jnp.pad(wt, ((0, 0), (0, ci_pad - ci), (0, cp - co)))
        wt = wt.reshape(9 * ci_pad, cp)
        shift = jnp.pad(shift, (0, cp - co)).reshape(1, cp)
        return wt.astype(jnp.bfloat16), shift.astype(jnp.float32)

    w1m, b1 = fold(w1, *bn1, cin_p)
    w2m, b2 = fold(w2, *bn2, cp)               # conv2 input lives padded to cp
    kparams = dict(w1=w1m, b1=b1, w2=w2m, b2=b2,
                   cp=cp, cin_p=cin_p, cin=cin, cout=cout)
    return raw, kparams


# ---------------------------------------------------------------------------
# Pure-JAX f32 reference (eval-mode BN), for numerical validation
# ---------------------------------------------------------------------------
def conv_block_reference(raw, x_nchw):
    eps = raw["eps"]
    x = jnp.transpose(x_nchw, (0, 2, 3, 1)).astype(jnp.float32)

    def conv_bn_celu(v, w, bn_p):
        g, b, mu, var = bn_p
        wf = jnp.transpose(w, (2, 3, 1, 0))    # (O,I,kh,kw) -> HWIO
        y = jax.lax.conv_general_dilated(
            v, wf, window_strides=(1, 1), padding=((1, 1), (1, 1)),
            dimension_numbers=("NHWC", "HWIO", "NHWC"))
        y = (y - mu) / jnp.sqrt(var + eps) * g + b
        return jnp.where(y > 0, y, jnp.expm1(y))

    y = conv_bn_celu(x, raw["w1"], raw["bn1"])
    y = conv_bn_celu(y, raw["w2"], raw["bn2"])
    return jnp.transpose(y, (0, 3, 1, 2))


if __name__ == "__main__":
    key = jax.random.PRNGKey(0)
    kparam_key, kx = jax.random.split(key)

    N, Cin, H, W, Cout = 2, 4, 16, 16, 32
    raw, kparams = make_conv_block_params(kparam_key, Cin, Cout)
    x = jax.random.normal(kx, (N, Cin, H, W), jnp.float32)

    fwd = jax.jit(partial(conv_block_forward, kparams))
    out = jax.block_until_ready(fwd(x))

    assert out.shape == (N, Cout, H, W)
    assert bool(jnp.all(jnp.isfinite(out)))

    ref = conv_block_reference(raw, x)
    err = float(jnp.max(jnp.abs(out - ref) / (1.0 + jnp.abs(ref))))
    assert err < 3e-2, f"error vs reference: {err}"

    print("KERNEL_OK")
</pallas_src>

<mosaic_0001>
module attributes {stable_mosaic.version = 11 : i64} {
  func.func @_conv_block_kernel(%arg0: i32, %arg1: memref<1x16x16x4xbf16, #tpu.memory_space<vmem>>, %arg2: memref<144x128xbf16, #tpu.memory_space<vmem>>, %arg3: memref<1x128xf32, #tpu.memory_space<vmem>>, %arg4: memref<1152x128xbf16, #tpu.memory_space<vmem>>, %arg5: memref<1x128xf32, #tpu.memory_space<vmem>>, %arg6: memref<1x16x16x128xbf16, #tpu.memory_space<vmem>>, %arg7: memref<1x18x18x16xbf16, #tpu.memory_space<vmem>>, %arg8: memref<1x18x18x128xbf16, #tpu.memory_space<vmem>>, %arg9: memref<256x144xbf16, #tpu.memory_space<vmem>>, %arg10: memref<256x1152xbf16, #tpu.memory_space<vmem>>) attributes {dimension_semantics = [#tpu.dimension_semantics<parallel>], iteration_bounds = array<i64: 2>, scalar_prefetch = 0 : i64, scratch_operands = 4 : i64, tpu.core_type = #tpu.core_type<tc>, window_params = [{transform_indices = @transform_0, window_bounds = array<i64: 1, 16, 16, 4>}, {pipeline_mode = #tpu.pipeline_mode<synchronous>, transform_indices = @transform_1, window_bounds = array<i64: 144, 128>}, {pipeline_mode = #tpu.pipeline_mode<synchronous>, transform_indices = @transform_2, window_bounds = array<i64: 1, 128>}, {pipeline_mode = #tpu.pipeline_mode<synchronous>, transform_indices = @transform_3, window_bounds = array<i64: 1152, 128>}, {pipeline_mode = #tpu.pipeline_mode<synchronous>, transform_indices = @transform_4, window_bounds = array<i64: 1, 128>}, {transform_indices = @transform_5, window_bounds = array<i64: 1, 16, 16, 128>}]} {
    %cst = arith.constant 0.000000e+00 : bf16
    %0 = vector.broadcast %cst : bf16 to vector<1x18x18x16xbf16>
    %c0 = arith.constant 0 : index
    %c0_0 = arith.constant 0 : index
    %c0_1 = arith.constant 0 : index
    %c0_2 = arith.constant 0 : index
    %1 = vector.load %arg7[%c0, %c0_0, %c0_1, %c0_2] : memref<1x18x18x16xbf16, #tpu.memory_space<vmem>>, vector<1x18x18x16xbf16>
    tpu.vector_store %arg7[%c0, %c0_0, %c0_1, %c0_2], %0 {strides = array<i32>} : memref<1x18x18x16xbf16, #tpu.memory_space<vmem>>, vector<1x18x18x16xbf16>,
    %c0_3 = arith.constant 0 : index
    %c0_4 = arith.constant 0 : index
    %c0_5 = arith.constant 0 : index
    %c0_6 = arith.constant 0 : index
    %2 = vector.load %arg1[%c0_3, %c0_4, %c0_5, %c0_6] : memref<1x16x16x4xbf16, #tpu.memory_space<vmem>>, vector<1x16x16x4xbf16>
    %c0_7 = arith.constant 0 : index
    %c1 = arith.constant 1 : index
    %c1_8 = arith.constant 1 : index
    %c0_9 = arith.constant 0 : index
    %3 = vector.load %arg7[%c0_7, %c1, %c1_8, %c0_9] : memref<1x18x18x16xbf16, #tpu.memory_space<vmem>>, vector<1x16x16x4xbf16>
    tpu.vector_store %arg7[%c0_7, %c1, %c1_8, %c0_9], %2 {strides = array<i32>} : memref<1x18x18x16xbf16, #tpu.memory_space<vmem>>, vector<1x16x16x4xbf16>,
    %c0_10 = arith.constant 0 : index
    %c0_11 = arith.constant 0 : index
    %c0_12 = arith.constant 0 : index
    %c0_13 = arith.constant 0 : index
    %4 = vector.load %arg7[%c0_10, %c0_11, %c0_12, %c0_13] : memref<1x18x18x16xbf16, #tpu.memory_space<vmem>>, vector<1x16x16x16xbf16>
    %5 = vector.shape_cast %4 : vector<1x16x16x16xbf16> to vector<256x16xbf16>
    %c0_14 = arith.constant 0 : index
    %c0_15 = arith.constant 0 : index
    %6 = vector.load %arg9[%c0_14, %c0_15] : memref<256x144xbf16, #tpu.memory_space<vmem>>, vector<256x16xbf16>
    tpu.vector_store %arg9[%c0_14, %c0_15], %5 {strides = array<i32>} : memref<256x144xbf16, #tpu.memory_space<vmem>>, vector<256x16xbf16>,
    %c0_16 = arith.constant 0 : index
    %c0_17 = arith.constant 0 : index
    %c1_18 = arith.constant 1 : index
    %c0_19 = arith.constant 0 : index
    %7 = vector.load %arg7[%c0_16, %c0_17, %c1_18, %c0_19] : memref<1x18x18x16xbf16, #tpu.memory_space<vmem>>, vector<1x16x16x16xbf16>
    %8 = vector.shape_cast %7 : vector<1x16x16x16xbf16> to vector<256x16xbf16>
    %c0_20 = arith.constant 0 : index
    %c16 = arith.constant 16 : index
    %9 = vector.load %arg9[%c0_20, %c16] : memref<256x144xbf16, #tpu.memory_space<vmem>>, vector<256x16xbf16>
    tpu.vector_store %arg9[%c0_20, %c16], %8 {strides = array<i32>} : memref<256x144xbf16, #tpu.memory_space<vmem>>, vector<256x16xbf16>,
    %c0_21 = arith.constant 0 : index
    %c0_22 = arith.constant 0 : index
    %c2 = arith.constant 2 : index
    %c0_23 = arith.constant 0 : index
    %10 = vector.load %arg7[%c0_21, %c0_22, %c2, %c0_23] : memref<1x18x18x16xbf16, #tpu.memory_space<vmem>>, vector<1x16x16x16xbf16>
    %11 = vector.shape_cast %10 : vector<1x16x16x16xbf16> to vector<256x16xbf16>
    %c0_24 = arith.constant 0 : index
    %c32 = arith.constant 32 : index
    %12 = vector.load %arg9[%c0_24, %c32] : memref<256x144xbf16, #tpu.memory_space<vmem>>, vector<256x16xbf16>
    tpu.vector_store %arg9[%c0_24, %c32], %11 {strides = array<i32>} : memref<256x144xbf16, #tpu.memory_space<vmem>>, vector<256x16xbf16>,
    %c0_25 = arith.constant 0 : index
    %c1_26 = arith.constant 1 : index
    %c0_27 = arith.constant 0 : index
    %c0_28 = arith.constant 0 : index
    %13 = vector.load %arg7[%c0_25, %c1_26, %c0_27, %c0_28] : memref<1x18x18x16xbf16, #tpu.memory_space<vmem>>, vector<1x16x16x16xbf16>
    %14 = vector.shape_cast %13 : vector<1x16x16x16xbf16> to vector<256x16xbf16>
    %c0_29 = arith.constant 0 : index
    %c48 = arith.constant 48 : index
    %15 = vector.load %arg9[%c0_29, %c48] : memref<256x144xbf16, #tpu.memory_space<vmem>>, vector<256x16xbf16>
    tpu.vector_store %arg9[%c0_29, %c48], %14 {strides = array<i32>} : memref<256x144xbf16, #tpu.memory_space<vmem>>, vector<256x16xbf16>,
    %c0_30 = arith.constant 0 : index
    %c1_31 = arith.constant 1 : index
    %c1_32 = arith.constant 1 : index
    %c0_33 = arith.constant 0 : index
    %16 = vector.load %arg7[%c0_30, %c1_31, %c1_32, %c0_33] : memref<1x18x18x16xbf16, #tpu.memory_space<vmem>>, vector<1x16x16x16xbf16>
    %17 = vector.shape_cast %16 : vector<1x16x16x16xbf16> to vector<256x16xbf16>
    %c0_34 = arith.constant 0 : index
    %c64 = arith.constant 64 : index
    %18 = vector.load %arg9[%c0_34, %c64] : memref<256x144xbf16, #tpu.memory_space<vmem>>, vector<256x16xbf16>
    tpu.vector_store %arg9[%c0_34, %c64], %17 {strides = array<i32>} : memref<256x144xbf16, #tpu.memory_space<vmem>>, vector<256x16xbf16>,
    %c0_35 = arith.constant 0 : index
    %c1_36 = arith.constant 1 : index
    %c2_37 = arith.constant 2 : index
    %c0_38 = arith.constant 0 : index
    %19 = vector.load %arg7[%c0_35, %c1_36, %c2_37, %c0_38] : memref<1x18x18x16xbf16, #tpu.memory_space<vmem>>, vector<1x16x16x16xbf16>
    %20 = vector.shape_cast %19 : vector<1x16x16x16xbf16> to vector<256x16xbf16>
    %c0_39 = arith.constant 0 : index
    %c80 = arith.constant 80 : index
    %21 = vector.load %arg9[%c0_39, %c80] : memref<256x144xbf16, #tpu.memory_space<vmem>>, vector<256x16xbf16>
    tpu.vector_store %arg9[%c0_39, %c80], %20 {strides = array<i32>} : memref<256x144xbf16, #tpu.memory_space<vmem>>, vector<256x16xbf16>,
    %c0_40 = arith.constant 0 : index
    %c2_41 = arith.constant 2 : index
    %c0_42 = arith.constant 0 : index
    %c0_43 = arith.constant 0 : index
    %22 = vector.load %arg7[%c0_40, %c2_41, %c0_42, %c0_43] : memref<1x18x18x16xbf16, #tpu.memory_space<vmem>>, vector<1x16x16x16xbf16>
    %23 = vector.shape_cast %22 : vector<1x16x16x16xbf16> to vector<256x16xbf16>
    %c0_44 = arith.constant 0 : index
    %c96 = arith.constant 96 : index
    %24 = vector.load %arg9[%c0_44, %c96] : memref<256x144xbf16, #tpu.memory_space<vmem>>, vector<256x16xbf16>
    tpu.vector_store %arg9[%c0_44, %c96], %23 {strides = array<i32>} : memref<256x144xbf16, #tpu.memory_space<vmem>>, vector<256x16xbf16>,
    %c0_45 = arith.constant 0 : index
    %c2_46 = arith.constant 2 : index
    %c1_47 = arith.constant 1 : index
    %c0_48 = arith.constant 0 : index
    %25 = vector.load %arg7[%c0_45, %c2_46, %c1_47, %c0_48] : memref<1x18x18x16xbf16, #tpu.memory_space<vmem>>, vector<1x16x16x16xbf16>
    %26 = vector.shape_cast %25 : vector<1x16x16x16xbf16> to vector<256x16xbf16>
    %c0_49 = arith.constant 0 : index
    %c112 = arith.constant 112 : index
    %27 = vector.load %arg9[%c0_49, %c112] : memref<256x144xbf16, #tpu.memory_space<vmem>>, vector<256x16xbf16>
    tpu.vector_store %arg9[%c0_49, %c112], %26 {strides = array<i32>} : memref<256x144xbf16, #tpu.memory_space<vmem>>, vector<256x16xbf16>,
    %c0_50 = arith.constant 0 : index
    %c2_51 = arith.constant 2 : index
    %c2_52 = arith.constant 2 : index
    %c0_53 = arith.constant 0 : index
    %28 = vector.load %arg7[%c0_50, %c2_51, %c2_52, %c0_53] : memref<1x18x18x16xbf16, #tpu.memory_space<vmem>>, vector<1x16x16x16xbf16>
    %29 = vector.shape_cast %28 : vector<1x16x16x16xbf16> to vector<256x16xbf16>
    %c0_54 = arith.constant 0 : index
    %c128 = arith.constant 128 : index
    %30 = vector.load %arg9[%c0_54, %c128] : memref<256x144xbf16, #tpu.memory_space<vmem>>, vector<256x16xbf16>
    tpu.vector_store %arg9[%c0_54, %c128], %29 {strides = array<i32>} : memref<256x144xbf16, #tpu.memory_space<vmem>>, vector<256x16xbf16>,
    %c0_55 = arith.constant 0 : index
    %c0_56 = arith.constant 0 : index
    %31 = vector.load %arg9[%c0_55, %c0_56] : memref<256x144xbf16, #tpu.memory_space<vmem>>, vector<256x144xbf16>
    %c0_57 = arith.constant 0 : index
    %c0_58 = arith.constant 0 : index
    %32 = vector.load %arg2[%c0_57, %c0_58] : memref<144x128xbf16, #tpu.memory_space<vmem>>, vector<144x128xbf16>
    %cst_59 = arith.constant dense<0.000000e+00> : vector<256x128xf32>
    %33 = tpu.matmul %31, %32, %cst_59 {dimension_numbers = #tpu.dot_dimension_numbers<[1], [0], [0], [1], [0, 0, 1, 1], [], []>} : vector<256x144xbf16>, vector<144x128xbf16>, vector<256x128xf32> -> vector<256x128xf32>
    %c0_60 = arith.constant 0 : index
    %c0_61 = arith.constant 0 : index
    %34 = vector.load %arg3[%c0_60, %c0_61] : memref<1x128xf32, #tpu.memory_space<vmem>>, vector<1x128xf32>
    %35 = vector.broadcast %34 : vector<1x128xf32> to vector<256x128xf32>
    %36 = arith.addf %33, %35 : vector<256x128xf32>
    %cst_62 = arith.constant 0.000000e+00 : f32
    %37 = vector.broadcast %cst_62 : f32 to vector<256x128xf32>
    %38 = arith.cmpf ogt, %36, %37 : vector<256x128xf32>
    %39 = math.exp %36 : vector<256x128xf32>
    %cst_63 = arith.constant 1.000000e+00 : f32
    %40 = vector.broadcast %cst_63 : f32 to vector<256x128xf32>
    %41 = arith.subf %39, %40 : vector<256x128xf32>
    %42 = arith.select %38, %36, %41 : vector<256x128xi1>, vector<256x128xf32>
    %cst_64 = arith.constant 0.000000e+00 : bf16
    %43 = vector.broadcast %cst_64 : bf16 to vector<1x1x18x128xbf16>
    %c0_65 = arith.constant 0 : index
    %c0_66 = arith.constant 0 : index
    %c0_67 = arith.constant 0 : index
    %c0_68 = arith.constant 0 : index
    %44 = vector.load %arg8[%c0_65, %c0_66, %c0_67, %c0_68] : memref<1x18x18x128xbf16, #tpu.memory_space<vmem>>, vector<1x1x18x128xbf16>
    tpu.vector_store %arg8[%c0_65, %c0_66, %c0_67, %c0_68], %43 {strides = array<i32>} : memref<1x18x18x128xbf16, #tpu.memory_space<vmem>>, vector<1x1x18x128xbf16>,
    %cst_69 = arith.constant 0.000000e+00 : bf16
    %45 = vector.broadcast %cst_69 : bf16 to vector<1x1x18x128xbf16>
    %c0_70 = arith.constant 0 : index
    %c17 = arith.constant 17 : index
    %c0_71 = arith.constant 0 : index
    %c0_72 = arith.constant 0 : index
    %46 = vector.load %arg8[%c0_70, %c17, %c0_71, %c0_72] : memref<1x18x18x128xbf16, #tpu.memory_space<vmem>>, vector<1x1x18x128xbf16>
    tpu.vector_store %arg8[%c0_70, %c17, %c0_71, %c0_72], %45 {strides = array<i32>} : memref<1x18x18x128xbf16, #tpu.memory_space<vmem>>, vector<1x1x18x128xbf16>,
    %cst_73 = arith.constant 0.000000e+00 : bf16
    %47 = vector.broadcast %cst_73 : bf16 to vector<1x18x1x128xbf16>
    %c0_74 = arith.constant 0 : index
    %c0_75 = arith.constant 0 : index
    %c0_76 = arith.constant 0 : index
    %c0_77 = arith.constant 0 : index
    %48 = vector.load %arg8[%c0_74, %c0_75, %c0_76, %c0_77] : memref<1x18x18x128xbf16, #tpu.memory_space<vmem>>, vector<1x18x1x128xbf16>
    tpu.vector_store %arg8[%c0_74, %c0_75, %c0_76, %c0_77], %47 {strides = array<i32>} : memref<1x18x18x128xbf16, #tpu.memory_space<vmem>>, vector<1x18x1x128xbf16>,
    %cst_78 = arith.constant 0.000000e+00 : bf16
    %49 = vector.broadcast %cst_78 : bf16 to vector<1x18x1x128xbf16>
    %c0_79 = arith.constant 0 : index
    %c0_80 = arith.constant 0 : index
    %c17_81 = arith.constant 17 : index
    %c0_82 = arith.constant 0 : index
    %50 = vector.load %arg8[%c0_79, %c0_80, %c17_81, %c0_82] : memref<1x18x18x128xbf16, #tpu.memory_space<vmem>>, vector<1x18x1x128xbf16>
    tpu.vector_store %arg8[%c0_79, %c0_80, %c17_81, %c0_82], %49 {strides = array<i32>} : memref<1x18x18x128xbf16, #tpu.memory_space<vmem>>, vector<1x18x1x128xbf16>,
    %51 = vector.shape_cast %42 : vector<256x128xf32> to vector<1x16x16x128xf32>
    %52 = arith.truncf %51 : vector<1x16x16x128xf32> to vector<1x16x16x128xbf16>
    %c0_83 = arith.constant 0 : index
    %c1_84 = arith.constant 1 : index
    %c1_85 = arith.constant 1 : index
    %c0_86 = arith.constant 0 : index
    %53 = vector.load %arg8[%c0_83, %c1_84, %c1_85, %c0_86] : memref<1x18x18x128xbf16, #tpu.memory_space<vmem>>, vector<1x16x16x128xbf16>
    tpu.vector_store %arg8[%c0_83, %c1_84, %c1_85, %c0_86], %52 {strides = array<i32>} : memref<1x18x18x128xbf16, #tpu.memory_space<vmem>>, vector<1x16x16x128xbf16>,
    %c0_87 = arith.constant 0 : index
    %c0_88 = arith.constant 0 : index
    %c0_89 = arith.constant 0 : index
    %c0_90 = arith.constant 0 : index
    %54 = vector.load %arg8[%c0_87, %c0_88, %c0_89, %c0_90] : memref<1x18x18x128xbf16, #tpu.memory_space<vmem>>, vector<1x16x16x128xbf16>
    %55 = vector.shape_cast %54 : vector<1x16x16x128xbf16> to vector<256x128xbf16>
    %c0_91 = arith.constant 0 : index
    %c0_92 = arith.constant 0 : index
    %56 = vector.load %arg10[%c0_91, %c0_92] : memref<256x1152xbf16, #tpu.memory_space<vmem>>, vector<256x128xbf16>
    tpu.vector_store %arg10[%c0_91, %c0_92], %55 {strides = array<i32>} : memref<256x1152xbf16, #tpu.memory_space<vmem>>, vector<256x128xbf16>,
    %c0_93 = arith.constant 0 : index
    %c0_94 = arith.constant 0 : index
    %c1_95 = arith.constant 1 : index
    %c0_96 = arith.constant 0 : index
    %57 = vector.load %arg8[%c0_93, %c0_94, %c1_95, %c0_96] : memref<1x18x18x128xbf16, #tpu.memory_space<vmem>>, vector<1x16x16x128xbf16>
    %58 = vector.shape_cast %57 : vector<1x16x16x128xbf16> to vector<256x128xbf16>
    %c0_97 = arith.constant 0 : index
    %c128_98 = arith.constant 128 : index
    %59 = vector.load %arg10[%c0_97, %c128_98] : memref<256x1152xbf16, #tpu.memory_space<vmem>>, vector<256x128xbf16>
    tpu.vector_store %arg10[%c0_97, %c128_98], %58 {strides = array<i32>} : memref<256x1152xbf16, #tpu.memory_space<vmem>>, vector<256x128xbf16>,
    %c0_99 = arith.constant 0 : index
    %c0_100 = arith.constant 0 : index
    %c2_101 = arith.constant 2 : index
    %c0_102 = arith.constant 0 : index
    %60 = vector.load %arg8[%c0_99, %c0_100, %c2_101, %c0_102] : memref<1x18x18x128xbf16, #tpu.memory_space<vmem>>, vector<1x16x16x128xbf16>
    %61 = vector.shape_cast %60 : vector<1x16x16x128xbf16> to vector<256x128xbf16>
    %c0_103 = arith.constant 0 : index
    %c256 = arith.constant 256 : index
    %62 = vector.load %arg10[%c0_103, %c256] : memref<256x1152xbf16, #tpu.memory_space<vmem>>, vector<256x128xbf16>
    tpu.vector_store %arg10[%c0_103, %c256], %61 {strides = array<i32>} : memref<256x1152xbf16, #tpu.memory_space<vmem>>, vector<256x128xbf16>,
    %c0_104 = arith.constant 0 : index
    %c1_105 = arith.constant 1 : index
    %c0_106 = arith.constant 0 : index
    %c0_107 = arith.constant 0 : index
    %63 = vector.load %arg8[%c0_104, %c1_105, %c0_106, %c0_107] : memref<1x18x18x128xbf16, #tpu.memory_space<vmem>>, vector<1x16x16x128xbf16>
    %64 = vector.shape_cast %63 : vector<1x16x16x128xbf16> to vector<256x128xbf16>
    %c0_108 = arith.constant 0 : index
    %c384 = arith.constant 384 : index
    %65 = vector.load %arg10[%c0_108, %c384] : memref<256x1152xbf16, #tpu.memory_space<vmem>>, vector<256x128xbf16>
    tpu.vector_store %arg10[%c0_108, %c384], %64 {strides = array<i32>} : memref<256x1152xbf16, #tpu.memory_space<vmem>>, vector<256x128xbf16>,
    %c0_109 = arith.constant 0 : index
    %c1_110 = arith.constant 1 : index
    %c1_111 = arith.constant 1 : index
    %c0_112 = arith.constant 0 : index
    %66 = vector.load %arg8[%c0_109, %c1_110, %c1_111, %c0_112] : memref<1x18x18x128xbf16, #tpu.memory_space<vmem>>, vector<1x16x16x128xbf16>
    %67 = vector.shape_cast %66 : vector<1x16x16x128xbf16> to vector<256x128xbf16>
    %c0_113 = arith.constant 0 : index
    %c512 = arith.constant 512 : index
    %68 = vector.load %arg10[%c0_113, %c512] : memref<256x1152xbf16, #tpu.memory_space<vmem>>, vector<256x128xbf16>
    tpu.vector_store %arg10[%c0_113, %c512], %67 {strides = array<i32>} : memref<256x1152xbf16, #tpu.memory_space<vmem>>, vector<256x128xbf16>,
    %c0_114 = arith.constant 0 : index
    %c1_115 = arith.constant 1 : index
    %c2_116 = arith.constant 2 : index
    %c0_117 = arith.constant 0 : index
    %69 = vector.load %arg8[%c0_114, %c1_115, %c2_116, %c0_117] : memref<1x18x18x128xbf16, #tpu.memory_space<vmem>>, vector<1x16x16x128xbf16>
    %70 = vector.shape_cast %69 : vector<1x16x16x128xbf16> to vector<256x128xbf16>
    %c0_118 = arith.constant 0 : index
    %c640 = arith.constant 640 : index
    %71 = vector.load %arg10[%c0_118, %c640] : memref<256x1152xbf16, #tpu.memory_space<vmem>>, vector<256x128xbf16>
    tpu.vector_store %arg10[%c0_118, %c640], %70 {strides = array<i32>} : memref<256x1152xbf16, #tpu.memory_space<vmem>>, vector<256x128xbf16>,
    %c0_119 = arith.constant 0 : index
    %c2_120 = arith.constant 2 : index
    %c0_121 = arith.constant 0 : index
    %c0_122 = arith.constant 0 : index
    %72 = vector.load %arg8[%c0_119, %c2_120, %c0_121, %c0_122] : memref<1x18x18x128xbf16, #tpu.memory_space<vmem>>, vector<1x16x16x128xbf16>
    %73 = vector.shape_cast %72 : vector<1x16x16x128xbf16> to vector<256x128xbf16>
    %c0_123 = arith.constant 0 : index
    %c768 = arith.constant 768 : index
    %74 = vector.load %arg10[%c0_123, %c768] : memref<256x1152xbf16, #tpu.memory_space<vmem>>, vector<256x128xbf16>
    tpu.vector_store %arg10[%c0_123, %c768], %73 {strides = array<i32>} : memref<256x1152xbf16, #tpu.memory_space<vmem>>, vector<256x128xbf16>,
    %c0_124 = arith.constant 0 : index
    %c2_125 = arith.constant 2 : index
    %c1_126 = arith.constant 1 : index
    %c0_127 = arith.constant 0 : index
    %75 = vector.load %arg8[%c0_124, %c2_125, %c1_126, %c0_127] : memref<1x18x18x128xbf16, #tpu.memory_space<vmem>>, vector<1x16x16x128xbf16>
    %76 = vector.shape_cast %75 : vector<1x16x16x128xbf16> to vector<256x128xbf16>
    %c0_128 = arith.constant 0 : index
    %c896 = arith.constant 896 : index
    %77 = vector.load %arg10[%c0_128, %c896] : memref<256x1152xbf16, #tpu.memory_space<vmem>>, vector<256x128xbf16>
    tpu.vector_store %arg10[%c0_128, %c896], %76 {strides = array<i32>} : memref<256x1152xbf16, #tpu.memory_space<vmem>>, vector<256x128xbf16>,
    %c0_129 = arith.constant 0 : index
    %c2_130 = arith.constant 2 : index
    %c2_131 = arith.constant 2 : index
    %c0_132 = arith.constant 0 : index
    %78 = vector.load %arg8[%c0_129, %c2_130, %c2_131, %c0_132] : memref<1x18x18x128xbf16, #tpu.memory_space<vmem>>, vector<1x16x16x128xbf16>
    %79 = vector.shape_cast %78 : vector<1x16x16x128xbf16> to vector<256x128xbf16>
    %c0_133 = arith.constant 0 : index
    %c1024 = arith.constant 1024 : index
    %80 = vector.load %arg10[%c0_133, %c1024] : memref<256x1152xbf16, #tpu.memory_space<vmem>>, vector<256x128xbf16>
    tpu.vector_store %arg10[%c0_133, %c1024], %79 {strides = array<i32>} : memref<256x1152xbf16, #tpu.memory_space<vmem>>, vector<256x128xbf16>,
    %c0_134 = arith.constant 0 : index
    %c0_135 = arith.constant 0 : index
    %81 = vector.load %arg10[%c0_134, %c0_135] : memref<256x1152xbf16, #tpu.memory_space<vmem>>, vector<256x1152xbf16>
    %c0_136 = arith.constant 0 : index
    %c0_137 = arith.constant 0 : index
    %82 = vector.load %arg4[%c0_136, %c0_137] : memref<1152x128xbf16, #tpu.memory_space<vmem>>, vector<1152x128xbf16>
    %cst_138 = arith.constant dense<0.000000e+00> : vector<256x128xf32>
    %83 = tpu.matmul %81, %82, %cst_138 {dimension_numbers = #tpu.dot_dimension_numbers<[1], [0], [0], [1], [0, 0, 1, 1], [], []>} : vector<256x1152xbf16>, vector<1152x128xbf16>, vector<256x128xf32> -> vector<256x128xf32>
    %c0_139 = arith.constant 0 : index
    %c0_140 = arith.constant 0 : index
    %84 = vector.load %arg5[%c0_139, %c0_140] : memref<1x128xf32, #tpu.memory_space<vmem>>, vector<1x128xf32>
    %85 = vector.broadcast %84 : vector<1x128xf32> to vector<256x128xf32>
    %86 = arith.addf %83, %85 : vector<256x128xf32>
    %cst_141 = arith.constant 0.000000e+00 : f32
    %87 = vector.broadcast %cst_141 : f32 to vector<256x128xf32>
    %88 = arith.cmpf ogt, %86, %87 : vector<256x128xf32>
    %89 = math.exp %86 : vector<256x128xf32>
    %cst_142 = arith.constant 1.000000e+00 : f32
    %90 = vector.broadcast %cst_142 : f32 to vector<256x128xf32>
    %91 = arith.subf %89, %90 : vector<256x128xf32>
    %92 = arith.select %88, %86, %91 : vector<256x128xi1>, vector<256x128xf32>
    %93 = vector.shape_cast %92 : vector<256x128xf32> to vector<1x16x16x128xf32>
    %94 = arith.truncf %93 : vector<1x16x16x128xf32> to vector<1x16x16x128xbf16>
    %c0_143 = arith.constant 0 : index
    %c0_144 = arith.constant 0 : index
    %c0_145 = arith.constant 0 : index
    %c0_146 = arith.constant 0 : index
    %95 = vector.load %arg6[%c0_143, %c0_144, %c0_145, %c0_146] : memref<1x16x16x128xbf16, #tpu.memory_space<vmem>>, vector<1x16x16x128xbf16>
    tpu.vector_store %arg6[%c0_143, %c0_144, %c0_145, %c0_146], %94 {strides = array<i32>} : memref<1x16x16x128xbf16, #tpu.memory_space<vmem>>, vector<1x16x16x128xbf16>,
    return
  }
  func.func @transform_0(%arg0: i32) -> (i32, i32, i32, i32) {
    %c0_i32 = arith.constant 0 : i32
    %c0_i32_0 = arith.constant 0 : i32
    %c0_i32_1 = arith.constant 0 : i32
    %c0_i32_2 = arith.constant 0 : i32
    return %arg0, %c0_i32, %c0_i32_0, %c0_i32_1 : i32, i32, i32, i32
  }
  func.func @transform_1(%arg0: i32) -> (i32, i32) {
    %c0_i32 = arith.constant 0 : i32
    %c0_i32_0 = arith.constant 0 : i32
    %c0_i32_1 = arith.constant 0 : i32
    return %c0_i32, %c0_i32_0 : i32, i32
  }
  func.func @transform_2(%arg0: i32) -> (i32, i32) {
    %c0_i32 = arith.constant 0 : i32
    %c0_i32_0 = arith.constant 0 : i32
    %c0_i32_1 = arith.constant 0 : i32
    return %c0_i32, %c0_i32_0 : i32, i32
  }
  func.func @transform_3(%arg0: i32) -> (i32, i32) {
    %c0_i32 = arith.constant 0 : i32
    %c0_i32_0 = arith.constant 0 : i32
    %c0_i32_1 = arith.constant 0 : i32
    return %c0_i32, %c0_i32_0 : i32, i32
  }
  func.func @transform_4(%arg0: i32) -> (i32, i32) {
    %c0_i32 = arith.constant 0 : i32
    %c0_i32_0 = arith.constant 0 : i32
    %c0_i32_1 = arith.constant 0 : i32
    return %c0_i32, %c0_i32_0 : i32, i32
  }
  func.func @transform_5(%arg0: i32) -> (i32, i32, i32, i32) {
    %c0_i32 = arith.constant 0 : i32
    %c0_i32_0 = arith.constant 0 : i32
    %c0_i32_1 = arith.constant 0 : i32
    %c0_i32_2 = arith.constant 0 : i32
    return %arg0, %c0_i32, %c0_i32_0, %c0_i32_1 : i32, i32, i32, i32
  }
}

</mosaic_0001>

<bundles_post_ra>
// kernel: conv_block_forward.1
= control target key start
LH: loop header
LB: loop body
LE: loop exit
PB: predicated region body
PF: predicated region fallthrough
CT: control target
= control target key end

     0   :  { %10 = vsyncpa [#allocation7], 0  ;;  %s11993_s18 = smov 0   ;;  %s15895_s0 = inlined_call_operand.vmem [shape: bf16[2,16,16,4], index: 0, kind: input, shape index: {}]   ;;  %s15896_s1 = inlined_call_operand.vmem [shape: bf16[144,128], index: 1, kind: input, shape index: {}]   ;;  %s15897_s2 = inlined_call_operand.vmem [shape: f32[1,128], index: 2, kind: input, shape index: {}]   ;;  %s15898_s3 = inlined_call_operand.hbm [shape: bf16[1152,128], index: 3, kind: input, shape index: {}]   ;;  %s15899_s4 = inlined_call_operand.vmem [shape: f32[1,128], index: 4, kind: input, shape index: {}]   ;;  %s15900_s5 = inlined_call_operand.vmem [shape: bf16[2,16,16,128], index: 5, kind: output, shape index: {}]  }
   0x1 LB: > { %s174_s21 = sshll.u32 %s15898_s3, 4  ;;  %s12002_s22 = sadd.s32 4294967295, %s11950_s18   ;;  %s11950_s18 = sphi %s11993_s18, %s16_s18   ;;  %s175_s21 = int_to_ptr.hbm [resolvable:$true] %s174_s21 }
   0x2   : > { %p10150_p0 = scmp.ge.s32.totalorder %s11950_s18, 1  ;;  %p157_p1 = scmp.lt.s32.totalorder %s11950_s18, 3 }
   0x3   : > { %p11744_p2 = scmp.eq.s32.totalorder %s12002_s22, 0  ;;  %s11952_s23 = smov [#allocation6]  }
   0x4   : > { %p158_p3 = pnand %p10150_p0, %p157_p1  ;;  %s176_s24 = sshll.u32 %s11952_s23, 4  ;;  %s177_s24 = int_to_ptr.vmem [resolvable:$true] %s176_s24 }
   0x5   : > { %s11953_s25 = smov 64   ;;  %s11954_s26 = smov 4  }
   0x6   : > { %p11740_p4 = pneg %p158_p3  ;;  %203 = sbr.rel (%p158_p3) target bundleno = 1668 (0x684), region = 40 }
   0x8   : > { %p11741_p5 = pnand %p11744_p2, %p11740_p4 }
   0xa   : > { %11743 = dma.hbm_to_vmem [thread:$0]  (!%p11741_p5), %s175_s21, 9216, %s177_s24, [#allocation7], %s11953_s25, %s11953_s25, %s11954_s26  }
   0xb   : > { %11945 = dma.done.wait (%p11744_p2), [#allocation7], 9216  }
   0xc   : > { %11947 = vsyncadd (%p11744_p2), [#allocation7], 4294958080  ;;  %vm243_vm0 = vcmask 125952   ;;  %v11955_v0 = vmov 0   ;;  %vm1497_vm1 = vcmask 1042432   ;;  %vm1498_vm2 = vcmask 1046532  }
   0xd   : > { %244 = vst.msk [vmem:[#allocation2] sm:$0xf] %vm243_vm0, %v11955_v0  ;;  %vm12025_vm3 = vmor %vm1497_vm1, %vm1498_vm2  ;;  %vm885_vm4 = vsmask.f32 3328  ;;  %vm886_vm5 = vsmask.f32 7440 }
   0xe   : > { %245 = vst.msk [vmem:[#allocation2 + $0x4] sm:$0xf] %vm243_vm0, %v11955_v0  ;;  %s11956_s27 = smov 32   ;;  %vm12051_vm6 = vmor %vm885_vm4, %vm886_vm5  ;;  %s11957_s28 = smov 16   ;;  %vm246_vm7 = vcmask 122880   ;;  %vm15905_vm8 = vcmask 27648  }
   0xf   : > { %248 = vst.msk [vmem:[#allocation2 + $0xc] sm:$0xf] %vm243_vm0, %v11955_v0  ;;  %p232_p6 = scmp.lt.s32.totalorder %s12002_s22, 1  ;;  %vm15901_vm9 = vsmask.f32 7938  ;;  %vm663_vm12 = vcmask 24576  }
  0x10   : > { %249 = vst.msk [vmem:[#allocation2 + $0x10] sm:$0xf] %vm243_vm0, %v11955_v0  ;;  %vm331_vm10 = vsmask.f32 256  ;;  %vm332_vm11 = vsmask.f32 4368  ;;  %vm12159_vm13 = vmand %vm15905_vm8, %vm15901_vm9 }
  0x11   : > { %251 = vst.msk [vmem:[#allocation2 + $0x18] sm:$0xf] %vm243_vm0, %v11955_v0  ;;  %s16249_s22 = smov (!%p232_p6, %s12002_s22), 1  ;;  %vm12168_vm14 = vmor %vm331_vm10, %vm332_vm11  ;;  %s11958_s8 = smov 96   ;;  %vm4111_vm1 = vcmask 130048   ;;  %vm15906_vm2 = vcmask 257152  }
  0x12   : > { %252 = vst.msk [vmem:[#allocation2 + $0x1c] sm:$0xf] %vm243_vm0, %v11955_v0  ;;  %s11365_s29 = sshll.u32 %s16249_s22, 7  ;;  %vm12175_vm15 = vmand %vm663_vm12, %vm331_vm10  ;;  %s11959_s9 = smov 48   ;;  %vm15904_vm4 = vcmask 388352   ;;  %vm1901_vm5 = vcmask 519552  }
  0x13   : > { %254 = vst.msk [vmem:[#allocation2 + $0x24] sm:$0xf] %vm243_vm0, %v11955_v0  ;;  %s12113_s7 = scalar_lea.vmem %s15895_s0, %s11365_s29  ;;  %s11960_s10 = smov 80   ;;  %vm15902_vm11 = vcmask 781952   ;;  %vm2993_vm12 = vcmask 913152   ;;  %vm15903_vm9 = vcmask 1044352  }
  0x14   : > { %v1401_v1 = vld [vmem:[#allocation2] sm:$0xe]  ;;  %255 = vst.msk [vmem:[#allocation2 + $0x28] sm:$0xf] %vm243_vm0, %v11955_v0  ;;  %v301_v20 = vld [vmem:[%s12113_s7 + $0x8] sm:$0xf]  ;;  %s15590_s13 = scalar_lea.vmem %s15900_s5, %s11365_s29 }
  0x15   : > { %v837_v2 = vld [vmem:[#allocation2] sm:$0xf]  ;;  %v12023_v3 = vld [vmem:[#allocation2 + $0x4] sm:$0xf]  ;;  %v10159_v5 = vrot.slane %v1401_v1, 9  ;;  %v352_v23 = vshrl.u32 %v301_v20, 16 }
  0x16   : > { %257 = vst.msk [vmem:[#allocation2 + $0x30] sm:$0xf] %vm243_vm0, %v11955_v0  ;;  %v889_v6 = vshrl.u32 %v837_v2, 16  ;;  %v1502_v7 = vrot.slane %v12023_v3, 5  ;;  %v838_v8 = vld [vmem:[#allocation2 + $0x4] sm:$0xf] }
  0x17   : > { %258 = vst.msk [vmem:[#allocation2 + $0x34] sm:$0xf] %vm243_vm0, %v11955_v0  ;;  %v892_v9 = vshll.u32 %v837_v2, 16  ;;  %v898_v11 = vshll.u32 %v838_v8, 16  ;;  %v902_v19 = vshrl.u32 %v838_v8, 16  ;;  %v354_v30 = vrot.slane %v352_v23, 7 }
  0x18   : > { %260 = vst.msk [vmem:[#allocation2 + $0x3c] sm:$0xf] %vm243_vm0, %v11955_v0  ;;  %v891_v10 = vrot.slane %v889_v6, 4  ;;  %v1503_v12 = vsel %vm12025_vm3, %v10159_v5, %v1502_v7  ;;  %v299_v21 = vld [vmem:[%s12113_s7] sm:$0xf]  ;;  %v1504_v29 = vrot.slane %v1502_v7, 4 }
  0x19   : > { %261 = vst.msk [vmem:[#allocation2 + $0x40] sm:$0xf] %vm243_vm0, %v11955_v0  ;;  %v894_v13 = vrot.slane %v892_v9, 5  ;;  %1612 = vrot.lane.b32.xlu1 %v1503_v12, %s11956_s27  ;;  %v12047_v15 = vrot.slane %v898_v11, 5  ;;  %v904_v22 = vrot.slane %v902_v19, 4  ;;  %v335_v25 = vshrl.u32 %v299_v21, 16 }
  0x1a   : > { %263 = vst.msk [vmem:[#allocation2 + $0x48] sm:$0xf] %vm243_vm0, %v11955_v0  ;;  %v300_v24 = vld [vmem:[%s12113_s7 + $0x4] sm:$0xf]  ;;  %v302_v26 = vld [vmem:[%s12113_s7 + $0xc] sm:$0xf] }
  0x1b   : > { %264 = vst.msk [vmem:[#allocation2 + $0x4c] sm:$0xf] %vm243_vm0, %v11955_v0  ;;  %v895_v14 = vor.u32 %v894_v13, %v891_v10  ;;  %v905_v27 = vor.u32 %v904_v22, %v12047_v15  ;;  %v343_v28 = vshrl.u32 %v300_v24, 16  ;;  %v355_v31 = vshll.u32 %v301_v20, 16  ;;  %v668_v49 = vld [vmem:[#allocation2 + $0x18] sm:$0xf] }
  0x1c   : > { %266 = vst.msk [vmem:[#allocation2 + $0x54] sm:$0xf] %vm243_vm0, %v11955_v0  ;;  %v337_v32 = vrot.slane %v335_v25, 7  ;;  %v346_v33 = vshll.u32 %v300_v24, 16  ;;  %v360_v34 = vshrl.u32 %v302_v26, 16  ;;  %v338_v43 = vshll.u32 %v299_v21, 16 }
  0x1d   : > { %267 = vst.msk [vmem:[#allocation2 + $0x58] sm:$0xf] %vm243_vm0, %v11955_v0  ;;  %v896_v17 = vrot.slane %v895_v14, 4  ;;  %v906_v38 = vrot.slane %v905_v27, 4  ;;  %v345_v40 = vrot.slane %v343_v28, 7  ;;  %v357_v44 = vor.u32 %v355_v31, %v354_v30  ;;  %s11961_s11 = smov 64  }
  0x1e   : > { %269 = vst.msk [vmem:[#allocation2 + $0x60] sm:$0xf] %vm243_vm0, %v11955_v0  ;;  %v362_v45 = vrot.slane %v360_v34, 7  ;;  %v363_v46 = vshll.u32 %v302_v26, 16  ;;  %v341_v50 = vrot.slane %v337_v32, 4  ;;  %v340_v56 = vor.u32 %v338_v43, %v337_v32  ;;  %s11962_s12 = smov 112  }
  0x1f   : > { %270 = vst.msk [vmem:[#allocation2 + $0x64] sm:$0xf] %vm243_vm0, %v11955_v0  ;;  %v901_v18 = vsel %vm12051_vm6, %v896_v17, %v12047_v15  ;;  %v348_v51 = vor.u32 %v346_v33, %v345_v40  ;;  %v350_v53 = vrot.slane %v345_v40, 4  ;;  %v358_v57 = vrot.slane %v354_v30, 4  ;;  %v658_v59 = vld [vmem:[#allocation2 + $0xc] sm:$0xf] }
  0x20   : > { %272 = vst.msk [vmem:[#allocation2 + $0x6c] sm:$0xf] %vm243_vm0, %v11955_v0  ;;  %1272 = vrot.lane.b32.xlu0 %v901_v18, %s11957_s28  ;;  %v669_v58 = vsel %vm12159_vm13, %v357_v44, %v668_v49  ;;  %v365_v60 = vor.u32 %v363_v46, %v362_v45  ;;  %v367_v62 = vrot.slane %v362_v45, 4  ;;  %v659_v2 = vsel %vm12159_vm13, %v340_v56, %v658_v59  ;;  %v303_v59 = vld [vmem:[%s12113_s7 + $0x10] sm:$0xf] }
  0x21   : > { %273 = vst.msk [vmem:[#allocation2 + $0x70] sm:$0xf] %vm243_vm0, %v11955_v0  ;;  %v349_v61 = vsel %vm12168_vm14, %v341_v50, %v348_v51 }
  0x22   : > { %275 = vst.msk [vmem:[#allocation2 + $0x78] sm:$0xf] %vm243_vm0, %v11955_v0  ;;  %v366_v3 = vsel %vm12168_vm14, %v358_v57, %v365_v60 }
  0x23   : > { %276 = vst.msk [vmem:[#allocation2 + $0x7c] sm:$0xf] %vm243_vm0, %v11955_v0 }
  0x24   : > { %278 = vst.msk [vmem:[#allocation2 + $0x84] sm:$0xf] %vm243_vm0, %v11955_v0 }
  0x25   : > { %279 = vst.msk [vmem:[#allocation2 + $0x88] sm:$0xf] %vm243_vm0, %v11955_v0 }
  0x26   : > { %281 = vst.msk [vmem:[#allocation2 + $0x90] sm:$0xf] %vm243_vm0, %v11955_v0 }
  0x27   : > { %282 = vst.msk [vmem:[#allocation2 + $0x94] sm:$0xf] %vm243_vm0, %v11955_v0 }
  0x28   : > { %284 = vst.msk [vmem:[#allocation2 + $0x9c] sm:$0xf] %vm243_vm0, %v11955_v0 }
  0x29   : > { %285 = vst.msk [vmem:[#allocation2 + $0xa0] sm:$0xf] %vm243_vm0, %v11955_v0 }
  0x2a   : > { %287 = vst.msk [vmem:[#allocation2 + $0xa8] sm:$0xf] %vm243_vm0, %v11955_v0 }
  0x2b   : > { %288 = vst.msk [vmem:[#allocation2 + $0xac] sm:$0xf] %vm243_vm0, %v11955_v0 }
  0x2c   : > { %290 = vst.msk [vmem:[#allocation2 + $0xb4] sm:$0xf] %vm243_vm0, %v11955_v0 }
  0x2d   : > { %291 = vst.msk [vmem:[#allocation2 + $0xb8] sm:$0xf] %vm243_vm0, %v11955_v0 }
  0x2e   : > { %293 = vst.msk [vmem:[#allocation2 + $0xc0] sm:$0xf] %vm243_vm0, %v11955_v0 }
  0x2f   : > { %294 = vst.msk [vmem:[#allocation2 + $0xc4] sm:$0xf] %vm243_vm0, %v11955_v0 }
  0x30   : > { %296 = vst.msk [vmem:[#allocation2 + $0xcc] sm:$0xf] %vm243_vm0, %v11955_v0 }
  0x31   : > { %297 = vst.msk [vmem:[#allocation2 + $0xd0] sm:$0xf] %vm243_vm0, %v11955_v0 }
  0x32   : > { %4498 = vst [vmem:[#allocation3] sm:$0xf] %v11955_v0 }
  0x33   : > { %4499 = vst [vmem:[#allocation3 + $0x4] sm:$0xf] %v11955_v0 }
  0x34   : > { %4500 = vst [vmem:[#allocation3 + $0x8] sm:$0x1] %v11955_v0 }
  0x35   : > { %4502 = vst [vmem:[#allocation3 + $0xcc] sm:$0xf] %v11955_v0 }
  0x36   : > { %4503 = vst [vmem:[#allocation3 + $0xd0] sm:$0xf] %v11955_v0 }
  0x37   : > { %4504 = vst [vmem:[#allocation3 + $0xd4] sm:$0x1] %v11955_v0 }
  0x38   : > { %247 = vst.msk [vmem:[#allocation2 + $0x8] sm:$0x1] %vm246_vm7, %v11955_v0 }
  0x39   : > { %250 = vst.msk [vmem:[#allocation2 + $0x14] sm:$0x1] %vm246_vm7, %v11955_v0 }
  0x3a   : > { %253 = vst.msk [vmem:[#allocation2 + $0x20] sm:$0x1] %vm246_vm7, %v11955_v0 }
  0x3b   : > { %256 = vst.msk [vmem:[#allocation2 + $0x2c] sm:$0x1] %vm246_vm7, %v11955_v0 }
  0x3c   : > { %259 = vst.msk [vmem:[#allocation2 + $0x38] sm:$0x1] %vm246_vm7, %v11955_v0 }
  0x3d   : > { %262 = vst.msk [vmem:[#allocation2 + $0x44] sm:$0x1] %vm246_vm7, %v11955_v0 }
  0x3e   : > { %265 = vst.msk [vmem:[#allocation2 + $0x50] sm:$0x1] %vm246_vm7, %v11955_v0 }
  0x3f   : > { %v1403_v35 = vld [vmem:[#allocation2 + $0x8] sm:$0x1]  ;;  %268 = vst.msk [vmem:[#allocation2 + $0x5c] sm:$0x1] %vm246_vm7, %v11955_v0 }
  0x40   : > { %v839_v36 = vld [vmem:[#allocation2 + $0x8] sm:$0x1]  ;;  %v1505_v37 = vrot.slane %v1403_v35, 5  ;;  %271 = vst.msk [vmem:[#allocation2 + $0x68] sm:$0x1] %vm246_vm7, %v11955_v0 }
  0x41   : > { %v908_v39 = vshll.u32 %v839_v36, 16  ;;  %274 = vst.msk [vmem:[#allocation2 + $0x74] sm:$0x1] %vm246_vm7, %v11955_v0  ;;  %v665_v55 = vld [vmem:[#allocation2 + $0x14] sm:$0x1] }
  0x42   : > { %v1506_v41 = vsel %vm12025_vm3, %v1504_v29, %v1505_v37  ;;  %277 = vst.msk [vmem:[#allocation2 + $0x80] sm:$0x1] %vm246_vm7, %v11955_v0  ;;  %v666_v63 = vsel %vm12175_vm15, %v350_v53, %v665_v55  ;;  %v672_v1 = vld [vmem:[#allocation2 + $0x20] sm:$0x1] }
  0x43   : > { %v910_v42 = vrot.slane %v908_v39, 5  ;;  %1614 = vrot.lane.b32.xlu1 %v1506_v41, %s11956_s27  ;;  %280 = vst.msk [vmem:[#allocation2 + $0x8c] sm:$0x1] %vm246_vm7, %v11955_v0  ;;  %v673_v5 = vsel %vm12175_vm15, %v367_v62, %v672_v1 }
  0x44   : > { %283 = vst.msk [vmem:[#allocation2 + $0x98] sm:$0x1] %vm246_vm7, %v11955_v0 }
  0x45   : > { %v911_v47 = vsel %vm12051_vm6, %v906_v38, %v910_v42  ;;  %286 = vst.msk [vmem:[#allocation2 + $0xa4] sm:$0x1] %vm246_vm7, %v11955_v0 }
  0x46   : > { %1274 = vrot.lane.b32.xlu0 %v911_v47, %s11957_s28  ;;  %289 = vst.msk [vmem:[#allocation2 + $0xb0] sm:$0x1] %vm246_vm7, %v11955_v0 }
  0x47   : > { %292 = vst.msk [vmem:[#allocation2 + $0xbc] sm:$0x1] %vm246_vm7, %v11955_v0 }
  0x48   : > { %295 = vst.msk [vmem:[#allocation2 + $0xc8] sm:$0x1] %vm246_vm7, %v11955_v0 }
  0x49   : > { %298 = vst.msk [vmem:[#allocation2 + $0xd4] sm:$0x1] %vm246_vm7, %v11955_v0  ;;  %vm2462_vm7 = vcmask 650752  }
  0x4a   : > { %670 = vst [vmem:[#allocation2 + $0x18] sm:$0xf] %v669_v58 }
  0x4b   : > { %662 = vst.msk [vmem:[#allocation2 + $0x10] sm:$0xf] %vm15905_vm8, %v349_v61 }
  0x4c   : > { %667 = vst [vmem:[#allocation2 + $0x14] sm:$0x1] %v666_v63  ;;  %v304_v63 = vld [vmem:[%s12113_s7 + $0x14] sm:$0xf] }
  0x4d   : > { %660 = vst [vmem:[#allocation2 + $0xc] sm:$0xf] %v659_v2 }
  0x4e   : > { %671 = vst.msk [vmem:[#allocation2 + $0x1c] sm:$0xf] %vm15905_vm8, %v366_v3 }
  0x4f   : > { %674 = vst [vmem:[#allocation2 + $0x20] sm:$0x1] %v673_v5  ;;  %v369_v5 = vshrl.u32 %v303_v59, 16 }
  0x51   : > { %v2833_v0 = vld [vmem:[#allocation2 + $0x18] sm:$0xf] }
  0x52   : > { %v3026_v6 = vld [vmem:[#allocation2 + $0x18] sm:$0xf]  ;;  %2897 = vrot.lane.b32.xlu1 %v2833_v0, %s11958_s8  ;;  %v12200_v7 = vld [vmem:[#allocation2 + $0x10] sm:$0xf] }
  0x53   : > { %v1935_v8 = vld [vmem:[#allocation2 + $0x10] sm:$0xf]  ;;  %v3075_v9 = vshrl.u32 %v3026_v6, 16  ;;  %v2497_v10 = vld [vmem:[#allocation2 + $0x14] sm:$0x1]  ;;  %v2593_v11 = vrot.slane %v12200_v7, 5 }
  0x54   : > { %v1936_v12 = vld [vmem:[#allocation2 + $0x14] sm:$0x1]  ;;  %v1992_v13 = vshll.u32 %v1935_v8, 16  ;;  %v2596_v14 = vrot.slane %v2497_v10, 5  ;;  %v1996_v15 = vshrl.u32 %v1935_v8, 16  ;;  %v3078_v19 = vshll.u32 %v3026_v6, 16 }
  0x55   : > { %v2002_v17 = vshll.u32 %v1936_v12, 16  ;;  %v1934_v18 = vld [vmem:[#allocation2 + $0xc] sm:$0xf]  ;;  %v2595_v20 = vrot.slane %v2593_v11, 4  ;;  %v3027_v26 = vld [vmem:[#allocation2 + $0x1c] sm:$0xf] }
  0x56   : > { %v1994_v21 = vrot.slane %v1992_v13, 5  ;;  %v1983_v22 = vshrl.u32 %v1934_v18, 16  ;;  %v1986_v23 = vshll.u32 %v1934_v18, 16  ;;  %v1741_v24 = vld [vmem:[#allocation2 + $0xc] sm:$0xf]  ;;  %v1998_v25 = vrot.slane %v1996_v15, 4 }
  0x57   : > { %1805 = vrot.lane.b32.xlu2 %v1741_v24, %s11959_s9  ;;  %v2597_v27 = vsel %vm12025_vm3, %v2595_v20, %v2596_v14  ;;  %v3028_v30 = vld [vmem:[#allocation2 + $0x20] sm:$0x1]  ;;  %v3084_v31 = vshll.u32 %v3027_v26, 16  ;;  %v2004_v33 = vrot.slane %v2002_v17, 5  ;;  %v3088_v34 = vshrl.u32 %v3027_v26, 16 }
  0x58   : > { %v1985_v28 = vrot.slane %v1983_v22, 4  ;;  %v1988_v29 = vrot.slane %v1986_v23, 5  ;;  %2705 = vrot.lane.b32.xlu0 %v2597_v27, %s11960_s10  ;;  %v1999_v32 = vor.u32 %v1998_v25, %v1994_v21  ;;  %v3077_v37 = vrot.slane %v3075_v9, 4  ;;  %v841_v42 = vld [vmem:[#allocation2 + $0x10] sm:$0xf] }
  0x59   : > { %v3086_v36 = vrot.slane %v3084_v31, 5  ;;  %v3080_v38 = vrot.slane %v3078_v19, 5  ;;  %v3090_v40 = vrot.slane %v3088_v34, 4  ;;  %v3094_v41 = vshll.u32 %v3028_v30, 16  ;;  %v1742_v44 = vld [vmem:[#allocation2 + $0x10] sm:$0xf] }
  0x5a   : > { %v1989_v35 = vor.u32 %v1988_v29, %v1985_v28  ;;  %v2000_v39 = vrot.slane %v1999_v32, 4  ;;  %v922_v50 = vshll.u32 %v841_v42, 16  ;;  %v926_v51 = vshrl.u32 %v841_v42, 16  ;;  %v1404_v56 = vld [vmem:[#allocation2 + $0xc] sm:$0xe] }
  0x5b   : > { %v3091_v46 = vor.u32 %v3090_v40, %v3086_v36  ;;  %v3081_v49 = vor.u32 %v3080_v38, %v3077_v37  ;;  %v3096_v55 = vrot.slane %v3094_v41, 5  ;;  %v842_v57 = vld [vmem:[#allocation2 + $0x14] sm:$0x1]  ;;  %v840_v58 = vld [vmem:[#allocation2 + $0xc] sm:$0xf]  ;;  %v377_v9 = vshrl.u32 %v304_v63, 16 }
  0x5c   : > { %v1990_v43 = vrot.slane %v1989_v35, 4  ;;  %v2005_v45 = vsel %vm12051_vm6, %v2000_v39, %v2004_v33  ;;  %v12217_v61 = vrot.slane %v922_v50, 5  ;;  %v928_v62 = vrot.slane %v926_v51, 4  ;;  %v12222_v2 = vld [vmem:[#allocation2 + $0x10] sm:$0xf] }
  0x5d   : > { %2368 = vrot.lane.b32.xlu1 %v2005_v45, %s11961_s11  ;;  %v3092_v53 = vrot.slane %v3091_v46, 4  ;;  %v3082_v60 = vrot.slane %v3081_v49, 4  ;;  %v913_v3 = vshrl.u32 %v840_v58, 16  ;;  %v2834_v0 = vld [vmem:[#allocation2 + $0x1c] sm:$0xf]  ;;  %v916_v8 = vshll.u32 %v840_v58, 16 }
  0x5e   : > { %v1995_v47 = vsel %vm12051_vm6, %v1990_v43, %v1994_v21  ;;  %v2495_v6 = vld [vmem:[#allocation2 + $0xc] sm:$0xe]  ;;  %v10160_v10 = vrot.slane %v1404_v56, 9  ;;  %v932_v12 = vshll.u32 %v842_v57, 16  ;;  %v371_v13 = vrot.slane %v369_v5, 7 }
  0x5f   : > { %1807 = vrot.lane.b32.xlu2 %v1742_v44, %s11959_s9  ;;  %v3097_v1 = vsel %vm12051_vm6, %v3092_v53, %v3096_v55  ;;  %v380_v14 = vshll.u32 %v304_v63, 16  ;;  %v3087_v15 = vsel %vm12051_vm6, %v3082_v60, %v3086_v36  ;;  %v929_v17 = vor.u32 %v928_v62, %v12217_v61  ;;  %v675_v24 = vld [vmem:[#allocation2 + $0x24] sm:$0xf]  ;;  %v679_v29 = vld [vmem:[#allocation2 + $0x2c] sm:$0x1] }
  0x60   : > { %2366 = vrot.lane.b32.xlu0 %v1995_v47, %s11961_s11  ;;  %v379_v18 = vrot.slane %v377_v9, 7  ;;  %v372_v19 = vshll.u32 %v303_v59, 16  ;;  %v1509_v20 = vrot.slane %v12222_v2, 5  ;;  %v10175_v21 = vrot.slane %v2495_v6, 9  ;;  %v1938_v32 = vld [vmem:[#allocation2 + $0x1c] sm:$0xf] }
  0x61   : > { %v915_v22 = vrot.slane %v913_v3, 4  ;;  %v375_v23 = vrot.slane %v371_v13, 4  ;;  %v918_v25 = vrot.slane %v916_v8, 5  ;;  %v930_v30 = vrot.slane %v929_v17, 4  ;;  %v1937_v42 = vld [vmem:[#allocation2 + $0x18] sm:$0xf] }
  0x62   : > { %v382_v26 = vor.u32 %v380_v14, %v379_v18  ;;  %v384_v27 = vrot.slane %v379_v18, 4  ;;  %v374_v28 = vor.u32 %v372_v19, %v371_v13  ;;  %v934_v31 = vrot.slane %v932_v12, 5  ;;  %v1939_v44 = vld [vmem:[#allocation2 + $0x20] sm:$0x1]  ;;  %v1744_v47 = vld [vmem:[#allocation2 + $0x1c] sm:$0xf] }
  0x63   : > { %v1510_v35 = vsel %vm12025_vm3, %v10160_v10, %v1509_v20  ;;  %v2594_v36 = vsel %vm12025_vm3, %v10175_v21, %v2593_v11  ;;  %v919_v37 = vor.u32 %v918_v25, %v915_v22  ;;  %v2016_v39 = vshll.u32 %v1938_v32, 16  ;;  %v2498_v49 = vld [vmem:[#allocation2 + $0x18] sm:$0xe]  ;;  %v12251_v50 = vld [vmem:[#allocation2 + $0x1c] sm:$0xf] }
  0x64   : > { %v383_v33 = vsel %vm12168_vm14, %v375_v23, %v382_v26  ;;  %v676_v34 = vsel %vm12159_vm13, %v374_v28, %v675_v24  ;;  %v680_v38 = vsel %vm12175_vm15, %v384_v27, %v679_v29  ;;  %v2020_v40 = vshrl.u32 %v1938_v32, 16  ;;  %v1406_v56 = vld [vmem:[#allocation2 + $0x14] sm:$0x1]  ;;  %v1743_v57 = vld [vmem:[#allocation2 + $0x18] sm:$0xf]  ;;  %v12280_v32 = vld [vmem:[%s15896_s1 + $0x40] sm:$0xff] }
  0x65   : > { %3460 = vrot.lane.b32.xlu1 %v3097_v1, %s11962_s12  ;;  %678 = vst.msk [vmem:[#allocation2 + $0x28] sm:$0xf] %vm15905_vm8, %v383_v33  ;;  %v935_v41 = vsel %vm12051_vm6, %v930_v30, %v934_v31  ;;  %v920_v7 = vrot.slane %v919_v37, 4  ;;  %v12249_v11 = vrot.slane %v2016_v39, 5  ;;  %v2007_v45 = vshrl.u32 %v1937_v42, 16  ;;  %4256 = vmatpush.bf16.msra.mxu1 %v12280_v32 }
  0x66   : > { %677 = vst [vmem:[#allocation2 + $0x24] sm:$0xf] %v676_v34  ;;  %v2022_v43 = vrot.slane %v2020_v40, 4  ;;  %v2010_v46 = vshll.u32 %v1937_v42, 16  ;;  %v2026_v55 = vshll.u32 %v1939_v44, 16  ;;  %v10176_v62 = vrot.slane %v2498_v49, 9 }
  0x67   : > { %2899 = vrot.lane.b32.xlu2 %v2834_v0, %s11958_s8  ;;  %681 = vst [vmem:[#allocation2 + $0x2c] sm:$0x1] %v680_v38  ;;  %v925_v51 = vsel %vm12051_vm6, %v920_v7, %v12217_v61  ;;  %v843_v58 = vld [vmem:[#allocation2 + $0x18] sm:$0xf]  ;;  %v2009_v59 = vrot.slane %v2007_v45, 4  ;;  %v2600_v63 = vrot.slane %v12251_v50, 5 }
  0x68   : > { %3458 = vrot.lane.b32.xlu0 %v3087_v15, %s11962_s12  ;;  %v2023_v53 = vor.u32 %v2022_v43, %v12249_v11  ;;  %v2012_v60 = vrot.slane %v2010_v46, 5  ;;  %v1511_v1 = vrot.slane %v1509_v20, 4  ;;  %v1512_v2 = vrot.slane %v1406_v56, 5  ;;  %v305_v10 = vld [vmem:[%s12113_s7 + $0x18] sm:$0xf] }
  0x69   : > { %v2028_v3 = vrot.slane %v2026_v55, 5  ;;  %v937_v5 = vshrl.u32 %v843_v58, 16  ;;  %v940_v0 = vshll.u32 %v843_v58, 16  ;;  %v2601_v8 = vsel %vm12025_vm3, %v10176_v62, %v2600_v63  ;;  %v12271_v18 = vld [vmem:[#allocation2 + $0x1c] sm:$0xf] }
  0x6a   : > { %v2024_v61 = vrot.slane %v2023_v53, 4  ;;  %v2013_v6 = vor.u32 %v2012_v60, %v2009_v59  ;;  %v1513_v12 = vsel %vm12025_vm3, %v1511_v1, %v1512_v2  ;;  %v386_v17 = vshrl.u32 %v305_v10, 16  ;;  %v3588_v23 = vld [vmem:[#allocation2 + $0x1c] sm:$0xf]  ;;  %v3587_v38 = vld [vmem:[#allocation2 + $0x18] sm:$0xe] }
  0x6b   : > { %v939_v14 = vrot.slane %v937_v5, 4  ;;  %v942_v15 = vrot.slane %v940_v0, 5  ;;  %v389_v22 = vshll.u32 %v305_v10, 16  ;;  %v306_v24 = vld [vmem:[%s12113_s7 + $0x1c] sm:$0xf]  ;;  %v3685_v27 = vrot.slane %v3588_v23, 5 }
  0x6c   : > { %v3030_v9 = vld [vmem:[#allocation2 + $0x28] sm:$0xf]  ;;  %v2029_v13 = vsel %vm12051_vm6, %v2024_v61, %v2028_v3  ;;  %v2014_v21 = vrot.slane %v2013_v6, 4  ;;  %v388_v25 = vrot.slane %v386_v17, 7  ;;  %v394_v28 = vshrl.u32 %v306_v24, 16 }
  0x6d   : > { %1616 = vrot.lane.b32.xlu1 %v1510_v35, %s11956_s27  ;;  %v3108_v19 = vshll.u32 %v3030_v9, 16  ;;  %v3112_v20 = vshrl.u32 %v3030_v9, 16  ;;  %v3029_v26 = vld [vmem:[#allocation2 + $0x24] sm:$0xf]  ;;  %v2836_v29 = vld [vmem:[#allocation2 + $0x28] sm:$0xf]  ;;  %v943_v34 = vor.u32 %v942_v15, %v939_v14 }
  0x6e   : > { %v946_v30 = vshll.u32 %v12271_v18, 16  ;;  %v3031_v31 = vld [vmem:[#allocation2 + $0x2c] sm:$0x1]  ;;  %v391_v33 = vor.u32 %v389_v22, %v388_v25  ;;  %v2019_v37 = vsel %vm12051_vm6, %v2014_v21, %v12249_v11  ;;  %v3589_v39 = vld [vmem:[#allocation2 + $0x20] sm:$0x1]  ;;  %v3099_v40 = vshrl.u32 %v3029_v26, 16 }
  0x6f   : > { %2703 = vrot.lane.b32.xlu2 %v2594_v36, %s11960_s10  ;;  %v12282_v35 = vrot.slane %v3108_v19, 5  ;;  %v3114_v36 = vrot.slane %v3112_v20, 4  ;;  %v3687_v42 = vrot.slane %v3685_v27, 4  ;;  %v3688_v7 = vrot.slane %v3589_v39, 5  ;;  %v682_v43 = vld [vmem:[#allocation2 + $0x30] sm:$0xf] }
  0x70   : > { %1278 = vrot.lane.b32.xlu0 %v935_v41, %s11957_s28  ;;  %v10191_v41 = vrot.slane %v3587_v38, 9  ;;  %v3102_v44 = vshll.u32 %v3029_v26, 16  ;;  %v392_v45 = vrot.slane %v388_v25, 4  ;;  %v12288_v46 = vrot.slane %v394_v28, 7  ;;  %v2500_v49 = vld [vmem:[#allocation2 + $0x20] sm:$0x1] }
  0x71   : > { %v3689_v11 = vsel %vm12025_vm3, %v3687_v42, %v3688_v7  ;;  %v683_v53 = vsel %vm12159_vm13, %v391_v33, %v682_v43  ;;  %v2835_v55 = vld [vmem:[#allocation2 + $0x24] sm:$0xf]  ;;  %v12297_v56 = vrot.slane %v946_v30, 5  ;;  %v3118_v58 = vshll.u32 %v3031_v31, 16  ;;  %v1408_v59 = vld [vmem:[#allocation2 + $0x1c] sm:$0xf] }
  0x72   : > { %v944_v62 = vrot.slane %v943_v34, 4  ;;  %v2602_v1 = vrot.slane %v2600_v63, 4  ;;  %v1940_v2 = vld [vmem:[#allocation2 + $0x24] sm:$0xf]  ;;  %3828 = vst.msk [vmem:[#allocation4 + $0xc] sm:$0xf] %vm243_vm0, %v3689_v11 }
  0x73   : > { %v2603_v61 = vrot.slane %v2500_v49, 5  ;;  %v3101_v3 = vrot.slane %v3099_v40, 4  ;;  %v3104_v5 = vrot.slane %v3102_v44, 5  ;;  %684 = vst [vmem:[#allocation2 + $0x30] sm:$0xf] %v683_v53  ;;  %v2031_v9 = vshrl.u32 %v1940_v2, 16 }
  0x74   : > { %v2034_v10 = vshll.u32 %v1940_v2, 16  ;;  %v949_v50 = vsel %vm12051_vm6, %v944_v62, %v12297_v56  ;;  %v1516_v63 = vrot.slane %v1408_v59, 5  ;;  %v1407_v25 = vld [vmem:[#allocation2 + $0x18] sm:$0xe]  ;;  %v3591_v34 = vld [vmem:[#allocation2 + $0x28] sm:$0xf] }
  0x75   : > { %1811 = vrot.lane.b32.xlu1 %v1744_v47, %s11959_s9  ;;  %v397_v47 = vshll.u32 %v306_v24, 16  ;;  %v2604_v14 = vsel %vm12025_vm3, %v2602_v1, %v2603_v61  ;;  %v3105_v15 = vor.u32 %v3104_v5, %v3101_v3  ;;  %v2033_v20 = vrot.slane %v2031_v9, 4  ;;  %v686_v62 = vld [vmem:[#allocation2 + $0x38] sm:$0x1]  ;;  %v1746_v9 = vld [vmem:[#allocation2 + $0x28] sm:$0xf] }
  0x76   : > { %v2036_v21 = vrot.slane %v2034_v10, 5  ;;  %v1518_v23 = vrot.slane %v1516_v63, 4  ;;  %v10161_v30 = vrot.slane %v1407_v25, 9  ;;  %v3692_v7 = vrot.slane %v3591_v34, 5  ;;  %v774_v25 = vld [vmem:[#allocation2 + $0x4] sm:$0xf] }
  0x77   : > { %1276 = vrot.lane.b32.xlu2 %v925_v51, %s11957_s28  ;;  %v3686_v51 = vsel %vm12025_vm3, %v10191_v41, %v3685_v27  ;;  %v399_v60 = vor.u32 %v397_v47, %v12288_v46  ;;  %v3106_v27 = vrot.slane %v3105_v15, 4  ;;  %v3592_v41 = vld [vmem:[#allocation2 + $0x2c] sm:$0x1]  ;;  %v12337_v47 = vld [vmem:[#allocation2 + $0x28] sm:$0xf]  ;;  %v401_v3 = vrot.slane %v12288_v46, 4 }
  0x78   : > { %1809 = vrot.lane.b32.xlu0 %v1743_v57, %s11959_s9  ;;  %v3115_v57 = vor.u32 %v3114_v36, %v12282_v35  ;;  %3827 = vst.msk [vmem:[#allocation4 + $0x4] sm:$0xf] %vm243_vm0, %v3686_v51  ;;  %v2037_v31 = vor.u32 %v2036_v21, %v2033_v20  ;;  %v1517_v43 = vsel %vm12025_vm3, %v10161_v30, %v1516_v63  ;;  %v3694_v49 = vrot.slane %v3692_v7, 4  ;;  %v847_v63 = vld [vmem:[#allocation2 + $0x28] sm:$0xf] }
  0x79   : > { %v400_v0 = vsel %vm12168_vm14, %v392_v45, %v399_v60  ;;  %v10211_v22 = vld [vmem:[#allocation4 + $0x8] sm:$0xf0]  ;;  %v3111_v38 = vsel %vm12051_vm6, %v3106_v27, %v12282_v35  ;;  %v3695_v51 = vrot.slane %v3592_v41, 5  ;;  %v2607_v1 = vrot.slane %v12337_v47, 5  ;;  %v1942_v20 = vld [vmem:[#allocation2 + $0x2c] sm:$0x1] }
  0x7a   : > { %685 = vst.msk [vmem:[#allocation2 + $0x34] sm:$0xf] %vm15905_vm8, %v400_v0  ;;  %v3116_v6 = vrot.slane %v3115_v57, 4  ;;  %v2038_v44 = vrot.slane %v2037_v31, 4  ;;  %v2501_v0 = vld [vmem:[#allocation2 + $0x24] sm:$0xe] }
  0x7b   : > { %v3696_v59 = vsel %vm12025_vm3, %v3694_v49, %v3695_v51  ;;  %806 = vst.msk [vmem:[#allocation4 + $0x8] sm:$0xf] %vm243_vm0, %v774_v25  ;;  %v11404_v25 = vld [vmem:[%s15896_s1 + $0x28] sm:$0xff] }
  0x7c   : > { %3830 = vst.msk [vmem:[#allocation4 + $0x1c] sm:$0xf] %vm243_vm0, %v3696_v59  ;;  %v689_v59 = vld [vmem:[#allocation2 + $0x3c] sm:$0xf] }
  0x7d   : > { %2707 = vrot.lane.b32.xlu1 %v2601_v8, %s11960_s10  ;;  %v3120_v8 = vrot.slane %v3118_v58, 5  ;;  %v773_v58 = vld [vmem:[#allocation2] sm:$0xf] }
  0x7e   : > { %805 = vst.msk [vmem:[#allocation4] sm:$0xf] %vm243_vm0, %v773_v58 }
  0x7f   : > { %1618 = vrot.lane.b32.xlu2 %v1513_v12, %s11956_s27  ;;  %v950_v12 = vshrl.u32 %v12271_v18, 16  ;;  %v11367_v17 = vld [vmem:[#allocation4 + $0x4] sm:$0xf]  ;;  %v3121_v19 = vsel %vm12051_vm6, %v3116_v6, %v3120_v8  ;;  %v12320_v18 = vld [vmem:[#allocation2 + $0x28] sm:$0xf] }
  0x80   : > { %2372 = vrot.lane.b32.xlu0 %v2029_v13, %s11961_s11  ;;  %v1409_v13 = vld [vmem:[#allocation2 + $0x20] sm:$0x1]  ;;  %v10214_v26 = vor.u32 %v11367_v17, %v10211_v22  ;;  %v2040_v33 = vshll.u32 %v12320_v18, 16  ;;  %v2044_v5 = vshrl.u32 %v12320_v18, 16 }
  0x81   : > { %v1519_v24 = vrot.slane %v1409_v13, 5  ;;  %v952_v28 = vrot.slane %v950_v12, 4  ;;  %v12356_v10 = vld [vmem:[#allocation2 + $0x34] sm:$0xf]  ;;  %v2609_v12 = vrot.slane %v2607_v1, 4  ;;  %v10177_v13 = vrot.slane %v2501_v0, 9 }
  0x82   : > { %10371 = vmatmul.msk.bf16.vlgmr.msra.gmra.mxu1 %vm4111_vm1, %v10214_v26  ;;  %v12334_v45 = vrot.slane %v2040_v33, 5  ;;  %v3594_v17 = vld [vmem:[#allocation2 + $0x34] sm:$0xf]  ;;  %v2046_v21 = vrot.slane %v2044_v5, 4  ;;  %v307_v22 = vld [vmem:[%s12113_s7 + $0x20] sm:$0xf] }
  0x83   : > { %v1520_v36 = vsel %vm12025_vm3, %v1518_v23, %v1519_v24  ;;  %v953_v39 = vor.u32 %v952_v28, %v12297_v56  ;;  %v2503_v56 = vld [vmem:[#allocation2 + $0x2c] sm:$0x1]  ;;  %v970_v23 = vshll.u32 %v847_v63, 16  ;;  %v3699_v18 = vrot.slane %v3594_v17, 5  ;;  %v1745_v33 = vld [vmem:[#allocation2 + $0x24] sm:$0xf] }
  0x84   : > { %v2043_v60 = vsel %vm12051_vm6, %v2038_v44, %v12334_v45  ;;  %v2610_v46 = vrot.slane %v2503_v56, 5  ;;  %v974_v26 = vshrl.u32 %v847_v63, 16  ;;  %v10219_v30 = vld [vmem:[#allocation4 + $0x18] sm:$0xf0]  ;;  %v403_v31 = vshrl.u32 %v307_v22, 16 }
  0x85   : > { %2903 = vrot.lane.b32.xlu1 %v2836_v29, %s11958_s8  ;;  %v845_v29 = vld [vmem:[#allocation2 + $0x20] sm:$0x1]  ;;  %v954_v11 = vrot.slane %v953_v39, 4  ;;  %v2047_v34 = vor.u32 %v2046_v21, %v12334_v45  ;;  %v2608_v39 = vsel %vm12025_vm3, %v10177_v13, %v2607_v1  ;;  %v12374_v41 = vrot.slane %v970_v23, 5  ;;  %v848_v56 = vld [vmem:[#allocation2 + $0x2c] sm:$0x1] }
  0x86   : > { %v956_v40 = vshll.u32 %v845_v29, 16  ;;  %v2611_v27 = vsel %vm12025_vm3, %v2609_v12, %v2610_v46  ;;  %v846_v29 = vld [vmem:[#allocation2 + $0x24] sm:$0xf]  ;;  %v2838_v13 = vld [vmem:[#allocation2 + $0x34] sm:$0xf] }
  0x87   : > { %2370 = vrot.lane.b32.xlu2 %v2019_v37, %s11961_s11  ;;  %v3590_v37 = vld [vmem:[#allocation2 + $0x24] sm:$0xe]  ;;  %v961_v44 = vshrl.u32 %v846_v29, 16  ;;  %v964_v45 = vshll.u32 %v846_v29, 16  ;;  %v12404_v23 = vld [vmem:[#allocation2 + $0x28] sm:$0xf] }
  0x88   : > { %2901 = vrot.lane.b32.xlu0 %v2835_v55, %s11958_s8  ;;  %v10192_v42 = vrot.slane %v3590_v37, 9  ;;  %v958_v53 = vrot.slane %v956_v40, 5  ;;  %v3032_v55 = vld [vmem:[#allocation2 + $0x30] sm:$0xf] }
  0x89   : > { %v3123_v2 = vshrl.u32 %v3032_v55, 16  ;;  %v3126_v61 = vshll.u32 %v3032_v55, 16  ;;  %v308_v55 = vld [vmem:[%s12113_s7 + $0x24] sm:$0xf]  ;;  %v966_v5 = vrot.slane %v964_v45, 5 }
  0x8a   : > { %v3693_v35 = vsel %vm12025_vm3, %v10192_v42, %v3692_v7  ;;  %v959_v6 = vsel %vm12051_vm6, %v954_v11, %v958_v53  ;;  %v11406_v42 = vld [vmem:[%s15896_s1 + $0x38] sm:$0xff]  ;;  %v3701_v7 = vrot.slane %v3699_v18, 4  ;;  %v405_v11 = vrot.slane %v403_v31, 7 }
  0x8b   : > { %3829 = vst.msk [vmem:[#allocation4 + $0x14] sm:$0xf] %vm243_vm0, %v3693_v35  ;;  %v1613_v8 = vpop.permute.xlu1 %1612  ;;  %v3128_v15 = vrot.slane %v3126_v61, 5  ;;  %4160 = vmatpush.bf16.msra.mxu0 %v11406_v42  ;;  %v406_v53 = vshll.u32 %v307_v22, 16  ;;  %11719 = vmatpush.bf16.msra.mxu3 %v11406_v42  ;;  %v3136_v61 = vshrl.u32 %v12356_v10, 16  ;;  %v411_v0 = vshrl.u32 %v308_v55, 16 }
  0x8c   : > { %v409_v46 = vrot.slane %v405_v11, 4  ;;  %v414_v12 = vshll.u32 %v308_v55, 16  ;;  %v1944_v22 = vld [vmem:[#allocation2 + $0x34] sm:$0xf]  ;;  %v11403_v42 = vld [vmem:[%s15896_s1 + $0x20] sm:$0xff] }
  0x8d   : > { %1280 = vrot.lane.b32.xlu1 %v949_v50, %s11957_s28  ;;  %v687_v50 = vsel %vm12175_vm15, %v401_v3, %v686_v62  ;;  %v963_v3 = vrot.slane %v961_v44, 4  ;;  %v413_v63 = vrot.slane %v411_v0, 7 }
  0x8e   : > { %688 = vst [vmem:[#allocation2 + $0x38] sm:$0x1] %v687_v50 }
  0x8f   : > { %2709 = vrot.lane.b32.xlu2 %v2604_v14, %s11960_s10  ;;  %v3125_v14 = vrot.slane %v3123_v2, 4  ;;  %v408_v2 = vor.u32 %v406_v53, %v405_v11  ;;  %v418_v17 = vrot.slane %v413_v63, 4 }
  0x90   : > { %3464 = vrot.lane.b32.xlu0 %v3121_v19, %s11962_s12  ;;  %v3132_v19 = vshll.u32 %v12356_v10, 16 }
  0x91   : > { %v3129_v28 = vor.u32 %v3128_v15, %v3125_v14  ;;  %v690_v50 = vsel %vm12159_vm13, %v408_v2, %v689_v59  ;;  %v967_v14 = vor.u32 %v966_v5, %v963_v3  ;;  %v416_v15 = vor.u32 %v414_v12, %v413_v63  ;;  %v11401_v12 = vld [vmem:[%s15896_s1 + $0x10] sm:$0xff] }
  0x92   : > { %v1273_v57 = vpop.permute.xlu0 %1272  ;;  %v11369_v24 = vld [vmem:[#allocation4 + $0x14] sm:$0xf]  ;;  %v12372_v40 = vrot.slane %v3132_v19, 5  ;;  %691 = vst [vmem:[#allocation2 + $0x3c] sm:$0xf] %v690_v50 }
  0x93   : > { %1369 = vst.msk [vmem:[#allocation4] sm:$0xf] %vm15906_vm2, %v1273_v57  ;;  %v10222_v37 = vor.u32 %v11369_v24, %v10219_v30  ;;  %v3130_v49 = vrot.slane %v3129_v28, 4  ;;  %v2048_v57 = vrot.slane %v2047_v34, 4  ;;  %v693_v19 = vld [vmem:[#allocation2 + $0x44] sm:$0x1] }
  0x94   : > { %1709 = vst.msk [vmem:[#allocation4] sm:$0xf] %vm15904_vm4, %v1613_v8  ;;  %v3138_v24 = vrot.slane %v3136_v61, 4  ;;  %v694_v30 = vsel %vm12175_vm15, %v418_v17, %v693_v19  ;;  %v968_v31 = vrot.slane %v967_v14, 4 }
  0x95   : > { %1622 = vrot.lane.b32.xlu1 %v1520_v36, %s11956_s27  ;;  %v2050_v36 = vshll.u32 %v1942_v20, 16  ;;  %10372 = vmatmul.msk.bf16.gmra.mxu1 %vm4111_vm1, %v10222_v37  ;;  %v3595_v47 = vld [vmem:[#allocation2 + $0x38] sm:$0x1]  ;;  %v12417_v37 = vld [vmem:[#allocation2 + $0x2c] sm:$0x1] }
  0x96   : > { %v3702_v51 = vrot.slane %v3595_v47, 5  ;;  %v3034_v28 = vld [vmem:[#allocation2 + $0x38] sm:$0x1]  ;;  %v3139_v44 = vor.u32 %v3138_v24, %v12372_v40  ;;  %695 = vst [vmem:[#allocation2 + $0x44] sm:$0x1] %v694_v30  ;;  %v1523_v47 = vrot.slane %v12404_v23, 5  ;;  %v973_v11 = vsel %vm12051_vm6, %v968_v31, %v12374_v41 }
  0x97   : > { %3462 = vrot.lane.b32.xlu2 %v3111_v38, %s11962_s12  ;;  %v3593_v38 = vld [vmem:[#allocation2 + $0x30] sm:$0xe]  ;;  %v2052_v58 = vrot.slane %v2050_v36, 5  ;;  %v3142_v45 = vshll.u32 %v3034_v28, 16  ;;  %v1526_v59 = vrot.slane %v12417_v37, 5  ;;  %v11400_v37 = vld [vmem:[%s15896_s1 + $0x8] sm:$0xff] }
  0x98   : > { %1620 = vrot.lane.b32.xlu0 %v1517_v43, %s11956_s27  ;;  %v976_v43 = vrot.slane %v974_v26, 4  ;;  %v10193_v35 = vrot.slane %v3593_v38, 9  ;;  %v3703_v1 = vsel %vm12025_vm3, %v3701_v7, %v3702_v51  ;;  %v2068_v38 = vshrl.u32 %v1944_v22, 16  ;;  %v309_v7 = vld [vmem:[%s12113_s7 + $0x28] sm:$0xf] }
  0x99   : > { %3832 = vst.msk [vmem:[#allocation4 + $0x2c] sm:$0xf] %vm243_vm0, %v3703_v1  ;;  %v2053_v10 = vsel %vm12051_vm6, %v2048_v57, %v2052_v58  ;;  %v310_v51 = vld [vmem:[%s12113_s7 + $0x2c] sm:$0xf]  ;;  %v420_v53 = vshrl.u32 %v309_v7, 16  ;;  %v11402_v58 = vld [vmem:[%s15896_s1 + $0x18] sm:$0xff] }
  0x9a   : > { %v3700_v62 = vsel %vm12025_vm3, %v10193_v35, %v3699_v18  ;;  %v977_v8 = vor.u32 %v976_v43, %v12374_v41  ;;  %v417_v18 = vsel %vm12168_vm14, %v409_v46, %v416_v15  ;;  %v2837_v43 = vld [vmem:[#allocation2 + $0x30] sm:$0xf]  ;;  %v428_v55 = vshrl.u32 %v310_v51, 16  ;;  %v3596_v1 = vld [vmem:[#allocation2 + $0x3c] sm:$0xe] }
  0x9b   : > { %3831 = vst.msk [vmem:[#allocation4 + $0x24] sm:$0xf] %vm243_vm0, %v3700_v62  ;;  %v2070_v57 = vrot.slane %v2068_v38, 4  ;;  %v3140_v62 = vrot.slane %v3139_v44, 4  ;;  %v3144_v41 = vrot.slane %v3142_v45, 5  ;;  %v1525_v61 = vrot.slane %v1523_v47, 4 }
  0x9c   : > { %v978_v20 = vrot.slane %v977_v8, 4  ;;  %692 = vst.msk [vmem:[#allocation2 + $0x40] sm:$0xf] %vm15905_vm8, %v417_v18  ;;  %v430_v50 = vrot.slane %v428_v55, 7  ;;  %v1747_v46 = vld [vmem:[#allocation2 + $0x30] sm:$0xf] }
  0x9d   : > { %2374 = vrot.lane.b32.xlu1 %v2043_v60, %s11961_s11  ;;  %v11405_v60 = vld [vmem:[%s15896_s1 + $0x30] sm:$0xff]  ;;  %v3145_v14 = vsel %vm12051_vm6, %v3140_v62, %v3144_v41  ;;  %v1410_v15 = vld [vmem:[#allocation2 + $0x24] sm:$0xe]  ;;  %v3598_v19 = vld [vmem:[#allocation2 + $0x44] sm:$0x1] }
  0x9e   : > { %4161 = vmatpush.bf16.msra.mxu0 %v11405_v60  ;;  %11720 = vmatpush.bf16.msra.mxu3 %v11405_v60  ;;  %v3709_v24 = vrot.slane %v3598_v19, 5  ;;  %v696_v30 = vld [vmem:[#allocation2 + $0x48] sm:$0xf]  ;;  %v435_v38 = vrot.slane %v430_v50, 4  ;;  %v12465_v44 = vld [vmem:[#allocation2 + $0x34] sm:$0xf] }
  0x9f   : > { %1282 = vrot.lane.b32.xlu2 %v959_v6, %s11957_s28  ;;  %v3135_v6 = vsel %vm12051_vm6, %v3130_v49, %v12372_v40  ;;  %v1945_v40 = vld [vmem:[#allocation2 + $0x38] sm:$0x1]  ;;  %v2614_v62 = vrot.slane %v12465_v44, 5 }
  0xa0   : > { %1815 = vrot.lane.b32.xlu0 %v1746_v9, %s11959_s9  ;;  %v980_v9 = vshll.u32 %v848_v56, 16  ;;  %v10227_v34 = vld [vmem:[#allocation4 + $0x28] sm:$0xf0]  ;;  %v2074_v8 = vshll.u32 %v1945_v40, 16 }
  0xa2   : > { %v982_v21 = vrot.slane %v980_v9, 5  ;;  %v11371_v29 = vld [vmem:[#allocation4 + $0x24] sm:$0xf]  ;;  %4162 = vmatpush.bf16.msra.mxu0 %v11404_v25  ;;  %11721 = vmatpush.bf16.msra.mxu3 %v11404_v25  ;;  %v422_v9 = vrot.slane %v420_v53, 7  ;;  %v775_v25 = vld [vmem:[#allocation2 + $0xc] sm:$0xf] }
  0xa3   : > { %v3597_v17 = vld [vmem:[#allocation2 + $0x40] sm:$0xf]  ;;  %807 = vst.msk [vmem:[#allocation4 + $0x10] sm:$0xf] %vm243_vm0, %v775_v25  ;;  %v776_v53 = vld [vmem:[#allocation2 + $0x10] sm:$0xf] }
  0xa4   : > { %v983_v36 = vsel %vm12051_vm6, %v978_v20, %v982_v21  ;;  %v3035_v21 = vld [vmem:[#allocation2 + $0x3c] sm:$0xf]  ;;  %v426_v28 = vrot.slane %v422_v9, 4  ;;  %808 = vst.msk [vmem:[#allocation4 + $0x18] sm:$0xf] %vm243_vm0, %v776_v53 }
  0xa5   : > { %2713 = vrot.lane.b32.xlu1 %v2611_v27, %s11960_s10  ;;  %v1943_v27 = vld [vmem:[#allocation2 + $0x30] sm:$0xf]  ;;  %v3147_v45 = vshrl.u32 %v3035_v21, 16  ;;  %v1748_v25 = vld [vmem:[#allocation2 + $0x34] sm:$0xf] }
  0xa6   : > { %v2055_v35 = vshrl.u32 %v1943_v27, 16  ;;  %v2058_v49 = vshll.u32 %v1943_v27, 16  ;;  %4163 = vmatpush.bf16.msra.mxu0 %v11403_v42  ;;  %11722 = vmatpush.bf16.msra.mxu3 %v11403_v42  ;;  %v2076_v27 = vrot.slane %v2074_v8, 5  ;;  %v700_v42 = vld [vmem:[#allocation2 + $0x50] sm:$0x1] }
  0xa7   : > { %1813 = vrot.lane.b32.xlu2 %v1745_v33, %s11959_s9  ;;  %v2064_v33 = vshll.u32 %v1944_v22, 16  ;;  %v3706_v22 = vrot.slane %v3597_v17, 5  ;;  %v2839_v17 = vld [vmem:[#allocation2 + $0x3c] sm:$0xf] }
  0xa8   : > { %2711 = vrot.lane.b32.xlu0 %v2608_v39, %s11960_s10  ;;  %v10230_v39 = vor.u32 %v11371_v29, %v10227_v34  ;;  %v2057_v5 = vrot.slane %v2055_v35, 4  ;;  %v2060_v0 = vrot.slane %v2058_v49, 5 }
  0xa9   : > { %v12433_v56 = vrot.slane %v2064_v33, 5  ;;  %v3036_v33 = vld [vmem:[#allocation2 + $0x40] sm:$0xf] }
  0xaa   : > { %10373 = vmatmul.msk.bf16.gmra.mxu1 %vm4111_vm1, %v10230_v39  ;;  %4164 = vmatpush.bf16.msra.mxu0 %v11402_v58  ;;  %v2061_v20 = vor.u32 %v2060_v0, %v2057_v5  ;;  %v10162_v39 = vrot.slane %v1410_v15, 9  ;;  %v703_v15 = vld [vmem:[#allocation2 + $0x54] sm:$0xf] }
  0xab   : > { %v2071_v63 = vor.u32 %v2070_v57, %v12433_v56  ;;  %11723 = vmatpush.bf16.msra.mxu3 %v11402_v58  ;;  %v3150_v57 = vshll.u32 %v3035_v21, 16  ;;  %v11399_v58 = vld [vmem:[%s15896_s1] sm:$0xff] }
  0xac   : > { %v1524_v41 = vsel %vm12025_vm3, %v10162_v39, %v1523_v47  ;;  %v3149_v47 = vrot.slane %v3147_v45, 4  ;;  %v851_v39 = vld [vmem:[#allocation2 + $0x38] sm:$0x1] }
  0xad   : > { %3466 = vrot.lane.b32.xlu1 %v3135_v6, %s11962_s12  ;;  %v423_v6 = vshll.u32 %v309_v7, 16  ;;  %v2072_v31 = vrot.slane %v2071_v63, 4  ;;  %v2062_v7 = vrot.slane %v2061_v20, 4  ;;  %v3152_v8 = vrot.slane %v3150_v57, 5  ;;  %v12503_v63 = vld [vmem:[%s12113_s7 + $0x34] sm:$0xf] }
  0xae   : > { %4165 = vmatpush.bf16.msra.mxu0 %v11401_v12 }
  0xaf   : > { %2376 = vrot.lane.b32.xlu2 %v2053_v10, %s11961_s11  ;;  %v431_v10 = vshll.u32 %v310_v51, 16  ;;  %v425_v18 = vor.u32 %v423_v6, %v422_v9  ;;  %11724 = vmatpush.bf16.msra.mxu3 %v11401_v12  ;;  %v3156_v51 = vshll.u32 %v3036_v33, 16  ;;  %v2077_v40 = vsel %vm12051_vm6, %v2072_v31, %v2076_v27  ;;  %v3037_v6 = vld [vmem:[#allocation2 + $0x44] sm:$0x1] }
  0xb0   : > { %2907 = vrot.lane.b32.xlu0 %v2838_v13, %s11958_s8  ;;  %v10194_v13 = vrot.slane %v3596_v1, 9  ;;  %v2067_v5 = vsel %vm12051_vm6, %v2062_v7, %v12433_v56  ;;  %v3166_v20 = vshll.u32 %v3037_v6, 16  ;;  %v849_v7 = vld [vmem:[#allocation2 + $0x30] sm:$0xf] }
  0xb1   : > { %v1806_v26 = vpop.permute.xlu2 %1805  ;;  %v433_v29 = vor.u32 %v431_v10, %v430_v50  ;;  %v697_v49 = vsel %vm12159_vm13, %v425_v18, %v696_v30  ;;  %v12495_v23 = vrot.slane %v3156_v51, 5  ;;  %v2616_v10 = vrot.slane %v2614_v62, 4 }
  0xb2   : > { %1902 = vst.msk [vmem:[#allocation4] sm:$0xf] %vm1901_vm5, %v1806_v26  ;;  %v1527_v26 = vsel %vm12025_vm3, %v1525_v61, %v1526_v59  ;;  %v3707_v34 = vsel %vm12025_vm3, %v10194_v13, %v3706_v22  ;;  %4166 = vmatpush.bf16.msra.mxu0 %v11400_v37  ;;  %v701_v59 = vsel %vm12175_vm15, %v435_v38, %v700_v42  ;;  %v850_v13 = vld [vmem:[#allocation2 + $0x34] sm:$0xf] }
  0xb3   : > { %3833 = vst.msk [vmem:[#allocation4 + $0x34] sm:$0xf] %vm243_vm0, %v3707_v34  ;;  %v434_v55 = vsel %vm12168_vm14, %v426_v28, %v433_v29  ;;  %11725 = vmatpush.bf16.msra.mxu3 %v11400_v37  ;;  %v994_v27 = vshll.u32 %v850_v13, 16  ;;  %v998_v28 = vshrl.u32 %v850_v13, 16  ;;  %v3168_v37 = vrot.slane %v3166_v20, 5 }
  0xb4   : > { %698 = vst [vmem:[#allocation2 + $0x48] sm:$0xf] %v697_v49 }
  0xb5   : > { %1286 = vrot.lane.b32.xlu1 %v983_v36, %s11957_s28  ;;  %v1615_v2 = vpop.permute.xlu1 %1614  ;;  %v3708_v36 = vrot.slane %v3706_v22, 4  ;;  %699 = vst.msk [vmem:[#allocation2 + $0x4c] sm:$0xf] %vm15905_vm8, %v434_v55  ;;  %v1000_v53 = vrot.slane %v998_v28, 4  ;;  %v2840_v28 = vld [vmem:[#allocation2 + $0x40] sm:$0xf] }
  0xb6   : > { %702 = vst [vmem:[#allocation2 + $0x50] sm:$0x1] %v701_v59  ;;  %4167 = vmatpush.bf16.msra.mxu0 %v11399_v58  ;;  %v313_v59 = vld [vmem:[%s12113_s7 + $0x38] sm:$0xf] }
  0xb7   : > { %2905 = vrot.lane.b32.xlu2 %v2837_v43, %s11958_s8  ;;  %v3710_v35 = vsel %vm12025_vm3, %v3708_v36, %v3709_v24  ;;  %11726 = vmatpush.bf16.msra.mxu3 %v11399_v58  ;;  %v3153_v24 = vor.u32 %v3152_v8, %v3149_v47  ;;  %v454_v6 = vshrl.u32 %v313_v59, 16  ;;  %v1004_v8 = vshll.u32 %v851_v39, 16  ;;  %v12586_v39 = vld [vmem:[#allocation2 + $0x3c] sm:$0xf] }
  0xb8   : > { %v1275_v60 = vpop.permute.xlu0 %1274  ;;  %1284 = vrot.lane.b32.xlu0 %v973_v11, %s11957_s28  ;;  %v3160_v11 = vshrl.u32 %v3036_v33, 16  ;;  %3834 = vst.msk [vmem:[#allocation4 + $0x3c] sm:$0xf] %vm243_vm0, %v3710_v35  ;;  %v2504_v33 = vld [vmem:[#allocation2 + $0x30] sm:$0xe]  ;;  %v448_v35 = vshll.u32 %v12503_v63, 16 }
  0xb9   : > { %1370 = vst.msk [vmem:[#allocation4 + $0x8] sm:$0xf] %vm15906_vm2, %v1275_v60  ;;  %v1808_v3 = vpop.permute.xlu2 %1807  ;;  %v311_v60 = vld [vmem:[%s12113_s7 + $0x30] sm:$0xf]  ;;  %v3154_v51 = vrot.slane %v3153_v24, 4  ;;  %v10178_v55 = vrot.slane %v2504_v33, 9 }
  0xba   : > { %1710 = vst.msk [vmem:[#allocation4 + $0x8] sm:$0xf] %vm15904_vm4, %v1615_v2  ;;  %v437_v1 = vshrl.u32 %v311_v60, 16  ;;  %v2506_v2 = vld [vmem:[#allocation2 + $0x38] sm:$0x1]  ;;  %v440_v61 = vshll.u32 %v311_v60, 16 }
  0xbb   : > { %1903 = vst.msk [vmem:[#allocation4 + $0x8] sm:$0xf] %vm1901_vm5, %v1808_v3  ;;  %v3162_v0 = vrot.slane %v3160_v11, 4  ;;  %v11373_v9 = vld [vmem:[#allocation4 + $0x34] sm:$0xf]  ;;  %11727 = vmatpush.bf16.msrb.mxu3 %v12280_v32  ;;  %v12522_v11 = vrot.slane %v994_v27, 5  ;;  %v3159_v44 = vsel %vm12051_vm6, %v3154_v51, %v12495_v23 }
  0xbc   : > { %v12498_v50 = vrot.slane %v437_v1, 7  ;;  %v3599_v18 = vld [vmem:[#allocation2 + $0x48] sm:$0xe]  ;;  %v3600_v29 = vld [vmem:[#allocation2 + $0x4c] sm:$0xf]  ;;  %v988_v1 = vshll.u32 %v849_v7, 16 }
  0xbd   : > { %1817 = vrot.lane.b32.xlu1 %v1747_v46, %s11959_s9  ;;  %v2617_v46 = vrot.slane %v2506_v2, 5  ;;  %v3163_v19 = vor.u32 %v3162_v0, %v12495_v23  ;;  %v10195_v30 = vrot.slane %v3599_v18, 9  ;;  %v3713_v34 = vrot.slane %v3600_v29, 5  ;;  %v3601_v38 = vld [vmem:[#allocation2 + $0x50] sm:$0x1] }
  0xbe   : > { %v3716_v58 = vrot.slane %v3601_v38, 5  ;;  %v1413_v60 = vld [vmem:[#allocation2 + $0x30] sm:$0xe]  ;;  %v443_v0 = vrot.slane %v12498_v50, 4  ;;  %v457_v13 = vshll.u32 %v313_v59, 16  ;;  %v12560_v20 = vrot.slane %v454_v6, 7 }
  0xbf   : > { %3468 = vrot.lane.b32.xlu2 %v3145_v14, %s11962_s12  ;;  %v10235_v12 = vld [vmem:[#allocation4 + $0x38] sm:$0xf0]  ;;  %v442_v14 = vor.u32 %v440_v61, %v12498_v50  ;;  %v2618_v31 = vsel %vm12025_vm3, %v2616_v10, %v2617_v46  ;;  %v3164_v36 = vrot.slane %v3163_v19, 4  ;;  %v3714_v42 = vsel %vm12025_vm3, %v10195_v30, %v3713_v34  ;;  %v1947_v10 = vld [vmem:[#allocation2 + $0x40] sm:$0xf] }
  0xc0   : > { %1626 = vrot.lane.b32.xlu0 %v1527_v26, %s11956_s27  ;;  %v10238_v21 = vor.u32 %v11373_v9, %v10235_v12  ;;  %v445_v26 = vshrl.u32 %v12503_v63, 16  ;;  %3835 = vst.msk [vmem:[#allocation4 + $0x44] sm:$0xf] %vm243_vm0, %v3714_v42  ;;  %v3715_v57 = vrot.slane %v3713_v34, 4  ;;  %v2615_v9 = vsel %vm12025_vm3, %v10178_v55, %v2614_v62  ;;  %v707_v12 = vld [vmem:[#allocation2 + $0x5c] sm:$0x1] }
  0xc1   : > { %v12463_v43 = vpop.permute.xlu2 %2899  ;;  %v704_v32 = vsel %vm12159_vm13, %v442_v14, %v703_v15  ;;  %v3169_v61 = vsel %vm12051_vm6, %v3164_v36, %v3168_v37  ;;  %v1001_v63 = vor.u32 %v1000_v53, %v12522_v11  ;;  %v990_v14 = vrot.slane %v988_v1, 5  ;;  %v12573_v29 = vld [vmem:[#allocation2 + $0x40] sm:$0xf]  ;;  %v12581_v36 = vld [vmem:[#allocation2 + $0x44] sm:$0x1] }
  0xc2   : > { %10374 = vmatmul.msk.bf16.gmra.mxu1 %vm4111_vm1, %v10238_v21  ;;  %v447_v45 = vrot.slane %v445_v26, 7  ;;  %705 = vst [vmem:[#allocation2 + $0x54] sm:$0xf] %v704_v32  ;;  %v3717_v50 = vsel %vm12025_vm3, %v3715_v57, %v3716_v58  ;;  %v1006_v21 = vrot.slane %v1004_v8, 5  ;;  %v2092_v18 = vshrl.u32 %v1947_v10, 16 }
  0xc3   : > { %3836 = vst.msk [vmem:[#allocation4 + $0x4c] sm:$0xf] %vm243_vm0, %v3717_v50  ;;  %v1002_v24 = vrot.slane %v1001_v63, 4  ;;  %v459_v26 = vor.u32 %v457_v13, %v12560_v20  ;;  %v710_v32 = vld [vmem:[#allocation2 + $0x60] sm:$0xf]  ;;  %v2098_v55 = vshll.u32 %v12581_v36, 16 }
  0xc4   : > { %v12489_v3 = vpop.permute.xlu1 %2897  ;;  %v450_v47 = vor.u32 %v448_v35, %v447_v45  ;;  %v452_v46 = vrot.slane %v447_v45, 4  ;;  %v2621_v45 = vrot.slane %v12573_v29, 5  ;;  %v1946_v35 = vld [vmem:[#allocation2 + $0x3c] sm:$0xf]  ;;  %v12596_v53 = vrot.slane %v2092_v18, 4 }
  0xc5   : > { %2380 = vrot.lane.b32.xlu1 %v2077_v40, %s11961_s11  ;;  %v1007_v42 = vsel %vm12051_vm6, %v1002_v24, %v1006_v21  ;;  %v711_v51 = vsel %vm12159_vm13, %v459_v26, %v710_v32  ;;  %v3039_v6 = vld [vmem:[#allocation2 + $0x4c] sm:$0xf]  ;;  %v2079_v8 = vshrl.u32 %v1946_v35, 16  ;;  %v777_v13 = vld [vmem:[#allocation2 + $0x18] sm:$0xf] }
  0xc6   : > { %v451_v19 = vsel %vm12168_vm14, %v443_v0, %v450_v47  ;;  %v12604_v0 = vld [vmem:[#allocation2 + $0x38] sm:$0x1]  ;;  %v1012_v47 = vshll.u32 %v12586_v39, 16  ;;  %712 = vst [vmem:[#allocation2 + $0x60] sm:$0xf] %v711_v51  ;;  %v3184_v24 = vshrl.u32 %v3039_v6, 16 }
  0xc7   : > { %1624 = vrot.lane.b32.xlu2 %v1524_v41, %s11956_s27  ;;  %v985_v41 = vshrl.u32 %v849_v7, 16  ;;  %706 = vst.msk [vmem:[#allocation2 + $0x58] sm:$0xf] %vm15905_vm8, %v451_v19  ;;  %v11375_v7 = vld [vmem:[#allocation4 + $0x44] sm:$0xf]  ;;  %v1533_v18 = vrot.slane %v12604_v0, 5 }
  0xc8   : > { %2378 = vrot.lane.b32.xlu0 %v2067_v5, %s11961_s11  ;;  %v12533_v5 = vld [vmem:[#allocation2 + $0x34] sm:$0xf]  ;;  %809 = vst.msk [vmem:[#allocation4 + $0x20] sm:$0xf] %vm243_vm0, %v777_v13  ;;  %v778_v26 = vld [vmem:[#allocation2 + $0x1c] sm:$0xf] }
  0xc9   : > { %v12506_v56 = vpop.permute.xlu2 %2703  ;;  %v987_v62 = vrot.slane %v985_v41, 4  ;;  %v1530_v15 = vrot.slane %v12533_v5, 5  ;;  %v3602_v38 = vld [vmem:[#allocation2 + $0x54] sm:$0xe]  ;;  %v460_v41 = vrot.slane %v12560_v20, 4 }
  0xca   : > { %v2706_v22 = vpop.permute.xlu0 %2705  ;;  %v10243_v58 = vld [vmem:[#allocation4 + $0x48] sm:$0xf0]  ;;  %v10196_v59 = vrot.slane %v3602_v38, 9  ;;  %810 = vst.msk [vmem:[#allocation4 + $0x28] sm:$0xf] %vm243_vm0, %v778_v26 }
  0xcb   : > { %v991_v30 = vor.u32 %v990_v14, %v987_v62  ;;  %v1949_v26 = vld [vmem:[#allocation2 + $0x48] sm:$0xf] }
  0xcd   : > { %2909 = vrot.lane.b32.xlu1 %v2839_v17, %s11958_s8  ;;  %v2088_v17 = vshll.u32 %v1947_v10, 16  ;;  %v1750_v10 = vld [vmem:[#allocation2 + $0x40] sm:$0xf] }
  0xcf   : > { %1819 = vrot.lane.b32.xlu2 %v1748_v25, %s11959_s9  ;;  %v2369_v49 = vpop.permute.xlu1 %2368  ;;  %v12583_v37 = vrot.slane %v2088_v17, 5  ;;  %v3180_v17 = vshll.u32 %v3039_v6, 16 }
  0xd0   : > { %2464 = vst.msk [vmem:[#allocation4 + $0x8] sm:$0xf] %vm2462_vm7, %v2369_v49  ;;  %2717 = vrot.lane.b32.xlu0 %v2618_v31, %s11960_s10 }
  0xd1   : > { %v1277_v40 = vpop.permute.xlu2 %1276  ;;  %2801 = vst.msk [vmem:[#allocation4 + $0x8] sm:$0xf] %vm15902_vm11, %v2706_v22  ;;  %v708_v22 = vsel %vm12175_vm15, %v452_v46, %v707_v12  ;;  %v2082_v12 = vshll.u32 %v1946_v35, 16 }
  0xd2   : > { %v2367_v2 = vpop.permute.xlu0 %2366  ;;  %2995 = vst.msk [vmem:[#allocation4 + $0x8] sm:$0xf] %vm2993_vm12, %v12463_v43  ;;  %v10163_v43 = vrot.slane %v1413_v60, 9  ;;  %v1009_v60 = vshrl.u32 %v12586_v39, 16  ;;  %v3040_v39 = vld [vmem:[#allocation2 + $0x50] sm:$0x1] }
  0xd3   : > { %2463 = vst.msk [vmem:[#allocation4] sm:$0xf] %vm2462_vm7, %v2367_v2  ;;  %v2084_v32 = vrot.slane %v2082_v12, 5  ;;  %v3038_v12 = vld [vmem:[#allocation2 + $0x48] sm:$0xf] }
  0xd4   : > { %2800 = vst.msk [vmem:[#allocation4] sm:$0xf] %vm15902_vm11, %v12506_v56  ;;  %v12553_v56 = vld [vmem:[%s12113_s7 + $0x3c] sm:$0xf]  ;;  %v1531_v33 = vsel %vm12025_vm3, %v10163_v43, %v1530_v15  ;;  %v3603_v43 = vld [vmem:[#allocation2 + $0x58] sm:$0xf] }
  0xd5   : > { %3472 = vrot.lane.b32.xlu1 %v3169_v61, %s11962_s12  ;;  %2994 = vst.msk [vmem:[#allocation4] sm:$0xf] %vm2993_vm12, %v12489_v3  ;;  %v12563_v3 = vld [vmem:[#allocation2 + $0x3c] sm:$0xe]  ;;  %v462_v27 = vshrl.u32 %v12553_v56, 16  ;;  %v465_v57 = vshll.u32 %v12553_v56, 16  ;;  %v10246_v61 = vor.u32 %v11375_v7, %v10243_v58 }
  0xd6   : > { %1371 = vst.msk [vmem:[#allocation4 + $0x10] sm:$0xf] %vm15906_vm2, %v1277_v40  ;;  %v10179_v34 = vrot.slane %v12563_v3, 9  ;;  %v992_v40 = vrot.slane %v991_v30, 4  ;;  %v3720_v50 = vrot.slane %v3603_v43, 5  ;;  %v1011_v5 = vrot.slane %v1009_v60, 4 }
  0xd7   : > { %2715 = vrot.lane.b32.xlu2 %v2615_v9, %s11960_s10  ;;  %v3461_v23 = vpop.permute.xlu1 %3460  ;;  %709 = vst [vmem:[#allocation2 + $0x5c] sm:$0x1] %v708_v22  ;;  %v12591_v49 = vrot.slane %v462_v27, 7  ;;  %10375 = vmatmul.msk.bf16.gmra.mxu1 %vm4111_vm1, %v10246_v61  ;;  %v2095_v27 = vor.u32 %v12596_v53, %v12583_v37  ;;  %v12629_v30 = vld [vmem:[#allocation2 + $0x40] sm:$0xf]  ;;  %v3186_v7 = vrot.slane %v3184_v24, 4 }
  0xd8   : > { %3470 = vrot.lane.b32.xlu0 %v3159_v44, %s11962_s12  ;;  %3556 = vst.msk [vmem:[#allocation4 + $0x8] sm:$0xf] %vm15903_vm9, %v3461_v23  ;;  %v997_v14 = vsel %vm12051_vm6, %v992_v40, %v12522_v11  ;;  %v1749_v23 = vld [vmem:[#allocation2 + $0x3c] sm:$0xf]  ;;  %v3721_v21 = vsel %vm12025_vm3, %v10196_v59, %v3720_v50  ;;  %v3722_v22 = vrot.slane %v3720_v50, 4  ;;  %v1532_v11 = vrot.slane %v1530_v15, 4 }
  0xd9   : > { %v12569_v25 = vpop.permute.xlu2 %1618  ;;  %v469_v1 = vrot.slane %v12591_v49, 4  ;;  %v467_v19 = vor.u32 %v465_v57, %v12591_v49  ;;  %3837 = vst.msk [vmem:[#allocation4 + $0x54] sm:$0xf] %vm243_vm0, %v3721_v21  ;;  %v1014_v15 = vrot.slane %v1012_v47, 5  ;;  %v2096_v51 = vrot.slane %v2095_v27, 4 }
  0xda   : > { %v3459_v31 = vpop.permute.xlu0 %3458  ;;  %v2100_v53 = vrot.slane %v2098_v55, 5  ;;  %v2622_v58 = vsel %vm12025_vm3, %v10179_v34, %v2621_v45  ;;  %v1018_v60 = vshll.u32 %v12629_v30, 16  ;;  %v1534_v36 = vsel %vm12025_vm3, %v1532_v11, %v1533_v18  ;;  %v315_v3 = vld [vmem:[%s12113_s7 + $0x40] sm:$0xf] }
  0xdb   : > { %3555 = vst.msk [vmem:[#allocation4] sm:$0xf] %vm15903_vm9, %v3459_v31  ;;  %v468_v31 = vsel %vm12168_vm14, %v460_v41, %v467_v19  ;;  %v1015_v59 = vor.u32 %v1014_v15, %v1011_v5  ;;  %v3190_v41 = vshll.u32 %v3040_v39, 16  ;;  %v1022_v0 = vshrl.u32 %v12629_v30, 16 }
  0xdc   : > { %713 = vst.msk [vmem:[#allocation2 + $0x64] sm:$0xf] %vm15905_vm8, %v468_v31  ;;  %v2101_v34 = vsel %vm12051_vm6, %v2096_v51, %v2100_v53  ;;  %v471_v13 = vshrl.u32 %v315_v3, 16  ;;  %v3171_v27 = vshrl.u32 %v3038_v12, 16  ;;  %v717_v31 = vld [vmem:[#allocation2 + $0x6c] sm:$0xf] }
  0xdd   : > { %1628 = vrot.lane.b32.xlu1 %v1531_v33, %s11956_s27  ;;  %v714_v33 = vld [vmem:[#allocation2 + $0x68] sm:$0x1]  ;;  %v2623_v39 = vrot.slane %v2621_v45, 4  ;;  %v2103_v51 = vshrl.u32 %v1949_v26, 16 }
  0xde   : > { %v3604_v63 = vld [vmem:[#allocation2 + $0x5c] sm:$0x1]  ;;  %v715_v35 = vsel %vm12175_vm15, %v469_v1, %v714_v33  ;;  %v3605_v1 = vld [vmem:[#allocation2 + $0x60] sm:$0xe]  ;;  %v12687_v33 = vld [vmem:[#allocation2 + $0x44] sm:$0x1] }
  0xdf   : > { %2911 = vrot.lane.b32.xlu2 %v2840_v28, %s11958_s8  ;;  %v1617_v2 = vpop.permute.xlu1 %1616  ;;  %v11368_v9 = vld [vmem:[#allocation4 + $0x4] sm:$0xf0]  ;;  %v3723_v56 = vrot.slane %v3604_v63, 5  ;;  %716 = vst [vmem:[#allocation2 + $0x68] sm:$0x1] %v715_v35  ;;  %v10197_v50 = vrot.slane %v3605_v1, 9 }
  0xe0   : > { %1290 = vrot.lane.b32.xlu0 %v1007_v42, %s11957_s28  ;;  %1711 = vst.msk [vmem:[#allocation4 + $0x10] sm:$0xf] %vm15904_vm4, %v1617_v2  ;;  %v12635_v42 = vrot.slane %v3180_v17, 5  ;;  %v11377_v2 = vld [vmem:[#allocation4 + $0x54] sm:$0xf] }
  0xe1   : > { %v2371_v46 = vpop.permute.xlu2 %2370  ;;  %v3724_v28 = vsel %vm12025_vm3, %v3722_v22, %v3723_v56  ;;  %v316_v17 = vld [vmem:[%s12113_s7 + $0x44] sm:$0xf]  ;;  %v473_v22 = vrot.slane %v471_v13, 7  ;;  %v318_v1 = vld [vmem:[%s12113_s7 + $0x4c] sm:$0xf] }
  0xe2   : > { %v1279_v44 = vpop.permute.xlu0 %1278  ;;  %v10209_v62 = vld [vmem:[#allocation4] sm:$0xf]  ;;  %3838 = vst.msk [vmem:[#allocation4 + $0x5c] sm:$0xf] %vm243_vm0, %v3724_v28  ;;  %v3187_v55 = vor.u32 %v3186_v7, %v12635_v42  ;;  %v3174_v28 = vshll.u32 %v3038_v12, 16  ;;  %v479_v15 = vshrl.u32 %v316_v17, 16 }
  0xe3   : > { %1372 = vst.msk [vmem:[#allocation4 + $0x18] sm:$0xf] %vm15906_vm2, %v1279_v44  ;;  %v10210_v20 = vor.u32 %v11368_v9, %v10209_v62  ;;  %v12665_v9 = vrot.slane %v1018_v60, 5  ;;  %v474_v44 = vshll.u32 %v315_v3, 16  ;;  %v2842_v62 = vld [vmem:[#allocation2 + $0x4c] sm:$0xf] }
  0xe4   : > { %1712 = vst.msk [vmem:[#allocation4 + $0x18] sm:$0xf] %vm15904_vm4, %v12569_v25  ;;  %v2081_v25 = vrot.slane %v2079_v8, 4  ;;  %v12663_v8 = vrot.slane %v1015_v59, 4  ;;  %v12671_v63 = vrot.slane %v3187_v55, 4  ;;  %v482_v53 = vshll.u32 %v316_v17, 16 }
  0xe5   : > { %4168 = vmatmul.bf16.vlgmr.msra.gmra.mxu0 %v10210_v20  ;;  %1823 = vrot.lane.b32.xlu1 %v1750_v10, %s11959_s9  ;;  %v12667_v10 = vrot.slane %v3190_v41, 5  ;;  %v3606_v56 = vld [vmem:[#allocation2 + $0x64] sm:$0xf]  ;;  %v3176_v29 = vrot.slane %v3174_v28, 5  ;;  %v477_v59 = vrot.slane %v473_v22, 4  ;;  %v481_v60 = vrot.slane %v479_v15, 7 }
  0xe6   : > { %v2085_v40 = vor.u32 %v2084_v32, %v2081_v25  ;;  %v2509_v20 = vld [vmem:[#allocation2 + $0x44] sm:$0x1]  ;;  %v3727_v21 = vrot.slane %v3606_v56, 5  ;;  %v2841_v25 = vld [vmem:[#allocation2 + $0x48] sm:$0xf] }
  0xe7   : > { %1288 = vrot.lane.b32.xlu2 %v997_v14, %s11957_s28  ;;  %v1812_v38 = vpop.permute.xlu1 %1811  ;;  %v2624_v7 = vrot.slane %v2509_v20, 5  ;;  %v721_v41 = vld [vmem:[#allocation2 + $0x74] sm:$0x1]  ;;  %v12717_v56 = vld [vmem:[#allocation2 + $0x4c] sm:$0xf]  ;;  %v496_v20 = vshrl.u32 %v318_v1, 16 }
  0xe8   : > { %1821 = vrot.lane.b32.xlu0 %v1749_v23, %s11959_s9  ;;  %1905 = vst.msk [vmem:[#allocation4 + $0x18] sm:$0xf] %vm1901_vm5, %v1812_v38  ;;  %v2086_v47 = vrot.slane %v2085_v40, 4  ;;  %v3607_v23 = vld [vmem:[#allocation2 + $0x68] sm:$0x1]  ;;  %v3728_v32 = vsel %vm12025_vm3, %v10197_v50, %v3727_v21  ;;  %v3729_v5 = vrot.slane %v3727_v21, 4 }
  0xe9   : > { %v2710_v49 = vpop.permute.xlu2 %2709  ;;  %v10251_v61 = vld [vmem:[#allocation4 + $0x58] sm:$0xf0]  ;;  %v3730_v18 = vrot.slane %v3607_v23, 5  ;;  %v12689_v38 = vld [vmem:[#allocation2 + $0x3c] sm:$0xe]  ;;  %v2105_v50 = vrot.slane %v2103_v51, 4 }
  0xea   : > { %v1810_v57 = vpop.permute.xlu0 %1809  ;;  %v10254_v6 = vor.u32 %v11377_v2, %v10251_v61  ;;  %v2091_v19 = vsel %vm12051_vm6, %v2086_v47, %v12583_v37  ;;  %v476_v37 = vor.u32 %v474_v44, %v473_v22  ;;  %3839 = vst.msk [vmem:[#allocation4 + $0x64] sm:$0xf] %vm243_vm0, %v3728_v32  ;;  %v317_v40 = vld [vmem:[%s12113_s7 + $0x48] sm:$0xf]  ;;  %v10164_v61 = vrot.slane %v12689_v38, 9 }
  0xeb   : > { %1904 = vst.msk [vmem:[#allocation4 + $0x10] sm:$0xf] %vm1901_vm5, %v1810_v57  ;;  %v3731_v35 = vsel %vm12025_vm3, %v3729_v5, %v3730_v18  ;;  %v3173_v57 = vrot.slane %v3171_v27, 4  ;;  %v488_v2 = vshrl.u32 %v317_v40, 16  ;;  %v491_v3 = vshll.u32 %v317_v40, 16 }
  0xec   : > { %2465 = vst.msk [vmem:[#allocation4 + $0x10] sm:$0xf] %vm2462_vm7, %v2371_v46  ;;  %v12669_v46 = vld [vmem:[#allocation2 + $0x40] sm:$0xf]  ;;  %10376 = vmatmul.msk.bf16.gmra.mxu1 %vm4111_vm1, %v10254_v6  ;;  %v718_v45 = vsel %vm12159_vm13, %v476_v37, %v717_v31  ;;  %v484_v47 = vor.u32 %v482_v53, %v481_v60  ;;  %v486_v6 = vrot.slane %v481_v60, 4  ;;  %v499_v27 = vshll.u32 %v318_v1, 16 }
  0xed   : > { %2719 = vrot.lane.b32.xlu1 %v2622_v58, %s11960_s10  ;;  %v1537_v11 = vrot.slane %v12669_v46, 5  ;;  %3840 = vst.msk [vmem:[#allocation4 + $0x6c] sm:$0xf] %vm243_vm0, %v3731_v35  ;;  %v3177_v13 = vor.u32 %v3176_v29, %v3173_v57  ;;  %v490_v44 = vrot.slane %v488_v2, 7  ;;  %v724_v22 = vld [vmem:[#allocation2 + $0x78] sm:$0xf] }
  0xee   : > { %719 = vst [vmem:[#allocation2 + $0x6c] sm:$0xf] %v718_v45  ;;  %v485_v17 = vsel %vm12168_vm14, %v477_v59, %v484_v47  ;;  %v854_v5 = vld [vmem:[#allocation2 + $0x44] sm:$0x1]  ;;  %v12736_v15 = vld [vmem:[#allocation2 + $0x50] sm:$0x1] }
  0xef   : > { %1630 = vrot.lane.b32.xlu2 %v1534_v36, %s11956_s27  ;;  %v2708_v43 = vpop.permute.xlu1 %2707  ;;  %v1021_v36 = vsel %vm12051_vm6, %v12663_v8, %v12665_v9  ;;  %v2625_v8 = vsel %vm12025_vm3, %v2623_v39, %v2624_v7  ;;  %v493_v21 = vor.u32 %v491_v3, %v490_v44  ;;  %720 = vst.msk [vmem:[#allocation2 + $0x70] sm:$0xf] %vm15905_vm8, %v485_v17  ;;  %v3178_v32 = vrot.slane %v3177_v13, 4  ;;  %v12751_v35 = vld [vmem:[#allocation2 + $0x48] sm:$0xe] }
  0xf0   : > { %2384 = vrot.lane.b32.xlu0 %v2101_v34, %s11961_s11  ;;  %2802 = vst.msk [vmem:[#allocation4 + $0x10] sm:$0xf] %vm15902_vm11, %v2708_v43  ;;  %v1540_v34 = vrot.slane %v12687_v33, 5  ;;  %v498_v30 = vrot.slane %v496_v20, 7  ;;  %v1538_v31 = vsel %vm12025_vm3, %v10164_v61, %v1537_v11  ;;  %v2628_v39 = vrot.slane %v12717_v56, 5 }
  0xf1   : > { %v12675_v14 = vpop.permute.xlu2 %3462  ;;  %v11379_v23 = vld [vmem:[#allocation4 + $0x64] sm:$0xf]  ;;  %v1028_v53 = vshll.u32 %v854_v5, 16  ;;  %v728_v46 = vld [vmem:[#allocation2 + $0x80] sm:$0x1]  ;;  %v3183_v59 = vsel %vm12051_vm6, %v3178_v32, %v12635_v42  ;;  %v10180_v1 = vrot.slane %v12751_v35, 9 }
  0xf2   : > { %v2373_v24 = vpop.permute.xlu0 %2372  ;;  %v501_v40 = vor.u32 %v499_v27, %v498_v30  ;;  %v12772_v42 = vrot.slane %v2628_v39, 4  ;;  %v1752_v5 = vld [vmem:[#allocation2 + $0x4c] sm:$0xf]  ;;  %v731_v35 = vld [vmem:[#allocation2 + $0x84] sm:$0xf] }
  0xf3   : > { %2466 = vst.msk [vmem:[#allocation4 + $0x18] sm:$0xf] %vm2462_vm7, %v2373_v24  ;;  %v3193_v24 = vsel %vm12051_vm6, %v12671_v63, %v12667_v10  ;;  %v3041_v10 = vld [vmem:[#allocation2 + $0x54] sm:$0xf]  ;;  %v494_v63 = vrot.slane %v490_v44, 4  ;;  %v1030_v61 = vrot.slane %v1028_v53, 5 }
  0xf4   : > { %2803 = vst.msk [vmem:[#allocation4 + $0x18] sm:$0xf] %vm15902_vm11, %v2710_v49  ;;  %v2106_v49 = vshll.u32 %v1949_v26, 16  ;;  %v10259_v18 = vld [vmem:[#allocation4 + $0x68] sm:$0xf0]  ;;  %v1024_v26 = vrot.slane %v1022_v0, 4  ;;  %v725_v0 = vsel %vm12159_vm13, %v493_v21, %v724_v22 }
  0xf5   : > { %2915 = vrot.lane.b32.xlu1 %v2842_v62, %s11958_s8  ;;  %v12715_v62 = vld [vmem:[#allocation2 + $0x4c] sm:$0xf]  ;;  %v10262_v28 = vor.u32 %v11379_v23, %v10259_v18  ;;  %726 = vst [vmem:[#allocation2 + $0x78] sm:$0xf] %v725_v0  ;;  %v3198_v60 = vshll.u32 %v3041_v10, 16 }
  0xf6   : > { %v2108_v12 = vrot.slane %v2106_v49, 5  ;;  %v2112_v38 = vshll.u32 %v12715_v62, 16  ;;  %v3608_v7 = vld [vmem:[#allocation2 + $0x6c] sm:$0xe]  ;;  %v1025_v51 = vor.u32 %v1024_v26, %v12665_v9  ;;  %v503_v49 = vrot.slane %v498_v30, 4 }
  0xf7   : > { %2382 = vrot.lane.b32.xlu2 %v2091_v19, %s11961_s11  ;;  %v2904_v58 = vpop.permute.xlu1 %2903  ;;  %v722_v19 = vsel %vm12175_vm15, %v486_v6, %v721_v41  ;;  %v2116_v45 = vshrl.u32 %v12715_v62, 16  ;;  %v10198_v9 = vrot.slane %v3608_v7, 9  ;;  %v502_v41 = vsel %vm12168_vm14, %v494_v63, %v501_v40  ;;  %v3609_v2 = vld [vmem:[#allocation2 + $0x70] sm:$0xf]  ;;  %v12789_v21 = vld [vmem:[#allocation2 + $0x4c] sm:$0xf] }
  0xf8   : > { %2913 = vrot.lane.b32.xlu0 %v2841_v25, %s11958_s8  ;;  %2997 = vst.msk [vmem:[#allocation4 + $0x18] sm:$0xf] %vm2993_vm12, %v2904_v58  ;;  %v2109_v25 = vor.u32 %v2108_v12, %v2105_v50  ;;  %v3195_v58 = vshrl.u32 %v3041_v10, 16  ;;  %v729_v3 = vsel %vm12175_vm15, %v503_v49, %v728_v46  ;;  %v3734_v6 = vrot.slane %v3609_v2, 5  ;;  %v12775_v50 = vld [vmem:[#allocation2 + $0x58] sm:$0xf] }
  0xf9   : > { %v1283_v55 = vpop.permute.xlu2 %1282  ;;  %723 = vst [vmem:[#allocation2 + $0x74] sm:$0x1] %v722_v19  ;;  %v12782_v17 = vrot.slane %v3198_v60, 5  ;;  %v12785_v19 = vld [vmem:[%s12113_s7 + $0x50] sm:$0xf]  ;;  %v1042_v30 = vshll.u32 %v12789_v21, 16 }
  0xfa   : > { %1374 = vst.msk [vmem:[#allocation4 + $0x28] sm:$0xf] %vm15906_vm2, %v1283_v55  ;;  %v2902_v43 = vpop.permute.xlu0 %2901  ;;  %v2110_v29 = vrot.slane %v2109_v25, 4  ;;  %v2631_v55 = vrot.slane %v12736_v15, 5  ;;  %v12777_v12 = vrot.slane %v3195_v58, 4  ;;  %v3735_v44 = vsel %vm12025_vm3, %v10198_v9, %v3734_v6 }
  0xfb   : > { %2996 = vst.msk [vmem:[#allocation4 + $0x10] sm:$0xf] %vm2993_vm12, %v2902_v43  ;;  %v320_v18 = vld [vmem:[%s12113_s7 + $0x54] sm:$0xf]  ;;  %v505_v25 = vshrl.u32 %v12785_v19, 16  ;;  %v508_v58 = vshll.u32 %v12785_v19, 16 }
  0xfc   : > { %3557 = vst.msk [vmem:[#allocation4 + $0x10] sm:$0xf] %vm15903_vm9, %v12675_v14  ;;  %v1539_v14 = vrot.slane %v1537_v11, 4  ;;  %10377 = vmatmul.msk.bf16.gmra.mxu1 %vm4111_vm1, %v10262_v28  ;;  %v3204_v28 = vshll.u32 %v12775_v50, 16  ;;  %v779_v10 = vld [vmem:[#allocation2 + $0x24] sm:$0xf]  ;;  %v2632_v62 = vsel %vm12025_vm3, %v12772_v42, %v2631_v55 }
  0xfd   : > { %1292 = vrot.lane.b32.xlu1 %v1021_v36, %s11957_s28  ;;  %v12763_v36 = vrot.slane %v2112_v38, 5  ;;  %727 = vst.msk [vmem:[#allocation2 + $0x7c] sm:$0xf] %vm15905_vm8, %v502_v41  ;;  %v3611_v63 = vld [vmem:[#allocation2 + $0x78] sm:$0xe]  ;;  %v1046_v38 = vshrl.u32 %v12789_v21, 16 }
  0xfe   : > { %v1541_v11 = vsel %vm12025_vm3, %v1539_v14, %v1540_v34  ;;  %v1026_v34 = vrot.slane %v1025_v51, 4  ;;  %730 = vst [vmem:[#allocation2 + $0x80] sm:$0x1] %v729_v3  ;;  %v855_v0 = vld [vmem:[#allocation2 + $0x48] sm:$0xf]  ;;  %v513_v51 = vshrl.u32 %v320_v18, 16 }
  0xff   : > { %2721 = vrot.lane.b32.xlu2 %v2625_v8, %s11960_s10  ;;  %v1281_v37 = vpop.permute.xlu1 %1280  ;;  %v3736_v8 = vrot.slane %v3734_v6, 4  ;;  %3841 = vst.msk [vmem:[#allocation4 + $0x74] sm:$0xf] %vm243_vm0, %v3735_v44  ;;  %v2115_v14 = vsel %vm12051_vm6, %v2110_v29, %v12763_v36  ;;  %v1033_v46 = vshrl.u32 %v855_v0, 16  ;;  %v516_v2 = vshll.u32 %v320_v18, 16 }
 0x100   : > { %3476 = vrot.lane.b32.xlu0 %v3193_v24, %s11962_s12  ;;  %1373 = vst.msk [vmem:[#allocation4 + $0x20] sm:$0xf] %vm15906_vm2, %v1281_v37  ;;  %v3610_v47 = vld [vmem:[#allocation2 + $0x74] sm:$0x1]  ;;  %v780_v24 = vld [vmem:[#allocation2 + $0x28] sm:$0xf]  ;;  %v1031_v37 = vsel %vm12051_vm6, %v1026_v34, %v1030_v61  ;;  %v3201_v6 = vor.u32 %v12782_v17, %v12777_v12 }
 0x101   : > { %v12746_v33 = vpop.permute.xlu2 %1813  ;;  %v3737_v43 = vrot.slane %v3610_v47, 5  ;;  %812 = vst.msk [vmem:[#allocation4 + $0x38] sm:$0xf] %vm243_vm0, %v780_v24  ;;  %v1036_v3 = vshll.u32 %v855_v0, 16  ;;  %v515_v34 = vrot.slane %v513_v51, 7  ;;  %v12835_v19 = vrot.slane %v1042_v30, 5 }
 0x102   : > { %v3465_v57 = vpop.permute.xlu0 %3464  ;;  %811 = vst.msk [vmem:[#allocation4 + $0x30] sm:$0xf] %vm243_vm0, %v779_v10  ;;  %v857_v15 = vld [vmem:[#allocation2 + $0x50] sm:$0x1]  ;;  %v1035_v21 = vrot.slane %v1033_v46, 4  ;;  %v12847_v24 = vrot.slane %v3204_v28, 5 }
 0x103   : > { %3558 = vst.msk [vmem:[#allocation4 + $0x18] sm:$0xf] %vm15903_vm9, %v3465_v57  ;;  %v10217_v20 = vld [vmem:[#allocation4 + $0x10] sm:$0xf]  ;;  %v3738_v22 = vsel %vm12025_vm3, %v3736_v8, %v3737_v43  ;;  %v1951_v57 = vld [vmem:[#allocation2 + $0x50] sm:$0x1]  ;;  %v518_v12 = vor.u32 %v516_v2, %v515_v34 }
 0x104   : > { %3842 = vst.msk [vmem:[#allocation4 + $0x7c] sm:$0xf] %vm243_vm0, %v3738_v22  ;;  %v3612_v7 = vld [vmem:[#allocation2 + $0x7c] sm:$0xf]  ;;  %v1751_v43 = vld [vmem:[#allocation2 + $0x48] sm:$0xf] }
 0x105   : > { %1634 = vrot.lane.b32.xlu1 %v1541_v11, %s11956_s27  ;;  %v3613_v53 = vld [vmem:[#allocation2 + $0x80] sm:$0x1]  ;;  %v3741_v40 = vrot.slane %v3612_v7, 5  ;;  %v2118_v11 = vrot.slane %v2116_v45, 4  ;;  %v2122_v42 = vshll.u32 %v1951_v57, 16  ;;  %v520_v17 = vrot.slane %v515_v34, 4 }
 0x106   : > { %v3744_v29 = vrot.slane %v3613_v53, 5  ;;  %v1038_v22 = vrot.slane %v1036_v3, 5  ;;  %v1052_v18 = vshll.u32 %v857_v15, 16  ;;  %v2844_v7 = vld [vmem:[#allocation2 + $0x58] sm:$0xf] }
 0x107   : > { %3474 = vrot.lane.b32.xlu2 %v3183_v59, %s11962_s12  ;;  %v1623_v13 = vpop.permute.xlu1 %1622  ;;  %v11381_v59 = vld [vmem:[#allocation4 + $0x74] sm:$0xf]  ;;  %v3743_v41 = vrot.slane %v3741_v40, 4  ;;  %v2119_v55 = vor.u32 %v2118_v11, %v12763_v36  ;;  %v2629_v36 = vsel %vm12025_vm3, %v10180_v1, %v2628_v39  ;;  %v2124_v1 = vrot.slane %v2122_v42, 5  ;;  %v2843_v42 = vld [vmem:[#allocation2 + $0x54] sm:$0xf] }
 0x108   : > { %1632 = vrot.lane.b32.xlu0 %v1538_v31, %s11956_s27  ;;  %1714 = vst.msk [vmem:[#allocation4 + $0x28] sm:$0xf] %vm15904_vm4, %v1623_v13  ;;  %v10199_v31 = vrot.slane %v3611_v63, 9  ;;  %v1039_v10 = vor.u32 %v1038_v22, %v1035_v21  ;;  %v322_v63 = vld [vmem:[%s12113_s7 + $0x5c] sm:$0xf]  ;;  %v1054_v46 = vrot.slane %v1052_v18, 5 }
 0x109   : > { %v2377_v23 = vpop.permute.xlu2 %2376  ;;  %v3745_v13 = vsel %vm12025_vm3, %v3743_v41, %v3744_v29  ;;  %v2120_v39 = vrot.slane %v2119_v55, 4  ;;  %v1954_v21 = vld [vmem:[#allocation2 + $0x5c] sm:$0x1] }
 0x10a   : > { %v1621_v26 = vpop.permute.xlu0 %1620  ;;  %v11370_v27 = vld [vmem:[#allocation4 + $0x14] sm:$0xf0]  ;;  %v3742_v60 = vsel %vm12025_vm3, %v10199_v31, %v3741_v40  ;;  %3844 = vst.msk [vmem:[#allocation4 + $0x8c] sm:$0xf] %vm243_vm0, %v3745_v13  ;;  %v3208_v31 = vshrl.u32 %v12775_v50, 16  ;;  %v12874_v50 = vrot.slane %v1039_v10, 4 }
 0x10b   : > { %1713 = vst.msk [vmem:[#allocation4 + $0x20] sm:$0xf] %vm15904_vm4, %v1621_v26  ;;  %v10218_v32 = vor.u32 %v11370_v27, %v10217_v20  ;;  %v10267_v45 = vld [vmem:[#allocation4 + $0x78] sm:$0xf0]  ;;  %v1048_v20 = vrot.slane %v1046_v38, 4  ;;  %v2125_v51 = vsel %vm12051_vm6, %v2120_v39, %v2124_v1 }
 0x10c   : > { %1906 = vst.msk [vmem:[#allocation4 + $0x20] sm:$0xf] %vm1901_vm5, %v12746_v33  ;;  %v507_v33 = vrot.slane %v505_v25, 7  ;;  %v10270_v47 = vor.u32 %v11381_v59, %v10267_v45  ;;  %v1952_v40 = vld [vmem:[#allocation2 + $0x54] sm:$0xf]  ;;  %v3210_v34 = vrot.slane %v3208_v31, 4 }
 0x10d   : > { %4173 = vmatmul.bf16.gmra.mxu0 %v10218_v32  ;;  %2386 = vrot.lane.b32.xlu1 %v2115_v14, %s11961_s11  ;;  %3843 = vst.msk [vmem:[#allocation4 + $0x84] sm:$0xf] %vm243_vm0, %v3742_v60  ;;  %v735_v14 = vld [vmem:[#allocation2 + $0x8c] sm:$0x1]  ;;  %v1049_v25 = vor.u32 %v1048_v20, %v12835_v19  ;;  %v1953_v32 = vld [vmem:[#allocation2 + $0x58] sm:$0xf] }
 0x10e   : > { %v511_v44 = vrot.slane %v507_v33, 4  ;;  %v510_v8 = vor.u32 %v508_v58, %v507_v33  ;;  %10378 = vmatmul.msk.bf16.gmra.mxu1 %vm4111_vm1, %v10270_v47  ;;  %v2136_v53 = vshll.u32 %v1953_v32, 16  ;;  %v530_v33 = vshrl.u32 %v322_v63, 16  ;;  %v3043_v13 = vld [vmem:[#allocation2 + $0x5c] sm:$0x1] }
 0x10f   : > { %1294 = vrot.lane.b32.xlu2 %v1031_v37, %s11957_s28  ;;  %v2375_v49 = vpop.permute.xlu1 %2374  ;;  %v321_v37 = vld [vmem:[%s12113_s7 + $0x58] sm:$0xf]  ;;  %v2140_v58 = vshrl.u32 %v1953_v32, 16  ;;  %v2127_v59 = vshrl.u32 %v1952_v40, 16  ;;  %v1421_v10 = vld [vmem:[#allocation2 + $0x50] sm:$0x1] }
 0x110   : > { %1827 = vrot.lane.b32.xlu0 %v1752_v5, %s11959_s9  ;;  %2467 = vst.msk [vmem:[#allocation4 + $0x20] sm:$0xf] %vm2462_vm7, %v2375_v49  ;;  %v519_v56 = vsel %vm12168_vm14, %v511_v44, %v518_v12  ;;  %v732_v27 = vsel %vm12159_vm13, %v510_v8, %v731_v35  ;;  %v736_v5 = vsel %vm12175_vm15, %v520_v17, %v735_v14  ;;  %v522_v38 = vshrl.u32 %v321_v37, 16  ;;  %v738_v17 = vld [vmem:[#allocation2 + $0x90] sm:$0xf] }
 0x111   : > { %v12817_v9 = vpop.permute.xlu2 %2905  ;;  %734 = vst.msk [vmem:[#allocation2 + $0x88] sm:$0xf] %vm15905_vm8, %v519_v56  ;;  %v1050_v49 = vrot.slane %v1049_v25, 4  ;;  %v525_v57 = vshll.u32 %v321_v37, 16  ;;  %v10275_v29 = vld [vmem:[#allocation4 + $0x88] sm:$0xf0]  ;;  %v3211_v35 = vor.u32 %v3210_v34, %v12847_v24 }
 0x112   : > { %v1816_v61 = vpop.permute.xlu0 %1815  ;;  %733 = vst [vmem:[#allocation2 + $0x84] sm:$0xf] %v732_v27  ;;  %v524_v41 = vrot.slane %v522_v38, 7  ;;  %v532_v2 = vrot.slane %v530_v33, 7  ;;  %v12877_v3 = vrot.slane %v2136_v53, 5  ;;  %v2142_v22 = vrot.slane %v2140_v58, 4 }
 0x113   : > { %1907 = vst.msk [vmem:[#allocation4 + $0x28] sm:$0xf] %vm1901_vm5, %v1816_v61  ;;  %v1055_v55 = vsel %vm12051_vm6, %v1050_v49, %v1054_v46  ;;  %v323_v27 = vld [vmem:[%s12113_s7 + $0x60] sm:$0xf]  ;;  %v742_v32 = vld [vmem:[#allocation2 + $0x98] sm:$0x1] }
 0x114   : > { %2468 = vst.msk [vmem:[#allocation4 + $0x28] sm:$0xf] %vm2462_vm7, %v2377_v23  ;;  %v3202_v23 = vrot.slane %v3201_v6, 4  ;;  %v11383_v11 = vld [vmem:[#allocation4 + $0x84] sm:$0xf]  ;;  %v527_v15 = vor.u32 %v525_v57, %v524_v41  ;;  %v528_v18 = vrot.slane %v524_v41, 4 }
 0x115   : > { %2725 = vrot.lane.b32.xlu1 %v2632_v62, %s11960_s10  ;;  %737 = vst [vmem:[#allocation2 + $0x8c] sm:$0x1] %v736_v5  ;;  %v533_v62 = vshll.u32 %v322_v63, 16  ;;  %v10278_v47 = vor.u32 %v11383_v11, %v10275_v29  ;;  %v537_v1 = vrot.slane %v532_v2, 4  ;;  %v2129_v37 = vrot.slane %v2127_v59, 4 }
 0x116   : > { %v3207_v0 = vsel %vm12051_vm6, %v3202_v23, %v12847_v24  ;;  %v739_v25 = vsel %vm12159_vm13, %v527_v15, %v738_v17  ;;  %v1045_v24 = vsel %vm12051_vm6, %v12874_v50, %v12835_v19  ;;  %v2143_v63 = vor.u32 %v2142_v22, %v12877_v3  ;;  %v324_v53 = vld [vmem:[%s12113_s7 + $0x64] sm:$0xf]  ;;  %v745_v22 = vld [vmem:[#allocation2 + $0x9c] sm:$0xf] }
 0x117   : > { %1825 = vrot.lane.b32.xlu2 %v1751_v43, %s11959_s9  ;;  %v2714_v26 = vpop.permute.xlu1 %2713  ;;  %v12883_v43 = vld [vmem:[#allocation2 + $0x4c] sm:$0xf]  ;;  %v535_v56 = vor.u32 %v533_v62, %v532_v2  ;;  %v539_v31 = vshrl.u32 %v323_v27, 16  ;;  %v3212_v38 = vrot.slane %v3211_v35, 4  ;;  %740 = vst [vmem:[#allocation2 + $0x90] sm:$0xf] %v739_v25 }
 0x118   : > { %2723 = vrot.lane.b32.xlu0 %v2629_v36, %s11960_s10  ;;  %2805 = vst.msk [vmem:[#allocation4 + $0x28] sm:$0xf] %vm15902_vm11, %v2714_v26  ;;  %v3615_v60 = vld [vmem:[#allocation2 + $0x88] sm:$0xf]  ;;  %v3214_v26 = vshll.u32 %v3043_v13, 16  ;;  %v1544_v5 = vrot.slane %v12883_v43, 5 }
 0x119   : > { %v12857_v28 = vpop.permute.xlu2 %3468  ;;  %v3748_v61 = vrot.slane %v3615_v60, 5  ;;  %v3614_v44 = vld [vmem:[#allocation2 + $0x84] sm:$0xe]  ;;  %v542_v49 = vshll.u32 %v323_v27, 16  ;;  %v1547_v50 = vrot.slane %v1421_v10, 5  ;;  %v12921_v29 = vrot.slane %v2143_v63, 4 }
 0x11a   : > { %v2712_v30 = vpop.permute.xlu0 %2711  ;;  %v10200_v20 = vrot.slane %v3614_v44, 9  ;;  %v1546_v57 = vrot.slane %v1544_v5, 4  ;;  %v12923_v59 = vrot.slane %v539_v31, 7  ;;  %v547_v60 = vshrl.u32 %v324_v53, 16  ;;  %v782_v10 = vld [vmem:[#allocation2 + $0x34] sm:$0xf] }
 0x11b   : > { %2804 = vst.msk [vmem:[#allocation4 + $0x20] sm:$0xf] %vm15902_vm11, %v2712_v30  ;;  %v3750_v12 = vrot.slane %v3748_v61, 4 }
 0x11c   : > { %2998 = vst.msk [vmem:[#allocation4 + $0x20] sm:$0xf] %vm2993_vm12, %v12817_v9  ;;  %v2130_v9 = vshll.u32 %v1952_v40, 16  ;;  %v3616_v8 = vld [vmem:[#allocation2 + $0x8c] sm:$0x1]  ;;  %v3749_v39 = vsel %vm12025_vm3, %v10200_v20, %v3748_v61  ;;  %v544_v13 = vor.u32 %v542_v49, %v12923_v59  ;;  %v1548_v44 = vsel %vm12025_vm3, %v1546_v57, %v1547_v50 }
 0x11d   : > { %3478 = vrot.lane.b32.xlu1 %v3207_v0, %s11962_s12  ;;  %v3751_v23 = vrot.slane %v3616_v8, 5  ;;  %3845 = vst.msk [vmem:[#allocation4 + $0x94] sm:$0xf] %vm243_vm0, %v3749_v39  ;;  %v536_v0 = vsel %vm12168_vm14, %v528_v18, %v535_v56  ;;  %v1753_v40 = vld [vmem:[#allocation2 + $0x54] sm:$0xf]  ;;  %v550_v20 = vshll.u32 %v324_v53, 16 }
 0x11e   : > { %10379 = vmatmul.msk.bf16.gmra.mxu1 %vm4111_vm1, %v10278_v47  ;;  %v2132_v30 = vrot.slane %v2130_v9, 5  ;;  %741 = vst.msk [vmem:[#allocation2 + $0x94] sm:$0xf] %vm15905_vm8, %v536_v0  ;;  %v781_v9 = vld [vmem:[#allocation2 + $0x30] sm:$0xf]  ;;  %v746_v39 = vsel %vm12159_vm13, %v544_v13, %v745_v22  ;;  %v545_v63 = vrot.slane %v12923_v59, 4 }
 0x11f   : > { %2388 = vrot.lane.b32.xlu2 %v2125_v51, %s11961_s11  ;;  %v3467_v45 = vpop.permute.xlu1 %3466  ;;  %v3752_v14 = vsel %vm12025_vm3, %v3750_v12, %v3751_v23  ;;  %v743_v51 = vsel %vm12175_vm15, %v537_v1, %v742_v32  ;;  %v1419_v61 = vld [vmem:[#allocation2 + $0x48] sm:$0xe]  ;;  %v3045_v47 = vld [vmem:[#allocation2 + $0x64] sm:$0xf]  ;;  %813 = vst.msk [vmem:[#allocation4 + $0x40] sm:$0xf] %vm243_vm0, %v781_v9 }
 0x120   : > { %2919 = vrot.lane.b32.xlu0 %v2844_v7, %s11958_s8  ;;  %3559 = vst.msk [vmem:[#allocation4 + $0x20] sm:$0xf] %vm15903_vm9, %v3467_v45  ;;  %v3216_v7 = vrot.slane %v3214_v26, 5  ;;  %v2133_v2 = vor.u32 %v2132_v30, %v2129_v37  ;;  %v12928_v45 = vld [vmem:[#allocation2 + $0x58] sm:$0xf]  ;;  %v3228_v35 = vshll.u32 %v3045_v47, 16 }
 0x121   : > { %v12881_v6 = vpop.permute.xlu2 %1624  ;;  %3846 = vst.msk [vmem:[#allocation4 + $0x9c] sm:$0xf] %vm243_vm0, %v3752_v14  ;;  %v3617_v8 = vld [vmem:[#allocation2 + $0x90] sm:$0xe]  ;;  %v2635_v56 = vrot.slane %v12928_v45, 5  ;;  %v3232_v1 = vshrl.u32 %v3045_v47, 16 }
 0x122   : > { %v2908_v36 = vpop.permute.xlu0 %2907  ;;  %744 = vst [vmem:[#allocation2 + $0x98] sm:$0x1] %v743_v51  ;;  %v3217_v62 = vsel %vm12051_vm6, %v3212_v38, %v3216_v7  ;;  %v2134_v17 = vrot.slane %v2133_v2, 4  ;;  %v2515_v0 = vld [vmem:[#allocation2 + $0x5c] sm:$0x1]  ;;  %v12965_v49 = vrot.slane %v3228_v35, 5 }
 0x123   : > { %2999 = vst.msk [vmem:[#allocation4 + $0x28] sm:$0xf] %vm2993_vm12, %v2908_v36  ;;  %v10165_v36 = vrot.slane %v1419_v61, 9  ;;  %v749_v51 = vld [vmem:[#allocation2 + $0xa4] sm:$0x1]  ;;  %v2638_v9 = vrot.slane %v2515_v0, 5 }
 0x124   : > { %3560 = vst.msk [vmem:[#allocation4 + $0x28] sm:$0xf] %vm15903_vm9, %v12857_v28  ;;  %v2146_v28 = vshll.u32 %v1954_v21, 16  ;;  %v11385_v15 = vld [vmem:[#allocation4 + $0x94] sm:$0xf]  ;;  %v10201_v21 = vrot.slane %v3617_v8, 9  ;;  %v2139_v43 = vsel %vm12051_vm6, %v2134_v17, %v12877_v3 }
 0x125   : > { %1298 = vrot.lane.b32.xlu1 %v1055_v55, %s11957_s28  ;;  %v3618_v26 = vld [vmem:[#allocation2 + $0x94] sm:$0xf]  ;;  %747 = vst [vmem:[#allocation2 + $0x9c] sm:$0xf] %v746_v39  ;;  %v1545_v31 = vsel %vm12025_vm3, %v10165_v36, %v1544_v5  ;;  %v325_v53 = vld [vmem:[%s12113_s7 + $0x68] sm:$0xf] }
 0x126   : > { %v2148_v58 = vrot.slane %v2146_v28, 5  ;;  %v3755_v32 = vrot.slane %v3618_v26, 5  ;;  %v3046_v5 = vld [vmem:[#allocation2 + $0x68] sm:$0x1]  ;;  %v556_v50 = vshrl.u32 %v325_v53, 16 }
 0x127   : > { %2917 = vrot.lane.b32.xlu2 %v2843_v42, %s11958_s8  ;;  %v1287_v19 = vpop.permute.xlu1 %1286  ;;  %v10225_v46 = vld [vmem:[#allocation4 + $0x20] sm:$0xf]  ;;  %v3044_v42 = vld [vmem:[#allocation2 + $0x60] sm:$0xf]  ;;  %814 = vst.msk [vmem:[#allocation4 + $0x48] sm:$0xf] %vm243_vm0, %v782_v10 }
 0x128   : > { %1296 = vrot.lane.b32.xlu0 %v1045_v24, %s11957_s28  ;;  %1376 = vst.msk [vmem:[#allocation4 + $0x38] sm:$0xf] %vm15906_vm2, %v1287_v19  ;;  %v10283_v55 = vld [vmem:[#allocation4 + $0x98] sm:$0xf0]  ;;  %v3219_v27 = vshrl.u32 %v3044_v42, 16  ;;  %v3222_v14 = vshll.u32 %v3044_v42, 16  ;;  %v2149_v28 = vsel %vm12051_vm6, %v12921_v29, %v2148_v58  ;;  %v3756_v19 = vsel %vm12025_vm3, %v10201_v21, %v3755_v32 }
 0x129   : > { %v12916_v33 = vpop.permute.xlu2 %1819  ;;  %v10286_v23 = vor.u32 %v11385_v15, %v10283_v55  ;;  %v3619_v25 = vld [vmem:[#allocation2 + $0x98] sm:$0x1]  ;;  %v3757_v38 = vrot.slane %v3755_v32, 4  ;;  %3847 = vst.msk [vmem:[#allocation4 + $0xa4] sm:$0xf] %vm243_vm0, %v3756_v19  ;;  %v558_v61 = vrot.slane %v556_v50, 7 }
 0x12a   : > { %v1285_v11 = vpop.permute.xlu0 %1284  ;;  %v3758_v37 = vrot.slane %v3619_v25, 5  ;;  %v3221_v58 = vrot.slane %v3219_v27, 4  ;;  %v3224_v59 = vrot.slane %v3222_v14, 5  ;;  %v2845_v2 = vld [vmem:[#allocation2 + $0x60] sm:$0xf]  ;;  %v3238_v42 = vshll.u32 %v3046_v5, 16 }
 0x12b   : > { %1375 = vst.msk [vmem:[#allocation4 + $0x30] sm:$0xf] %vm15906_vm2, %v1285_v11  ;;  %v11372_v41 = vld [vmem:[#allocation4 + $0x24] sm:$0xf0]  ;;  %v559_v11 = vshll.u32 %v325_v53, 16  ;;  %v562_v17 = vrot.slane %v558_v61, 4 }
 0x12c   : > { %1715 = vst.msk [vmem:[#allocation4 + $0x30] sm:$0xf] %vm15904_vm4, %v12881_v6  ;;  %v10226_v34 = vor.u32 %v11372_v41, %v10225_v46  ;;  %v549_v6 = vrot.slane %v547_v60, 7  ;;  %v3234_v46 = vrot.slane %v3232_v1, 4  ;;  %v3759_v57 = vsel %vm12025_vm3, %v3757_v38, %v3758_v37  ;;  %v859_v13 = vld [vmem:[#allocation2 + $0x58] sm:$0xf] }
 0x12d   : > { %1829 = vrot.lane.b32.xlu1 %v1753_v40, %s11959_s9  ;;  %v326_v40 = vld [vmem:[%s12113_s7 + $0x6c] sm:$0xf]  ;;  %3848 = vst.msk [vmem:[#allocation4 + $0xac] sm:$0xf] %vm243_vm0, %v3759_v57  ;;  %v1754_v8 = vld [vmem:[#allocation2 + $0x58] sm:$0xf] }
 0x12e   : > { %4178 = vmatmul.bf16.gmra.mxu0 %v10226_v34  ;;  %v552_v30 = vor.u32 %v550_v20, %v549_v6  ;;  %v554_v7 = vrot.slane %v549_v6, 4  ;;  %10380 = vmatmul.msk.bf16.gmra.mxu1 %vm4111_vm1, %v10286_v23  ;;  %v564_v29 = vshrl.u32 %v326_v40, 16  ;;  %v567_v41 = vshll.u32 %v326_v40, 16  ;;  %v3620_v22 = vld [vmem:[#allocation2 + $0x9c] sm:$0xe] }
 0x12f   : > { %3480 = vrot.lane.b32.xlu2 %v3217_v62, %s11962_s12  ;;  %v1818_v12 = vpop.permute.xlu1 %1817  ;;  %v2637_v62 = vrot.slane %v2635_v56, 4  ;;  %v3235_v55 = vor.u32 %v3234_v46, %v12965_v49  ;;  %v561_v6 = vor.u32 %v559_v11, %v558_v61  ;;  %v3225_v20 = vor.u32 %v3224_v59, %v3221_v58  ;;  %v858_v37 = vld [vmem:[#allocation2 + $0x54] sm:$0xf]  ;;  %v860_v46 = vld [vmem:[#allocation2 + $0x5c] sm:$0x1] }
 0x130   : > { %1638 = vrot.lane.b32.xlu0 %v1548_v44, %s11956_s27  ;;  %1908 = vst.msk [vmem:[#allocation4 + $0x30] sm:$0xf] %vm1901_vm5, %v1818_v12  ;;  %v750_v60 = vsel %vm12175_vm15, %v554_v7, %v749_v51  ;;  %v12981_v47 = vrot.slane %v564_v29, 7  ;;  %v752_v44 = vld [vmem:[#allocation2 + $0xa8] sm:$0xf]  ;;  %v1066_v21 = vshll.u32 %v859_v13, 16 }
 0x131   : > { %v12940_v18 = vpop.permute.xlu2 %2715  ;;  %751 = vst [vmem:[#allocation2 + $0xa4] sm:$0x1] %v750_v60  ;;  %v2513_v12 = vld [vmem:[#allocation2 + $0x54] sm:$0xe]  ;;  %v753_v23 = vsel %vm12159_vm13, %v561_v6, %v752_v44  ;;  %v2639_v35 = vsel %vm12025_vm3, %v2637_v62, %v2638_v9  ;;  %v1070_v1 = vshrl.u32 %v859_v13, 16  ;;  %v3236_v27 = vrot.slane %v3235_v55, 4 }
 0x132   : > { %v1627_v24 = vpop.permute.xlu0 %1626  ;;  %v569_v36 = vor.u32 %v567_v41, %v12981_v47  ;;  %v11387_v26 = vld [vmem:[#allocation4 + $0xa4] sm:$0xf]  ;;  %v3240_v14 = vrot.slane %v3238_v42, 5  ;;  %v10181_v25 = vrot.slane %v2513_v12, 9  ;;  %754 = vst [vmem:[#allocation2 + $0xa8] sm:$0xf] %v753_v23 }
 0x133   : > { %1716 = vst.msk [vmem:[#allocation4 + $0x38] sm:$0xf] %vm15904_vm4, %v1627_v24  ;;  %v12995_v24 = vld [vmem:[#allocation2 + $0x54] sm:$0xe]  ;;  %v13003_v19 = vrot.slane %v1066_v21, 5  ;;  %v571_v7 = vrot.slane %v12981_v47, 4 }
 0x134   : > { %1909 = vst.msk [vmem:[#allocation4 + $0x38] sm:$0xf] %vm1901_vm5, %v12916_v33  ;;  %v553_v33 = vsel %vm12168_vm14, %v545_v63, %v552_v30  ;;  %v10291_v39 = vld [vmem:[#allocation4 + $0xa8] sm:$0xf0]  ;;  %v570_v10 = vsel %vm12168_vm14, %v562_v17, %v569_v36  ;;  %v756_v63 = vld [vmem:[#allocation2 + $0xb0] sm:$0x1]  ;;  %v3241_v5 = vsel %vm12051_vm6, %v3236_v27, %v3240_v14  ;;  %v2636_v57 = vsel %vm12025_vm3, %v10181_v25, %v2635_v56 }
 0x135   : > { %2392 = vrot.lane.b32.xlu1 %v2149_v28, %s11961_s11  ;;  %748 = vst.msk [vmem:[#allocation2 + $0xa0] sm:$0xf] %vm15905_vm8, %v553_v33  ;;  %v10202_v28 = vrot.slane %v3620_v22, 9  ;;  %v10294_v30 = vor.u32 %v11387_v26, %v10291_v39  ;;  %v1072_v51 = vrot.slane %v1070_v1, 4  ;;  %v1057_v29 = vshrl.u32 %v858_v37, 16  ;;  %v11558_v25 = vld [vmem:[#allocation6 + $0x30] sm:$0xff] }
 0x136   : > { %755 = vst.msk [vmem:[#allocation2 + $0xac] sm:$0xf] %vm15905_vm8, %v570_v10  ;;  %v10166_v56 = vrot.slane %v12995_v24, 9  ;;  %v757_v58 = vsel %vm12175_vm15, %v571_v7, %v756_v63  ;;  %v1076_v41 = vshll.u32 %v860_v46, 16  ;;  %v1957_v44 = vld [vmem:[#allocation2 + $0x68] sm:$0x1] }
 0x137   : > { %1636 = vrot.lane.b32.xlu2 %v1545_v31, %s11956_s27  ;;  %v2381_v3 = vpop.permute.xlu1 %2380  ;;  %v13001_v31 = vld [vmem:[#allocation2 + $0x58] sm:$0xf]  ;;  %v1073_v60 = vor.u32 %v1072_v51, %v13003_v19  ;;  %v1059_v61 = vrot.slane %v1057_v29, 4  ;;  %758 = vst [vmem:[#allocation2 + $0xb0] sm:$0x1] %v757_v58  ;;  %v2170_v39 = vshll.u32 %v1957_v44, 16 }
 0x138   : > { %2390 = vrot.lane.b32.xlu0 %v2139_v43, %s11961_s11  ;;  %2470 = vst.msk [vmem:[#allocation4 + $0x38] sm:$0xf] %vm2462_vm7, %v2381_v3  ;;  %v3622_v53 = vld [vmem:[#allocation2 + $0xa4] sm:$0x1]  ;;  %v1060_v3 = vshll.u32 %v858_v37, 16  ;;  %v1551_v59 = vrot.slane %v13001_v31, 5 }
 0x139   : > { %v2912_v34 = vpop.permute.xlu2 %2911  ;;  %v3765_v33 = vrot.slane %v3622_v53, 5  ;;  %v3623_v62 = vld [vmem:[#allocation2 + $0xa8] sm:$0xe]  ;;  %v1074_v42 = vrot.slane %v1073_v60, 4  ;;  %v2846_v36 = vld [vmem:[#allocation2 + $0x64] sm:$0xf] }
 0x13a   : > { %v2379_v15 = vpop.permute.xlu0 %2378  ;;  %v1062_v47 = vrot.slane %v1060_v3, 5  ;;  %v10203_v55 = vrot.slane %v3623_v62, 9  ;;  %v1552_v17 = vsel %vm12025_vm3, %v10166_v56, %v1551_v59  ;;  %v11575_v10 = vld [vmem:[#allocation6 + $0xb8] sm:$0xff]  ;;  %v13063_v53 = vrot.slane %v2170_v39, 5  ;;  %v11557_v3 = vld [vmem:[#allocation6 + $0x28] sm:$0xff]  ;;  %v11574_v58 = vld [vmem:[#allocation6 + $0xb0] sm:$0xff] }
 0x13b   : > { %2469 = vst.msk [vmem:[#allocation4 + $0x30] sm:$0xf] %vm2462_vm7, %v2379_v15  ;;  %v11559_v15 = vld [vmem:[#allocation6 + $0x38] sm:$0xff]  ;;  %9234 = vmatpush.bf16.msrb.mxu1 %v11575_v10  ;;  %v3048_v60 = vld [vmem:[#allocation2 + $0x70] sm:$0xf] }
 0x13c   : > { %2806 = vst.msk [vmem:[#allocation4 + $0x30] sm:$0xf] %vm15902_vm11, %v12940_v18  ;;  %v3226_v18 = vrot.slane %v3225_v20, 4  ;;  %v3621_v38 = vld [vmem:[#allocation2 + $0xa0] sm:$0xf]  ;;  %9056 = vmatpush.bf16.msra.mxu2 %v11559_v15  ;;  %v1063_v1 = vor.u32 %v1062_v47, %v1059_v61  ;;  %v11556_v39 = vld [vmem:[#allocation6 + $0x20] sm:$0xff] }
 0x13d   : > { %2921 = vrot.lane.b32.xlu1 %v2845_v2, %s11958_s8  ;;  %v3762_v40 = vrot.slane %v3621_v38, 5  ;;  %v3624_v6 = vld [vmem:[#allocation2 + $0xac] sm:$0xf]  ;;  %v327_v20 = vld [vmem:[%s12113_s7 + $0x70] sm:$0xf] }
 0x13e   : > { %v3231_v45 = vsel %vm12051_vm6, %v3226_v18, %v12965_v49  ;;  %10381 = vmatmul.msk.bf16.gmra.mxu1 %vm4111_vm1, %v10294_v30  ;;  %v1956_v49 = vld [vmem:[#allocation2 + $0x64] sm:$0xf]  ;;  %v3769_v23 = vrot.slane %v3624_v6, 5  ;;  %v573_v18 = vshrl.u32 %v327_v20, 16  ;;  %v3625_v38 = vld [vmem:[#allocation2 + $0xb0] sm:$0x1] }
 0x13f   : > { %1831 = vrot.lane.b32.xlu2 %v1754_v8, %s11959_s9  ;;  %v2910_v32 = vpop.permute.xlu1 %2909  ;;  %v3763_v50 = vsel %vm12025_vm3, %v10202_v28, %v3762_v40  ;;  %v3764_v11 = vrot.slane %v3762_v40, 4  ;;  %v1078_v8 = vrot.slane %v1076_v41, 5  ;;  %v2160_v21 = vshll.u32 %v1956_v49, 16  ;;  %v1955_v41 = vld [vmem:[#allocation2 + $0x60] sm:$0xf]  ;;  %9235 = vmatpush.bf16.msrb.mxu1 %v11574_v58 }
 0x140   : > { %2729 = vrot.lane.b32.xlu0 %v2639_v35, %s11960_s10  ;;  %3000 = vst.msk [vmem:[#allocation4 + $0x30] sm:$0xf] %vm2993_vm12, %v2910_v32  ;;  %v2164_v22 = vshrl.u32 %v1956_v49, 16  ;;  %v13045_v35 = vld [vmem:[#allocation2 + $0x64] sm:$0xf]  ;;  %v3770_v14 = vsel %vm12025_vm3, %v10203_v55, %v3769_v23  ;;  %v3771_v37 = vrot.slane %v3769_v23, 4  ;;  %9057 = vmatpush.bf16.msra.mxu2 %v11558_v25 }
 0x141   : > { %v1289_v0 = vpop.permute.xlu2 %1288  ;;  %v3766_v2 = vsel %vm12025_vm3, %v3764_v11, %v3765_v33  ;;  %3849 = vst.msk [vmem:[#allocation4 + $0xb4] sm:$0xf] %vm243_vm0, %v3763_v50  ;;  %v13051_v32 = vld [vmem:[%s12113_s7 + $0x74] sm:$0xf]  ;;  %v1079_v24 = vsel %vm12051_vm6, %v1074_v42, %v1078_v8  ;;  %v2642_v63 = vrot.slane %v13045_v35, 5  ;;  %v13059_v30 = vrot.slane %v2160_v21, 5 }
 0x142   : > { %1377 = vst.msk [vmem:[#allocation4 + $0x40] sm:$0xf] %vm15906_vm2, %v1289_v0  ;;  %v2718_v43 = vpop.permute.xlu0 %2717  ;;  %v13061_v0 = vrot.slane %v2164_v22, 4  ;;  %v576_v7 = vshll.u32 %v327_v20, 16  ;;  %v1064_v40 = vrot.slane %v1063_v1, 4  ;;  %v581_v46 = vshrl.u32 %v13051_v32, 16  ;;  %v13100_v22 = vpop.f32.mrf.mxu1 }
 0x143   : > { %2807 = vst.msk [vmem:[#allocation4 + $0x38] sm:$0xf] %vm15902_vm11, %v2718_v43  ;;  %vm4505_vm11 = vcmask 1040384   ;;  %v3772_v43 = vrot.slane %v3625_v38, 5  ;;  %v1756_v50 = vld [vmem:[#allocation2 + $0x64] sm:$0xf] }
 0x144   : > { %3001 = vst.msk [vmem:[#allocation4 + $0x38] sm:$0xf] %vm2993_vm12, %v2912_v34  ;;  %v13033_v34 = vld [vmem:[#allocation2 + $0x60] sm:$0xe]  ;;  %v759_v49 = vld [vmem:[#allocation2 + $0xb4] sm:$0xf]  ;;  %v2167_v61 = vor.u32 %v13061_v0, %v13059_v30  ;;  %9058 = vmatpush.bf16.msra.mxu2 %v11557_v3  ;;  %v1069_v42 = vsel %vm12051_vm6, %v1064_v40, %v13003_v19 }
 0x145   : > { %3484 = vrot.lane.b32.xlu1 %v3241_v5, %s11962_s12  ;;  %3850 = vst.msk [vmem:[#allocation4 + $0xbc] sm:$0xf] %vm243_vm0, %v3766_v2  ;;  %v10182_v26 = vrot.slane %v13033_v34, 9  ;;  %v13065_v5 = vld [vmem:[#allocation2 + $0x60] sm:$0xf]  ;;  %v3773_v56 = vsel %vm12025_vm3, %v3771_v37, %v3772_v43  ;;  %v584_v2 = vshll.u32 %v13051_v32, 16 }
 0x146   : > { %3851 = vst.msk [vmem:[#allocation4 + $0xc4] sm:$0xf] %vm243_vm0, %v3770_v14  ;;  %v4510_v47 = vld [vmem:[#allocation3 + $0xc] sm:$0x1]  ;;  %v1755_v55 = vld [vmem:[#allocation2 + $0x60] sm:$0xf] }
 0x147   : > { %2727 = vrot.lane.b32.xlu2 %v2636_v57, %s11960_s10  ;;  %v3473_v9 = vpop.permute.xlu1 %3472  ;;  %v15919_v57 = vmov 0  ;;  %3852 = vst.msk [vmem:[#allocation4 + $0xcc] sm:$0xf] %vm243_vm0, %v3773_v56  ;;  %v1424_v6 = vld [vmem:[#allocation2 + $0x5c] sm:$0x1]  ;;  %v13093_v20 = vrot.slane %v581_v46, 7 }
 0x148   : > { %3482 = vrot.lane.b32.xlu0 %v3231_v45, %s11962_s12  ;;  %3562 = vst.msk [vmem:[#allocation4 + $0x38] sm:$0xf] %vm15903_vm9, %v3473_v9  ;;  %v11389_v27 = vld [vmem:[#allocation4 + $0xb4] sm:$0xf]  ;;  %v13078_v45 = vrot.slane %v573_v18, 7  ;;  %v2151_v21 = vshrl.u32 %v1955_v41, 16  ;;  %9059 = vmatpush.bf16.msra.mxu2 %v11556_v39 }
 0x149   : > { %v13037_v13 = vpop.permute.xlu2 %1630  ;;  %v2154_v19 = vshll.u32 %v1955_v41, 16  ;;  %v783_v23 = vld [vmem:[#allocation2 + $0x3c] sm:$0xf]  ;;  %v3256_v1 = vshrl.u32 %v3048_v60, 16  ;;  %v1553_v32 = vrot.slane %v1551_v59, 4  ;;  %v1554_v18 = vrot.slane %v1424_v6, 5 }
 0x14a   : > { %v3471_v12 = vpop.permute.xlu0 %3470  ;;  %v578_v44 = vor.u32 %v576_v7, %v13078_v45  ;;  %815 = vst.msk [vmem:[#allocation4 + $0x50] sm:$0xf] %vm243_vm0, %v783_v23  ;;  %v2168_v37 = vrot.slane %v2167_v61, 4  ;;  %v11555_v0 = vld [vmem:[#allocation6 + $0x18] sm:$0xff]  ;;  %v579_v38 = vrot.slane %v13078_v45, 4  ;;  %v586_v7 = vor.u32 %v584_v2, %v13093_v20 }
 0x14b   : > { %3561 = vst.msk [vmem:[#allocation4 + $0x30] sm:$0xf] %vm15903_vm9, %v3471_v12  ;;  %vm13070_vm9 = vmand %vm4505_vm11, %vm331_vm10  ;;  %v1081_v12 = vshrl.u32 %v13065_v5, 16  ;;  %v588_v31 = vrot.slane %v13093_v20, 4  ;;  %v3049_v43 = vld [vmem:[#allocation2 + $0x74] sm:$0x1]  ;;  %v1555_v45 = vsel %vm12025_vm3, %v1553_v32, %v1554_v18 }
 0x14c   : > { %v10299_v28 = vld [vmem:[#allocation4 + $0xb8] sm:$0xf0]  ;;  %v15920_v57 = vsel %vm13070_vm9, 4294967295, %v15919_v57  ;;  %v4511_v8 = vsel %vm13070_vm9, 0, %v4510_v47  ;;  %v760_v14 = vsel %vm12159_vm13, %v578_v44, %v759_v49  ;;  %v763_v3 = vld [vmem:[#allocation2 + $0xbc] sm:$0x1]  ;;  %9060 = vmatpush.bf16.msra.mxu2 %v11555_v0  ;;  %v587_v2 = vsel %vm12168_vm14, %v579_v38, %v586_v7 }
 0x14d   : > { %1640 = vrot.lane.b32.xlu1 %v1552_v17, %s11956_s27  ;;  %15921 = vst [vmem:[#allocation9_spill] sm:$0xff] %v15920_v57  ;;  %v10302_v11 = vor.u32 %v11389_v27, %v10299_v28  ;;  %v1084_v17 = vshll.u32 %v13065_v5, 16  ;;  %v11573_v27 = vld [vmem:[#allocation6 + $0xa8] sm:$0xff]  ;;  %v2156_v28 = vrot.slane %v2154_v19, 5  ;;  %v1083_v59 = vrot.slane %v1081_v12, 4  ;;  %v11572_v5 = vld [vmem:[#allocation6 + $0xa0] sm:$0xff] }
 0x14e   : > { %4512 = vst [vmem:[#allocation3 + $0xc] sm:$0x1] %v4511_v8  ;;  %9236 = vmatpush.bf16.msrb.mxu1 %v11573_v27  ;;  %v11391_v56 = vld [vmem:[#allocation4 + $0xc4] sm:$0xf]  ;;  %vm15922_vm10 = vsmask.f32 7938  ;;  %v2173_v49 = vsel %vm12051_vm6, %v2168_v37, %v13063_v53  ;;  %v764_v53 = vsel %vm12175_vm15, %v588_v31, %v763_v3 }
 0x14f   : > { %2923 = vrot.lane.b32.xlu2 %v2846_v36, %s11958_s8  ;;  %v1629_v51 = vpop.permute.xlu1 %1628  ;;  %v11374_v33 = vld [vmem:[#allocation4 + $0x34] sm:$0xf0]  ;;  %10382 = vmatmul.msk.bf16.gmra.mxu1 %vm4111_vm1, %v10302_v11  ;;  %v3252_v36 = vshll.u32 %v3048_v60, 16  ;;  %v3258_v11 = vrot.slane %v3256_v1, 4  ;;  %761 = vst [vmem:[#allocation2 + $0xb4] sm:$0xf] %v760_v14 }
 0x150   : > { %1302 = vrot.lane.b32.xlu0 %v1079_v24, %s11957_s28  ;;  %1717 = vst.msk [vmem:[#allocation4 + $0x40] sm:$0xf] %vm15904_vm4, %v1629_v51  ;;  %v2153_v24 = vrot.slane %v2151_v21, 4  ;;  %v1086_v51 = vrot.slane %v1084_v17, 5  ;;  %v784_v60 = vld [vmem:[#allocation2 + $0x40] sm:$0xf] }
 0x151   : > { %v13076_v29 = vpop.permute.xlu2 %2382  ;;  %v15923_v34 = vmov 0  ;;  %v10307_v41 = vld [vmem:[#allocation4 + $0xc8] sm:$0xf0]  ;;  %v3262_v61 = vshll.u32 %v3049_v43, 16  ;;  %816 = vst.msk [vmem:[#allocation4 + $0x58] sm:$0xf] %vm243_vm0, %v784_v60 }
 0x152   : > { %v1291_v62 = vpop.permute.xlu0 %1290  ;;  %v10233_v9 = vld [vmem:[#allocation4 + $0x30] sm:$0xf]  ;;  %v2157_v58 = vor.u32 %v2156_v28, %v2153_v24  ;;  %9237 = vmatpush.bf16.msrb.mxu1 %v11572_v5  ;;  %v11571_v47 = vld [vmem:[#allocation6 + $0x98] sm:$0xff]  ;;  %v13158_v6 = vld [vmem:[#allocation2 + $0x64] sm:$0xf]  ;;  %v10310_v12 = vor.u32 %v11391_v56, %v10307_v41  ;;  %v2644_v5 = vrot.slane %v2642_v63, 4 }
 0x153   : > { %1378 = vst.msk [vmem:[#allocation4 + $0x48] sm:$0xf] %vm15906_vm2, %v1291_v62  ;;  %v10234_v15 = vor.u32 %v11374_v33, %v10233_v9  ;;  %v2643_v33 = vsel %vm12025_vm3, %v10182_v26, %v2642_v63  ;;  %v4565_v26 = vld [vmem:[#allocation3 + $0x14] sm:$0x1]  ;;  %v1087_v9 = vor.u32 %v1086_v51, %v1083_v59  ;;  %v13150_v44 = vld [vmem:[%s15897_s2] ss:$0 sm:$0xff] }
 0x154   : > { %1718 = vst.msk [vmem:[#allocation4 + $0x48] sm:$0xf] %vm15904_vm4, %v13037_v13  ;;  %v13104_v13 = vld [vmem:[#allocation2 + $0x64] sm:$0xf]  ;;  %vm13132_vm4 = vmand %vm4505_vm11, %vm15922_vm10  ;;  %v2158_v8 = vrot.slane %v2157_v58, 4  ;;  %vm15926_vm11 = vcmask 781952  }
 0x155   : > { %4183 = vmatmul.bf16.gmra.mxu0 %v10234_v15  ;;  %1835 = vrot.lane.b32.xlu1 %v1756_v50, %s11959_s9  ;;  %v1090_v40 = vshll.u32 %v13104_v13, 16  ;;  %v13125_v50 = vrot.slane %v3252_v36, 5  ;;  %v15924_v34 = vsel %vm13132_vm4, 4294967295, %v15923_v34  ;;  %v4566_v62 = vsel %vm13132_vm4, 0, %v4565_v26  ;;  %762 = vst.msk [vmem:[#allocation2 + $0xb8] sm:$0xf] %vm15905_vm8, %v587_v2  ;;  %vm15927_vm10 = vmmov %vm15926_vm11 }
 0x156   : > { %15925 = vst [vmem:[#allocation10_spill] sm:$0xff] %v15924_v34  ;;  %v2848_v20 = vld [vmem:[#allocation2 + $0x70] sm:$0xf]  ;;  %9238 = vmatpush.bf16.msrb.mxu1 %v11571_v47  ;;  %v11553_v36 = vld [vmem:[#allocation6 + $0x8] sm:$0xff]  ;;  %v3047_v21 = vld [vmem:[#allocation2 + $0x6c] sm:$0xf]  ;;  %v2163_v0 = vsel %vm12051_vm6, %v2158_v8, %v13059_v30 }
 0x157   : > { %1300 = vrot.lane.b32.xlu2 %v1069_v42, %s11957_s28  ;;  %v1824_v25 = vpop.permute.xlu1 %1823  ;;  %4567 = vst [vmem:[#allocation3 + $0x14] sm:$0x1] %v4566_v62  ;;  %v3259_v15 = vor.u32 %v3258_v11, %v13125_v50  ;;  %v13165_v19 = vrot.slane %v1087_v9, 4  ;;  %v13167_v23 = vrot.slane %v1090_v40, 5  ;;  %v13169_v39 = vrot.slane %v3262_v61, 5  ;;  %v11570_v1 = vld [vmem:[#allocation6 + $0x90] sm:$0xff] }
 0x158   : > { %1833 = vrot.lane.b32.xlu0 %v1755_v55, %s11959_s9  ;;  %1911 = vst.msk [vmem:[#allocation4 + $0x48] sm:$0xf] %vm1901_vm5, %v1824_v25  ;;  %v13156_v55 = vpop.f32.mrf.mxu1  ;;  %v2518_v32 = vld [vmem:[#allocation2 + $0x68] sm:$0x1]  ;;  %v3626_v18 = vld [vmem:[#allocation2 + $0xb4] sm:$0xe] }
 0x159   : > { %v13113_v10 = vpop.permute.xlu2 %2721  ;;  %765 = vst [vmem:[#allocation2 + $0xbc] sm:$0x1] %v764_v53  ;;  %v13171_v25 = vrot.slane %v3259_v15, 4  ;;  %v3243_v24 = vshrl.u32 %v3047_v21, 16  ;;  %v2847_v37 = vld [vmem:[#allocation2 + $0x6c] sm:$0xf] }
 0x15a   : > { %v1822_v46 = vpop.permute.xlu0 %1821  ;;  %v1558_v38 = vrot.slane %v13158_v6, 5  ;;  %v3246_v7 = vshll.u32 %v3047_v21, 16  ;;  %v4507_v31 = vld [vmem:[#allocation3] sm:$0x1]  ;;  %v1958_v59 = vld [vmem:[#allocation2 + $0x6c] sm:$0xf]  ;;  %9239 = vmatpush.bf16.msrb.mxu1 %v11570_v1 }
 0x15b   : > { %1910 = vst.msk [vmem:[#allocation4 + $0x40] sm:$0xf] %vm1901_vm5, %v1822_v46  ;;  %v11552_v51 = vld [vmem:[#allocation6] sm:$0xff]  ;;  %v4508_v40 = vsel %vm13070_vm9, 0, %v4507_v31  ;;  %v13188_v30 = vld [vmem:[#allocation2 + $0x68] sm:$0x1] }
 0x15c   : > { %2471 = vst.msk [vmem:[#allocation4 + $0x40] sm:$0xf] %vm2462_vm7, %v13076_v29  ;;  %v11554_v29 = vld [vmem:[#allocation6 + $0x10] sm:$0xff]  ;;  %v2645_v46 = vrot.slane %v2518_v32, 5  ;;  %v3627_v11 = vld [vmem:[#allocation2 + $0xb8] sm:$0xf] }
 0x15d   : > { %2731 = vrot.lane.b32.xlu1 %v2643_v33, %s11960_s10  ;;  %9061 = vmatpush.bf16.msra.mxu2 %v11554_v29  ;;  %v10204_v33 = vrot.slane %v3626_v18, 9  ;;  %4509 = vst [vmem:[#allocation3] sm:$0x1] %v4508_v40  ;;  %v3245_v3 = vrot.slane %v3243_v24, 4  ;;  %v5084_v56 = vld [vmem:[#allocation3 + $0x4] sm:$0xf]  ;;  %v3265_v18 = vsel %vm12051_vm6, %v13171_v25, %v13169_v39 }
 0x15e   : > { %v3776_v60 = vrot.slane %v3627_v11, 5  ;;  %v2175_v26 = vshrl.u32 %v1958_v59, 16  ;;  %5116 = vst [vmem:[#allocation5 + $0x24] sm:$0xf] %v5084_v56  ;;  %v1094_v35 = vshrl.u32 %v13104_v13, 16  ;;  %v2178_v2 = vshll.u32 %v1958_v59, 16 }
 0x15f   : > { %1642 = vrot.lane.b32.xlu2 %v1555_v45, %s11956_s27  ;;  %v2720_v42 = vpop.permute.xlu1 %2719  ;;  %10383 = vmatmul.msk.bf16.gmra.mxu1 %vm4111_vm1, %v10310_v12  ;;  %v3248_v45 = vrot.slane %v3246_v7, 5  ;;  %v11568_v29 = vld [vmem:[#allocation6 + $0x80] sm:$0xff]  ;;  %v1093_v13 = vsel %vm12051_vm6, %v13165_v19, %v13167_v23  ;;  %v1561_v53 = vrot.slane %v13188_v30, 5  ;;  %v2646_v12 = vsel %vm12025_vm3, %v2644_v5, %v2645_v46  ;;  %v863_v39 = vld [vmem:[#allocation2 + $0x68] sm:$0x1] }
 0x160   : > { %2396 = vrot.lane.b32.xlu0 %v2173_v49, %s11961_s11  ;;  %2808 = vst.msk [vmem:[#allocation4 + $0x40] sm:$0xf] %vm15926_vm11, %v2720_v42  ;;  %v3628_v41 = vld [vmem:[#allocation2 + $0xbc] sm:$0x1]  ;;  %v13197_v49 = vpop.f32.mrf.mxu1  ;;  %v3777_v62 = vsel %vm12025_vm3, %v10204_v33, %v3776_v60  ;;  %v3778_v9 = vrot.slane %v3776_v60, 4  ;;  %v2177_v1 = vrot.slane %v2175_v26, 4 }
 0x161   : > { %v13163_v17 = vpop.permute.xlu2 %3474  ;;  %9062 = vmatpush.bf16.msra.mxu2 %v11553_v36  ;;  %v3779_v61 = vrot.slane %v3628_v41, 5  ;;  %v1425_v42 = vld [vmem:[#allocation2 + $0x60] sm:$0xe]  ;;  %3853 = vst.msk [vmem:[#allocation4 + $0xd4] sm:$0xf] %vm243_vm0, %v3777_v62  ;;  %v3249_v8 = vor.u32 %v3248_v45, %v3245_v3  ;;  %vm15928_vm11 = vcmask 1044352  }
 0x162   : > { %v2385_v27 = vpop.permute.xlu0 %2384  ;;  %v4169_v14 = vpop.f32.mrf.mxu0  ;;  %v13214_v21 = vld [vmem:[#allocation2 + $0x70] sm:$0xf]  ;;  %v2180_v19 = vrot.slane %v2178_v2, 5  ;;  %v1560_v24 = vrot.slane %v1558_v38, 4  ;;  %v4562_v25 = vld [vmem:[#allocation3 + $0x8] sm:$0x1] }
 0x163   : > { %2472 = vst.msk [vmem:[#allocation4 + $0x48] sm:$0xf] %vm2462_vm7, %v2385_v27  ;;  %v4170_v28 = vadd.f32 %v13150_v44, %v4169_v14  ;;  %v3780_v36 = vsel %vm12025_vm3, %v3778_v9, %v3779_v61  ;;  %v1096_v14 = vrot.slane %v1094_v35, 4  ;;  %v13237_v40 = vld [vmem:[#allocation2 + $0x70] sm:$0xf]  ;;  %v4563_v5 = vsel %vm13132_vm4, 0, %v4562_v25 }
 0x164   : > { %2809 = vst.msk [vmem:[#allocation4 + $0x48] sm:$0xf] %vm15927_vm10, %v13113_v10  ;;  %v11569_v10 = vld [vmem:[#allocation6 + $0x88] sm:$0xff]  ;;  %vm4969_vm10 = vcmask 1043456   ;;  %v1562_v3 = vsel %vm12025_vm3, %v1560_v24, %v1561_v53  ;;  %v1100_v45 = vshll.u32 %v863_v39, 16  ;;  %vm15929_vm8 = vcmask 1044352  }
 0x165   : > { %v13185_v43 = vadd.f32 %v13100_v22, %v4170_v28  ;;  %2927 = vrot.lane.b32.xlu1 %v2848_v20, %s11958_s8  ;;  %9063 = vmatpush.bf16.msra.mxu2 %v11552_v51  ;;  %v5083_v27 = vld [vmem:[#allocation3] sm:$0xf]  ;;  %3854 = vst.msk [vmem:[#allocation4 + $0xdc] sm:$0xf] %vm243_vm0, %v3780_v36  ;;  %v3250_v28 = vrot.slane %v3249_v8, 4  ;;  %v2181_v51 = vor.u32 %v2180_v19, %v2177_v1  ;;  %v2649_v9 = vrot.slane %v13237_v40, 5 }
 0x166   : > { %9240 = vmatpush.bf16.msrb.mxu1 %v11569_v10  ;;  %5115 = vst [vmem:[#allocation5] sm:$0xf] %v5083_v27  ;;  %v1097_v30 = vor.u32 %v1096_v14, %v13167_v23  ;;  %v5643_v33 = vld [vmem:[#allocation3] sm:$0xe]  ;;  %v5644_v56 = vld [vmem:[#allocation3 + $0x4] sm:$0xf] }
 0x167   : > { %2394 = vrot.lane.b32.xlu2 %v2163_v0, %s11961_s11  ;;  %v4370_v22 = vmul.f32 1.442695, %v13185_v43  ;;  %v2916_v58 = vpop.permute.xlu1 %2915  ;;  %4564 = vst [vmem:[#allocation3 + $0x8] sm:$0x1] %v4563_v5  ;;  %v11412_v35 = vld [vmem:[#allocation5 + $0x20] sm:$0xf0] }
 0x168   : > { %2925 = vrot.lane.b32.xlu0 %v2847_v37, %s11958_s8  ;;  %3003 = vst.msk [vmem:[#allocation4 + $0x48] sm:$0xf] %vm2993_vm12, %v2916_v58  ;;  %v11393_v46 = vld [vmem:[#allocation4 + $0xd4] sm:$0xf]  ;;  %v3050_v58 = vld [vmem:[#allocation2 + $0x78] sm:$0xf]  ;;  %v13247_v23 = vpop.f32.mrf.mxu1 }
 0x169   : > { %v1295_v63 = vpop.permute.xlu2 %1294  ;;  %11767 = vpow2.f32 %v4370_v22  ;;  %v10419_v22 = vrot.slane %v5643_v33, 9  ;;  %v2182_v2 = vrot.slane %v2181_v51, 4  ;;  %v1098_v61 = vrot.slane %v1097_v30, 4  ;;  %v13268_v27 = vld [vmem:[#allocation2 + $0x7c] sm:$0xf]  ;;  %v11607_v34 = vld [vmem:[#allocation6 + $0x1b8] sm:$0xff] }
 0x16a   : > { %1380 = vst.msk [vmem:[#allocation4 + $0x58] sm:$0xf] %vm15906_vm2, %v1295_v63  ;;  %v2914_v47 = vpop.permute.xlu0 %2913  ;;  %v4171_v15 = vpop.f32.mrf.mxu0  ;;  %9241 = vmatpush.bf16.msrb.mxu1 %v11568_v29  ;;  %v5741_v63 = vrot.slane %v5644_v56, 5  ;;  %v3270_v8 = vshll.u32 %v3050_v58, 16  ;;  %v4513_v5 = vld [vmem:[#allocation3 + $0x18] sm:$0x1] }
 0x16b   : > { %3002 = vst.msk [vmem:[#allocation4 + $0x40] sm:$0xf] %vm2993_vm12, %v2914_v47  ;;  %v4172_v20 = vadd.f32 %v13150_v44, %v4171_v15  ;;  %v3267_v15 = vshrl.u32 %v3050_v58, 16  ;;  %v3276_v33 = vshll.u32 %v13268_v27, 16  ;;  %v1758_v56 = vld [vmem:[#allocation2 + $0x70] sm:$0xf] }
 0x16c   : > { %3563 = vst.msk [vmem:[#allocation4 + $0x40] sm:$0xf] %vm15928_vm11, %v13163_v17  ;;  %vm4338_vm11 = vcmp.gt.f32.partialorder %v13185_v43, 0.0  ;;  %v10167_v17 = vrot.slane %v1425_v42, 9  ;;  %v10315_v41 = vld [vmem:[#allocation4 + $0xd8] sm:$0xf0] }
 0x16d   : > { %v13219_v32 = vadd.f32 %v13156_v55, %v4172_v20  ;;  %1304 = vrot.lane.b32.xlu1 %v1093_v13, %s11957_s28  ;;  %v2184_v55 = vshll.u32 %v13214_v21, 16  ;;  %v10318_v6 = vor.u32 %v11393_v46, %v10315_v41  ;;  %v10469_v47 = vld [vmem:[#allocation5] sm:$0xf]  ;;  %v4971_v13 = vld [vmem:[#allocation3 + $0xc] sm:$0xf]  ;;  %v1102_v42 = vrot.slane %v1100_v45, 5 }
 0x16e   : > { %v1559_v26 = vsel %vm12025_vm3, %v10167_v17, %v1558_v38  ;;  %v5742_v38 = vsel %vm12025_vm3, %v10419_v22, %v5741_v63  ;;  %v10470_v53 = vor.u32 %v11412_v35, %v10469_v47  ;;  %v2521_v17 = vld [vmem:[#allocation2 + $0x74] sm:$0x1]  ;;  %v3269_v39 = vrot.slane %v3267_v15, 4  ;;  %9590 = vmatpush.bf16.msra.mxu1 %v11607_v34 }
 0x16f   : > { %2733 = vrot.lane.b32.xlu2 %v2646_v12, %s11960_s10  ;;  %v11768_v37 = vpop.eup %11767  ;;  %v4372_v0 = vmul.f32 1.442695, %v13219_v32  ;;  %v1293_v7 = vpop.permute.xlu1 %1292  ;;  %v13257_v62 = vrot.slane %v2184_v55, 5  ;;  %5883 = vst [vmem:[#allocation5 + $0x8] sm:$0xf] %v5742_v38  ;;  %10384 = vmatmul.msk.bf16.gmra.mxu1 %vm4111_vm1, %v10318_v6  ;;  %v1103_v30 = vsel %vm12051_vm6, %v1098_v61, %v1102_v42  ;;  %v3272_v46 = vrot.slane %v3270_v8, 5 }
 0x170   : > { %v10387_v31 = vadd.f32 -1.0, %v11768_v37  ;;  %3488 = vrot.lane.b32.xlu0 %v3265_v18, %s11962_s12  ;;  %1379 = vst.msk [vmem:[#allocation4 + $0x50] sm:$0xf] %vm15906_vm2, %v1293_v7  ;;  %vm15933_vm2 = vcmask 388352   ;;  %9064 = vmatmul.bf16.vlgmr.msra.gmra.mxu2 %v10470_v53  ;;  %v5645_v55 = vld [vmem:[#allocation3 + $0x8] sm:$0x1]  ;;  %v13298_v58 = vpop.f32.mrf.mxu1 }
 0x171   : > { %v13235_v59 = vpop.permute.xlu2 %1825  ;;  %11769 = vpow2.f32 %v4372_v0  ;;  %v2187_v18 = vsel %vm12051_vm6, %v2182_v2, %v13257_v62  ;;  %v13285_v0 = vld [vmem:[#allocation2 + $0x6c] sm:$0xe]  ;;  %v5744_v7 = vrot.slane %v5645_v55, 5  ;;  %v4514_v45 = vsel %vm13070_vm9, 0, %v4513_v5 }
 0x172   : > { %v4466_v10 = vsel %vm4338_vm11, %v13185_v43, %v10387_v31  ;;  %v3477_v11 = vpop.permute.xlu0 %3476  ;;  %v3255_v43 = vsel %vm12051_vm6, %v3250_v28, %v13125_v50  ;;  %v2188_v50 = vshrl.u32 %v13214_v21, 16  ;;  %v5743_v28 = vrot.slane %v5741_v63, 4  ;;  %v4975_v63 = vld [vmem:[#allocation3 + $0x14] sm:$0x1]  ;;  %4515 = vst [vmem:[#allocation3 + $0x18] sm:$0x1] %v4514_v45 }
 0x173   : > { %v4616_v60 = vpack.c.bf16 %v4466_v10, %v4466_v10  ;;  %3564 = vst.msk [vmem:[#allocation4 + $0x48] sm:$0xf] %vm15929_vm8, %v3477_v11  ;;  %v10241_v19 = vld [vmem:[#allocation4 + $0x40] sm:$0xf]  ;;  %vm15930_vm8 = vsmask.f32 7938  ;;  %v3273_v2 = vor.u32 %v3272_v46, %v3269_v39 }
 0x174   : > { %vm13272_vm11 = vmand %vm4969_vm10, %vm15930_vm8  ;;  %vm4339_vm10 = vcmp.gt.f32.partialorder %v13219_v32, 0.0  ;;  %v5745_v22 = vsel %vm12025_vm3, %v5743_v28, %v5744_v7  ;;  %v10183_v41 = vrot.slane %v13285_v0, 9  ;;  %v13308_v47 = vrot.slane %v3276_v33, 5  ;;  %v786_v53 = vld [vmem:[#allocation2 + $0x4c] sm:$0xf] }
 0x175   : > { %v4649_v29 = vshrl.u32 %v4616_v60, 16  ;;  %1646 = vrot.lane.b32.xlu1 %v1562_v3, %s11956_s27  ;;  %v4652_v36 = vshll.u32 %v4616_v60, 16  ;;  %5884 = vst [vmem:[#allocation5 + $0x2c] sm:$0xf] %v5745_v22  ;;  %v2190_v38 = vrot.slane %v2188_v50, 4  ;;  %vm15934_vm8 = vcmask 781952  }
 0x176   : > { %818 = vst.msk [vmem:[#allocation4 + $0x68] sm:$0xf] %vm243_vm0, %v786_v53  ;;  %v864_v50 = vld [vmem:[#allocation2 + $0x6c] sm:$0xf]  ;;  %v2650_v0 = vsel %vm12025_vm3, %v10183_v41, %v2649_v9  ;;  %v10477_v7 = vld [vmem:[#allocation5 + $0x8] sm:$0xf] }
 0x177   : > { %3486 = vrot.lane.b32.xlu2 %v3255_v43, %s11962_s12  ;;  %v11770_v20 = vpop.eup %11769  ;;  %v13265_v12 = vrot.slane %v4649_v29, 7  ;;  %v1635_v1 = vpop.permute.xlu1 %1634  ;;  %v2652_v43 = vrot.slane %v2521_v17, 5  ;;  %v1757_v55 = vld [vmem:[#allocation2 + $0x6c] sm:$0xf]  ;;  %v2191_v28 = vor.u32 %v2190_v38, %v13257_v62  ;;  %v4568_v39 = vld [vmem:[#allocation3 + $0x20] sm:$0x1] }
 0x178   : > { %v10388_v14 = vadd.f32 -1.0, %v11770_v20  ;;  %1644 = vrot.lane.b32.xlu0 %v1559_v26, %s11956_s27  ;;  %1720 = vst.msk [vmem:[#allocation4 + $0x58] sm:$0xf] %vm15933_vm2, %v1635_v1  ;;  %v2651_v26 = vrot.slane %v2649_v9, 4  ;;  %v13334_v5 = vpop.f32.mrf.mxu1  ;;  %v866_v33 = vld [vmem:[#allocation2 + $0x74] sm:$0x1] }
 0x179   : > { %v13281_v24 = vpop.permute.xlu2 %2388  ;;  %v4654_v37 = vor.u32 %v4652_v36, %v13265_v12  ;;  %v4655_v35 = vrot.slane %v13265_v12, 4  ;;  %v785_v12 = vld [vmem:[#allocation2 + $0x48] sm:$0xf] }
 0x17a   : > { %v4467_v25 = vsel %vm4339_vm10, %v13219_v32, %v10388_v14  ;;  %v1633_v31 = vpop.permute.xlu0 %1632  ;;  %v11376_v51 = vld [vmem:[#allocation4 + $0x44] sm:$0xf0]  ;;  %v865_v32 = vld [vmem:[#allocation2 + $0x70] sm:$0xf]  ;;  %v2653_v1 = vsel %vm12025_vm3, %v2651_v26, %v2652_v43  ;;  %817 = vst.msk [vmem:[#allocation4 + $0x60] sm:$0xf] %vm243_vm0, %v785_v12  ;;  %vm15935_vm10 = vmmov %vm15934_vm8 }
 0x17b   : > { %v4972_v10 = vsel %vm13272_vm11, %v4654_v37, %v4971_v13  ;;  %v4617_v11 = vpack.c.bf16 %v4467_v25, %v4467_v25  ;;  %1719 = vst.msk [vmem:[#allocation4 + $0x50] sm:$0xf] %vm15933_vm2, %v1633_v31  ;;  %v10242_v3 = vor.u32 %v11376_v51, %v10241_v19  ;;  %v1114_v61 = vshll.u32 %v865_v32, 16  ;;  %v1960_v13 = vld [vmem:[#allocation2 + $0x74] sm:$0x1] }
 0x17c   : > { %4973 = vst [vmem:[#allocation3 + $0xc] sm:$0xf] %v4972_v10  ;;  %v1118_v20 = vshrl.u32 %v865_v32, 16  ;;  %v3274_v19 = vrot.slane %v3273_v2, 4  ;;  %v2194_v37 = vshll.u32 %v1960_v13, 16  ;;  %v4569_v25 = vsel %vm13132_vm4, 0, %v4568_v39 }
 0x17d   : > { %v4657_v60 = vshrl.u32 %v4617_v11, 16  ;;  %1912 = vst.msk [vmem:[#allocation4 + $0x50] sm:$0xf] %vm1901_vm5, %v13235_v59  ;;  %4188 = vmatmul.bf16.gmra.mxu0 %v10242_v3  ;;  %2398 = vrot.lane.b32.xlu1 %v2187_v18, %s11961_s11  ;;  %v4660_v6 = vshll.u32 %v4617_v11, 16  ;;  %v13315_v14 = vrot.slane %v1114_v61, 5  ;;  %v1105_v51 = vshrl.u32 %v864_v50, 16 }
 0x17e   : > { %v1120_v31 = vrot.slane %v1118_v20, 4  ;;  %v11413_v62 = vld [vmem:[#allocation5 + $0x28] sm:$0xf0]  ;;  %4570 = vst [vmem:[#allocation3 + $0x20] sm:$0x1] %v4569_v25  ;;  %v2192_v10 = vrot.slane %v2191_v28, 4  ;;  %v3279_v22 = vsel %vm12051_vm6, %v3274_v19, %v13308_v47 }
 0x17f   : > { %1306 = vrot.lane.b32.xlu2 %v1103_v30, %s11957_s28  ;;  %v4659_v29 = vrot.slane %v4657_v60, 7  ;;  %v2387_v59 = vpop.permute.xlu1 %2386  ;;  %v1108_v30 = vshll.u32 %v864_v50, 16  ;;  %v10478_v46 = vor.u32 %v11413_v62, %v10477_v7  ;;  %v2196_v11 = vrot.slane %v2194_v37, 5  ;;  %v2850_v61 = vld [vmem:[#allocation2 + $0x7c] sm:$0xf] }
 0x180   : > { %1839 = vrot.lane.b32.xlu0 %v1758_v56, %s11959_s9  ;;  %2473 = vst.msk [vmem:[#allocation4 + $0x50] sm:$0xf] %vm2462_vm7, %v2387_v59  ;;  %v3280_v60 = vshrl.u32 %v13268_v27, 16  ;;  %v1121_v26 = vor.u32 %v1120_v31, %v13315_v14  ;;  %v1124_v43 = vshll.u32 %v866_v33, 16  ;;  %v1962_v19 = vld [vmem:[#allocation2 + $0x7c] sm:$0xf] }
 0x181   : > { %v2918_v15 = vpop.permute.xlu2 %2917  ;;  %v4662_v42 = vor.u32 %v4660_v6, %v4659_v29  ;;  %v4664_v8 = vrot.slane %v4659_v29, 4  ;;  %9242 = vmatmul.bf16.vlgmr.msrb.gmra.mxu1 %v10478_v46  ;;  %v1110_v45 = vrot.slane %v1108_v30, 5  ;;  %v2197_v2 = vsel %vm12051_vm6, %v2192_v10, %v2196_v11 }
 0x182   : > { %v1828_v36 = vpop.permute.xlu0 %1827  ;;  %v1122_v53 = vrot.slane %v1121_v26, 4  ;;  %v3282_v20 = vrot.slane %v3280_v60, 4  ;;  %vm15936_vm2 = vcmask 1044352   ;;  %v2208_v30 = vshll.u32 %v1962_v19, 16 }
 0x183   : > { %v4663_v18 = vsel %vm12168_vm14, %v4655_v35, %v4662_v42  ;;  %v4976_v17 = vsel %vm13070_vm9, %v4664_v8, %v4975_v63  ;;  %1913 = vst.msk [vmem:[#allocation4 + $0x58] sm:$0xf] %vm1901_vm5, %v1828_v36  ;;  %v5085_v40 = vld [vmem:[#allocation3 + $0xc] sm:$0xf]  ;;  %v1126_v42 = vrot.slane %v1124_v43, 5  ;;  %v2212_v62 = vshrl.u32 %v1962_v19, 16 }
 0x184   : > { %4974 = vst [vmem:[#allocation3 + $0x10] sm:$0xf] %v4663_v18  ;;  %v5646_v35 = vld [vmem:[#allocation3 + $0xc] sm:$0xe]  ;;  %v13353_v8 = vld [vmem:[#allocation2 + $0x70] sm:$0xf] }
 0x185   : > { %4977 = vst [vmem:[#allocation3 + $0x14] sm:$0x1] %v4976_v17  ;;  %2737 = vrot.lane.b32.xlu1 %v2653_v1, %s11960_s10  ;;  %v10420_v38 = vrot.slane %v5646_v35, 9  ;;  %v1961_v18 = vld [vmem:[#allocation2 + $0x78] sm:$0xf]  ;;  %v1565_v7 = vrot.slane %v13353_v8, 5  ;;  %v1127_v31 = vsel %vm12051_vm6, %v1122_v53, %v1126_v42 }
 0x186   : > { %2474 = vst.msk [vmem:[#allocation4 + $0x58] sm:$0xf] %vm2462_vm7, %v13281_v24  ;;  %v1107_v24 = vrot.slane %v1105_v51, 4  ;;  %v3052_v17 = vld [vmem:[#allocation2 + $0x80] sm:$0x1]  ;;  %v2199_v46 = vshrl.u32 %v1961_v18, 16 }
 0x187   : > { %1837 = vrot.lane.b32.xlu2 %v1757_v55, %s11959_s9  ;;  %v2726_v9 = vpop.permute.xlu1 %2725  ;;  %5117 = vst [vmem:[#allocation5 + $0x48] sm:$0xf] %v5085_v40  ;;  %v13362_v55 = vpop.f32.mrf.mxu1  ;;  %v2849_v51 = vld [vmem:[#allocation2 + $0x78] sm:$0xf]  ;;  %v3283_v40 = vor.u32 %v3282_v20, %v13308_v47  ;;  %v2202_v33 = vshll.u32 %v1961_v18, 16  ;;  %v3286_v10 = vshll.u32 %v3052_v17, 16 }
 0x188   : > { %2735 = vrot.lane.b32.xlu0 %v2650_v0, %s11960_s10  ;;  %2811 = vst.msk [vmem:[#allocation4 + $0x58] sm:$0xf] %vm15934_vm8, %v2726_v9  ;;  %v1111_v27 = vor.u32 %v1110_v45, %v1107_v24  ;;  %v13366_v0 = vld [vmem:[#allocation2 + $0x74] sm:$0x1]  ;;  %vm15937_vm8 = vmmov %vm15936_vm2  ;;  %v13386_v60 = vrot.slane %v2208_v30, 5  ;;  %v2214_v26 = vrot.slane %v2212_v62, 4 }
 0x189   : > { %v3481_v3 = vpop.permute.xlu2 %3480  ;;  %v4516_v17 = vld [vmem:[#allocation3 + $0x24] sm:$0x1] }
 0x18a   : > { %v2724_v32 = vpop.permute.xlu0 %2723  ;;  %v4174_v56 = vpop.f32.mrf.mxu0  ;;  %v1112_v28 = vrot.slane %v1111_v27, 4  ;;  %v2201_v27 = vrot.slane %v2199_v46, 4  ;;  %v4978_v46 = vld [vmem:[#allocation3 + $0x18] sm:$0xf] }
 0x18b   : > { %2810 = vst.msk [vmem:[#allocation4 + $0x50] sm:$0xf] %vm15935_vm10, %v2724_v32  ;;  %v4175_v63 = vadd.f32 %v13150_v44, %v4174_v56  ;;  %v5086_v41 = vld [vmem:[#allocation3 + $0x10] sm:$0xf]  ;;  %v1567_v56 = vrot.slane %v1565_v7, 4 }
 0x18c   : > { %3004 = vst.msk [vmem:[#allocation4 + $0x50] sm:$0xf] %vm2993_vm12, %v2918_v15  ;;  %v5647_v29 = vld [vmem:[#allocation3 + $0x10] sm:$0xf]  ;;  %v5648_v59 = vld [vmem:[#allocation3 + $0x14] sm:$0x1]  ;;  %v1117_v47 = vsel %vm12051_vm6, %v1112_v28, %v13315_v14 }
 0x18d   : > { %v13349_v6 = vadd.f32 %v13197_v49, %v4175_v63  ;;  %3490 = vrot.lane.b32.xlu1 %v3279_v22, %s11962_s12  ;;  %5118 = vst [vmem:[#allocation5 + $0x6c] sm:$0xf] %v5086_v41  ;;  %v5748_v13 = vrot.slane %v5647_v29, 5  ;;  %v5751_v1 = vrot.slane %v5648_v59, 5  ;;  %v1568_v22 = vrot.slane %v13366_v0, 5 }
 0x18e   : > { %v10505_v11 = vld [vmem:[#allocation5 + $0x48] sm:$0xf]  ;;  %v3284_v63 = vrot.slane %v3283_v40, 4  ;;  %v3288_v41 = vrot.slane %v3286_v10, 5  ;;  %v2204_v59 = vrot.slane %v2202_v33, 5 }
 0x18f   : > { %2400 = vrot.lane.b32.xlu2 %v2197_v2, %s11961_s11  ;;  %v4374_v15 = vmul.f32 1.442695, %v13349_v6  ;;  %v3479_v12 = vpop.permute.xlu1 %3478  ;;  %v5749_v49 = vsel %vm12025_vm3, %v10420_v38, %v5748_v13  ;;  %v5750_v36 = vrot.slane %v5748_v13, 4  ;;  %v5915_v2 = vld [vmem:[#allocation3 + $0xc] sm:$0xf]  ;;  %vm4340_vm10 = vcmp.gt.f32.partialorder %v13349_v6, 0.0  ;;  %v13399_v28 = vpop.f32.mrf.mxu1 }
 0x190   : > { %2931 = vrot.lane.b32.xlu0 %v2850_v61, %s11958_s8  ;;  %3565 = vst.msk [vmem:[#allocation4 + $0x50] sm:$0xf] %vm15936_vm2, %v3479_v12  ;;  %vm15938_vm2 = vcmask 257152   ;;  %v1759_v61 = vld [vmem:[#allocation2 + $0x78] sm:$0xf]  ;;  %v2215_v12 = vor.u32 %v2214_v26, %v13386_v60  ;;  %v3289_v18 = vsel %vm12051_vm6, %v3284_v63, %v3288_v41 }
 0x191   : > { %v13360_v50 = vpop.permute.xlu2 %1636  ;;  %11771 = vpow2.f32 %v4374_v15  ;;  %v5752_v37 = vsel %vm12025_vm3, %v5750_v36, %v5751_v1  ;;  %5885 = vst [vmem:[#allocation5 + $0x50] sm:$0xf] %v5749_v49  ;;  %v5916_v36 = vld [vmem:[#allocation3 + $0x10] sm:$0xf]  ;;  %v1428_v0 = vld [vmem:[#allocation2 + $0x6c] sm:$0xe] }
 0x192   : > { %v2920_v39 = vpop.permute.xlu0 %2919  ;;  %v4176_v25 = vpop.f32.mrf.mxu0  ;;  %5886 = vst [vmem:[#allocation5 + $0x74] sm:$0xf] %v5752_v37  ;;  %v4517_v37 = vsel %vm13070_vm9, 0, %v4516_v17  ;;  %v2216_v30 = vrot.slane %v2215_v12, 4  ;;  %v10168_v10 = vrot.slane %v1428_v0, 9 }
 0x193   : > { %3005 = vst.msk [vmem:[#allocation4 + $0x58] sm:$0xf] %vm2993_vm12, %v2920_v39  ;;  %v4177_v9 = vadd.f32 %v13150_v44, %v4176_v25  ;;  %v1569_v25 = vsel %vm12025_vm3, %v1567_v56, %v1568_v22  ;;  %v3053_v26 = vld [vmem:[#allocation2 + $0x84] sm:$0xf]  ;;  %v787_v12 = vld [vmem:[#allocation2 + $0x54] sm:$0xf] }
 0x194   : > { %3566 = vst.msk [vmem:[#allocation4 + $0x58] sm:$0xf] %vm15937_vm8, %v3481_v3  ;;  %v11421_v24 = vld [vmem:[#allocation5 + $0x68] sm:$0xf0]  ;;  %v1963_v3 = vld [vmem:[#allocation2 + $0x80] sm:$0x1]  ;;  %vm15939_vm8 = vmmov %vm15938_vm2 }
 0x195   : > { %v13376_v45 = vadd.f32 %v13247_v23, %v4177_v9  ;;  %v10506_v32 = vor.u32 %v11421_v24, %v10505_v11  ;;  %1310 = vrot.lane.b32.xlu1 %v1127_v31, %s11957_s28  ;;  %v2218_v49 = vshll.u32 %v1963_v3, 16  ;;  %5947 = vst [vmem:[#allocation5 + $0xc] sm:$0xf] %v5915_v2  ;;  %v2205_v31 = vor.u32 %v2204_v59, %v2201_v27  ;;  %v13417_v3 = vld [vmem:[#allocation2 + $0x7c] sm:$0xf] }
 0x196   : > { %4518 = vst [vmem:[#allocation3 + $0x24] sm:$0x1] %v4517_v37  ;;  %v2524_v2 = vld [vmem:[#allocation2 + $0x80] sm:$0x1] }
 0x197   : > { %2929 = vrot.lane.b32.xlu2 %v2849_v51, %s11958_s8  ;;  %v11772_v23 = vpop.eup %11771  ;;  %v4376_v43 = vmul.f32 1.442695, %v13376_v45  ;;  %9069 = vmatmul.bf16.gmra.mxu2 %v10506_v32  ;;  %v1299_v35 = vpop.permute.xlu1 %1298  ;;  %v10249_v53 = vld [vmem:[#allocation4 + $0x50] sm:$0xf]  ;;  %v3054_v51 = vld [vmem:[#allocation2 + $0x88] sm:$0xf] }
 0x198   : > { %v10389_v14 = vadd.f32 -1.0, %v11772_v23  ;;  %1308 = vrot.lane.b32.xlu0 %v1117_v47, %s11957_s28  ;;  %1382 = vst.msk [vmem:[#allocation4 + $0x68] sm:$0xf] %vm15938_vm2, %v1299_v35  ;;  %v10513_v38 = vld [vmem:[#allocation5 + $0x50] sm:$0xf]  ;;  %vm15940_vm2 = vcmask 388352  }
 0x199   : > { %v13392_v29 = vpop.permute.xlu2 %1831  ;;  %11773 = vpow2.f32 %v4376_v43  ;;  %v11422_v13 = vld [vmem:[#allocation5 + $0x70] sm:$0xf0]  ;;  %v2220_v62 = vrot.slane %v2218_v49, 5  ;;  %5948 = vst [vmem:[#allocation5 + $0x30] sm:$0xf] %v5916_v36  ;;  %v3300_v32 = vshll.u32 %v3054_v51, 16 }
 0x19a   : > { %v4468_v42 = vsel %vm4340_vm10, %v13349_v6, %v10389_v14  ;;  %v1297_v20 = vpop.permute.xlu0 %1296  ;;  %v10514_v15 = vor.u32 %v11422_v13, %v10513_v38  ;;  %v3304_v47 = vshrl.u32 %v3054_v51, 16  ;;  %vm4341_vm10 = vcmp.gt.f32.partialorder %v13376_v45, 0.0  ;;  %819 = vst.msk [vmem:[#allocation4 + $0x70] sm:$0xf] %vm243_vm0, %v787_v12  ;;  %v2851_v51 = vld [vmem:[#allocation2 + $0x84] sm:$0xf] }
 0x19b   : > { %v4618_v1 = vpack.c.bf16 %v4468_v42, %v4468_v42  ;;  %1381 = vst.msk [vmem:[#allocation4 + $0x60] sm:$0xf] %vm15939_vm8, %v1297_v20  ;;  %v11378_v19 = vld [vmem:[#allocation4 + $0x54] sm:$0xf0]  ;;  %v2206_v22 = vrot.slane %v2205_v31, 4  ;;  %v2221_v35 = vsel %vm12051_vm6, %v2216_v30, %v2220_v62  ;;  %vm15941_vm8 = vmmov %vm15940_vm2  ;;  %v1566_v14 = vsel %vm12025_vm3, %v10168_v10, %v1565_v7 }
 0x19c   : > { %1721 = vst.msk [vmem:[#allocation4 + $0x60] sm:$0xf] %vm15940_vm2, %v13360_v50  ;;  %9247 = vmatmul.bf16.gmra.mxu1 %v10514_v15  ;;  %v10250_v6 = vor.u32 %v11378_v19, %v10249_v53  ;;  %v13430_v27 = vrot.slane %v3300_v32, 5  ;;  %v3306_v59 = vrot.slane %v3304_v47, 4  ;;  %v3291_v38 = vshrl.u32 %v3053_v26, 16 }
 0x19d   : > { %v4666_v39 = vshrl.u32 %v4618_v1, 16  ;;  %1841 = vrot.lane.b32.xlu1 %v1759_v61, %s11959_s9  ;;  %v4669_v9 = vshll.u32 %v4618_v1, 16  ;;  %v3055_v61 = vld [vmem:[#allocation2 + $0x8c] sm:$0x1]  ;;  %v2211_v8 = vsel %vm12051_vm6, %v2206_v22, %v13386_v60  ;;  %v4571_v53 = vld [vmem:[#allocation3 + $0x2c] sm:$0x1] }
 0x19e   : > { %4193 = vmatmul.bf16.gmra.mxu0 %v10250_v6  ;;  %v3294_v7 = vshll.u32 %v3053_v26, 16  ;;  %v4982_v42 = vld [vmem:[#allocation3 + $0x20] sm:$0x1]  ;;  %v4572_v20 = vsel %vm13132_vm4, 0, %v4571_v53  ;;  %v3310_v15 = vshll.u32 %v3055_v61, 16  ;;  %v2659_v19 = vrot.slane %v2524_v2, 5 }
 0x19f   : > { %3492 = vrot.lane.b32.xlu2 %v3289_v18, %s11962_s12  ;;  %v11774_v50 = vpop.eup %11773  ;;  %v13409_v40 = vrot.slane %v4666_v39, 7  ;;  %v1830_v33 = vpop.permute.xlu1 %1829  ;;  %4573 = vst [vmem:[#allocation3 + $0x2c] sm:$0x1] %v4572_v20  ;;  %v3307_v17 = vor.u32 %v3306_v59, %v13430_v27  ;;  %v3293_v6 = vrot.slane %v3291_v38, 4  ;;  %v874_v30 = vld [vmem:[#allocation2 + $0x94] sm:$0xf] }
 0x1a0   : > { %v10390_v11 = vadd.f32 -1.0, %v11774_v50  ;;  %1650 = vrot.lane.b32.xlu0 %v1569_v25, %s11956_s27  ;;  %1914 = vst.msk [vmem:[#allocation4 + $0x60] sm:$0xf] %vm1901_vm5, %v1830_v33  ;;  %v3296_v25 = vrot.slane %v3294_v7, 5  ;;  %v2522_v32 = vld [vmem:[#allocation2 + $0x78] sm:$0xe] }
 0x1a1   : > { %v13413_v24 = vpop.permute.xlu2 %2727  ;;  %v4671_v56 = vor.u32 %v4669_v9, %v13409_v40  ;;  %v4672_v37 = vrot.slane %v13409_v40, 4  ;;  %v3312_v40 = vrot.slane %v3310_v15, 5  ;;  %v3308_v47 = vrot.slane %v3307_v17, 4  ;;  %v867_v12 = vld [vmem:[#allocation2 + $0x78] sm:$0xf] }
 0x1a2   : > { %v4469_v23 = vsel %vm4341_vm10, %v13376_v45, %v10390_v11  ;;  %v1639_v43 = vpop.permute.xlu0 %1638  ;;  %v2656_v45 = vrot.slane %v13417_v3, 5  ;;  %v1186_v22 = vshll.u32 %v874_v30, 16  ;;  %v1190_v26 = vshrl.u32 %v874_v30, 16 }
 0x1a3   : > { %v4979_v63 = vsel %vm13272_vm11, %v4671_v56, %v4978_v46  ;;  %v4619_v41 = vpack.c.bf16 %v4469_v23, %v4469_v23  ;;  %1722 = vst.msk [vmem:[#allocation4 + $0x68] sm:$0xf] %vm15941_vm8, %v1639_v43  ;;  %v1760_v46 = vld [vmem:[#allocation2 + $0x7c] sm:$0xf]  ;;  %v3297_v56 = vor.u32 %v3296_v25, %v3293_v6  ;;  %vm15942_vm2 = vcmask 781952  }
 0x1a4   : > { %4980 = vst [vmem:[#allocation3 + $0x18] sm:$0xf] %v4979_v63  ;;  %v2658_v60 = vrot.slane %v2656_v45, 4  ;;  %v1437_v43 = vld [vmem:[#allocation2 + $0x90] sm:$0xe]  ;;  %v10184_v2 = vrot.slane %v2522_v32, 9  ;;  %vm15944_vm8 = vmmov %vm15942_vm2 }
 0x1a5   : > { %v4674_v13 = vshrl.u32 %v4619_v41, 16  ;;  %1915 = vst.msk [vmem:[#allocation4 + $0x68] sm:$0xf] %vm1901_vm5, %v13392_v29  ;;  %2404 = vrot.lane.b32.xlu1 %v2221_v35, %s11961_s11  ;;  %v4677_v36 = vshll.u32 %v4619_v41, 16  ;;  %v788_v29 = vld [vmem:[#allocation2 + $0x58] sm:$0xf] }
 0x1a6   : > { %820 = vst.msk [vmem:[#allocation4 + $0x78] sm:$0xf] %vm243_vm0, %v788_v29  ;;  %v2660_v10 = vsel %vm12025_vm3, %v2658_v60, %v2659_v19  ;;  %v875_v35 = vld [vmem:[#allocation2 + $0x98] sm:$0x1]  ;;  %v13464_v41 = vld [vmem:[#allocation2 + $0x94] sm:$0xf]  ;;  %v2657_v20 = vsel %vm12025_vm3, %v10184_v2, %v2656_v45  ;;  %v13512_v2 = vpop.f32.mrf.mxu1 }
 0x1a7   : > { %1648 = vrot.lane.b32.xlu2 %v1566_v14, %s11956_s27  ;;  %v4676_v49 = vrot.slane %v4674_v13, 7  ;;  %v2393_v1 = vpop.permute.xlu1 %2392  ;;  %vm15943_vm10 = vcmask 257152   ;;  %v13472_v59 = vrot.slane %v1186_v22, 5  ;;  %v1192_v38 = vrot.slane %v1190_v26, 4  ;;  %v873_v25 = vld [vmem:[#allocation2 + $0x90] sm:$0xf] }
 0x1a8   : > { %2402 = vrot.lane.b32.xlu0 %v2211_v8, %s11961_s11  ;;  %2476 = vst.msk [vmem:[#allocation4 + $0x68] sm:$0xf] %vm2462_vm7, %v2393_v1  ;;  %v10171_v8 = vrot.slane %v1437_v43, 9  ;;  %v1586_v53 = vrot.slane %v13464_v41, 5  ;;  %v1196_v7 = vshll.u32 %v875_v35, 16  ;;  %v1129_v17 = vshrl.u32 %v867_v12, 16 }
 0x1a9   : > { %v2924_v18 = vpop.permute.xlu2 %2923  ;;  %v4679_v0 = vor.u32 %v4677_v36, %v4676_v49  ;;  %v4681_v39 = vrot.slane %v4676_v49, 4  ;;  %v1193_v29 = vor.u32 %v1192_v38, %v13472_v59  ;;  %v1177_v22 = vshrl.u32 %v873_v25, 16 }
 0x1aa   : > { %v2391_v31 = vpop.permute.xlu0 %2390 }
 0x1ab   : > { %v4680_v62 = vsel %vm12168_vm14, %v4672_v37, %v4679_v0  ;;  %v4983_v50 = vsel %vm13070_vm9, %v4681_v39, %v4982_v42  ;;  %2475 = vst.msk [vmem:[#allocation4 + $0x60] sm:$0xf] %vm2462_vm7, %v2391_v31  ;;  %v4179_v9 = vpop.f32.mrf.mxu0  ;;  %v5087_v11 = vld [vmem:[#allocation3 + $0x18] sm:$0xf]  ;;  %v1198_v37 = vrot.slane %v1196_v7, 5  ;;  %v1132_v0 = vshll.u32 %v867_v12, 16 }
 0x1ac   : > { %4981 = vst [vmem:[#allocation3 + $0x1c] sm:$0xf] %v4680_v62  ;;  %v4180_v33 = vadd.f32 %v13150_v44, %v4179_v9  ;;  %v5649_v15 = vld [vmem:[#allocation3 + $0x18] sm:$0xe]  ;;  %v1971_v39 = vld [vmem:[#allocation2 + $0xa0] sm:$0xf] }
 0x1ad   : > { %4984 = vst [vmem:[#allocation3 + $0x20] sm:$0x1] %v4983_v50  ;;  %2933 = vrot.lane.b32.xlu1 %v2851_v51, %s11958_s8  ;;  %v10421_v19 = vrot.slane %v5649_v15, 9  ;;  %v2280_v43 = vshll.u32 %v1971_v39, 16  ;;  %v2284_v35 = vshrl.u32 %v1971_v39, 16 }
 0x1ae   : > { %2812 = vst.msk [vmem:[#allocation4 + $0x60] sm:$0xf] %vm15942_vm2, %v13413_v24  ;;  %v13461_v23 = vadd.f32 %v13298_v58, %v4180_v33  ;;  %v3313_v58 = vsel %vm12051_vm6, %v3308_v47, %v3312_v40  ;;  %v3298_v24 = vrot.slane %v3297_v56, 4  ;;  %vm15945_vm2 = vcmask 1044352   ;;  %v13508_v56 = vld [vmem:[#allocation2 + $0xa4] sm:$0x1] }
 0x1af   : > { %1843 = vrot.lane.b32.xlu2 %v1760_v46, %s11959_s9  ;;  %v2922_v63 = vpop.permute.xlu1 %2921  ;;  %5119 = vst [vmem:[#allocation5 + $0x90] sm:$0xf] %v5087_v11  ;;  %v1194_v40 = vrot.slane %v1193_v29, 4  ;;  %v2852_v46 = vld [vmem:[#allocation2 + $0x88] sm:$0xf]  ;;  %v1131_v47 = vrot.slane %v1129_v17, 4 }
 0x1b0   : > { %v4378_v14 = vmul.f32 1.442695, %v13461_v23  ;;  %2741 = vrot.lane.b32.xlu0 %v2660_v10, %s11960_s10  ;;  %3006 = vst.msk [vmem:[#allocation4 + $0x60] sm:$0xf] %vm2993_vm12, %v2922_v63  ;;  %v3303_v1 = vsel %vm12051_vm6, %v3298_v24, %v13430_v27  ;;  %v1587_v27 = vsel %vm12025_vm3, %v10171_v8, %v1586_v53  ;;  %v1180_v63 = vshll.u32 %v873_v25, 16 }
 0x1b1   : > { %v1301_v61 = vpop.permute.xlu2 %1300  ;;  %v1179_v24 = vrot.slane %v1177_v22, 4  ;;  %v13521_v15 = vrot.slane %v2280_v43, 5  ;;  %v13523_v12 = vrot.slane %v2284_v35, 4  ;;  %v1588_v22 = vrot.slane %v1586_v53, 4  ;;  %v13553_v35 = vpop.f32.mrf.mxu1 }
 0x1b2   : > { %1383 = vst.msk [vmem:[#allocation4 + $0x70] sm:$0xf] %vm15943_vm10, %v1301_v61  ;;  %11775 = vpow2.f32 %v4378_v14  ;;  %v2730_v13 = vpop.permute.xlu0 %2729  ;;  %vm4342_vm10 = vcmp.gt.f32.partialorder %v13461_v23, 0.0  ;;  %v1182_v8 = vrot.slane %v1180_v63, 5 }
 0x1b3   : > { %2813 = vst.msk [vmem:[#allocation4 + $0x68] sm:$0xf] %vm15944_vm8, %v2730_v13  ;;  %v4181_v42 = vpop.f32.mrf.mxu0  ;;  %v5088_v36 = vld [vmem:[#allocation3 + $0x1c] sm:$0xf]  ;;  %vm15946_vm8 = vmmov %vm15945_vm2  ;;  %v1199_v13 = vsel %vm12051_vm6, %v1194_v40, %v1198_v37  ;;  %v1439_v37 = vld [vmem:[#allocation2 + $0x98] sm:$0x1] }
 0x1b4   : > { %3007 = vst.msk [vmem:[#allocation4 + $0x68] sm:$0xf] %vm2993_vm12, %v2924_v18  ;;  %v4182_v49 = vadd.f32 %v13150_v44, %v4181_v42  ;;  %v5650_v3 = vld [vmem:[#allocation3 + $0x1c] sm:$0xf]  ;;  %v5651_v60 = vld [vmem:[#allocation3 + $0x20] sm:$0x1] }
 0x1b5   : > { %3496 = vrot.lane.b32.xlu1 %v3313_v58, %s11962_s12  ;;  %5120 = vst [vmem:[#allocation5 + $0xb4] sm:$0xf] %v5088_v36  ;;  %v5755_v18 = vrot.slane %v5650_v3, 5  ;;  %v13491_v44 = vld [vmem:[#allocation2 + $0x7c] sm:$0xf]  ;;  %v5758_v50 = vrot.slane %v5651_v60, 5  ;;  %v1183_v36 = vor.u32 %v1182_v8, %v1179_v24 }
 0x1b6   : > { %v13488_v45 = vadd.f32 %v13334_v5, %v4182_v49  ;;  %v1138_v33 = vshll.u32 %v13491_v44, 16  ;;  %v10541_v11 = vld [vmem:[#allocation5 + $0x90] sm:$0xf]  ;;  %v1134_v58 = vrot.slane %v1132_v0, 5  ;;  %v4985_v42 = vld [vmem:[#allocation3 + $0x24] sm:$0xf] }
 0x1b7   : > { %2739 = vrot.lane.b32.xlu2 %v2657_v20, %s11960_s10  ;;  %v3485_v6 = vpop.permute.xlu1 %3484  ;;  %v5756_v30 = vsel %vm12025_vm3, %v10421_v19, %v5755_v18  ;;  %v5757_v62 = vrot.slane %v5755_v18, 4  ;;  %v2290_v49 = vshll.u32 %v13508_v56, 16  ;;  %v1766_v19 = vld [vmem:[#allocation2 + $0xa0] sm:$0xf]  ;;  %v1970_v0 = vld [vmem:[#allocation2 + $0x9c] sm:$0xf] }
 0x1b8   : > { %v11776_v31 = vpop.eup %11775  ;;  %v4380_v5 = vmul.f32 1.442695, %v13488_v45  ;;  %3494 = vrot.lane.b32.xlu0 %v3303_v1, %s11962_s12  ;;  %3568 = vst.msk [vmem:[#allocation4 + $0x68] sm:$0xf] %vm15945_vm2, %v3485_v6  ;;  %vm4343_vm2 = vcmp.gt.f32.partialorder %v13488_v45, 0.0  ;;  %v13519_v7 = vrot.slane %v1138_v33, 5  ;;  %v1135_v17 = vor.u32 %v1134_v58, %v1131_v47 }
 0x1b9   : > { %v13500_v51 = vpop.permute.xlu2 %1642  ;;  %v10391_v9 = vadd.f32 -1.0, %v11776_v31  ;;  %5887 = vst [vmem:[#allocation5 + $0x98] sm:$0xf] %v5756_v30  ;;  %v5759_v32 = vsel %vm12025_vm3, %v5757_v62, %v5758_v50  ;;  %v4519_v30 = vld [vmem:[#allocation3 + $0x30] sm:$0x1]  ;;  %v2274_v43 = vshll.u32 %v1970_v0, 16 }
 0x1ba   : > { %11777 = vpow2.f32 %v4380_v5  ;;  %v3483_v10 = vpop.permute.xlu0 %3482  ;;  %5888 = vst [vmem:[#allocation5 + $0xbc] sm:$0xf] %v5759_v32  ;;  %v1765_v40 = vld [vmem:[#allocation2 + $0x9c] sm:$0xf]  ;;  %v4520_v33 = vsel %vm13070_vm9, 0, %v4519_v30  ;;  %v1136_v32 = vrot.slane %v1135_v17, 4 }
 0x1bb   : > { %v4470_v26 = vsel %vm4342_vm10, %v13461_v23, %v10391_v9  ;;  %3567 = vst.msk [vmem:[#allocation4 + $0x60] sm:$0xf] %vm15946_vm8, %v3483_v10  ;;  %vm15947_vm10 = vcmask 388352   ;;  %vm15948_vm8 = vcmask 257152   ;;  %v13546_v47 = vld [vmem:[#allocation2 + $0xa0] sm:$0xf] }
 0x1bc   : > { %v4620_v14 = vpack.c.bf16 %v4470_v26, %v4470_v26  ;;  %v11430_v61 = vld [vmem:[#allocation5 + $0xb0] sm:$0xf0]  ;;  %v5917_v56 = vld [vmem:[#allocation3 + $0x18] sm:$0xf]  ;;  %v2271_v26 = vshrl.u32 %v1970_v0, 16  ;;  %v1589_v63 = vrot.slane %v1439_v37, 5 }
 0x1bd   : > { %v10542_v38 = vor.u32 %v11430_v61, %v10541_v11  ;;  %1660 = vrot.lane.b32.xlu1 %v1587_v27, %s11956_s27  ;;  %v1184_v27 = vrot.slane %v1183_v36, 4  ;;  %4521 = vst [vmem:[#allocation3 + $0x30] sm:$0x1] %v4520_v33  ;;  %v5979_v61 = vld [vmem:[#allocation3 + $0xc] sm:$0xf]  ;;  %v2292_v36 = vrot.slane %v2290_v49, 5 }
 0x1be   : > { %v4683_v23 = vshrl.u32 %v4620_v14, 16  ;;  %v4686_v3 = vshll.u32 %v4620_v14, 16  ;;  %v789_v14 = vld [vmem:[#allocation2 + $0x60] sm:$0xf]  ;;  %v4989_v58 = vld [vmem:[#allocation3 + $0x2c] sm:$0x1] }
 0x1bf   : > { %2935 = vrot.lane.b32.xlu2 %v2852_v46, %s11958_s8  ;;  %9074 = vmatmul.bf16.gmra.mxu2 %v10542_v38  ;;  %v1641_v20 = vpop.permute.xlu1 %1640  ;;  %v11380_v60 = vld [vmem:[#allocation4 + $0x64] sm:$0xf0]  ;;  %v1189_v46 = vsel %vm12051_vm6, %v1184_v27, %v13472_v59  ;;  %v2287_v59 = vor.u32 %v13523_v12, %v13521_v15  ;;  %v2273_v38 = vrot.slane %v2271_v26, 4  ;;  %821 = vst.msk [vmem:[#allocation4 + $0x80] sm:$0xf] %vm243_vm0, %v789_v14  ;;  %v6028_v49 = vshrl.u32 %v5979_v61, 16 }
 0x1c0   : > { %v11778_v1 = vpop.eup %11777  ;;  %v13526_v29 = vrot.slane %v4683_v23, 7  ;;  %1322 = vrot.lane.b32.xlu0 %v1199_v13, %s11957_s28  ;;  %1723 = vst.msk [vmem:[#allocation4 + $0x70] sm:$0xf] %vm15947_vm10, %v1641_v20  ;;  %v10549_v31 = vld [vmem:[#allocation5 + $0x98] sm:$0xf]  ;;  %v2276_v13 = vrot.slane %v2274_v43, 5 }
 0x1c1   : > { %v13530_v18 = vpop.permute.xlu2 %2394  ;;  %v10392_v6 = vadd.f32 -1.0, %v11778_v1  ;;  %v11431_v50 = vld [vmem:[#allocation5 + $0xb8] sm:$0xf0]  ;;  %v5918_v41 = vld [vmem:[#allocation3 + $0x1c] sm:$0xf]  ;;  %v1142_v20 = vshrl.u32 %v13491_v44, 16  ;;  %v1590_v44 = vsel %vm12025_vm3, %v1588_v22, %v1589_v63 }
 0x1c2   : > { %v4688_v39 = vor.u32 %v4686_v3, %v13526_v29  ;;  %v1303_v25 = vpop.permute.xlu0 %1302  ;;  %v10257_v5 = vld [vmem:[#allocation4 + $0x60] sm:$0xf]  ;;  %v2288_v12 = vrot.slane %v2287_v59, 4  ;;  %v2677_v1 = vrot.slane %v13546_v47, 5  ;;  %5949 = vst [vmem:[#allocation5 + $0x54] sm:$0xf] %v5917_v56  ;;  %v2277_v27 = vor.u32 %v2276_v13, %v2273_v38 }
 0x1c3   : > { %v4471_v62 = vsel %vm4343_vm2, %v13488_v45, %v10392_v6  ;;  %1384 = vst.msk [vmem:[#allocation4 + $0x78] sm:$0xf] %vm15948_vm8, %v1303_v25  ;;  %v10258_v9 = vor.u32 %v11380_v60, %v10257_v5  ;;  %v10550_v45 = vor.u32 %v11431_v50, %v10549_v31  ;;  %v4689_v3 = vrot.slane %v13526_v29, 4  ;;  %v4574_v25 = vld [vmem:[#allocation3 + $0x38] sm:$0x1] }
 0x1c4   : > { %v4986_v10 = vsel %vm13272_vm11, %v4688_v39, %v4985_v42  ;;  %v4621_v11 = vpack.c.bf16 %v4471_v62, %v4471_v62  ;;  %1724 = vst.msk [vmem:[#allocation4 + $0x78] sm:$0xf] %vm15947_vm10, %v13500_v51  ;;  %v2533_v42 = vld [vmem:[#allocation2 + $0xa4] sm:$0x1]  ;;  %v1141_v6 = vsel %vm12051_vm6, %v1136_v32, %v13519_v7  ;;  %v2531_v39 = vld [vmem:[#allocation2 + $0x9c] sm:$0xe]  ;;  %v2293_v30 = vsel %vm12051_vm6, %v2288_v12, %v2292_v36 }
 0x1c5   : > { %4987 = vst [vmem:[#allocation3 + $0x24] sm:$0xf] %v4986_v10  ;;  %4198 = vmatmul.bf16.gmra.mxu0 %v10258_v9  ;;  %1855 = vrot.lane.b32.xlu1 %v1766_v19, %s11959_s9  ;;  %v2680_v0 = vrot.slane %v2533_v42, 5  ;;  %v5980_v31 = vld [vmem:[#allocation3 + $0x10] sm:$0xf]  ;;  %v6031_v5 = vshll.u32 %v5979_v61, 16 }
 0x1c6   : > { %v4691_v51 = vshrl.u32 %v4621_v11, 16  ;;  %9252 = vmatmul.bf16.gmra.mxu1 %v10550_v45  ;;  %v4694_v8 = vshll.u32 %v4621_v11, 16  ;;  %5950 = vst [vmem:[#allocation5 + $0x78] sm:$0xf] %v5918_v41  ;;  %v2679_v62 = vrot.slane %v2677_v1, 4  ;;  %v4575_v50 = vsel %vm13132_vm4, 0, %v4574_v25 }
 0x1c7   : > { %1320 = vrot.lane.b32.xlu2 %v1189_v46, %s11957_s28  ;;  %v1836_v24 = vpop.permute.xlu1 %1835  ;;  %v13583_v9 = vld [vmem:[#allocation2 + $0x7c] sm:$0xf]  ;;  %v869_v46 = vld [vmem:[#allocation2 + $0x80] sm:$0x1]  ;;  %4576 = vst [vmem:[#allocation3 + $0x38] sm:$0x1] %v4575_v50 }
 0x1c8   : > { %v4693_v53 = vrot.slane %v4691_v51, 7  ;;  %1853 = vrot.lane.b32.xlu0 %v1765_v40, %s11959_s9  ;;  %1917 = vst.msk [vmem:[#allocation4 + $0x78] sm:$0xf] %vm1901_vm5, %v1836_v24  ;;  %v2278_v10 = vrot.slane %v2277_v27, 4  ;;  %v790_v11 = vld [vmem:[#allocation2 + $0x64] sm:$0xf]  ;;  %v2681_v61 = vsel %vm12025_vm3, %v2679_v62, %v2680_v0 }
 0x1c9   : > { %v13559_v23 = vpop.permute.xlu2 %2733  ;;  %v13586_v45 = vrot.slane %v6028_v49, 4  ;;  %vm15949_vm2 = vcmask 781952   ;;  %v1964_v59 = vld [vmem:[#allocation2 + $0x84] sm:$0xf]  ;;  %v10187_v22 = vrot.slane %v2531_v39, 9  ;;  %v13592_v26 = vrot.slane %v6031_v5, 5 }
 0x1ca   : > { %v4696_v60 = vor.u32 %v4694_v8, %v4693_v53  ;;  %v4698_v19 = vrot.slane %v4693_v53, 4  ;;  %v1834_v17 = vpop.permute.xlu0 %1833  ;;  %v6037_v43 = vshll.u32 %v5980_v31, 16  ;;  %v6041_v51 = vshrl.u32 %v5980_v31, 16  ;;  %822 = vst.msk [vmem:[#allocation4 + $0x88] sm:$0xf] %vm243_vm0, %v790_v11  ;;  %vm15950_vm8 = vmmov %vm15949_vm2 }
 0x1cb   : > { %1916 = vst.msk [vmem:[#allocation4 + $0x70] sm:$0xf] %vm1901_vm5, %v1834_v17  ;;  %v1148_v38 = vshll.u32 %v869_v46, 16  ;;  %v13603_v13 = vld [vmem:[%s15897_s2] ss:$0 sm:$0xff]  ;;  %v2283_v8 = vsel %vm12051_vm6, %v2278_v10, %v13521_v15  ;;  %vm15951_vm10 = vcmask 257152   ;;  %v6034_v10 = vor.u32 %v13592_v26, %v13586_v45  ;;  %v13648_v26 = vpop.f32.mrf.mxu1 }
 0x1cc   : > { %v4697_v37 = vsel %vm12168_vm14, %v4689_v3, %v4696_v60  ;;  %v4990_v29 = vsel %vm13070_vm9, %v4698_v19, %v4989_v58  ;;  %2477 = vst.msk [vmem:[#allocation4 + $0x70] sm:$0xf] %vm2462_vm7, %v13530_v18  ;;  %v1144_v18 = vrot.slane %v1142_v20, 4  ;;  %v5089_v40 = vld [vmem:[#allocation3 + $0x24] sm:$0xf]  ;;  %v1572_v58 = vrot.slane %v13583_v9, 5 }
 0x1cd   : > { %4988 = vst [vmem:[#allocation3 + $0x28] sm:$0xf] %v4697_v37  ;;  %1312 = vrot.lane.b32.xlu1 %v1141_v6, %s11957_s28  ;;  %v5652_v56 = vld [vmem:[#allocation3 + $0x24] sm:$0xe]  ;;  %v1433_v53 = vld [vmem:[#allocation2 + $0x80] sm:$0x1]  ;;  %v2678_v3 = vsel %vm12025_vm3, %v10187_v22, %v2677_v1 }
 0x1ce   : > { %4991 = vst [vmem:[#allocation3 + $0x2c] sm:$0x1] %v4990_v29  ;;  %v1145_v24 = vor.u32 %v1144_v18, %v13519_v7  ;;  %v10422_v42 = vrot.slane %v5652_v56, 9  ;;  %v2223_v20 = vshrl.u32 %v1964_v59, 16  ;;  %v2226_v19 = vshll.u32 %v1964_v59, 16 }
 0x1cf   : > { %1662 = vrot.lane.b32.xlu2 %v1590_v44, %s11956_s27  ;;  %v2732_v33 = vpop.permute.xlu1 %2731  ;;  %5121 = vst [vmem:[#allocation5 + $0xd8] sm:$0xf] %v5089_v40  ;;  %v1574_v17 = vrot.slane %v1572_v58, 4  ;;  %v13622_v6 = vrot.slane %v6037_v43, 5  ;;  %v1150_v49 = vrot.slane %v1148_v38, 5  ;;  %v1575_v29 = vrot.slane %v1433_v53, 5 }
 0x1d0   : > { %2416 = vrot.lane.b32.xlu0 %v2293_v30, %s11961_s11  ;;  %2814 = vst.msk [vmem:[#allocation4 + $0x70] sm:$0xf] %vm15949_vm2, %v2732_v33  ;;  %v13627_v37 = vld [vmem:[#allocation2 + $0x88] sm:$0xf]  ;;  %v3063_v25 = vld [vmem:[#allocation2 + $0xac] sm:$0xf] }
 0x1d1   : > { %v13590_v32 = vpop.permute.xlu2 %3486  ;;  %v2857_v31 = vld [vmem:[#allocation2 + $0xa8] sm:$0xf]  ;;  %v2225_v5 = vrot.slane %v2223_v20, 4  ;;  %v2228_v30 = vrot.slane %v2226_v19, 5  ;;  %v13632_v62 = vld [vmem:[#allocation3 + $0x14] sm:$0x1]  ;;  %v1576_v45 = vsel %vm12025_vm3, %v1574_v17, %v1575_v29 }
 0x1d2   : > { %v2397_v63 = vpop.permute.xlu0 %2396  ;;  %v4184_v14 = vpop.f32.mrf.mxu0  ;;  %v2232_v46 = vshll.u32 %v13627_v37, 16  ;;  %v3064_v33 = vld [vmem:[#allocation2 + $0xb0] sm:$0x1]  ;;  %v3372_v22 = vshll.u32 %v3063_v25, 16  ;;  %v3376_v43 = vshrl.u32 %v3063_v25, 16  ;;  %vm15952_vm2 = vcmask 1044352  }
 0x1d3   : > { %2478 = vst.msk [vmem:[#allocation4 + $0x78] sm:$0xf] %vm2462_vm7, %v2397_v63  ;;  %v4185_v41 = vadd.f32 %v13603_v13, %v4184_v14  ;;  %v2229_v38 = vor.u32 %v2228_v30, %v2225_v5  ;;  %v13655_v53 = vld [vmem:[#allocation2 + $0x88] sm:$0xf]  ;;  %v2236_v17 = vshrl.u32 %v13627_v37, 16 }
 0x1d4   : > { %2815 = vst.msk [vmem:[#allocation4 + $0x78] sm:$0xf] %vm15950_vm8, %v13559_v23  ;;  %v5090_v7 = vld [vmem:[#allocation3 + $0x28] sm:$0xf]  ;;  %v1146_v23 = vrot.slane %v1145_v24, 4  ;;  %vm15953_vm8 = vmmov %vm15951_vm10 }
 0x1d5   : > { %v5653_v12 = vld [vmem:[#allocation3 + $0x28] sm:$0xf]  ;;  %v13612_v36 = vadd.f32 %v13362_v55, %v4185_v41  ;;  %2753 = vrot.lane.b32.xlu1 %v2681_v61, %s11960_s10  ;;  %5122 = vst [vmem:[#allocation5 + $0xfc] sm:$0xf] %v5090_v7  ;;  %v5654_v60 = vld [vmem:[#allocation3 + $0x2c] sm:$0x1] }
 0x1d6   : > { %v5762_v15 = vrot.slane %v5653_v12, 5  ;;  %v6043_v55 = vrot.slane %v6041_v51, 4  ;;  %v5765_v39 = vrot.slane %v5654_v60, 5  ;;  %v1151_v59 = vsel %vm12051_vm6, %v1146_v23, %v1150_v49  ;;  %v1431_v51 = vld [vmem:[#allocation2 + $0x78] sm:$0xe] }
 0x1d7   : > { %2414 = vrot.lane.b32.xlu2 %v2283_v8, %s11961_s11  ;;  %v4382_v44 = vmul.f32 1.442695, %v13612_v36  ;;  %v2928_v27 = vpop.permute.xlu1 %2927  ;;  %v10577_v63 = vld [vmem:[#allocation5 + $0xd8] sm:$0xf]  ;;  %v3382_v41 = vshll.u32 %v3064_v33, 16  ;;  %v13663_v12 = vrot.slane %v2232_v46, 5 }
 0x1d8   : > { %v5763_v47 = vsel %vm12025_vm3, %v10422_v42, %v5762_v15  ;;  %v5764_v1 = vrot.slane %v5762_v15, 4  ;;  %2751 = vrot.lane.b32.xlu0 %v2678_v3, %s11960_s10  ;;  %3009 = vst.msk [vmem:[#allocation4 + $0x78] sm:$0xf] %vm2993_vm12, %v2928_v27  ;;  %v6044_v11 = vor.u32 %v6043_v55, %v13622_v6  ;;  %v6047_v42 = vshll.u32 %v13632_v62, 16  ;;  %v3062_v60 = vld [vmem:[#allocation2 + $0xa8] sm:$0xf] }
 0x1d9   : > { %v1307_v0 = vpop.permute.xlu2 %1306  ;;  %11779 = vpow2.f32 %v4382_v44  ;;  %5889 = vst [vmem:[#allocation5 + $0xe0] sm:$0xf] %v5763_v47  ;;  %v10169_v3 = vrot.slane %v1431_v51, 9  ;;  %v13670_v23 = vrot.slane %v3372_v22, 5  ;;  %v3378_v55 = vrot.slane %v3376_v43, 4  ;;  %v13696_v51 = vpop.f32.mrf.mxu1 }
 0x1da   : > { %1386 = vst.msk [vmem:[#allocation4 + $0x88] sm:$0xf] %vm15951_vm10, %v1307_v0  ;;  %v2926_v50 = vpop.permute.xlu0 %2925  ;;  %v4186_v18 = vpop.f32.mrf.mxu0  ;;  %v5766_v40 = vsel %vm12025_vm3, %v5764_v1, %v5765_v39  ;;  %v13659_v8 = vrot.slane %v6044_v11, 4  ;;  %vm4344_vm10 = vcmp.gt.f32.partialorder %v13612_v36, 0.0  ;;  %v1762_v44 = vld [vmem:[#allocation2 + $0x88] sm:$0xf] }
 0x1db   : > { %3008 = vst.msk [vmem:[#allocation4 + $0x70] sm:$0xf] %vm2993_vm12, %v2926_v50  ;;  %v4187_v56 = vadd.f32 %v13603_v13, %v4186_v18  ;;  %v13673_v27 = vrot.slane %v2229_v38, 4  ;;  %v2663_v47 = vrot.slane %v13655_v53, 5  ;;  %v13677_v29 = vrot.slane %v3382_v41, 5 }
 0x1dc   : > { %3569 = vst.msk [vmem:[#allocation4 + $0x70] sm:$0xf] %vm15952_vm2, %v13590_v32  ;;  %v11439_v14 = vld [vmem:[#allocation5 + $0xf8] sm:$0xf0]  ;;  %v13657_v32 = vrot.slane %v6034_v10, 4  ;;  %v3363_v39 = vshrl.u32 %v3062_v60, 16  ;;  %v1573_v5 = vsel %vm12025_vm3, %v10169_v3, %v1572_v58 }
 0x1dd   : > { %v13651_v61 = vadd.f32 %v13399_v28, %v4187_v56  ;;  %v10578_v24 = vor.u32 %v11439_v14, %v10577_v63  ;;  %2945 = vrot.lane.b32.xlu1 %v2857_v31, %s11958_s8  ;;  %5890 = vst [vmem:[#allocation5 + $0x104] sm:$0xf] %v5766_v40  ;;  %v13679_v0 = vld [vmem:[#allocation2 + $0x8c] sm:$0x1]  ;;  %v3366_v25 = vshll.u32 %v3062_v60, 16  ;;  %v3379_v40 = vor.u32 %v3378_v55, %v13670_v23 }
 0x1de   : > { %v13686_v30 = vld [vmem:[#allocation2 + $0x84] sm:$0xe]  ;;  %v5919_v50 = vld [vmem:[#allocation3 + $0x24] sm:$0xf]  ;;  %v3056_v46 = vld [vmem:[#allocation2 + $0x90] sm:$0xf] }
 0x1df   : > { %1314 = vrot.lane.b32.xlu2 %v1151_v59, %s11957_s28  ;;  %v11780_v20 = vpop.eup %11779  ;;  %v4384_v28 = vmul.f32 1.442695, %v13651_v61  ;;  %9079 = vmatmul.bf16.gmra.mxu2 %v10578_v24  ;;  %v1305_v7 = vpop.permute.xlu1 %1304  ;;  %v1761_v11 = vld [vmem:[#allocation2 + $0x84] sm:$0xf]  ;;  %v13692_v56 = vrot.slane %v2663_v47, 4  ;;  %v2666_v9 = vrot.slane %v13679_v0, 5 }
 0x1e0   : > { %v10393_v15 = vadd.f32 -1.0, %v11780_v20  ;;  %1654 = vrot.lane.b32.xlu0 %v1576_v45, %s11956_s27  ;;  %1385 = vst.msk [vmem:[#allocation4 + $0x80] sm:$0xf] %vm15953_vm8, %v1305_v7  ;;  %v10585_v18 = vld [vmem:[#allocation5 + $0xe0] sm:$0xf]  ;;  %v3365_v58 = vrot.slane %v3363_v39, 4  ;;  %v2235_v39 = vsel %vm12051_vm6, %v13673_v27, %v13663_v12 }
 0x1e1   : > { %v13667_v19 = vpop.permute.xlu2 %1837  ;;  %11781 = vpow2.f32 %v4384_v28  ;;  %v3368_v59 = vrot.slane %v3366_v25, 5  ;;  %v5920_v22 = vld [vmem:[#allocation3 + $0x28] sm:$0xf]  ;;  %5951 = vst [vmem:[#allocation5 + $0x9c] sm:$0xf] %v5919_v50  ;;  %v10185_v38 = vrot.slane %v13686_v30, 9 }
 0x1e2   : > { %v4472_v1 = vsel %vm4344_vm10, %v13612_v36, %v10393_v15  ;;  %v3489_v49 = vpop.permute.xlu0 %3488  ;;  %v4992_v45 = vld [vmem:[#allocation3 + $0x30] sm:$0xf]  ;;  %v3315_v41 = vshrl.u32 %v3056_v46, 16  ;;  %vm15954_vm8 = vcmask 388352   ;;  %v3318_v3 = vshll.u32 %v3056_v46, 16 }
 0x1e3   : > { %v4622_v31 = vpack.c.bf16 %v4472_v1, %v4472_v1  ;;  %3570 = vst.msk [vmem:[#allocation4 + $0x78] sm:$0xf] %vm15952_vm2, %v3489_v49  ;;  %v10265_v28 = vld [vmem:[#allocation4 + $0x70] sm:$0xf]  ;;  %vm4345_vm10 = vcmp.gt.f32.partialorder %v13651_v61, 0.0  ;;  %v3380_v15 = vrot.slane %v3379_v40, 4  ;;  %vm15955_vm2 = vmmov %vm15954_vm8 }
 0x1e4   : > { %v11440_v36 = vld [vmem:[#allocation5 + $0x100] sm:$0xf0]  ;;  %v2858_v55 = vld [vmem:[#allocation2 + $0xac] sm:$0xf]  ;;  %5952 = vst [vmem:[#allocation5 + $0xc0] sm:$0xf] %v5920_v22 }
 0x1e5   : > { %v4700_v33 = vshrl.u32 %v4622_v31, 16  ;;  %v10586_v10 = vor.u32 %v11440_v36, %v10585_v18  ;;  %1847 = vrot.lane.b32.xlu1 %v1762_v44, %s11959_s9  ;;  %v4703_v14 = vshll.u32 %v4622_v31, 16  ;;  %v4522_v25 = vld [vmem:[#allocation3 + $0x3c] sm:$0x1]  ;;  %v3369_v31 = vor.u32 %v3368_v59, %v3365_v58  ;;  %v4996_v22 = vld [vmem:[#allocation3 + $0x38] sm:$0x1] }
 0x1e6   : > { %v13717_v40 = vld [vmem:[#allocation2 + $0x94] sm:$0xf]  ;;  %v3317_v46 = vrot.slane %v3315_v41, 4  ;;  %v878_v30 = vld [vmem:[#allocation2 + $0xa4] sm:$0x1] }
 0x1e7   : > { %1652 = vrot.lane.b32.xlu2 %v1573_v5, %s11956_s27  ;;  %v11782_v43 = vpop.eup %11781  ;;  %v13698_v63 = vrot.slane %v4700_v33, 7  ;;  %9257 = vmatmul.bf16.gmra.mxu1 %v10586_v10  ;;  %v1647_v24 = vpop.permute.xlu1 %1646  ;;  %v877_v5 = vld [vmem:[#allocation2 + $0xa0] sm:$0xf]  ;;  %v3320_v33 = vrot.slane %v3318_v3, 5  ;;  %v876_v10 = vld [vmem:[#allocation2 + $0x9c] sm:$0xf] }
 0x1e8   : > { %v10394_v20 = vadd.f32 -1.0, %v11782_v43  ;;  %1845 = vrot.lane.b32.xlu0 %v1761_v11, %s11959_s9  ;;  %1726 = vst.msk [vmem:[#allocation4 + $0x88] sm:$0xf] %vm15954_vm8, %v1647_v24  ;;  %v3385_v11 = vsel %vm12051_vm6, %v3380_v15, %v13677_v29  ;;  %v1210_v58 = vshll.u32 %v877_v5, 16  ;;  %v1214_v59 = vshrl.u32 %v877_v5, 16 }
 0x1e9   : > { %v13703_v7 = vpop.permute.xlu2 %2400  ;;  %v4705_v60 = vor.u32 %v4703_v14, %v13698_v63  ;;  %v3370_v43 = vrot.slane %v3369_v31, 4  ;;  %v2238_v14 = vrot.slane %v2236_v17, 4  ;;  %v6040_v29 = vsel %vm12051_vm6, %v13657_v32, %v13622_v6 }
 0x1ea   : > { %v4473_v44 = vsel %vm4345_vm10, %v13651_v61, %v10394_v20  ;;  %v1645_v1 = vpop.permute.xlu0 %1644  ;;  %v11382_v49 = vld [vmem:[#allocation4 + $0x74] sm:$0xf0]  ;;  %v4523_v61 = vsel %vm13070_vm9, 0, %v4522_v25  ;;  %v791_v20 = vld [vmem:[#allocation2 + $0x6c] sm:$0xf]  ;;  %v3321_v3 = vor.u32 %v3320_v33, %v3317_v46  ;;  %v3324_v37 = vshll.u32 %v13717_v40, 16 }
 0x1eb   : > { %v4993_v50 = vsel %vm13272_vm11, %v4705_v60, %v4992_v45  ;;  %v4623_v18 = vpack.c.bf16 %v4473_v44, %v4473_v44  ;;  %1725 = vst.msk [vmem:[#allocation4 + $0x80] sm:$0xf] %vm15955_vm2, %v1645_v1  ;;  %v10266_v36 = vor.u32 %v11382_v49, %v10265_v28  ;;  %v792_v45 = vld [vmem:[#allocation2 + $0x70] sm:$0xf]  ;;  %v1201_v17 = vshrl.u32 %v876_v10, 16 }
 0x1ec   : > { %4994 = vst [vmem:[#allocation3 + $0x30] sm:$0xf] %v4993_v50  ;;  %v1966_v60 = vld [vmem:[#allocation2 + $0x8c] sm:$0x1]  ;;  %v4706_v15 = vrot.slane %v13698_v63, 4  ;;  %v1204_v1 = vshll.u32 %v876_v10, 16  ;;  %v2667_v6 = vsel %vm12025_vm3, %v13692_v56, %v2666_v9  ;;  %v3375_v32 = vsel %vm12051_vm6, %v3370_v43, %v13670_v23 }
 0x1ed   : > { %v4708_v27 = vshrl.u32 %v4623_v18, 16  ;;  %1918 = vst.msk [vmem:[#allocation4 + $0x80] sm:$0xf] %vm1901_vm5, %v13667_v19  ;;  %4203 = vmatmul.bf16.gmra.mxu0 %v10266_v36  ;;  %2406 = vrot.lane.b32.xlu1 %v2235_v39, %s11961_s11  ;;  %v4711_v19 = vshll.u32 %v4623_v18, 16  ;;  %v13746_v39 = vrot.slane %v1210_v58, 5  ;;  %v1216_v25 = vrot.slane %v1214_v59, 4 }
 0x1ee   : > { %4524 = vst [vmem:[#allocation3 + $0x3c] sm:$0x1] %v4523_v61  ;;  %v2239_v0 = vor.u32 %v2238_v14, %v13663_v12  ;;  %v2242_v5 = vshll.u32 %v1966_v60, 16  ;;  %v2664_v23 = vsel %vm12025_vm3, %v10185_v38, %v2663_v47  ;;  %v13760_v56 = vrot.slane %v3324_v37, 5  ;;  %v4577_v9 = vld [vmem:[#allocation3 + $0x44] sm:$0x1] }
 0x1ef   : > { %2947 = vrot.lane.b32.xlu2 %v2858_v55, %s11958_s8  ;;  %v4710_v24 = vrot.slane %v4708_v27, 7  ;;  %v2399_v41 = vpop.permute.xlu1 %2398  ;;  %824 = vst.msk [vmem:[#allocation4 + $0x98] sm:$0xf] %vm243_vm0, %v792_v45  ;;  %v6049_v50 = vrot.slane %v6047_v42, 5  ;;  %v3322_v18 = vrot.slane %v3321_v3, 4  ;;  %v4578_v12 = vsel %vm13132_vm4, 0, %v4577_v9 }
 0x1f0   : > { %3508 = vrot.lane.b32.xlu0 %v3385_v11, %s11962_s12  ;;  %2479 = vst.msk [vmem:[#allocation4 + $0x80] sm:$0xf] %vm2462_vm7, %v2399_v41  ;;  %v1203_v36 = vrot.slane %v1201_v17, 4  ;;  %v1206_v53 = vrot.slane %v1204_v1, 5  ;;  %v1217_v38 = vor.u32 %v1216_v25, %v13746_v39  ;;  %v2240_v42 = vrot.slane %v2239_v0, 4 }
 0x1f1   : > { %v2930_v28 = vpop.permute.xlu2 %2929  ;;  %v4713_v55 = vor.u32 %v4711_v19, %v4710_v24  ;;  %v4715_v44 = vrot.slane %v4710_v24, 4  ;;  %823 = vst.msk [vmem:[#allocation4 + $0x90] sm:$0xf] %vm243_vm0, %v791_v20  ;;  %v2244_v61 = vrot.slane %v2242_v5, 5  ;;  %v6050_v46 = vsel %vm12051_vm6, %v13659_v8, %v6049_v50  ;;  %v2854_v14 = vld [vmem:[#allocation2 + $0x94] sm:$0xf] }
 0x1f2   : > { %v1840_v49 = vpop.permute.xlu0 %1839  ;;  %6443 = vst [vmem:[#allocation5 + $0x10] sm:$0xf] %v6040_v29  ;;  %vm15956_vm8 = vcmask 781952   ;;  %v1207_v10 = vor.u32 %v1206_v53, %v1203_v36  ;;  %v3327_v59 = vsel %vm12051_vm6, %v3322_v18, %v13760_v56  ;;  %v1218_v43 = vrot.slane %v1217_v38, 4  ;;  %v13789_v17 = vld [vmem:[#allocation2 + $0xa0] sm:$0xf] }
 0x1f3   : > { %v4714_v63 = vsel %vm12168_vm14, %v4706_v15, %v4713_v55  ;;  %v4997_v31 = vsel %vm13070_vm9, %v4715_v44, %v4996_v22  ;;  %1919 = vst.msk [vmem:[#allocation4 + $0x88] sm:$0xf] %vm1901_vm5, %v1840_v49  ;;  %v5091_v47 = vld [vmem:[#allocation3 + $0x30] sm:$0xf]  ;;  %v3328_v22 = vshrl.u32 %v13717_v40, 16  ;;  %vm15957_vm10 = vmmov %vm15956_vm8  ;;  %v2245_v24 = vsel %vm12051_vm6, %v2240_v42, %v2244_v61 }
 0x1f4   : > { %4995 = vst [vmem:[#allocation3 + $0x34] sm:$0xf] %v4714_v63  ;;  %v5655_v27 = vld [vmem:[#allocation3 + $0x30] sm:$0xe]  ;;  %v1208_v37 = vrot.slane %v1207_v10, 4  ;;  %vm15958_vm2 = vcmask 1044352  }
 0x1f5   : > { %4998 = vst [vmem:[#allocation3 + $0x38] sm:$0x1] %v4997_v31  ;;  %2745 = vrot.lane.b32.xlu1 %v2667_v6, %s11960_s10  ;;  %v10423_v20 = vrot.slane %v5655_v27, 9  ;;  %v1974_v55 = vld [vmem:[#allocation2 + $0xac] sm:$0xf]  ;;  %v3330_v44 = vrot.slane %v3328_v22, 4  ;;  %v13803_v31 = vpop.f32.mrf.mxu1 }
 0x1f6   : > { %2480 = vst.msk [vmem:[#allocation4 + $0x88] sm:$0xf] %vm2462_vm7, %v13703_v7  ;;  %v1220_v7 = vshll.u32 %v878_v30, 16  ;;  %v3058_v49 = vld [vmem:[#allocation2 + $0x98] sm:$0x1]  ;;  %v1593_v5 = vrot.slane %v13789_v17, 5  ;;  %v1213_v61 = vsel %vm12051_vm6, %v1208_v37, %v13746_v39 }
 0x1f7   : > { %3506 = vrot.lane.b32.xlu2 %v3375_v32, %s11962_s12  ;;  %v2738_v62 = vpop.permute.xlu1 %2737  ;;  %4579 = vst [vmem:[#allocation3 + $0x44] sm:$0x1] %v4578_v12  ;;  %v13801_v25 = vld [vmem:[#allocation2 + $0xa4] sm:$0x1]  ;;  %v1973_v63 = vld [vmem:[#allocation2 + $0xa8] sm:$0xf]  ;;  %v3331_v12 = vor.u32 %v3330_v44, %v13760_v56 }
 0x1f8   : > { %2743 = vrot.lane.b32.xlu0 %v2664_v23, %s11960_s10  ;;  %2817 = vst.msk [vmem:[#allocation4 + $0x88] sm:$0xf] %vm15956_vm8, %v2738_v62  ;;  %v1222_v40 = vrot.slane %v1220_v7, 5  ;;  %v2304_v50 = vshll.u32 %v1974_v55, 16  ;;  %v2308_v18 = vshrl.u32 %v1974_v55, 16  ;;  %v3334_v36 = vshll.u32 %v3058_v49, 16  ;;  %vm15959_vm8 = vmmov %vm15958_vm2 }
 0x1f9   : > { %v3493_v33 = vpop.permute.xlu2 %3492  ;;  %5123 = vst [vmem:[#allocation5 + $0x120] sm:$0xf] %v5091_v47  ;;  %v1596_v47 = vrot.slane %v13801_v25, 5  ;;  %v2853_v30 = vld [vmem:[#allocation2 + $0x90] sm:$0xf]  ;;  %v2295_v38 = vshrl.u32 %v1973_v63, 16 }
 0x1fa   : > { %v2736_v11 = vpop.permute.xlu0 %2735  ;;  %v4189_v58 = vpop.f32.mrf.mxu0  ;;  %6444 = vst [vmem:[#allocation5 + $0x34] sm:$0xf] %v6050_v46  ;;  %v1223_v0 = vsel %vm12051_vm6, %v1218_v43, %v1222_v40  ;;  %v1595_v7 = vrot.slane %v1593_v5, 4  ;;  %v2298_v10 = vshll.u32 %v1973_v63, 16  ;;  %v1975_v27 = vld [vmem:[#allocation2 + $0xb0] sm:$0x1] }
 0x1fb   : > { %2816 = vst.msk [vmem:[#allocation4 + $0x80] sm:$0xf] %vm15957_vm10, %v2736_v11  ;;  %v4190_v8 = vadd.f32 %v13603_v13, %v4189_v58  ;;  %v5092_v45 = vld [vmem:[#allocation3 + $0x34] sm:$0xf]  ;;  %v2310_v11 = vrot.slane %v2308_v18, 4  ;;  %v3332_v58 = vrot.slane %v3331_v12, 4 }
 0x1fc   : > { %v5656_v19 = vld [vmem:[#allocation3 + $0x34] sm:$0xf]  ;;  %3010 = vst.msk [vmem:[#allocation4 + $0x80] sm:$0xf] %vm2993_vm12, %v2930_v28  ;;  %v5657_v41 = vld [vmem:[#allocation3 + $0x38] sm:$0x1]  ;;  %v1597_v18 = vsel %vm12025_vm3, %v1595_v7, %v1596_v47 }
 0x1fd   : > { %v5769_v29 = vrot.slane %v5656_v19, 5  ;;  %v13786_v3 = vadd.f32 %v13512_v2, %v4190_v8  ;;  %3498 = vrot.lane.b32.xlu1 %v3327_v59, %s11962_s12  ;;  %5124 = vst [vmem:[#allocation5 + $0x144] sm:$0xf] %v5092_v45  ;;  %v5772_v28 = vrot.slane %v5657_v41, 5  ;;  %v3336_v59 = vrot.slane %v3334_v36, 5 }
 0x1fe   : > { %v871_v8 = vld [vmem:[#allocation2 + $0x88] sm:$0xf]  ;;  %vm15960_vm10 = vcmask 257152   ;;  %v2297_v19 = vrot.slane %v2295_v38, 4  ;;  %v2300_v40 = vrot.slane %v2298_v10, 5 }
 0x1ff   : > { %2408 = vrot.lane.b32.xlu2 %v2245_v24, %s11961_s11  ;;  %v5770_v60 = vsel %vm12025_vm3, %v10423_v20, %v5769_v29  ;;  %v5771_v15 = vrot.slane %v5769_v29, 4  ;;  %v4386_v1 = vmul.f32 1.442695, %v13786_v3  ;;  %v3491_v2 = vpop.permute.xlu1 %3490  ;;  %v1767_v29 = vld [vmem:[#allocation2 + $0xa8] sm:$0xf]  ;;  %v1162_v55 = vshll.u32 %v871_v8, 16 }
 0x200   : > { %5891 = vst [vmem:[#allocation5 + $0x128] sm:$0xf] %v5770_v60  ;;  %2939 = vrot.lane.b32.xlu0 %v2854_v14, %s11958_s8  ;;  %v10613_v62 = vld [vmem:[#allocation5 + $0x120] sm:$0xf]  ;;  %v1440_v44 = vld [vmem:[#allocation2 + $0x9c] sm:$0xe]  ;;  %v3337_v25 = vsel %vm12051_vm6, %v3332_v58, %v3336_v59  ;;  %v2301_v12 = vor.u32 %v2300_v40, %v2297_v19 }
 0x201   : > { %3571 = vst.msk [vmem:[#allocation4 + $0x80] sm:$0xf] %vm15958_vm2, %v3491_v2  ;;  %v13797_v6 = vpop.permute.xlu2 %1648  ;;  %v5773_v32 = vsel %vm12025_vm3, %v5771_v15, %v5772_v28  ;;  %11783 = vpow2.f32 %v4386_v1  ;;  %vm4346_vm2 = vcmp.gt.f32.partialorder %v13786_v3, 0.0  ;;  %v2314_v28 = vshll.u32 %v1975_v27, 16  ;;  %v5921_v1 = vld [vmem:[#allocation3 + $0x30] sm:$0xf]  ;;  %v13833_v2 = vpop.f32.mrf.mxu1 }
 0x202   : > { %5892 = vst [vmem:[#allocation5 + $0x14c] sm:$0xf] %v5773_v32  ;;  %v2932_v23 = vpop.permute.xlu0 %2931  ;;  %v4191_v9 = vpop.f32.mrf.mxu0  ;;  %v4525_v63 = vld [vmem:[#allocation3 + $0x48] sm:$0x1]  ;;  %v4999_v36 = vld [vmem:[#allocation3 + $0x3c] sm:$0xf] }
 0x203   : > { %3011 = vst.msk [vmem:[#allocation4 + $0x88] sm:$0xf] %vm2993_vm12, %v2932_v23  ;;  %v4192_v53 = vadd.f32 %v13603_v13, %v4191_v9  ;;  %v1166_v23 = vshrl.u32 %v871_v8, 16  ;;  %v5922_v9 = vld [vmem:[#allocation3 + $0x34] sm:$0xf]  ;;  %v13852_v7 = vrot.slane %v1162_v55, 5 }
 0x204   : > { %3572 = vst.msk [vmem:[#allocation4 + $0x88] sm:$0xf] %vm15959_vm8, %v3493_v33  ;;  %v11448_v42 = vld [vmem:[#allocation5 + $0x140] sm:$0xf0]  ;;  %v13823_v33 = vrot.slane %v2304_v50, 5  ;;  %vm15961_vm8 = vmmov %vm15960_vm10  ;;  %v2302_v58 = vrot.slane %v2301_v12, 4 }
 0x205   : > { %v13817_v46 = vadd.f32 %v13553_v35, %v4192_v53  ;;  %v10614_v56 = vor.u32 %v11448_v42, %v10613_v62  ;;  %1326 = vrot.lane.b32.xlu1 %v1223_v0, %s11957_s28  ;;  %v4526_v0 = vsel %vm13070_vm9, 0, %v4525_v63  ;;  %5953 = vst [vmem:[#allocation5 + $0xe4] sm:$0xf] %v5921_v1  ;;  %v1168_v27 = vrot.slane %v1166_v23, 4  ;;  %v872_v59 = vld [vmem:[#allocation2 + $0x8c] sm:$0x1] }
 0x206   : > { %v2311_v15 = vor.u32 %v2310_v11, %v13823_v33  ;;  %4527 = vst [vmem:[#allocation3 + $0x48] sm:$0x1] %v4526_v0  ;;  %v13869_v40 = vld [vmem:[#allocation2 + $0x88] sm:$0xf]  ;;  %v797_v55 = vld [vmem:[#allocation2 + $0x90] sm:$0xf] }
 0x207   : > { %2937 = vrot.lane.b32.xlu2 %v2853_v30, %s11958_s8  ;;  %v11784_v22 = vpop.eup %11783  ;;  %v4388_v39 = vmul.f32 1.442695, %v13817_v46  ;;  %9084 = vmatmul.bf16.gmra.mxu2 %v10614_v56  ;;  %v1311_v35 = vpop.permute.xlu1 %1310  ;;  %v10621_v43 = vld [vmem:[#allocation5 + $0x128] sm:$0xf]  ;;  %v2316_v30 = vrot.slane %v2314_v28, 5 }
 0x208   : > { %v10395_v14 = vadd.f32 -1.0, %v11784_v22  ;;  %1324 = vrot.lane.b32.xlu0 %v1213_v61, %s11957_s28  ;;  %1388 = vst.msk [vmem:[#allocation4 + $0x98] sm:$0xf] %vm15960_vm10, %v1311_v35  ;;  %v10273_v20 = vld [vmem:[#allocation4 + $0x80] sm:$0xf]  ;;  %vm15962_vm10 = vcmask 388352  }
 0x209   : > { %v11449_v45 = vld [vmem:[#allocation5 + $0x148] sm:$0xf0]  ;;  %v13828_v24 = vpop.permute.xlu2 %1843  ;;  %11785 = vpow2.f32 %v4388_v39  ;;  %v2312_v53 = vrot.slane %v2311_v15, 4  ;;  %v870_v56 = vld [vmem:[#allocation2 + $0x84] sm:$0xf] }
 0x20a   : > { %v10622_v41 = vor.u32 %v11449_v45, %v10621_v43  ;;  %v4474_v37 = vsel %vm4346_vm2, %v13786_v3, %v10395_v14  ;;  %v1309_v60 = vpop.permute.xlu0 %1308  ;;  %5954 = vst [vmem:[#allocation5 + $0x108] sm:$0xf] %v5922_v9  ;;  %vm4347_vm2 = vcmp.gt.f32.partialorder %v13817_v46, 0.0  ;;  %v2534_v43 = vld [vmem:[#allocation2 + $0xa8] sm:$0xe]  ;;  %v1153_v8 = vshrl.u32 %v870_v56, 16 }
 0x20b   : > { %v4624_v49 = vpack.c.bf16 %v4474_v37, %v4474_v37  ;;  %1387 = vst.msk [vmem:[#allocation4 + $0x90] sm:$0xf] %vm15961_vm8, %v1309_v60  ;;  %v11384_v32 = vld [vmem:[#allocation4 + $0x84] sm:$0xf0]  ;;  %v2317_v35 = vsel %vm12051_vm6, %v2312_v53, %v2316_v30  ;;  %v1156_v14 = vshll.u32 %v870_v56, 16  ;;  %vm15963_vm8 = vmmov %vm15962_vm10  ;;  %v2307_v60 = vsel %vm12051_vm6, %v2302_v58, %v13823_v33 }
 0x20c   : > { %9262 = vmatmul.bf16.gmra.mxu1 %v10622_v41  ;;  %1727 = vst.msk [vmem:[#allocation4 + $0x90] sm:$0xf] %vm15962_vm10, %v13797_v6  ;;  %v10274_v3 = vor.u32 %v11384_v32, %v10273_v20  ;;  %v10172_v6 = vrot.slane %v1440_v44, 9  ;;  %v13862_v41 = vld [vmem:[#allocation2 + $0xac] sm:$0xf]  ;;  %v1169_v20 = vor.u32 %v1168_v27, %v13852_v7  ;;  %v10188_v17 = vrot.slane %v2534_v43, 9 }
 0x20d   : > { %v4717_v50 = vshrl.u32 %v4624_v49, 16  ;;  %1857 = vrot.lane.b32.xlu1 %v1767_v29, %s11959_s9  ;;  %v4720_v42 = vshll.u32 %v4624_v49, 16  ;;  %v1172_v29 = vshll.u32 %v872_v59, 16  ;;  %v4580_v15 = vld [vmem:[#allocation3 + $0x50] sm:$0x1]  ;;  %v1155_v44 = vrot.slane %v1153_v8, 4 }
 0x20e   : > { %4208 = vmatmul.bf16.gmra.mxu0 %v10274_v3  ;;  %v4581_v28 = vsel %vm13132_vm4, 0, %v4580_v15  ;;  %v1158_v1 = vrot.slane %v1156_v14, 5  ;;  %v5003_v63 = vld [vmem:[#allocation3 + $0x44] sm:$0x1]  ;;  %v1170_v33 = vrot.slane %v1169_v20, 4  ;;  %vm15964_vm10 = vcmask 781952  }
 0x20f   : > { %3500 = vrot.lane.b32.xlu2 %v3337_v25, %s11962_s12  ;;  %v11786_v38 = vpop.eup %11785  ;;  %v13846_v62 = vrot.slane %v4717_v50, 7  ;;  %v1842_v61 = vpop.permute.xlu1 %1841  ;;  %4582 = vst [vmem:[#allocation3 + $0x50] sm:$0x1] %v4581_v28  ;;  %v798_v25 = vld [vmem:[#allocation2 + $0x94] sm:$0xf]  ;;  %v1174_v3 = vrot.slane %v1172_v29, 5 }
 0x210   : > { %v10396_v10 = vadd.f32 -1.0, %v11786_v38  ;;  %1666 = vrot.lane.b32.xlu0 %v1597_v18, %s11956_s27  ;;  %1920 = vst.msk [vmem:[#allocation4 + $0x90] sm:$0xf] %vm1901_vm5, %v1842_v61  ;;  %v1579_v18 = vrot.slane %v13869_v40, 5  ;;  %v1436_v53 = vld [vmem:[#allocation2 + $0x8c] sm:$0x1] }
 0x211   : > { %v13850_v47 = vpop.permute.xlu2 %2739  ;;  %v4722_v11 = vor.u32 %v4720_v42, %v13846_v62  ;;  %v4723_v23 = vrot.slane %v13846_v62, 4  ;;  %829 = vst.msk [vmem:[#allocation4 + $0xc0] sm:$0xf] %vm243_vm0, %v797_v55  ;;  %v1768_v62 = vld [vmem:[#allocation2 + $0xac] sm:$0xf]  ;;  %v1159_v42 = vor.u32 %v1158_v1, %v1155_v44  ;;  %v1175_v27 = vsel %vm12051_vm6, %v1170_v33, %v1174_v3 }
 0x212   : > { %v4475_v22 = vsel %vm4347_vm2, %v13817_v46, %v10396_v10  ;;  %v1651_v39 = vpop.permute.xlu0 %1650  ;;  %v1594_v46 = vsel %vm12025_vm3, %v10172_v6, %v1593_v5  ;;  %v2684_v5 = vrot.slane %v13862_v41, 5  ;;  %830 = vst.msk [vmem:[#allocation4 + $0xc8] sm:$0xf] %vm243_vm0, %v798_v25  ;;  %v3066_v61 = vld [vmem:[#allocation2 + $0xb8] sm:$0xf]  ;;  %v1582_v58 = vrot.slane %v1436_v53, 5 }
 0x213   : > { %v5000_v45 = vsel %vm13272_vm11, %v4722_v11, %v4999_v36  ;;  %v4625_v19 = vpack.c.bf16 %v4475_v22, %v4475_v22  ;;  %1728 = vst.msk [vmem:[#allocation4 + $0x98] sm:$0xf] %vm15963_vm8, %v1651_v39  ;;  %v1581_v11 = vrot.slane %v1579_v18, 4  ;;  %v1434_v59 = vld [vmem:[#allocation2 + $0x84] sm:$0xe]  ;;  %v3396_v39 = vshll.u32 %v3066_v61, 16  ;;  %vm15966_vm8 = vmmov %vm15964_vm10 }
 0x214   : > { %5001 = vst [vmem:[#allocation3 + $0x3c] sm:$0xf] %v5000_v45  ;;  %v2685_v36 = vsel %vm12025_vm3, %v10188_v17, %v2684_v5  ;;  %v3065_v43 = vld [vmem:[#allocation2 + $0xb4] sm:$0xf]  ;;  %v1160_v14 = vrot.slane %v1159_v42, 4  ;;  %vm15965_vm2 = vcmask 257152  }
 0x215   : > { %v4725_v37 = vshrl.u32 %v4625_v19, 16  ;;  %1921 = vst.msk [vmem:[#allocation4 + $0x98] sm:$0xf] %vm1901_vm5, %v13828_v24  ;;  %2420 = vrot.lane.b32.xlu1 %v2317_v35, %s11961_s11  ;;  %v4728_v24 = vshll.u32 %v4625_v19, 16  ;;  %v3400_v35 = vshrl.u32 %v3066_v61, 16  ;;  %v3387_v29 = vshrl.u32 %v3065_v43, 16 }
 0x216   : > { %v13906_v45 = vld [vmem:[#allocation2 + $0xbc] sm:$0x1]  ;;  %v3390_v40 = vshll.u32 %v3065_v43, 16  ;;  %v2536_v28 = vld [vmem:[#allocation2 + $0xb0] sm:$0x1]  ;;  %v1165_v1 = vsel %vm12051_vm6, %v1160_v14, %v13852_v7 }
 0x217   : > { %1664 = vrot.lane.b32.xlu2 %v1594_v46, %s11956_s27  ;;  %v4727_v49 = vrot.slane %v4725_v37, 7  ;;  %v2405_v32 = vpop.permute.xlu1 %2404  ;;  %v3402_v17 = vrot.slane %v3400_v35, 4  ;;  %v3406_v15 = vshll.u32 %v13906_v45, 16  ;;  %v3389_v3 = vrot.slane %v3387_v29, 4  ;;  %v793_v53 = vld [vmem:[#allocation2 + $0x78] sm:$0xf] }
 0x218   : > { %2418 = vrot.lane.b32.xlu0 %v2307_v60, %s11961_s11  ;;  %2482 = vst.msk [vmem:[#allocation4 + $0x98] sm:$0xf] %vm2462_vm7, %v2405_v32  ;;  %v13914_v60 = vrot.slane %v3396_v39, 5  ;;  %v2687_v7 = vrot.slane %v2536_v28, 5 }
 0x219   : > { %v2936_v0 = vpop.permute.xlu2 %2935  ;;  %v4730_v9 = vor.u32 %v4728_v24, %v4727_v49  ;;  %v4732_v50 = vrot.slane %v4727_v49, 4  ;;  %825 = vst.msk [vmem:[#allocation4 + $0xa0] sm:$0xf] %vm243_vm0, %v793_v53  ;;  %v3408_v39 = vrot.slane %v3406_v15, 5 }
 0x21a   : > { %v2403_v12 = vpop.permute.xlu0 %2402 }
 0x21b   : > { %v4731_v30 = vsel %vm12168_vm14, %v4723_v23, %v4730_v9  ;;  %v5004_v6 = vsel %vm13070_vm9, %v4732_v50, %v5003_v63  ;;  %2481 = vst.msk [vmem:[#allocation4 + $0x90] sm:$0xf] %vm2462_vm7, %v2403_v12  ;;  %v4194_v38 = vpop.f32.mrf.mxu0  ;;  %v5093_v10 = vld [vmem:[#allocation3 + $0x3c] sm:$0xf]  ;;  %v3392_v23 = vrot.slane %v3390_v40, 5  ;;  %v2686_v9 = vrot.slane %v2684_v5, 4 }
 0x21c   : > { %5002 = vst [vmem:[#allocation3 + $0x40] sm:$0xf] %v4731_v30  ;;  %v4195_v56 = vadd.f32 %v13603_v13, %v4194_v38  ;;  %v5658_v20 = vld [vmem:[#allocation3 + $0x3c] sm:$0xe]  ;;  %v3403_v38 = vor.u32 %v3402_v17, %v13914_v60  ;;  %v1969_v40 = vld [vmem:[#allocation2 + $0x98] sm:$0x1] }
 0x21d   : > { %5005 = vst [vmem:[#allocation3 + $0x44] sm:$0x1] %v5004_v6  ;;  %2755 = vrot.lane.b32.xlu1 %v2685_v36, %s11960_s10  ;;  %v10424_v63 = vrot.slane %v5658_v20, 9  ;;  %v1968_v36 = vld [vmem:[#allocation2 + $0x94] sm:$0xf]  ;;  %v3393_v61 = vor.u32 %v3392_v23, %v3389_v3  ;;  %v2688_v35 = vsel %vm12025_vm3, %v2686_v9, %v2687_v7 }
 0x21e   : > { %2818 = vst.msk [vmem:[#allocation4 + $0x90] sm:$0xf] %vm15964_vm10, %v13850_v47  ;;  %v13903_v22 = vadd.f32 %v13648_v26, %v4195_v56  ;;  %v10170_v47 = vrot.slane %v1434_v59, 9  ;;  %v1583_v26 = vsel %vm12025_vm3, %v1581_v11, %v1582_v58  ;;  %vm15967_vm10 = vcmask 1044352   ;;  %v13944_v56 = vld [vmem:[#allocation2 + $0x90] sm:$0xe] }
 0x21f   : > { %1859 = vrot.lane.b32.xlu2 %v1768_v62, %s11959_s9  ;;  %v2934_v8 = vpop.permute.xlu1 %2933  ;;  %5125 = vst [vmem:[#allocation5 + $0x168] sm:$0xf] %v5093_v10  ;;  %v13942_v62 = vpop.f32.mrf.mxu1  ;;  %v2256_v11 = vshll.u32 %v1968_v36, 16  ;;  %v2860_v59 = vld [vmem:[#allocation2 + $0xb8] sm:$0xf]  ;;  %v3404_v45 = vrot.slane %v3403_v38, 4 }
 0x220   : > { %v4390_v19 = vmul.f32 1.442695, %v13903_v22  ;;  %1318 = vrot.lane.b32.xlu0 %v1175_v27, %s11957_s28  ;;  %3012 = vst.msk [vmem:[#allocation4 + $0x90] sm:$0xf] %vm2993_vm12, %v2934_v8  ;;  %v1580_v32 = vsel %vm12025_vm3, %v10170_v47, %v1579_v18  ;;  %v13947_v27 = vld [vmem:[#allocation2 + $0x94] sm:$0xf] }
 0x221   : > { %v1321_v46 = vpop.permute.xlu2 %1320  ;;  %v794_v20 = vld [vmem:[#allocation2 + $0x7c] sm:$0xf]  ;;  %v5006_v17 = vld [vmem:[#allocation3 + $0x48] sm:$0xf]  ;;  %v2859_v23 = vld [vmem:[#allocation2 + $0xb4] sm:$0xf] }
 0x222   : > { %1393 = vst.msk [vmem:[#allocation4 + $0xc0] sm:$0xf] %vm15965_vm2, %v1321_v46  ;;  %11787 = vpow2.f32 %v4390_v19  ;;  %v2742_v37 = vpop.permute.xlu0 %2741  ;;  %vm4348_vm2 = vcmp.gt.f32.partialorder %v13903_v22, 0.0  ;;  %v10186_v19 = vrot.slane %v13944_v56, 9  ;;  %v13956_v46 = vrot.slane %v3393_v61, 4 }
 0x223   : > { %2819 = vst.msk [vmem:[#allocation4 + $0x98] sm:$0xf] %vm15966_vm8, %v2742_v37  ;;  %v4196_v55 = vpop.f32.mrf.mxu0  ;;  %v5094_v44 = vld [vmem:[#allocation3 + $0x40] sm:$0xf]  ;;  %vm15968_vm8 = vmmov %vm15967_vm10  ;;  %v13960_v37 = vrot.slane %v2256_v11, 5 }
 0x224   : > { %v5659_v49 = vld [vmem:[#allocation3 + $0x40] sm:$0xf]  ;;  %3013 = vst.msk [vmem:[#allocation4 + $0x98] sm:$0xf] %vm2993_vm12, %v2936_v0  ;;  %v4197_v24 = vadd.f32 %v13603_v13, %v4196_v55  ;;  %v5660_v25 = vld [vmem:[#allocation3 + $0x44] sm:$0x1] }
 0x225   : > { %v5776_v33 = vrot.slane %v5659_v49, 5  ;;  %1658 = vrot.lane.b32.xlu1 %v1583_v26, %s11956_s27  ;;  %5126 = vst [vmem:[#allocation5 + $0x18c] sm:$0xf] %v5094_v44  ;;  %v5779_v18 = vrot.slane %v5660_v25, 5  ;;  %v2260_v26 = vshrl.u32 %v1968_v36, 16 }
 0x226   : > { %v13929_v50 = vadd.f32 %v13696_v51, %v4197_v24  ;;  %v1763_v51 = vld [vmem:[#allocation2 + $0x90] sm:$0xf]  ;;  %v10649_v8 = vld [vmem:[#allocation5 + $0x168] sm:$0xf]  ;;  %826 = vst.msk [vmem:[#allocation4 + $0xa8] sm:$0xf] %vm243_vm0, %v794_v20 }
 0x227   : > { %1316 = vrot.lane.b32.xlu2 %v1165_v1, %s11957_s28  ;;  %v5777_v13 = vsel %vm12025_vm3, %v10424_v63, %v5776_v33  ;;  %v5778_v0 = vrot.slane %v5776_v33, 4  ;;  %v3497_v12 = vpop.permute.xlu1 %3496  ;;  %v879_v44 = vld [vmem:[#allocation2 + $0xa8] sm:$0xf]  ;;  %v2262_v3 = vrot.slane %v2260_v26, 4  ;;  %v13970_v9 = vld [vmem:[#allocation3 + $0x18] sm:$0xf]  ;;  %v13975_v53 = vpop.f32.mrf.mxu1 }
 0x228   : > { %5893 = vst [vmem:[#allocation5 + $0x170] sm:$0xf] %v5777_v13  ;;  %v11788_v30 = vpop.eup %11787  ;;  %v4392_v6 = vmul.f32 1.442695, %v13929_v50  ;;  %1656 = vrot.lane.b32.xlu0 %v1580_v32, %s11956_s27  ;;  %v1967_v36 = vld [vmem:[#allocation2 + $0x90] sm:$0xf] }
 0x229   : > { %3574 = vst.msk [vmem:[#allocation4 + $0x98] sm:$0xf] %vm15967_vm10, %v3497_v12  ;;  %v13937_v41 = vpop.permute.xlu2 %1662  ;;  %v5780_v5 = vsel %vm12025_vm3, %v5778_v0, %v5779_v18  ;;  %v10397_v42 = vadd.f32 -1.0, %v11788_v30  ;;  %vm15969_vm10 = vcmask 388352   ;;  %v3409_v18 = vsel %vm12051_vm6, %v3404_v45, %v3408_v39  ;;  %v3060_v12 = vld [vmem:[#allocation2 + $0xa0] sm:$0xf] }
 0x22a   : > { %5894 = vst [vmem:[#allocation5 + $0x194] sm:$0xf] %v5780_v5  ;;  %11789 = vpow2.f32 %v4392_v6  ;;  %v3495_v10 = vpop.permute.xlu0 %3494  ;;  %v4528_v5 = vld [vmem:[#allocation3 + $0x54] sm:$0x1]  ;;  %v1225_v38 = vshrl.u32 %v879_v44, 16  ;;  %v1228_v11 = vshll.u32 %v879_v44, 16 }
 0x22b   : > { %v4476_v58 = vsel %vm4348_vm2, %v13903_v22, %v10397_v42  ;;  %3573 = vst.msk [vmem:[#allocation4 + $0x90] sm:$0xf] %vm15968_vm8, %v3495_v10  ;;  %v2670_v22 = vrot.slane %v13947_v27, 5  ;;  %vm4349_vm2 = vcmp.gt.f32.partialorder %v13929_v50, 0.0  ;;  %vm15970_vm8 = vcmask 257152  }
 0x22c   : > { %v4626_v43 = vpack.c.bf16 %v4476_v58, %v4476_v58  ;;  %v11457_v14 = vld [vmem:[#allocation5 + $0x188] sm:$0xf0]  ;;  %v4529_v10 = vsel %vm13070_vm9, 0, %v4528_v5  ;;  %v2263_v58 = vor.u32 %v2262_v3, %v13960_v37  ;;  %v2250_v39 = vshll.u32 %v1967_v36, 16 }
 0x22d   : > { %v10650_v47 = vor.u32 %v11457_v14, %v10649_v8  ;;  %1849 = vrot.lane.b32.xlu1 %v1763_v51, %s11959_s9  ;;  %v2266_v51 = vshll.u32 %v1969_v40, 16  ;;  %4530 = vst [vmem:[#allocation3 + $0x54] sm:$0x1] %v4529_v10  ;;  %v6052_v8 = vshrl.u32 %v13970_v9, 16  ;;  %v5010_v14 = vld [vmem:[#allocation3 + $0x50] sm:$0x1]  ;;  %v2671_v44 = vsel %vm12025_vm3, %v10186_v19, %v2670_v22 }
 0x22e   : > { %v4734_v29 = vshrl.u32 %v4626_v43, 16  ;;  %v4737_v24 = vshll.u32 %v4626_v43, 16  ;;  %v3352_v43 = vshrl.u32 %v3060_v12, 16  ;;  %v2252_v20 = vrot.slane %v2250_v39, 5  ;;  %v14037_v39 = vld [vmem:[#allocation2 + $0xac] sm:$0xf] }
 0x22f   : > { %2757 = vrot.lane.b32.xlu2 %v2688_v35, %s11960_s10  ;;  %9089 = vmatmul.bf16.gmra.mxu2 %v10650_v47  ;;  %v1661_v15 = vpop.permute.xlu1 %1660  ;;  %v10657_v28 = vld [vmem:[#allocation5 + $0x170] sm:$0xf]  ;;  %v2268_v47 = vrot.slane %v2266_v51, 5 }
 0x230   : > { %v11386_v55 = vld [vmem:[#allocation4 + $0x94] sm:$0xf0]  ;;  %v11790_v1 = vpop.eup %11789  ;;  %v13963_v49 = vrot.slane %v4734_v29, 7  ;;  %2951 = vrot.lane.b32.xlu0 %v2860_v59, %s11958_s8  ;;  %1733 = vst.msk [vmem:[#allocation4 + $0xc0] sm:$0xf] %vm15969_vm10, %v1661_v15  ;;  %v2247_v59 = vshrl.u32 %v1967_v36, 16 }
 0x231   : > { %v11458_v32 = vld [vmem:[#allocation5 + $0x190] sm:$0xf0]  ;;  %v13967_v25 = vpop.permute.xlu2 %2414  ;;  %v10398_v63 = vadd.f32 -1.0, %v11790_v1  ;;  %v5923_v29 = vld [vmem:[#allocation3 + $0x3c] sm:$0xf]  ;;  %v1227_v15 = vrot.slane %v1225_v38, 4 }
 0x232   : > { %v10658_v33 = vor.u32 %v11458_v32, %v10657_v28  ;;  %v4739_v7 = vor.u32 %v4737_v24, %v13963_v49  ;;  %v1323_v13 = vpop.permute.xlu0 %1322  ;;  %v10281_v0 = vld [vmem:[#allocation4 + $0x90] sm:$0xf]  ;;  %v2249_v26 = vrot.slane %v2247_v59, 4  ;;  %v1230_v28 = vrot.slane %v1228_v11, 5  ;;  %v14004_v24 = vld [vmem:[#allocation2 + $0xac] sm:$0xf] }
 0x233   : > { %v4477_v30 = vsel %vm4349_vm2, %v13929_v50, %v10398_v63  ;;  %1394 = vst.msk [vmem:[#allocation4 + $0xc8] sm:$0xf] %vm15970_vm8, %v1323_v13  ;;  %v10282_v6 = vor.u32 %v11386_v55, %v10281_v0  ;;  %v3399_v50 = vsel %vm12051_vm6, %v13956_v46, %v13914_v60  ;;  %v6055_v60 = vshll.u32 %v13970_v9, 16  ;;  %vm15971_vm2 = vmmov %vm15970_vm8  ;;  %v3061_v9 = vld [vmem:[#allocation2 + $0xa4] sm:$0x1] }
 0x234   : > { %9267 = vmatmul.bf16.gmra.mxu1 %v10658_v33  ;;  %v5007_v42 = vsel %vm13272_vm11, %v4739_v7, %v5006_v17  ;;  %v4627_v61 = vpack.c.bf16 %v4477_v30, %v4477_v30  ;;  %1734 = vst.msk [vmem:[#allocation4 + $0xc8] sm:$0xf] %vm15969_vm10, %v13937_v41  ;;  %v3348_v41 = vshll.u32 %v3060_v12, 16  ;;  %v4740_v55 = vrot.slane %v13963_v49, 4  ;;  %v1764_v49 = vld [vmem:[#allocation2 + $0x94] sm:$0xf]  ;;  %vm15972_vm8 = vmmov %vm15971_vm2 }
 0x235   : > { %5008 = vst [vmem:[#allocation3 + $0x48] sm:$0xf] %v5007_v42  ;;  %4213 = vmatmul.bf16.gmra.mxu0 %v10282_v6  ;;  %3512 = vrot.lane.b32.xlu1 %v3409_v18, %s11962_s12  ;;  %v2264_v1 = vrot.slane %v2263_v58, 4  ;;  %v2253_v56 = vor.u32 %v2252_v20, %v2249_v26  ;;  %v1231_v13 = vor.u32 %v1230_v28, %v1227_v15  ;;  %v1234_v0 = vshll.u32 %v14004_v24, 16  ;;  %v14016_v18 = vld [vmem:[#allocation3 + $0x1c] sm:$0xf] }
 0x236   : > { %v4742_v35 = vshrl.u32 %v4627_v61, 16  ;;  %v4745_v40 = vshll.u32 %v4627_v61, 16  ;;  %v14006_v3 = vrot.slane %v3348_v41, 5  ;;  %5955 = vst [vmem:[#allocation5 + $0x12c] sm:$0xf] %v5923_v29  ;;  %v14021_v30 = vrot.slane %v6052_v8, 4 }
 0x237   : > { %2949 = vrot.lane.b32.xlu2 %v2859_v23, %s11958_s8  ;;  %v1856_v45 = vpop.permute.xlu1 %1855  ;;  %v3354_v23 = vrot.slane %v3352_v43, 4  ;;  %v2269_v12 = vsel %vm12051_vm6, %v2264_v1, %v2268_v47  ;;  %v4583_v36 = vld [vmem:[#allocation3 + $0x5c] sm:$0x1]  ;;  %v3358_v51 = vshll.u32 %v3061_v9, 16  ;;  %v14027_v5 = vrot.slane %v6055_v60, 5 }
 0x238   : > { %v4744_v46 = vrot.slane %v4742_v35, 7  ;;  %3510 = vrot.lane.b32.xlu0 %v3399_v50, %s11962_s12  ;;  %1927 = vst.msk [vmem:[#allocation4 + $0xc8] sm:$0xf] %vm1901_vm5, %v1856_v45  ;;  %v2254_v61 = vrot.slane %v2253_v56, 4  ;;  %v6061_v10 = vshll.u32 %v14016_v18, 16  ;;  %v14032_v58 = vrot.slane %v1231_v13, 4 }
 0x239   : > { %v1315_v17 = vpop.permute.xlu2 %1314  ;;  %v3355_v6 = vor.u32 %v3354_v23, %v14006_v3  ;;  %v2856_v11 = vld [vmem:[#allocation2 + $0xa0] sm:$0xf]  ;;  %v14034_v59 = vrot.slane %v1234_v0, 5  ;;  %v3059_v35 = vld [vmem:[#allocation2 + $0x9c] sm:$0xf]  ;;  %v14041_v8 = vrot.slane %v3358_v51, 5 }
 0x23a   : > { %1390 = vst.msk [vmem:[#allocation4 + $0xa8] sm:$0xf] %vm15971_vm2, %v1315_v17  ;;  %v4747_v32 = vor.u32 %v4745_v40, %v4744_v46  ;;  %v4749_v63 = vrot.slane %v4744_v46, 4  ;;  %v1854_v33 = vpop.permute.xlu0 %1853  ;;  %v2855_v47 = vld [vmem:[#allocation2 + $0x9c] sm:$0xf]  ;;  %v2259_v26 = vsel %vm12051_vm6, %v2254_v61, %v13960_v37  ;;  %v3339_v60 = vshrl.u32 %v3059_v35, 16 }
 0x23b   : > { %1926 = vst.msk [vmem:[#allocation4 + $0xc0] sm:$0xf] %vm1901_vm5, %v1854_v33  ;;  %v14039_v43 = vrot.slane %v3355_v6, 4  ;;  %v14047_v20 = vld [vmem:[#allocation2 + $0xb0] sm:$0x1]  ;;  %v3342_v46 = vshll.u32 %v3059_v35, 16 }
 0x23c   : > { %v4748_v19 = vsel %vm12168_vm14, %v4740_v55, %v4747_v32  ;;  %v5011_v7 = vsel %vm13070_vm9, %v4749_v63, %v5010_v14  ;;  %2487 = vst.msk [vmem:[#allocation4 + $0xc0] sm:$0xf] %vm2462_vm7, %v13967_v25  ;;  %v4584_v25 = vsel %vm13132_vm4, 0, %v4583_v36  ;;  %v5095_v42 = vld [vmem:[#allocation3 + $0x48] sm:$0xf]  ;;  %v1600_v55 = vrot.slane %v14037_v39, 5 }
 0x23d   : > { %5009 = vst [vmem:[#allocation3 + $0x4c] sm:$0xf] %v4748_v19  ;;  %2747 = vrot.lane.b32.xlu1 %v2671_v44, %s11960_s10  ;;  %v5661_v14 = vld [vmem:[#allocation3 + $0x48] sm:$0xe]  ;;  %v2530_v29 = vld [vmem:[#allocation2 + $0x98] sm:$0x1] }
 0x23e   : > { %5012 = vst [vmem:[#allocation3 + $0x50] sm:$0x1] %v5011_v7  ;;  %v14052_v40 = vld [vmem:[%s15897_s2] ss:$0 sm:$0xff]  ;;  %v2672_v37 = vrot.slane %v2670_v22, 4  ;;  %v10425_v1 = vrot.slane %v5661_v14, 9 }
 0x23f   : > { %1851 = vrot.lane.b32.xlu2 %v1764_v49, %s11959_s9  ;;  %v1313_v38 = vpop.permute.xlu1 %1312  ;;  %4585 = vst [vmem:[#allocation3 + $0x5c] sm:$0x1] %v4584_v25  ;;  %v2673_v23 = vrot.slane %v2530_v29, 5  ;;  %v1976_v49 = vld [vmem:[#allocation2 + $0xb4] sm:$0xf]  ;;  %v3341_v7 = vrot.slane %v3339_v60, 4  ;;  %v3361_v60 = vsel %vm12051_vm6, %v14039_v43, %v14041_v8 }
 0x240   : > { %2412 = vrot.lane.b32.xlu0 %v2269_v12, %s11961_s11  ;;  %1389 = vst.msk [vmem:[#allocation4 + $0xa0] sm:$0xf] %vm15972_vm8, %v1313_v38  ;;  %v14064_v9 = vld [vmem:[%s12113_s7 + $0x78] sm:$0xf]  ;;  %v14068_v19 = vld [vmem:[#allocation2 + $0xa8] sm:$0xe] }
 0x241   : > { %v1653_v50 = vpop.permute.xlu2 %1652  ;;  %5127 = vst [vmem:[#allocation5 + $0x1b0] sm:$0xf] %v5095_v42  ;;  %v3344_v13 = vrot.slane %v3342_v46, 5  ;;  %vm15973_vm2 = vcmask 781952   ;;  %v1602_v36 = vrot.slane %v1600_v55, 4  ;;  %v1603_v25 = vrot.slane %v14047_v20, 5 }
 0x242   : > { %1729 = vst.msk [vmem:[#allocation4 + $0xa0] sm:$0xf] %vm15969_vm10, %v1653_v50  ;;  %v2417_v41 = vpop.permute.xlu0 %2416  ;;  %v4199_v45 = vpop.f32.mrf.mxu0  ;;  %v2319_v51 = vshrl.u32 %v1976_v49, 16  ;;  %v2322_v38 = vshll.u32 %v1976_v49, 16  ;;  %v590_v42 = vshrl.u32 %v14064_v9, 16  ;;  %v10173_v50 = vrot.slane %v14068_v19, 9  ;;  %vm15974_vm8 = vmmov %vm15973_vm2 }
 0x243   : > { %2488 = vst.msk [vmem:[#allocation4 + $0xc8] sm:$0xf] %vm2462_vm7, %v2417_v41  ;;  %v4200_v17 = vadd.f32 %v14052_v40, %v4199_v45  ;;  %v5924_v35 = vld [vmem:[#allocation3 + $0x40] sm:$0xf]  ;;  %v2674_v14 = vsel %vm12025_vm3, %v2672_v37, %v2673_v23  ;;  %v766_v49 = vld [vmem:[#allocation2 + $0xc0] sm:$0xf] }
 0x244   : > { %v5096_v15 = vld [vmem:[#allocation3 + $0x4c] sm:$0xf]  ;;  %v14089_v45 = vld [vmem:[#allocation2 + $0xb8] sm:$0xf]  ;;  %5956 = vst [vmem:[#allocation5 + $0x150] sm:$0xf] %v5924_v35 }
 0x245   : > { %v5662_v28 = vld [vmem:[#allocation3 + $0x4c] sm:$0xf]  ;;  %2943 = vrot.lane.b32.xlu1 %v2856_v11, %s11958_s8  ;;  %5128 = vst [vmem:[#allocation5 + $0x1d4] sm:$0xf] %v5096_v15  ;;  %v5663_v44 = vld [vmem:[#allocation3 + $0x50] sm:$0x1]  ;;  %v14060_v63 = vadd.f32 %v13803_v31, %v4200_v17  ;;  %v1237_v31 = vsel %vm12051_vm6, %v14032_v58, %v14034_v59  ;;  %v3345_v58 = vor.u32 %v3344_v13, %v3341_v7 }
 0x246   : > { %v5783_v32 = vrot.slane %v5662_v28, 5  ;;  %v5786_v33 = vrot.slane %v5663_v44, 5  ;;  %v1238_v11 = vshrl.u32 %v14004_v24, 16  ;;  %v2321_v17 = vrot.slane %v2319_v51, 4  ;;  %v14117_v51 = vld [vmem:[#allocation2 + $0xb8] sm:$0xf] }
 0x247   : > { %2410 = vrot.lane.b32.xlu2 %v2259_v26, %s11961_s11  ;;  %v2754_v56 = vpop.permute.xlu1 %2753  ;;  %v4394_v0 = vmul.f32 1.442695, %v14060_v63  ;;  %v14092_v26 = vpop.f32.mrf.mxu1  ;;  %v2324_v15 = vrot.slane %v2322_v38, 5  ;;  %v592_v28 = vrot.slane %v590_v42, 7  ;;  %v3346_v44 = vrot.slane %v3345_v58, 4 }
 0x248   : > { %v5784_v27 = vsel %vm12025_vm3, %v10425_v1, %v5783_v32  ;;  %v5785_v22 = vrot.slane %v5783_v32, 4  ;;  %2941 = vrot.lane.b32.xlu0 %v2855_v47, %s11958_s8  ;;  %2825 = vst.msk [vmem:[#allocation4 + $0xc8] sm:$0xf] %vm15973_vm2, %v2754_v56  ;;  %v330_v47 = vld [vmem:[%s12113_s7 + $0x7c] sm:$0xf]  ;;  %v1240_v32 = vrot.slane %v1238_v11, 4  ;;  %v1604_v7 = vsel %vm12025_vm3, %v1602_v36, %v1603_v25 }
 0x249   : > { %v2948_v12 = vpop.permute.xlu2 %2947  ;;  %11791 = vpow2.f32 %v4394_v0  ;;  %5895 = vst [vmem:[#allocation5 + $0x1b8] sm:$0xf] %v5784_v27  ;;  %v10685_v29 = vld [vmem:[#allocation5 + $0x1b0] sm:$0xf]  ;;  %v881_v1 = vld [vmem:[#allocation2 + $0xb0] sm:$0x1]  ;;  %v6058_v27 = vor.u32 %v14027_v5, %v14021_v30  ;;  %v3351_v11 = vsel %vm12051_vm6, %v3346_v44, %v14006_v3 }
 0x24a   : > { %3019 = vst.msk [vmem:[#allocation4 + $0xc8] sm:$0xf] %vm2993_vm12, %v2948_v12  ;;  %v5787_v6 = vsel %vm12025_vm3, %v5785_v22, %v5786_v33  ;;  %v2752_v61 = vpop.permute.xlu0 %2751  ;;  %v4201_v41 = vpop.f32.mrf.mxu0  ;;  %v593_v33 = vshll.u32 %v14064_v9, 16  ;;  %v598_v8 = vshrl.u32 %v330_v47, 16  ;;  %v601_v23 = vshll.u32 %v330_v47, 16 }
 0x24b   : > { %2824 = vst.msk [vmem:[#allocation4 + $0xc0] sm:$0xf] %vm15974_vm8, %v2752_v61  ;;  %v4202_v20 = vadd.f32 %v14052_v40, %v4201_v41  ;;  %v5925_v56 = vld [vmem:[#allocation3 + $0x48] sm:$0xf]  ;;  %v2328_v13 = vshll.u32 %v14089_v45, 16  ;;  %vm15975_vm10 = vcmask 1044352   ;;  %v2325_v12 = vor.u32 %v2324_v15, %v2321_v17 }
 0x24c   : > { %v11466_v24 = vld [vmem:[#allocation5 + $0x1d0] sm:$0xf0]  ;;  %5896 = vst [vmem:[#allocation5 + $0x1dc] sm:$0xf] %v5787_v6  ;;  %v595_v0 = vor.u32 %v593_v33, %v592_v28  ;;  %v596_v6 = vrot.slane %v592_v28, 4  ;;  %v14114_v30 = vrot.slane %v598_v8, 7  ;;  %v1241_v58 = vor.u32 %v1240_v32, %v14034_v59 }
 0x24d   : > { %v10686_v46 = vor.u32 %v11466_v24, %v10685_v29  ;;  %1328 = vrot.lane.b32.xlu1 %v1237_v31, %s11957_s28  ;;  %v14101_v37 = vadd.f32 %v13833_v2, %v4202_v20  ;;  %vm4350_vm2 = vcmp.gt.f32.partialorder %v14060_v63, 0.0  ;;  %v1244_v38 = vshll.u32 %v881_v1, 16  ;;  %5957 = vst [vmem:[#allocation5 + $0x174] sm:$0xf] %v5925_v56  ;;  %v14155_v32 = vld [vmem:[#allocation2 + $0xb4] sm:$0xe] }
 0x24e   : > { %v767_v36 = vsel %vm12159_vm13, %v595_v0, %v766_v49  ;;  %vm15976_vm8 = vcmask 388352   ;;  %v603_v35 = vor.u32 %v601_v23, %v14114_v30  ;;  %v14128_v48 = vrot.slane %v6058_v27, 4  ;;  %v4531_v27 = vld [vmem:[#allocation3 + $0x60] sm:$0x1] }
 0x24f   : > { %2749 = vrot.lane.b32.xlu2 %v2674_v14, %s11960_s10  ;;  %9094 = vmatmul.bf16.gmra.mxu2 %v10686_v46  ;;  %v2946_v43 = vpop.permute.xlu1 %2945  ;;  %v11792_v22 = vpop.eup %11791  ;;  %v4396_v2 = vmul.f32 1.442695, %v14101_v37  ;;  %768 = vst [vmem:[#allocation2 + $0xc0] sm:$0xf] %v767_v36  ;;  %v2691_v3 = vrot.slane %v14117_v51, 5  ;;  %v6065_v47 = vshrl.u32 %v14016_v18, 16 }
 0x250   : > { %3504 = vrot.lane.b32.xlu0 %v3361_v60, %s11962_s12  ;;  %3018 = vst.msk [vmem:[#allocation4 + $0xc0] sm:$0xf] %vm2993_vm12, %v2946_v43  ;;  %v10399_v31 = vadd.f32 -1.0, %v11792_v22  ;;  %v10693_v42 = vld [vmem:[#allocation5 + $0x1b8] sm:$0xf]  ;;  %v604_v59 = vsel %vm12168_vm14, %v596_v6, %v603_v35  ;;  %v14141_v20 = vpop.f32.mrf.mxu1  ;;  %v2326_v24 = vrot.slane %v2325_v12, 4 }
 0x251   : > { %v3507_v9 = vpop.permute.xlu2 %3506  ;;  %11793 = vpow2.f32 %v4396_v2  ;;  %v14143_v60 = vrot.slane %v2328_v13, 5  ;;  %vm15977_vm13 = vcmask 27648   ;;  %v14149_v39 = vrot.slane %v6061_v10, 5  ;;  %v883_v22 = vld [vmem:[#allocation2 + $0xb8] sm:$0xf] }
 0x252   : > { %3579 = vst.msk [vmem:[#allocation4 + $0xc0] sm:$0xf] %vm15975_vm10, %v3507_v9  ;;  %v1655_v5 = vpop.permute.xlu0 %1654  ;;  %v4478_v25 = vsel %vm4350_vm2, %v14060_v63, %v10399_v31  ;;  %v1601_v63 = vsel %vm12025_vm3, %v10173_v50, %v1600_v55  ;;  %v5013_v55 = vld [vmem:[#allocation3 + $0x54] sm:$0xf]  ;;  %v2539_v50 = vld [vmem:[#allocation2 + $0xbc] sm:$0x1] }
 0x253   : > { %1730 = vst.msk [vmem:[#allocation4 + $0xa8] sm:$0xf] %vm15976_vm8, %v1655_v5  ;;  %v11467_v61 = vld [vmem:[#allocation5 + $0x1d8] sm:$0xf0]  ;;  %v4628_v41 = vpack.c.bf16 %v4478_v25, %v4478_v25  ;;  %v1242_v46 = vrot.slane %v1241_v58, 4  ;;  %v1246_v17 = vrot.slane %v1244_v38, 5  ;;  %v2331_v49 = vsel %vm12051_vm6, %v2326_v24, %v14143_v60 }
 0x254   : > { %v10694_v14 = vor.u32 %v11467_v61, %v10693_v42  ;;  %769 = vst.msk [vmem:[#allocation2 + $0xc4] sm:$0xf] %vm15977_vm13, %v604_v59  ;;  %v2332_v18 = vshrl.u32 %v14089_v45, 16  ;;  %v2693_v10 = vrot.slane %v2691_v3, 4  ;;  %v14161_v43 = vrot.slane %v6065_v47, 4 }
 0x255   : > { %1670 = vrot.lane.b32.xlu1 %v1604_v7, %s11956_s27  ;;  %v4751_v29 = vshrl.u32 %v4628_v41, 16  ;;  %v4754_v44 = vshll.u32 %v4628_v41, 16  ;;  %vm4351_vm10 = vcmp.gt.f32.partialorder %v14101_v37, 0.0  ;;  %v2694_v56 = vrot.slane %v2539_v50, 5  ;;  %v1770_v12 = vld [vmem:[#allocation2 + $0xb8] sm:$0xf] }
 0x256   : > { %9272 = vmatmul.bf16.gmra.mxu1 %v10694_v14  ;;  %v10189_v2 = vrot.slane %v14155_v32, 9  ;;  %v1247_v7 = vsel %vm12051_vm6, %v1242_v46, %v1246_v17  ;;  %v4532_v9 = vsel %vm13070_vm9, 0, %v4531_v27  ;;  %v3068_v13 = vld [vmem:[#allocation2 + $0xc0] sm:$0xf]  ;;  %v1262_v38 = vshrl.u32 %v883_v22, 16 }
 0x257   : > { %3502 = vrot.lane.b32.xlu2 %v3351_v11, %s11962_s12  ;;  %v1848_v19 = vpop.permute.xlu1 %1847  ;;  %v11794_v15 = vpop.eup %11793  ;;  %v14151_v28 = vrot.slane %v4751_v29, 7  ;;  %4533 = vst [vmem:[#allocation3 + $0x60] sm:$0x1] %v4532_v9  ;;  %v3411_v6 = vshrl.u32 %v3068_v13, 16  ;;  %v3414_v5 = vshll.u32 %v3068_v13, 16  ;;  %v2334_v11 = vrot.slane %v2332_v18, 4 }
 0x258   : > { %1668 = vrot.lane.b32.xlu0 %v1601_v63, %s11956_s27  ;;  %1923 = vst.msk [vmem:[#allocation4 + $0xa8] sm:$0xf] %vm1901_vm5, %v1848_v19  ;;  %v10400_v33 = vadd.f32 -1.0, %v11794_v15  ;;  %v882_v36 = vld [vmem:[#allocation2 + $0xb4] sm:$0xf]  ;;  %v2695_v50 = vsel %vm12025_vm3, %v2693_v10, %v2694_v56  ;;  %vm15978_vm2 = vcmask 1044352  }
 0x259   : > { %v2409_v1 = vpop.permute.xlu2 %2408  ;;  %v4756_v8 = vor.u32 %v4754_v44, %v14151_v28  ;;  %v3413_v42 = vrot.slane %v3411_v6, 4  ;;  %v3416_v61 = vrot.slane %v3414_v5, 5  ;;  %v800_v58 = vld [vmem:[#allocation2 + $0xa0] sm:$0xf]  ;;  %v5017_v35 = vld [vmem:[#allocation3 + $0x5c] sm:$0x1] }
 0x25a   : > { %2484 = vst.msk [vmem:[#allocation4 + $0xa8] sm:$0xf] %vm2462_vm7, %v2409_v1  ;;  %v1846_v23 = vpop.permute.xlu0 %1845  ;;  %v4479_v45 = vsel %vm4351_vm10, %v14101_v37, %v10400_v33  ;;  %v1258_v37 = vshll.u32 %v883_v22, 16  ;;  %v1978_v63 = vld [vmem:[#allocation2 + $0xbc] sm:$0x1]  ;;  %v4757_v19 = vrot.slane %v14151_v28, 4  ;;  %v2335_v28 = vor.u32 %v2334_v11, %v14143_v60  ;;  %vm15982_vm10 = vmmov %vm15978_vm2 }
 0x25b   : > { %1922 = vst.msk [vmem:[#allocation4 + $0xa0] sm:$0xf] %vm1901_vm5, %v1846_v23  ;;  %v5014_v0 = vsel %vm13272_vm11, %v4756_v8, %v5013_v55  ;;  %v4629_v31 = vpack.c.bf16 %v4479_v45, %v4479_v45  ;;  %v14179_v14 = vld [vmem:[#allocation2 + $0xc4] sm:$0xf]  ;;  %v14182_v59 = vld [vmem:[#allocation3 + $0x20] sm:$0x1]  ;;  %v3417_v32 = vor.u32 %v3416_v61, %v3413_v42  ;;  %v2692_v60 = vsel %vm12025_vm3, %v10189_v2, %v2691_v3 }
 0x25c   : > { %5015 = vst [vmem:[#allocation3 + $0x54] sm:$0xf] %v5014_v0  ;;  %v799_v55 = vld [vmem:[#allocation2 + $0x9c] sm:$0xf]  ;;  %v1249_v46 = vshrl.u32 %v882_v36, 16  ;;  %v1252_v17 = vshll.u32 %v882_v36, 16 }
 0x25d   : > { %2422 = vrot.lane.b32.xlu1 %v2331_v49, %s11961_s11  ;;  %v4759_v25 = vshrl.u32 %v4629_v31, 16  ;;  %832 = vst.msk [vmem:[#allocation4 + $0xd8] sm:$0xf] %vm243_vm0, %v800_v58  ;;  %v4762_v29 = vshll.u32 %v4629_v31, 16  ;;  %v3420_v33 = vshll.u32 %v14179_v14, 16  ;;  %v14194_v8 = vrot.slane %v1258_v37, 5 }
 0x25e   : > { %831 = vst.msk [vmem:[#allocation4 + $0xd0] sm:$0xf] %vm243_vm0, %v799_v55  ;;  %v1769_v18 = vld [vmem:[#allocation2 + $0xb4] sm:$0xf]  ;;  %v1264_v23 = vrot.slane %v1262_v38, 4  ;;  %v2338_v49 = vshll.u32 %v1978_v63, 16 }
 0x25f   : > { %1330 = vrot.lane.b32.xlu2 %v1247_v7, %s11957_s28  ;;  %v2407_v41 = vpop.permute.xlu1 %2406  ;;  %v4761_v47 = vrot.slane %v4759_v25, 7  ;;  %v4586_v27 = vld [vmem:[#allocation3 + $0x68] sm:$0x1]  ;;  %v884_v22 = vld [vmem:[#allocation2 + $0xbc] sm:$0x1]  ;;  %v605_v45 = vrot.slane %v14114_v30, 4 }
 0x260   : > { %1863 = vrot.lane.b32.xlu0 %v1770_v12, %s11959_s9  ;;  %2483 = vst.msk [vmem:[#allocation4 + $0xa0] sm:$0xf] %vm2462_vm7, %v2407_v41  ;;  %v6071_v7 = vshll.u32 %v14182_v59, 16  ;;  %v4587_v9 = vsel %vm13132_vm4, 0, %v4586_v27  ;;  %v14210_v13 = vrot.slane %v1249_v46, 4  ;;  %v14212_v0 = vrot.slane %v1252_v17, 5 }
 0x261   : > { %v14186_v24 = vpop.permute.xlu2 %2937  ;;  %v4764_v15 = vor.u32 %v4762_v29, %v4761_v47  ;;  %v4766_v44 = vrot.slane %v4761_v47, 4  ;;  %v3418_v31 = vrot.slane %v3417_v32, 4  ;;  %v14214_v30 = vrot.slane %v3420_v33, 5  ;;  %4588 = vst [vmem:[#allocation3 + $0x68] sm:$0x1] %v4587_v9 }
 0x262   : > { %v3509_v1 = vpop.permute.xlu0 %3508  ;;  %v1265_v51 = vor.u32 %v1264_v23, %v14194_v8  ;;  %v2336_v5 = vrot.slane %v2335_v28, 4  ;;  %v2340_v3 = vrot.slane %v2338_v49, 5  ;;  %v770_v2 = vld [vmem:[#allocation2 + $0xc8] sm:$0x1]  ;;  %vm15979_vm8 = vcmask 781952  }
 0x263   : > { %3580 = vst.msk [vmem:[#allocation4 + $0xc8] sm:$0xf] %vm15978_vm2, %v3509_v1  ;;  %v4765_v10 = vsel %vm12168_vm14, %v4757_v19, %v4764_v15  ;;  %v5018_v56 = vsel %vm13070_vm9, %v4766_v44, %v5017_v35  ;;  %v5097_v12 = vld [vmem:[#allocation3 + $0x54] sm:$0xf]  ;;  %v10305_v37 = vld [vmem:[#allocation4 + $0xc0] sm:$0xf]  ;;  %v771_v36 = vsel %vm12175_vm15, %v605_v45, %v770_v2  ;;  %v3423_v63 = vsel %vm12051_vm6, %v3418_v31, %v14214_v30  ;;  %vm15980_vm13 = vmmov %vm15979_vm8 }
 0x264   : > { %5016 = vst [vmem:[#allocation3 + $0x58] sm:$0xf] %v4765_v10  ;;  %v1980_v25 = vld [vmem:[#allocation2 + $0xc4] sm:$0xf]  ;;  %v3424_v42 = vshrl.u32 %v14179_v14, 16  ;;  %v1268_v61 = vshll.u32 %v884_v22, 16  ;;  %v1255_v17 = vor.u32 %v14212_v0, %v14210_v13  ;;  %v6068_v44 = vor.u32 %v14161_v43, %v14149_v39  ;;  %vm15981_vm15 = vmmov %vm15978_vm2 }
 0x265   : > { %2761 = vrot.lane.b32.xlu1 %v2695_v50, %s11960_s10  ;;  %5019 = vst [vmem:[#allocation3 + $0x5c] sm:$0x1] %v5018_v56  ;;  %v5664_v11 = vld [vmem:[#allocation3 + $0x54] sm:$0xe]  ;;  %v2352_v47 = vshll.u32 %v1980_v25, 16  ;;  %v2356_v29 = vshrl.u32 %v1980_v25, 16  ;;  %v2341_v50 = vsel %vm12051_vm6, %v2336_v5, %v2340_v3 }
 0x266   : > { %5129 = vst [vmem:[#allocation5 + $0x1f8] sm:$0xf] %v5097_v12  ;;  %v2862_v19 = vld [vmem:[#allocation2 + $0xc4] sm:$0xf]  ;;  %v14230_v14 = vrot.slane %v1265_v51, 4  ;;  %v10426_v33 = vrot.slane %v5664_v11, 9 }
 0x267   : > { %1861 = vrot.lane.b32.xlu2 %v1769_v18, %s11959_s9  ;;  %v2746_v6 = vpop.permute.xlu1 %2745  ;;  %772 = vst [vmem:[#allocation2 + $0xc8] sm:$0x1] %v771_v36  ;;  %v1270_v23 = vrot.slane %v1268_v61, 5  ;;  %v14247_v28 = vrot.slane %v2352_v47, 5  ;;  %v14249_v49 = vrot.slane %v2356_v29, 4  ;;  %v3426_v43 = vrot.slane %v3424_v42, 4 }
 0x268   : > { %2759 = vrot.lane.b32.xlu0 %v2692_v60, %s11960_s10  ;;  %2821 = vst.msk [vmem:[#allocation4 + $0xa8] sm:$0xf] %vm15979_vm8, %v2746_v6  ;;  %v11897_v10 = vld [vmem:[#allocation6 + $0x38] sm:$0xff]  ;;  %v1979_v60 = vld [vmem:[#allocation2 + $0xc0] sm:$0xf]  ;;  %v1256_v9 = vrot.slane %v1255_v17, 4  ;;  %v14264_v6 = vpop.f32.mrf.mxu1 }
 0x269   : > { %v14220_v38 = vpop.permute.xlu2 %3500  ;;  %v14258_v0 = vld [vmem:[#allocation2 + $0xbc] sm:$0x1]  ;;  %v14260_v31 = vrot.slane %v6068_v44, 4  ;;  %v14262_v12 = vld [vmem:[#allocation3 + $0xc] sm:$0xf]  ;;  %v14271_v2 = vrot.slane %v6071_v7, 5  ;;  %v1271_v25 = vsel %vm12051_vm6, %v14230_v14, %v1270_v23  ;;  %v3427_v11 = vor.u32 %v3426_v43, %v14214_v30 }
 0x26a   : > { %v2744_v58 = vpop.permute.xlu0 %2743  ;;  %v4204_v35 = vpop.f32.mrf.mxu0  ;;  %v11392_v41 = vld [vmem:[#allocation4 + $0xc4] sm:$0xf0]  ;;  %v2343_v42 = vshrl.u32 %v1979_v60, 16  ;;  %v2346_v61 = vshll.u32 %v1979_v60, 16  ;;  %v1610_v7 = vrot.slane %v14258_v0, 5  ;;  %v1261_v30 = vsel %vm12051_vm6, %v1256_v9, %v14194_v8 }
 0x26b   : > { %2820 = vst.msk [vmem:[#allocation4 + $0xa0] sm:$0xf] %vm15980_vm13, %v2744_v58  ;;  %v4205_v54 = vadd.f32 %v14052_v40, %v4204_v35  ;;  %v10306_v55 = vor.u32 %v11392_v41, %v10305_v37  ;;  %v5098_v46 = vld [vmem:[#allocation3 + $0x58] sm:$0xf]  ;;  %v795_v58 = vld [vmem:[#allocation2 + $0x84] sm:$0xf] }
 0x26c   : > { %3014 = vst.msk [vmem:[#allocation4 + $0xa0] sm:$0xf] %vm2993_vm12, %v14186_v24  ;;  %v5665_v15 = vld [vmem:[#allocation3 + $0x58] sm:$0xf]  ;;  %v5666_v32 = vld [vmem:[#allocation3 + $0x5c] sm:$0x1] }
 0x26d   : > { %v14241_v1 = vadd.f32 %v13942_v62, %v4205_v54  ;;  %4228 = vmatmul.bf16.vlgmr.msra.gmra.mxu3 %v10306_v55  ;;  %3514 = vrot.lane.b32.xlu1 %v3423_v63, %s11962_s12  ;;  %5130 = vst [vmem:[#allocation5 + $0x21c] sm:$0xf] %v5098_v46  ;;  %v5790_v18 = vrot.slane %v5665_v15, 5  ;;  %v14245_v24 = vld [vmem:[#allocation2 + $0xb8] sm:$0xf]  ;;  %v5793_v45 = vrot.slane %v5666_v32, 5  ;;  %v2359_v63 = vor.u32 %v14249_v49, %v14247_v28 }
 0x26e   : > { %11728 = vmatpush.bf16.msra.mxu3 %v11897_v10  ;;  %v1607_v5 = vrot.slane %v14245_v24, 5  ;;  %v3070_v3 = vld [vmem:[#allocation2 + $0xc8] sm:$0x1]  ;;  %v11898_v35 = vld [vmem:[#allocation6 + $0x30] sm:$0xff]  ;;  %827 = vst.msk [vmem:[#allocation4 + $0xb0] sm:$0xf] %vm243_vm0, %v795_v58 }
 0x26f   : > { %2424 = vrot.lane.b32.xlu2 %v2341_v50, %s11961_s11  ;;  %v4398_v62 = vmul.f32 1.442695, %v14241_v1  ;;  %v3499_v56 = vpop.permute.xlu1 %3498  ;;  %v5791_v27 = vsel %vm12025_vm3, %v10426_v33, %v5790_v18  ;;  %v5792_v22 = vrot.slane %v5790_v18, 4  ;;  %v2861_v41 = vld [vmem:[#allocation2 + $0xc0] sm:$0xf]  ;;  %v3430_v47 = vshll.u32 %v3070_v3, 16 }
 0x270   : > { %2955 = vrot.lane.b32.xlu0 %v2862_v19, %s11958_s8  ;;  %3575 = vst.msk [vmem:[#allocation4 + $0xa0] sm:$0xf] %vm15981_vm15, %v3499_v56  ;;  %v10721_v29 = vld [vmem:[#allocation5 + $0x1f8] sm:$0xf]  ;;  %v1609_v14 = vrot.slane %v1607_v5, 4  ;;  %vm4352_vm2 = vcmp.gt.f32.partialorder %v14241_v1, 0.0 }
 0x271   : > { %v14256_v13 = vpop.permute.xlu2 %1664  ;;  %11795 = vpow2.f32 %v4398_v62  ;;  %v5794_v51 = vsel %vm12025_vm3, %v5792_v22, %v5793_v45  ;;  %5897 = vst [vmem:[#allocation5 + $0x200] sm:$0xf] %v5791_v27  ;;  %v1981_v50 = vld [vmem:[#allocation2 + $0xc8] sm:$0x1]  ;;  %v5926_v46 = vld [vmem:[#allocation3 + $0x4c] sm:$0xf] }
 0x272   : > { %v2940_v37 = vpop.permute.xlu0 %2939  ;;  %v4206_v36 = vpop.f32.mrf.mxu0  ;;  %5898 = vst [vmem:[#allocation5 + $0x224] sm:$0xf] %v5794_v51  ;;  %11729 = vmatpush.bf16.msra.mxu3 %v11898_v35  ;;  %v14297_v8 = vrot.slane %v2343_v42, 4  ;;  %v3428_v17 = vrot.slane %v3427_v11, 4  ;;  %v796_v15 = vld [vmem:[#allocation2 + $0x88] sm:$0xf] }
 0x273   : > { %3015 = vst.msk [vmem:[#allocation4 + $0xa8] sm:$0xf] %vm2993_vm12, %v2940_v37  ;;  %v4207_v59 = vadd.f32 %v14052_v40, %v4206_v36  ;;  %v11899_v44 = vld [vmem:[#allocation6 + $0x28] sm:$0xff]  ;;  %v14300_v23 = vrot.slane %v2359_v63, 4  ;;  %v3432_v49 = vrot.slane %v3430_v47, 5  ;;  %v5223_v43 = vshll.u32 %v14262_v12, 16 }
 0x274   : > { %3576 = vst.msk [vmem:[#allocation4 + $0xa8] sm:$0xf] %vm15982_vm10, %v14220_v38  ;;  %v11475_v54 = vld [vmem:[#allocation5 + $0x218] sm:$0xf0]  ;;  %v5220_v38 = vshrl.u32 %v14262_v12, 16  ;;  %vm15983_vm8 = vcmask 257152  }
 0x275   : > { %v14288_v55 = vadd.f32 %v13975_v53, %v4207_v59  ;;  %v10722_v19 = vor.u32 %v11475_v54, %v10721_v29  ;;  %1334 = vrot.lane.b32.xlu1 %v1271_v25, %s11957_s28  ;;  %v2348_v53 = vrot.slane %v2346_v61, 5  ;;  %v1771_v56 = vld [vmem:[#allocation2 + $0xc0] sm:$0xf]  ;;  %v2362_v22 = vshll.u32 %v1981_v50, 16  ;;  %828 = vst.msk [vmem:[#allocation4 + $0xb8] sm:$0xf] %vm243_vm0, %v796_v15  ;;  %vm15984_vm13 = vmmov %vm15983_vm8 }
 0x276   : > { %11730 = vmatpush.bf16.msra.mxu3 %v11899_v44  ;;  %v14311_v37 = vld [vmem:[#allocation2 + $0xc4] sm:$0xf]  ;;  %v14313_v36 = vld [vmem:[#allocation2 + $0xb4] sm:$0xe]  ;;  %5958 = vst [vmem:[#allocation5 + $0x198] sm:$0xf] %v5926_v46  ;;  %v3433_v58 = vsel %vm12051_vm6, %v3428_v17, %v3432_v49  ;;  %v6064_v54 = vsel %vm12051_vm6, %v14128_v48, %v14149_v39 }
 0x277   : > { %2953 = vrot.lane.b32.xlu2 %v2861_v41, %s11958_s8  ;;  %v11796_v32 = vpop.eup %11795  ;;  %v4400_v33 = vmul.f32 1.442695, %v14288_v55  ;;  %9099 = vmatmul.bf16.gmra.mxu2 %v10722_v19  ;;  %v1327_v18 = vpop.permute.xlu1 %1326  ;;  %v10289_v62 = vld [vmem:[#allocation4 + $0xa0] sm:$0xf]  ;;  %v2349_v11 = vor.u32 %v2348_v53, %v14297_v8  ;;  %v4534_v35 = vld [vmem:[#allocation3 + $0x6c] sm:$0x1] }
 0x278   : > { %v10401_v10 = vadd.f32 -1.0, %v11796_v32  ;;  %1332 = vrot.lane.b32.xlu0 %v1261_v30, %s11957_s28  ;;  %1396 = vst.msk [vmem:[#allocation4 + $0xd8] sm:$0xf] %vm15983_vm8, %v1327_v18  ;;  %v10729_v45 = vld [vmem:[#allocation5 + $0x200] sm:$0xf]  ;;  %vm15985_vm15 = vcmask 388352   ;;  %v6074_v18 = vsel %vm12051_vm6, %v14260_v31, %v14271_v2 }
 0x279   : > { %v14305_v27 = vpop.permute.xlu2 %1859  ;;  %11797 = vpow2.f32 %v4400_v33  ;;  %v11476_v60 = vld [vmem:[#allocation5 + $0x220] sm:$0xf0]  ;;  %v2364_v41 = vrot.slane %v2362_v22, 5  ;;  %v4535_v63 = vsel %vm13070_vm9, 0, %v4534_v35  ;;  %v14325_v47 = vld [vmem:[#allocation2 + $0xc8] sm:$0x1] }
 0x27a   : > { %v4480_v9 = vsel %vm4352_vm2, %v14241_v1, %v10401_v10  ;;  %v1325_v51 = vpop.permute.xlu0 %1324  ;;  %v10730_v3 = vor.u32 %v11476_v60, %v10729_v45  ;;  %v11900_v25 = vld [vmem:[#allocation6 + $0x20] sm:$0xff]  ;;  %v14319_v1 = vpop.f32.mrf.mxu1  ;;  %v5927_v29 = vld [vmem:[#allocation3 + $0x54] sm:$0xf]  ;;  %4536 = vst [vmem:[#allocation3 + $0x6c] sm:$0x1] %v4535_v63  ;;  %v2698_v19 = vrot.slane %v14311_v37, 5  ;;  %vm15986_vm2 = vmmov %vm15983_vm8 }
 0x27b   : > { %11731 = vmatpush.bf16.msra.mxu3 %v11900_v25  ;;  %v4630_v42 = vpack.c.bf16 %v4480_v9, %v4480_v9  ;;  %1395 = vst.msk [vmem:[#allocation4 + $0xd0] sm:$0xf] %vm15984_vm13, %v1325_v51  ;;  %v11388_v61 = vld [vmem:[#allocation4 + $0xa4] sm:$0xf0]  ;;  %v3072_v50 = vld [vmem:[#allocation2 + $0xd0] sm:$0xf]  ;;  %vm15987_vm8 = vmmov %vm15985_vm15 }
 0x27c   : > { %1735 = vst.msk [vmem:[#allocation4 + $0xd0] sm:$0xf] %vm15985_vm15, %v14256_v13  ;;  %9277 = vmatmul.bf16.gmra.mxu1 %v10730_v3  ;;  %v10290_v59 = vor.u32 %v11388_v61, %v10289_v62  ;;  %v1611_v13 = vsel %vm12025_vm3, %v1609_v14, %v1610_v7  ;;  %v5020_v46 = vld [vmem:[#allocation3 + $0x60] sm:$0xf]  ;;  %v14338_v8 = vld [vmem:[#allocation2 + $0xcc] sm:$0xf]  ;;  %v2365_v62 = vsel %vm12051_vm6, %v14300_v23, %v2364_v41 }
 0x27d   : > { %v4768_v30 = vshrl.u32 %v4630_v42, 16  ;;  %1865 = vrot.lane.b32.xlu1 %v1771_v56, %s11959_s9  ;;  %5959 = vst [vmem:[#allocation5 + $0x1bc] sm:$0xf] %v5927_v29  ;;  %v5985_v48 = vld [vmem:[#allocation3 + $0x24] sm:$0xf]  ;;  %v4771_v17 = vshll.u32 %v4630_v42, 16 }
 0x27e   : > { %4218 = vmatmul.bf16.gmra.mxu0 %v10290_v59  ;;  %v2350_v15 = vrot.slane %v2349_v11, 4  ;;  %v10174_v7 = vrot.slane %v14313_v36, 9  ;;  %6445 = vst [vmem:[#allocation5 + $0x58] sm:$0xf] %v6064_v54  ;;  %v11901_v14 = vld [vmem:[#allocation6 + $0x18] sm:$0xff]  ;;  %v6076_v49 = vshrl.u32 %v5985_v48, 16 }
 0x27f   : > { %3516 = vrot.lane.b32.xlu2 %v3433_v58, %s11962_s12  ;;  %v11798_v39 = vpop.eup %11797  ;;  %v14340_v53 = vrot.slane %v4768_v30, 7  ;;  %v1858_v0 = vpop.permute.xlu1 %1857  ;;  %11732 = vmatpush.bf16.msra.mxu3 %v11901_v14  ;;  %v5928_v33 = vld [vmem:[#allocation3 + $0x58] sm:$0xf]  ;;  %vm4353_vm10 = vcmp.gt.f32.partialorder %v14288_v55, 0.0  ;;  %v2701_v56 = vrot.slane %v14325_v47, 5  ;;  %v14359_v60 = vrot.slane %v2698_v19, 4 }
 0x280   : > { %v10402_v44 = vadd.f32 -1.0, %v11798_v39  ;;  %1674 = vrot.lane.b32.xlu0 %v1611_v13, %s11956_s27  ;;  %1928 = vst.msk [vmem:[#allocation4 + $0xd0] sm:$0xf] %vm1901_vm5, %v1858_v0  ;;  %v3444_v31 = vshll.u32 %v3072_v50, 16  ;;  %v3448_v2 = vshrl.u32 %v3072_v50, 16  ;;  %v1608_v23 = vsel %vm12025_vm3, %v10174_v7, %v1607_v5  ;;  %v11902_v36 = vld [vmem:[#allocation6 + $0x10] sm:$0xff] }
 0x281   : > { %v1317_v32 = vpop.permute.xlu2 %1316  ;;  %v4773_v10 = vor.u32 %v4771_v17, %v14340_v53  ;;  %5960 = vst [vmem:[#allocation5 + $0x1e0] sm:$0xf] %v5928_v33  ;;  %v3435_v3 = vshrl.u32 %v14338_v8, 16  ;;  %v5986_v25 = vld [vmem:[#allocation3 + $0x28] sm:$0xf]  ;;  %v6078_v42 = vrot.slane %v6076_v49, 4  ;;  %v2355_v24 = vsel %vm12051_vm6, %v2350_v15, %v14247_v28 }
 0x282   : > { %1391 = vst.msk [vmem:[#allocation4 + $0xb0] sm:$0xf] %vm15986_vm2, %v1317_v32  ;;  %v4481_v22 = vsel %vm4353_vm10, %v14288_v55, %v10402_v44  ;;  %v1667_v45 = vpop.permute.xlu0 %1666  ;;  %v14368_v55 = vld [vmem:[#allocation2 + $0xd4] sm:$0x1]  ;;  %v6079_v61 = vshll.u32 %v5985_v48, 16  ;;  %v3438_v58 = vshll.u32 %v14338_v8, 16  ;;  %vm15990_vm10 = vmmov %vm15986_vm2 }
 0x283   : > { %v5021_v9 = vsel %vm13272_vm11, %v4773_v10, %v5020_v46  ;;  %v4631_v51 = vpack.c.bf16 %v4481_v22, %v4481_v22  ;;  %1736 = vst.msk [vmem:[#allocation4 + $0xd8] sm:$0xf] %vm15987_vm8, %v1667_v45  ;;  %11733 = vmatpush.bf16.msra.mxu3 %v11902_v36  ;;  %v4589_v5 = vld [vmem:[#allocation3 + $0x74] sm:$0x1]  ;;  %v5024_v35 = vld [vmem:[#allocation3 + $0x68] sm:$0x1]  ;;  %vm15991_vm2 = vmmov %vm15987_vm8 }
 0x284   : > { %5022 = vst [vmem:[#allocation3 + $0x60] sm:$0xf] %v5021_v9  ;;  %v4590_v59 = vsel %vm13132_vm4, 0, %v4589_v5  ;;  %v14381_v41 = vrot.slane %v3444_v31, 5  ;;  %v3450_v63 = vrot.slane %v3448_v2, 4  ;;  %v3454_v28 = vshll.u32 %v14368_v55, 16 }
 0x285   : > { %v4776_v11 = vshrl.u32 %v4631_v51, 16  ;;  %1929 = vst.msk [vmem:[#allocation4 + $0xd8] sm:$0xf] %vm1901_vm5, %v14305_v27  ;;  %2428 = vrot.lane.b32.xlu1 %v2365_v62, %s11961_s11  ;;  %v6081_v27 = vrot.slane %v6079_v61, 5  ;;  %v4779_v54 = vshll.u32 %v4631_v51, 16  ;;  %v6085_v13 = vshll.u32 %v5986_v25, 16 }
 0x286   : > { %6446 = vst [vmem:[#allocation5 + $0x7c] sm:$0xf] %v6074_v18  ;;  %v11903_v50 = vld [vmem:[#allocation6 + $0x8] sm:$0xff]  ;;  %v2863_v46 = vld [vmem:[#allocation2 + $0xcc] sm:$0xf]  ;;  %v3437_v48 = vrot.slane %v3435_v3, 4  ;;  %v3451_v33 = vor.u32 %v3450_v63, %v14381_v41 }
 0x287   : > { %1672 = vrot.lane.b32.xlu2 %v1608_v23, %s11956_s27  ;;  %v4778_v29 = vrot.slane %v4776_v11, 7  ;;  %v2421_v30 = vpop.permute.xlu1 %2420  ;;  %4591 = vst [vmem:[#allocation3 + $0x74] sm:$0x1] %v4590_v59  ;;  %11734 = vmatpush.bf16.msra.mxu3 %v11903_v50  ;;  %v5987_v39 = vld [vmem:[#allocation3 + $0x2c] sm:$0x1]  ;;  %v6082_v17 = vor.u32 %v6081_v27, %v6078_v42  ;;  %v6089_v0 = vshrl.u32 %v5986_v25, 16  ;;  %v2702_v25 = vsel %vm12025_vm3, %v14359_v60, %v2701_v56 }
 0x288   : > { %2426 = vrot.lane.b32.xlu0 %v2355_v24, %s11961_s11  ;;  %2490 = vst.msk [vmem:[#allocation4 + $0xd8] sm:$0xf] %vm2462_vm7, %v2421_v30  ;;  %v4774_v15 = vrot.slane %v14340_v53, 4  ;;  %vm15988_vm13 = vcmask 781952   ;;  %v3440_v44 = vrot.slane %v3438_v58, 5  ;;  %v6087_v10 = vrot.slane %v6085_v13, 5 }
 0x289   : > { %v2758_v8 = vpop.permute.xlu2 %2757  ;;  %v4781_v7 = vor.u32 %v4779_v54, %v4778_v29  ;;  %v4783_v14 = vrot.slane %v4778_v29, 4  ;;  %v1772_v18 = vld [vmem:[#allocation2 + $0xc4] sm:$0xf]  ;;  %v6083_v49 = vrot.slane %v6082_v17, 4  ;;  %v6091_v62 = vrot.slane %v6089_v0, 4  ;;  %v11904_v3 = vld [vmem:[#allocation6] sm:$0xff]  ;;  %vm15989_vm15 = vmmov %vm15988_vm13 }
 0x28a   : > { %2827 = vst.msk [vmem:[#allocation4 + $0xd8] sm:$0xf] %vm15988_vm13, %v2758_v8  ;;  %v2419_v32 = vpop.permute.xlu0 %2418  ;;  %v6095_v2 = vshll.u32 %v5987_v39, 16  ;;  %v2540_v51 = vld [vmem:[#allocation2 + $0xc0] sm:$0xe]  ;;  %v3441_v42 = vor.u32 %v3440_v44, %v3437_v48  ;;  %v5222_v61 = vrot.slane %v5220_v38, 4  ;;  %vm15992_vm13 = vmmov %vm15991_vm2 }
 0x28b   : > { %v4782_v22 = vsel %vm12168_vm14, %v4774_v15, %v4781_v7  ;;  %v5025_v45 = vsel %vm13070_vm9, %v4783_v14, %v5024_v35  ;;  %2489 = vst.msk [vmem:[#allocation4 + $0xd0] sm:$0xf] %vm2462_vm7, %v2419_v32  ;;  %v4209_v53 = vpop.f32.mrf.mxu0  ;;  %v5099_v31 = vld [vmem:[#allocation3 + $0x60] sm:$0xf]  ;;  %v6088_v23 = vsel %vm12051_vm6, %v6083_v49, %v6087_v10  ;;  %v6092_v55 = vor.u32 %v6091_v62, %v6087_v10  ;;  %v5151_v36 = vld [vmem:[#allocation3 + $0x10] sm:$0xf] }
 0x28c   : > { %5023 = vst [vmem:[#allocation3 + $0x64] sm:$0xf] %v4782_v22  ;;  %v4210_v9 = vadd.f32 %v14052_v40, %v4209_v53  ;;  %11735 = vmatpush.bf16.msra.mxu3 %v11904_v3  ;;  %v5225_v11 = vrot.slane %v5223_v43, 5  ;;  %v3452_v5 = vrot.slane %v3451_v33, 4  ;;  %v3456_v58 = vrot.slane %v3454_v28, 5 }
 0x28d   : > { %5026 = vst [vmem:[#allocation3 + $0x68] sm:$0x1] %v5025_v45  ;;  %2957 = vrot.lane.b32.xlu1 %v2863_v46, %s11958_s8  ;;  %v5667_v47 = vld [vmem:[#allocation3 + $0x60] sm:$0xe]  ;;  %v10190_v59 = vrot.slane %v2540_v51, 9  ;;  %v6093_v63 = vrot.slane %v6092_v55, 4  ;;  %v14443_v51 = vpop.f32.mrf.mxu1 }
 0x28e   : > { %v14408_v24 = vadd.f32 %v14092_v26, %v4210_v9  ;;  %5131 = vst [vmem:[#allocation5 + $0x240] sm:$0xf] %v5099_v31  ;;  %v6097_v56 = vrot.slane %v6095_v2, 5  ;;  %v5229_v60 = vshll.u32 %v5151_v36, 16  ;;  %v6748_v12 = vld [vmem:[#allocation3 + $0x18] sm:$0xf]  ;;  %v3457_v13 = vsel %vm12051_vm6, %v3452_v5, %v3456_v58 }
 0x28f   : > { %1867 = vrot.lane.b32.xlu2 %v1772_v18, %s11959_s9  ;;  %v2756_v35 = vpop.permute.xlu1 %2755  ;;  %6447 = vst [vmem:[#allocation5 + $0xa0] sm:$0xf] %v6088_v23  ;;  %v5233_v43 = vshrl.u32 %v5151_v36, 16  ;;  %v3442_v27 = vrot.slane %v3441_v42, 4  ;;  %v5152_v54 = vld [vmem:[#allocation3 + $0x14] sm:$0x1]  ;;  %v2699_v0 = vsel %vm12025_vm3, %v10190_v59, %v2698_v19  ;;  %v5226_v15 = vor.u32 %v5225_v11, %v5222_v61 }
 0x290   : > { %v4402_v38 = vmul.f32 1.442695, %v14408_v24  ;;  %2765 = vrot.lane.b32.xlu0 %v2702_v25, %s11960_s10  ;;  %2826 = vst.msk [vmem:[#allocation4 + $0xd0] sm:$0xf] %vm15989_vm15, %v2756_v35  ;;  %v6098_v29 = vsel %vm12051_vm6, %v6093_v63, %v6097_v56  ;;  %v5231_v30 = vrot.slane %v5229_v60, 5  ;;  %v10427_v50 = vrot.slane %v5667_v47, 9 }
 0x291   : > { %v2950_v26 = vpop.permute.xlu2 %2949  ;;  %6448 = vst [vmem:[#allocation5 + $0xc4] sm:$0xf] %v6098_v29  ;;  %v6749_v46 = vld [vmem:[#allocation3 + $0x1c] sm:$0xf]  ;;  %v5235_v8 = vrot.slane %v5233_v43, 4  ;;  %v5239_v33 = vshll.u32 %v5152_v54, 16  ;;  %v3447_v18 = vsel %vm12051_vm6, %v3442_v27, %v14381_v41 }
 0x292   : > { %3020 = vst.msk [vmem:[#allocation4 + $0xd0] sm:$0xf] %vm2993_vm12, %v2950_v26  ;;  %11799 = vpow2.f32 %v4402_v38  ;;  %v1319_v28 = vpop.permute.xlu0 %1318  ;;  %v5227_v22 = vrot.slane %v5226_v15, 4  ;;  %vm4354_vm8 = vcmp.gt.f32.partialorder %v14408_v24, 0.0  ;;  %v2864_v55 = vld [vmem:[#allocation2 + $0xd0] sm:$0xf] }
 0x293   : > { %1392 = vst.msk [vmem:[#allocation4 + $0xb8] sm:$0xf] %vm15990_vm10, %v1319_v28  ;;  %v4211_v48 = vpop.f32.mrf.mxu0  ;;  %v5100_v39 = vld [vmem:[#allocation3 + $0x64] sm:$0xf]  ;;  %v5236_v32 = vor.u32 %v5235_v8, %v5231_v30  ;;  %v5241_v31 = vrot.slane %v5239_v33, 5  ;;  %v11583_v28 = vld [vmem:[#allocation6 + $0xf8] sm:$0xff] }
 0x294   : > { %v5668_v17 = vld [vmem:[#allocation3 + $0x64] sm:$0xf]  ;;  %v4212_v7 = vadd.f32 %v14052_v40, %v4211_v48  ;;  %5132 = vst [vmem:[#allocation5 + $0x264] sm:$0xf] %v5100_v39  ;;  %v5669_v14 = vld [vmem:[#allocation3 + $0x68] sm:$0x1]  ;;  %v5232_v9 = vsel %vm12051_vm6, %v5227_v22, %v5231_v30  ;;  %9323 = vmatpush.bf16.msrb.mxu0 %v11583_v28 }
 0x295   : > { %v5797_v44 = vrot.slane %v5668_v17, 5  ;;  %3520 = vrot.lane.b32.xlu1 %v3457_v13, %s11962_s12  ;;  %v5800_v49 = vrot.slane %v5669_v14, 5  ;;  %6780 = vst [vmem:[#allocation5 + $0x18] sm:$0xf] %v6748_v12  ;;  %v5237_v10 = vrot.slane %v5236_v32, 4  ;;  %v11582_v33 = vld [vmem:[#allocation6 + $0xf0] sm:$0xff] }
 0x296   : > { %v14430_v37 = vadd.f32 %v14141_v20, %v4212_v7  ;;  %6781 = vst [vmem:[#allocation5 + $0x3c] sm:$0xf] %v6749_v46  ;;  %v10757_v25 = vld [vmem:[#allocation5 + $0x240] sm:$0xf]  ;;  %v5988_v5 = vld [vmem:[#allocation3 + $0x30] sm:$0xf] }
 0x297   : > { %v5798_v19 = vsel %vm12025_vm3, %v10427_v50, %v5797_v44  ;;  %v5799_v40 = vrot.slane %v5797_v44, 4  ;;  %2763 = vrot.lane.b32.xlu2 %v2699_v0, %s11960_s10  ;;  %v1659_v62 = vpop.permute.xlu1 %1658  ;;  %v5242_v3 = vsel %vm12051_vm6, %v5237_v10, %v5241_v31  ;;  %5613 = vst [vmem:[#allocation5 + $0x4c] sm:$0xf] %v5232_v9  ;;  %v6100_v58 = vshrl.u32 %v5988_v5, 16  ;;  %v6812_v59 = vld [vmem:[#allocation3 + $0x18] sm:$0xf]  ;;  %v14462_v0 = vpop.f32.mrf.mxu1 }
 0x298   : > { %5899 = vst [vmem:[#allocation5 + $0x248] sm:$0xf] %v5798_v19  ;;  %v11800_v45 = vpop.eup %11799  ;;  %v4404_v53 = vmul.f32 1.442695, %v14430_v37  ;;  %3518 = vrot.lane.b32.xlu0 %v3447_v18, %s11962_s12  ;;  %v6103_v47 = vshll.u32 %v5988_v5, 16  ;;  %vm4355_vm15 = vcmp.gt.f32.partialorder %v14430_v37, 0.0  ;;  %9324 = vmatpush.bf16.msrb.mxu0 %v11582_v33 }
 0x299   : > { %1732 = vst.msk [vmem:[#allocation4 + $0xb8] sm:$0xf] %vm15991_vm2, %v1659_v62  ;;  %v1852_v20 = vpop.permute.xlu2 %1851  ;;  %v5801_v41 = vsel %vm12025_vm3, %v5799_v40, %v5800_v49  ;;  %v10403_v2 = vadd.f32 -1.0, %v11800_v45  ;;  %v14451_v63 = vld [vmem:[#allocation3 + $0x1c] sm:$0xf]  ;;  %v6102_v60 = vrot.slane %v6100_v58, 4 }
 0x29a   : > { %1925 = vst.msk [vmem:[#allocation4 + $0xb8] sm:$0xf] %vm1901_vm5, %v1852_v20  ;;  %11801 = vpow2.f32 %v4404_v53  ;;  %v1657_v23 = vpop.permute.xlu0 %1656  ;;  %v5027_v56 = vld [vmem:[#allocation3 + $0x6c] sm:$0xf]  ;;  %v6105_v38 = vrot.slane %v6103_v47, 5  ;;  %v6874_v48 = vshrl.u32 %v14451_v63, 16 }
 0x29b   : > { %5900 = vst [vmem:[#allocation5 + $0x26c] sm:$0xf] %v5801_v41  ;;  %v4482_v36 = vsel %vm4354_vm8, %v14408_v24, %v10403_v2  ;;  %v11484_v42 = vld [vmem:[#allocation5 + $0x260] sm:$0xf0]  ;;  %v4537_v17 = vld [vmem:[#allocation3 + $0x78] sm:$0x1] }
 0x29c   : > { %1731 = vst.msk [vmem:[#allocation4 + $0xb0] sm:$0xf] %vm15992_vm13, %v1657_v23  ;;  %v4632_v61 = vpack.c.bf16 %v4482_v36, %v4482_v36  ;;  %v10758_v11 = vor.u32 %v11484_v42, %v10757_v25  ;;  %v6106_v8 = vor.u32 %v6105_v38, %v6102_v60  ;;  %v4538_v14 = vsel %vm13070_vm9, 0, %v4537_v17  ;;  %v5989_v44 = vld [vmem:[#allocation3 + $0x34] sm:$0xf] }
 0x29d   : > { %5614 = vst [vmem:[#allocation5 + $0x70] sm:$0xf] %v5242_v3  ;;  %v6861_v32 = vshrl.u32 %v6812_v59, 16  ;;  %v6109_v18 = vshll.u32 %v5989_v44, 16  ;;  %v6113_v49 = vshrl.u32 %v5989_v44, 16  ;;  %vm15993_vm10 = vcmask 1044352  }
 0x29e   : > { %v4785_v35 = vshrl.u32 %v4632_v61, 16  ;;  %9104 = vmatmul.bf16.gmra.mxu2 %v10758_v11  ;;  %v4788_v43 = vshll.u32 %v4632_v61, 16  ;;  %4539 = vst [vmem:[#allocation3 + $0x78] sm:$0x1] %v4538_v14  ;;  %v801_v40 = vld [vmem:[#allocation2 + $0xa8] sm:$0xf]  ;;  %vm15994_vm2 = vmmov %vm15993_vm10 }
 0x29f   : > { %2959 = vrot.lane.b32.xlu2 %v2864_v55, %s11958_s8  ;;  %v1850_v24 = vpop.permute.xlu1 %1849  ;;  %v10765_v27 = vld [vmem:[#allocation5 + $0x248] sm:$0xf]  ;;  %v6107_v10 = vrot.slane %v6106_v8, 4  ;;  %v14468_v62 = vld [vmem:[#allocation3 + $0x18] sm:$0xf]  ;;  %v6111_v53 = vrot.slane %v6109_v18, 5 }
 0x2a0   : > { %v11802_v26 = vpop.eup %11801  ;;  %v14453_v12 = vrot.slane %v4785_v35, 7  ;;  %1924 = vst.msk [vmem:[#allocation4 + $0xb0] sm:$0xf] %vm1901_vm5, %v1850_v24  ;;  %v5990_v45 = vld [vmem:[#allocation3 + $0x38] sm:$0x1]  ;;  %v6115_v20 = vrot.slane %v6113_v49, 4 }
 0x2a1   : > { %v2411_v29 = vpop.permute.xlu2 %2410  ;;  %v10404_v54 = vadd.f32 -1.0, %v11802_v26  ;;  %833 = vst.msk [vmem:[#allocation4 + $0xe0] sm:$0xf] %vm243_vm0, %v801_v40  ;;  %v6870_v9 = vshll.u32 %v14451_v63, 16  ;;  %v5031_v23 = vld [vmem:[#allocation3 + $0x74] sm:$0x1]  ;;  %v6112_v3 = vsel %vm12051_vm6, %v6107_v10, %v6111_v53 }
 0x2a2   : > { %v11485_v30 = vld [vmem:[#allocation5 + $0x268] sm:$0xf0]  ;;  %2485 = vst.msk [vmem:[#allocation4 + $0xb0] sm:$0xf] %vm2462_vm7, %v2411_v29  ;;  %v4790_v13 = vor.u32 %v4788_v43, %v14453_v12  ;;  %v2952_v50 = vpop.permute.xlu0 %2951  ;;  %v6863_v36 = vrot.slane %v6861_v32, 4  ;;  %v4791_v42 = vrot.slane %v14453_v12, 4  ;;  %v6116_v58 = vor.u32 %v6115_v20, %v6111_v53 }
 0x2a3   : > { %v10766_v46 = vor.u32 %v11485_v30, %v10765_v27  ;;  %v4483_v39 = vsel %vm4355_vm15, %v14430_v37, %v10404_v54  ;;  %3021 = vst.msk [vmem:[#allocation4 + $0xd8] sm:$0xf] %vm2993_vm12, %v2952_v50  ;;  %v6864_v37 = vshll.u32 %v6812_v59, 16  ;;  %v11581_v55 = vld [vmem:[#allocation6 + $0xe8] sm:$0xff]  ;;  %v14476_v47 = vrot.slane %v6874_v48, 4  ;;  %v11580_v50 = vld [vmem:[#allocation6 + $0xe0] sm:$0xff] }
 0x2a4   : > { %v5028_v15 = vsel %vm13272_vm11, %v4790_v13, %v5027_v56  ;;  %v4633_v7 = vpack.c.bf16 %v4483_v39, %v4483_v39  ;;  %6449 = vst [vmem:[#allocation5 + $0xe8] sm:$0xf] %v6112_v3  ;;  %9325 = vmatpush.bf16.msrb.mxu0 %v11581_v55  ;;  %v6119_v35 = vshll.u32 %v5990_v45, 16  ;;  %v5244_v59 = vshrl.u32 %v14468_v62, 16  ;;  %v5154_v60 = vld [vmem:[#allocation3 + $0x1c] sm:$0xf] }
 0x2a5   : > { %9282 = vmatmul.bf16.gmra.mxu1 %v10766_v46  ;;  %5029 = vst [vmem:[#allocation3 + $0x6c] sm:$0xf] %v5028_v15  ;;  %v6866_v25 = vrot.slane %v6864_v37, 5  ;;  %v6872_v24 = vrot.slane %v6870_v9, 5  ;;  %v5247_v38 = vshll.u32 %v14468_v62, 16  ;;  %v6117_v30 = vrot.slane %v6116_v58, 4 }
 0x2a6   : > { %v4793_v19 = vshrl.u32 %v4633_v7, 16  ;;  %v4796_v31 = vshll.u32 %v4633_v7, 16  ;;  %v4592_v26 = vld [vmem:[#allocation3 + $0x80] sm:$0x1]  ;;  %v802_v13 = vld [vmem:[#allocation2 + $0xac] sm:$0xf] }
 0x2a7   : > { %v3513_v22 = vpop.permute.xlu1 %3512  ;;  %v14485_v43 = vld [vmem:[#allocation3 + $0x20] sm:$0x1]  ;;  %v6867_v27 = vor.u32 %v6866_v25, %v6863_v36  ;;  %v4593_v29 = vsel %vm13132_vm4, 0, %v4592_v26  ;;  %v6121_v46 = vrot.slane %v6119_v35, 5  ;;  %vm15995_vm8 = vcmask 781952   ;;  %v11579_v15 = vld [vmem:[#allocation6 + $0xd8] sm:$0xff] }
 0x2a8   : > { %v4795_v41 = vrot.slane %v4793_v19, 7  ;;  %3582 = vst.msk [vmem:[#allocation4 + $0xd8] sm:$0xf] %vm15993_vm10, %v3513_v22  ;;  %v5253_v39 = vshll.u32 %v5154_v60, 16  ;;  %v5257_v17 = vshrl.u32 %v5154_v60, 16  ;;  %9326 = vmatpush.bf16.msrb.mxu0 %v11580_v50  ;;  %v5246_v14 = vrot.slane %v5244_v59, 4  ;;  %vm15996_vm13 = vmmov %vm15995_vm8 }
 0x2a9   : > { %v2750_v2 = vpop.permute.xlu2 %2749  ;;  %4594 = vst [vmem:[#allocation3 + $0x80] sm:$0x1] %v4593_v29  ;;  %v6868_v7 = vrot.slane %v6867_v27, 4  ;;  %v6122_v33 = vsel %vm12051_vm6, %v6117_v30, %v6121_v46  ;;  %v6877_v18 = vor.u32 %v14476_v47, %v6872_v24  ;;  %v6880_v49 = vshll.u32 %v14485_v43, 16  ;;  %v14503_v45 = vld [vmem:[%s15897_s2] ss:$0 sm:$0xff]  ;;  %vm15998_vm10 = vmmov %vm15994_vm2  ;;  %v14523_v30 = vpop.f32.mrf.mxu1 }
 0x2aa   : > { %v4798_v61 = vor.u32 %v4796_v31, %v4795_v41  ;;  %v4800_v11 = vrot.slane %v4795_v41, 4  ;;  %v3511_v5 = vpop.permute.xlu0 %3510  ;;  %834 = vst.msk [vmem:[#allocation4 + $0xe8] sm:$0xf] %vm243_vm0, %v802_v13  ;;  %v5249_v37 = vrot.slane %v5247_v38, 5  ;;  %v14498_v62 = vrot.slane %v5253_v39, 5  ;;  %v11578_v55 = vld [vmem:[#allocation6 + $0xd0] sm:$0xff] }
 0x2ab   : > { %3581 = vst.msk [vmem:[#allocation4 + $0xd0] sm:$0xf] %vm15994_vm2, %v3511_v5  ;;  %v5259_v22 = vrot.slane %v5257_v17, 4  ;;  %v6873_v31 = vsel %vm12051_vm6, %v6868_v7, %v6872_v24  ;;  %v5155_v36 = vld [vmem:[#allocation3 + $0x20] sm:$0x1]  ;;  %vm15997_vm15 = vcmask 257152  }
 0x2ac   : > { %v4799_v63 = vsel %vm12168_vm14, %v4791_v42, %v4798_v61  ;;  %v5032_v56 = vsel %vm13070_vm9, %v4800_v11, %v5031_v23  ;;  %v5101_v12 = vld [vmem:[#allocation3 + $0x6c] sm:$0xf]  ;;  %9327 = vmatpush.bf16.msrb.mxu0 %v11579_v15  ;;  %6450 = vst [vmem:[#allocation5 + $0x10c] sm:$0xf] %v6122_v33  ;;  %v5250_v25 = vor.u32 %v5249_v37, %v5246_v14  ;;  %v6878_v11 = vrot.slane %v6877_v18, 4  ;;  %v11576_v13 = vld [vmem:[#allocation6 + $0xc0] sm:$0xff]  ;;  %vm15999_vm2 = vmmov %vm15997_vm15 }
 0x2ad   : > { %5030 = vst [vmem:[#allocation3 + $0x70] sm:$0xf] %v4799_v63  ;;  %v5670_v54 = vld [vmem:[#allocation3 + $0x6c] sm:$0xe]  ;;  %v5260_v5 = vor.u32 %v5259_v22, %v14498_v62  ;;  %v6882_v59 = vrot.slane %v6880_v49, 5  ;;  %v5263_v63 = vshll.u32 %v5155_v36, 16 }
 0x2ae   : > { %5033 = vst [vmem:[#allocation3 + $0x74] sm:$0x1] %v5032_v56  ;;  %v10428_v10 = vrot.slane %v5670_v54, 9  ;;  %v6750_v54 = vld [vmem:[#allocation3 + $0x24] sm:$0xf] }
 0x2af   : > { %v2748_v28 = vpop.permute.xlu1 %2747  ;;  %v11394_v8 = vld [vmem:[#allocation4 + $0xd4] sm:$0xf0]  ;;  %5133 = vst [vmem:[#allocation5 + $0x288] sm:$0xf] %v5101_v12  ;;  %v6883_v26 = vsel %vm12051_vm6, %v6878_v11, %v6882_v59  ;;  %v5251_v12 = vrot.slane %v5250_v25, 4  ;;  %v5261_v43 = vrot.slane %v5260_v5, 4 }
 0x2b0   : > { %2822 = vst.msk [vmem:[#allocation4 + $0xb0] sm:$0xf] %vm15995_vm8, %v2748_v28  ;;  %9328 = vmatpush.bf16.msrb.mxu0 %v11578_v55  ;;  %v5265_v50 = vrot.slane %v5263_v63, 5  ;;  %v6815_v46 = vld [vmem:[#allocation3 + $0x24] sm:$0xf] }
 0x2b1   : > { %v14490_v48 = vpop.permute.xlu2 %3502  ;;  %7276 = vst [vmem:[#allocation5 + $0x1c] sm:$0xf] %v6873_v31  ;;  %v5256_v39 = vsel %vm12051_vm6, %v5251_v12, %v14498_v62  ;;  %v6885_v15 = vshrl.u32 %v6815_v46, 16  ;;  %v6888_v7 = vshll.u32 %v6815_v46, 16  ;;  %v14537_v18 = vld [vmem:[#allocation3 + $0x18] sm:$0xe] }
 0x2b2   : > { %v2413_v44 = vpop.permute.xlu0 %2412  ;;  %v10313_v32 = vld [vmem:[#allocation4 + $0xd0] sm:$0xf]  ;;  %v4214_v19 = vpop.f32.mrf.mxu0  ;;  %7277 = vst [vmem:[#allocation5 + $0x40] sm:$0xf] %v6883_v26  ;;  %v5266_v17 = vsel %vm12051_vm6, %v5261_v43, %v5265_v50  ;;  %v14541_v25 = vld [vmem:[#allocation3 + $0x24] sm:$0xf] }
 0x2b3   : > { %2486 = vst.msk [vmem:[#allocation4 + $0xb8] sm:$0xf] %vm2462_vm7, %v2413_v44  ;;  %v10314_v40 = vor.u32 %v11394_v8, %v10313_v32  ;;  %v4215_v53 = vadd.f32 %v14503_v45, %v4214_v19  ;;  %v6816_v36 = vld [vmem:[#allocation3 + $0x28] sm:$0xf]  ;;  %v804_v5 = vld [vmem:[#allocation2 + $0xb8] sm:$0xf] }
 0x2b4   : > { %2823 = vst.msk [vmem:[#allocation4 + $0xb8] sm:$0xf] %vm15996_vm13, %v2750_v2  ;;  %v5102_v20 = vld [vmem:[#allocation3 + $0x70] sm:$0xf]  ;;  %vm16000_vm13 = vmmov %vm15998_vm10 }
 0x2b5   : > { %v5671_v41 = vld [vmem:[#allocation3 + $0x70] sm:$0xf]  ;;  %4233 = vmatmul.bf16.gmra.mxu3 %v10314_v40  ;;  %5134 = vst [vmem:[#allocation5 + $0x2ac] sm:$0xf] %v5102_v20  ;;  %v5672_v9 = vld [vmem:[#allocation3 + $0x74] sm:$0x1]  ;;  %v4304_v3 = vadd.f32 %v14264_v6, %v4215_v53 }
 0x2b6   : > { %v5804_v23 = vrot.slane %v5671_v41, 5  ;;  %v5807_v35 = vrot.slane %v5672_v9, 5  ;;  %v11577_v6 = vld [vmem:[#allocation6 + $0xc8] sm:$0xff]  ;;  %6782 = vst [vmem:[#allocation5 + $0x60] sm:$0xf] %v6750_v54  ;;  %v6887_v40 = vrot.slane %v6885_v15, 4 }
 0x2b7   : > { %v2944_v42 = vpop.permute.xlu1 %2943  ;;  %v4406_v58 = vmul.f32 1.442695, %v4304_v3  ;;  %v10793_v38 = vld [vmem:[#allocation5 + $0x288] sm:$0xf]  ;;  %9329 = vmatpush.bf16.msrb.mxu0 %v11577_v6  ;;  %5615 = vst [vmem:[#allocation5 + $0x94] sm:$0xf] %v5256_v39 }
 0x2b8   : > { %v5805_v2 = vsel %vm12025_vm3, %v10428_v10, %v5804_v23  ;;  %v5806_v61 = vrot.slane %v5804_v23, 4  ;;  %3017 = vst.msk [vmem:[#allocation4 + $0xb8] sm:$0xf] %vm2993_vm12, %v2944_v42  ;;  %vm4356_vm8 = vcmp.gt.f32.partialorder %v4304_v3, 0.0  ;;  %v6890_v10 = vrot.slane %v6888_v7, 5  ;;  %v14544_v42 = vpop.f32.mrf.mxu1 }
 0x2b9   : > { %v1331_v47 = vpop.permute.xlu2 %1330  ;;  %11803 = vpow2.f32 %v4406_v58  ;;  %5901 = vst [vmem:[#allocation5 + $0x290] sm:$0xf] %v5805_v2  ;;  %v5991_v53 = vld [vmem:[#allocation3 + $0x3c] sm:$0xf]  ;;  %v6751_v20 = vld [vmem:[#allocation3 + $0x28] sm:$0xf] }
 0x2ba   : > { %1398 = vst.msk [vmem:[#allocation4 + $0xe8] sm:$0xf] %vm15997_vm15, %v1331_v47  ;;  %v2942_v56 = vpop.permute.xlu0 %2941  ;;  %v5808_v24 = vsel %vm12025_vm3, %v5806_v61, %v5807_v35  ;;  %v4216_v60 = vpop.f32.mrf.mxu0  ;;  %v6124_v9 = vshrl.u32 %v5991_v53, 16  ;;  %v6127_v23 = vshll.u32 %v5991_v53, 16  ;;  %v5034_v2 = vld [vmem:[#allocation3 + $0x78] sm:$0xf]  ;;  %v6891_v35 = vor.u32 %v6890_v10, %v6887_v40 }
 0x2bb   : > { %3016 = vst.msk [vmem:[#allocation4 + $0xb0] sm:$0xf] %vm2993_vm12, %v2942_v56  ;;  %v4217_v27 = vadd.f32 %v14503_v45, %v4216_v60  ;;  %9330 = vmatpush.bf16.msrb.mxu0 %v11576_v13  ;;  %vm16001_vm15 = vcmask 388352   ;;  %v803_v56 = vld [vmem:[#allocation2 + $0xb4] sm:$0xf]  ;;  %v6894_v60 = vshll.u32 %v6816_v36, 16 }
 0x2bc   : > { %3577 = vst.msk [vmem:[#allocation4 + $0xb0] sm:$0xf] %vm15998_vm10, %v14490_v48  ;;  %v11493_v29 = vld [vmem:[#allocation5 + $0x2a8] sm:$0xf0]  ;;  %v6126_v58 = vrot.slane %v6124_v9, 4  ;;  %v6129_v47 = vrot.slane %v6127_v23, 5 }
 0x2bd   : > { %v10794_v28 = vor.u32 %v11493_v29, %v10793_v38  ;;  %5902 = vst [vmem:[#allocation5 + $0x2b4] sm:$0xf] %v5808_v24  ;;  %v14526_v8 = vadd.f32 %v14319_v1, %v4217_v27  ;;  %v14535_v1 = vld [vmem:[#allocation3 + $0x1c] sm:$0xf]  ;;  %v5268_v38 = vshrl.u32 %v14541_v25, 16  ;;  %v6898_v29 = vshrl.u32 %v6816_v36, 16 }
 0x2be   : > { %5616 = vst [vmem:[#allocation5 + $0xb8] sm:$0xf] %v5266_v17  ;;  %v7406_v41 = vrot.slane %v14535_v1, 5  ;;  %v6130_v27 = vor.u32 %v6129_v47, %v6126_v58  ;;  %v5271_v54 = vshll.u32 %v14541_v25, 16  ;;  %v6892_v50 = vrot.slane %v6891_v35, 4 }
 0x2bf   : > { %9109 = vmatmul.bf16.gmra.mxu2 %v10794_v28  ;;  %v1329_v48 = vpop.permute.xlu1 %1328  ;;  %v11804_v14 = vpop.eup %11803  ;;  %v4408_v44 = vmul.f32 1.442695, %v14526_v8  ;;  %6783 = vst [vmem:[#allocation5 + $0x84] sm:$0xf] %v6751_v20  ;;  %vm4357_vm10 = vcmp.gt.f32.partialorder %v14526_v8, 0.0  ;;  %v6896_v46 = vrot.slane %v6894_v60, 5 }
 0x2c0   : > { %1397 = vst.msk [vmem:[#allocation4 + $0xe0] sm:$0xf] %vm15999_vm2, %v1329_v48  ;;  %v10405_v32 = vadd.f32 -1.0, %v11804_v14  ;;  %v10801_v37 = vld [vmem:[#allocation5 + $0x290] sm:$0xf]  ;;  %vm16002_vm2 = vmmov %vm16001_vm15 }
 0x2c1   : > { %11805 = vpow2.f32 %v4408_v44  ;;  %v1862_v19 = vpop.permute.xlu2 %1861  ;;  %836 = vst.msk [vmem:[#allocation4 + $0xf8] sm:$0xf] %vm243_vm0, %v804_v5  ;;  %v5992_v17 = vld [vmem:[#allocation3 + $0x40] sm:$0xf]  ;;  %v5993_v15 = vld [vmem:[#allocation3 + $0x44] sm:$0x1] }
 0x2c2   : > { %v3505_v33 = vpop.permute.xlu0 %3504  ;;  %v4484_v49 = vsel %vm4356_vm8, %v4304_v3, %v10405_v32  ;;  %v10451_v3 = vrot.slane %v14537_v18, 9  ;;  %835 = vst.msk [vmem:[#allocation4 + $0xf0] sm:$0xf] %vm243_vm0, %v803_v56  ;;  %v6133_v14 = vshll.u32 %v5992_v17, 16  ;;  %v6137_v44 = vshrl.u32 %v5992_v17, 16 }
 0x2c3   : > { %3578 = vst.msk [vmem:[#allocation4 + $0xb8] sm:$0xf] %vm16000_vm13, %v3505_v33  ;;  %v4634_v62 = vpack.c.bf16 %v4484_v49, %v4484_v49  ;;  %v10297_v11 = vld [vmem:[#allocation4 + $0xb0] sm:$0xf]  ;;  %v6817_v32 = vld [vmem:[#allocation3 + $0x2c] sm:$0x1] }
 0x2c4   : > { %v11494_v22 = vld [vmem:[#allocation5 + $0x2b0] sm:$0xf0]  ;;  %v7407_v33 = vsel %vm12025_vm3, %v10451_v3, %v7406_v41  ;;  %v6143_v53 = vshll.u32 %v5993_v15, 16  ;;  %v6904_v9 = vshll.u32 %v6817_v32, 16  ;;  %v5157_v23 = vld [vmem:[#allocation3 + $0x28] sm:$0xf] }
 0x2c5   : > { %v10802_v31 = vor.u32 %v11494_v22, %v10801_v37  ;;  %v4802_v55 = vshrl.u32 %v4634_v62, 16  ;;  %v4805_v63 = vshll.u32 %v4634_v62, 16  ;;  %v6131_v37 = vrot.slane %v6130_v27, 4  ;;  %7548 = vst [vmem:[#allocation5 + $0x20] sm:$0xf] %v7407_v33 }
 0x2c6   : > { %v6135_v62 = vrot.slane %v6133_v14, 5  ;;  %v6139_v22 = vrot.slane %v6137_v44, 4  ;;  %v5270_v3 = vrot.slane %v5268_v38, 4  ;;  %v5158_v58 = vld [vmem:[#allocation3 + $0x2c] sm:$0x1]  ;;  %v5277_v47 = vshll.u32 %v5157_v23, 16 }
 0x2c7   : > { %9287 = vmatmul.bf16.gmra.mxu1 %v10802_v31  ;;  %v1671_v61 = vpop.permute.xlu1 %1670  ;;  %v11806_v6 = vpop.eup %11805  ;;  %v14546_v59 = vrot.slane %v4802_v55, 7  ;;  %v5038_v55 = vld [vmem:[#allocation3 + $0x80] sm:$0x1]  ;;  %v6145_v60 = vrot.slane %v6143_v53, 5  ;;  %v6906_v38 = vrot.slane %v6904_v9, 5  ;;  %vm16003_vm8 = vcmask 781952  }
 0x2c8   : > { %1738 = vst.msk [vmem:[#allocation4 + $0xe8] sm:$0xf] %vm16001_vm15, %v1671_v61  ;;  %v10406_v24 = vadd.f32 -1.0, %v11806_v6  ;;  %v6136_v36 = vsel %vm12051_vm6, %v6131_v37, %v6135_v62  ;;  %v6140_v25 = vor.u32 %v6139_v22, %v6135_v62  ;;  %vm16004_vm13 = vmmov %vm16003_vm8  ;;  %v7310_v53 = vld [vmem:[#allocation3 + $0x20] sm:$0x1]  ;;  %vm16005_vm15 = vcmask 1044352  }
 0x2c9   : > { %v4807_v26 = vor.u32 %v4805_v63, %v14546_v59  ;;  %v2425_v7 = vpop.permute.xlu2 %2424  ;;  %v4808_v18 = vrot.slane %v14546_v59, 4  ;;  %6451 = vst [vmem:[#allocation5 + $0x130] sm:$0xf] %v6136_v36  ;;  %v5281_v59 = vshrl.u32 %v5157_v23, 16  ;;  %v7408_v23 = vrot.slane %v7406_v41, 4 }
 0x2ca   : > { %v1669_v12 = vpop.permute.xlu0 %1668  ;;  %v11390_v43 = vld [vmem:[#allocation4 + $0xb4] sm:$0xf0]  ;;  %v4485_v28 = vsel %vm4357_vm10, %v14526_v8, %v10406_v24  ;;  %v6897_v8 = vsel %vm12051_vm6, %v6892_v50, %v6896_v46  ;;  %v6141_v35 = vrot.slane %v6140_v25, 4  ;;  %v10479_v50 = vld [vmem:[#allocation5 + $0x2c] sm:$0xf0]  ;;  %vm16006_vm10 = vmmov %vm16005_vm15 }
 0x2cb   : > { %1737 = vst.msk [vmem:[#allocation4 + $0xe0] sm:$0xf] %vm16002_vm2, %v1669_v12  ;;  %v10298_v13 = vor.u32 %v11390_v43, %v10297_v11  ;;  %v5035_v39 = vsel %vm13272_vm11, %v4807_v26, %v5034_v2  ;;  %v4635_v48 = vpack.c.bf16 %v4485_v28, %v4485_v28  ;;  %v5273_v2 = vrot.slane %v5271_v54, 5 }
 0x2cc   : > { %1930 = vst.msk [vmem:[#allocation4 + $0xe0] sm:$0xf] %vm1901_vm5, %v1862_v19  ;;  %v6900_v19 = vrot.slane %v6898_v29, 4  ;;  %v5279_v12 = vrot.slane %v5277_v47, 5  ;;  %v6146_v43 = vsel %vm12051_vm6, %v6141_v35, %v6145_v60  ;;  %v5283_v27 = vrot.slane %v5281_v59, 4 }
 0x2cd   : > { %5036 = vst [vmem:[#allocation3 + $0x78] sm:$0xf] %v5035_v39  ;;  %4223 = vmatmul.bf16.gmra.mxu0 %v10298_v13  ;;  %v4810_v49 = vshrl.u32 %v4635_v48, 16  ;;  %v4813_v40 = vshll.u32 %v4635_v48, 16  ;;  %v5274_v26 = vor.u32 %v5273_v2, %v5270_v3  ;;  %v5287_v29 = vshll.u32 %v5158_v58, 16 }
 0x2ce   : > { %7278 = vst [vmem:[#allocation5 + $0x64] sm:$0xf] %v6897_v8  ;;  %v6901_v31 = vor.u32 %v6900_v19, %v6896_v46  ;;  %v5284_v46 = vor.u32 %v5283_v27, %v5279_v12  ;;  %v11409_v39 = vld [vmem:[#allocation5 + $0xc] sm:$0xf]  ;;  %v5929_v2 = vld [vmem:[#allocation3 + $0x60] sm:$0xf]  ;;  %v14603_v27 = vpop.f32.mrf.mxu2 }
 0x2cf   : > { %v2423_v10 = vpop.permute.xlu1 %2422  ;;  %v4812_v20 = vrot.slane %v4810_v49, 7  ;;  %6452 = vst [vmem:[#allocation5 + $0x154] sm:$0xf] %v6146_v43  ;;  %v5275_v48 = vrot.slane %v5274_v26, 4  ;;  %v5289_v14 = vrot.slane %v5287_v29, 5  ;;  %v10482_v44 = vor.u32 %v11409_v39, %v10479_v50 }
 0x2d0   : > { %2491 = vst.msk [vmem:[#allocation4 + $0xe0] sm:$0xf] %vm2462_vm7, %v2423_v10  ;;  %v6902_v6 = vrot.slane %v6901_v31, 4  ;;  %v5994_v35 = vld [vmem:[#allocation3 + $0x48] sm:$0xf]  ;;  %vm16007_vm2 = vcmask 257152  }
 0x2d1   : > { %v4815_v61 = vor.u32 %v4813_v40, %v4812_v20  ;;  %v4817_v11 = vrot.slane %v4812_v20, 4  ;;  %v2954_v28 = vpop.permute.xlu2 %2953  ;;  %v5280_v32 = vsel %vm12051_vm6, %v5275_v48, %v5279_v12  ;;  %v4546_v20 = vld [vmem:[#allocation3 + $0x9c] sm:$0x1]  ;;  %5961 = vst [vmem:[#allocation5 + $0x204] sm:$0xf] %v5929_v2  ;;  %v6151_v59 = vshll.u32 %v5994_v35, 16 }
 0x2d2   : > { %v1864_v5 = vpop.permute.xlu0 %1863  ;;  %v6907_v13 = vsel %vm12051_vm6, %v6902_v6, %v6906_v38  ;;  %5617 = vst [vmem:[#allocation5 + $0xdc] sm:$0xf] %v5280_v32  ;;  %v4547_v3 = vsel %vm13070_vm9, 0, %v4546_v20  ;;  %v6148_v6 = vshrl.u32 %v5994_v35, 16  ;;  %v11418_v26 = vld [vmem:[#allocation5 + $0x54] sm:$0xf] }
 0x2d3   : > { %1931 = vst.msk [vmem:[#allocation4 + $0xe8] sm:$0xf] %vm1901_vm5, %v1864_v5  ;;  %v4816_v63 = vsel %vm12168_vm14, %v4808_v18, %v4815_v61  ;;  %v5039_v56 = vsel %vm13070_vm9, %v4817_v11, %v5038_v55  ;;  %v14594_v55 = vpop.f32.mrf.mxu1  ;;  %v7409_v61 = vrot.slane %v7310_v53, 5  ;;  %v6752_v11 = vld [vmem:[#allocation3 + $0x30] sm:$0xf] }
 0x2d4   : > { %2492 = vst.msk [vmem:[#allocation4 + $0xe8] sm:$0xf] %vm2462_vm7, %v2425_v7  ;;  %v5103_v24 = vld [vmem:[#allocation3 + $0x78] sm:$0xf]  ;;  %v5285_v7 = vrot.slane %v5284_v46, 4 }
 0x2d5   : > { %5037 = vst [vmem:[#allocation3 + $0x7c] sm:$0xf] %v4816_v63  ;;  %v5673_v15 = vld [vmem:[#allocation3 + $0x78] sm:$0xe]  ;;  %v6818_v5 = vld [vmem:[#allocation3 + $0x30] sm:$0xf]  ;;  %v7410_v63 = vsel %vm12025_vm3, %v7408_v23, %v7409_v61 }
 0x2d6   : > { %5040 = vst [vmem:[#allocation3 + $0x80] sm:$0x1] %v5039_v56  ;;  %v5290_v18 = vsel %vm12051_vm6, %v5285_v7, %v5289_v14  ;;  %v10429_v37 = vrot.slane %v5673_v15, 9  ;;  %v6909_v47 = vshrl.u32 %v6818_v5, 16  ;;  %v6912_v1 = vshll.u32 %v6818_v5, 16 }
 0x2d7   : > { %v2762_v54 = vpop.permute.xlu1 %2761  ;;  %5135 = vst [vmem:[#allocation5 + $0x2d0] sm:$0xf] %v5103_v24  ;;  %v10515_v24 = vld [vmem:[#allocation5 + $0x74] sm:$0xf0]  ;;  %v4601_v39 = vld [vmem:[#allocation3 + $0xa4] sm:$0x1] }
 0x2d8   : > { %2829 = vst.msk [vmem:[#allocation4 + $0xe8] sm:$0xf] %vm16003_vm8, %v2762_v54  ;;  %v6911_v12 = vrot.slane %v6909_v47, 4  ;;  %v6914_v43 = vrot.slane %v6912_v1, 5  ;;  %v6150_v54 = vrot.slane %v6148_v6, 4  ;;  %vm16008_vm8 = vmmov %vm16007_vm2  ;;  %v10518_v15 = vor.u32 %v11418_v26, %v10515_v24  ;;  %v14619_v24 = vpop.f32.mrf.mxu2 }
 0x2d9   : > { %7279 = vst [vmem:[#allocation5 + $0x88] sm:$0xf] %v6907_v13  ;;  %v3517_v31 = vpop.permute.xlu2 %3516  ;;  %v5930_v48 = vld [vmem:[#allocation3 + $0x64] sm:$0xf]  ;;  %v4602_v14 = vsel %vm13132_vm4, 0, %v4601_v39 }
 0x2da   : > { %v2760_v17 = vpop.permute.xlu0 %2759  ;;  %5618 = vst [vmem:[#allocation5 + $0x100] sm:$0xf] %v5290_v18  ;;  %v6915_v18 = vor.u32 %v6914_v43, %v6911_v12  ;;  %v6753_v53 = vld [vmem:[#allocation3 + $0x34] sm:$0xf]  ;;  %v6820_v5 = vld [vmem:[#allocation3 + $0x38] sm:$0x1] }
 0x2db   : > { %2828 = vst.msk [vmem:[#allocation4 + $0xe0] sm:$0xf] %vm16004_vm13, %v2760_v17  ;;  %v5159_v17 = vld [vmem:[#allocation3 + $0x30] sm:$0xf]  ;;  %vm16009_vm13 = vcmask 388352   ;;  %v6928_v43 = vshll.u32 %v6820_v5, 16 }
 0x2dc   : > { %3022 = vst.msk [vmem:[#allocation4 + $0xe0] sm:$0xf] %vm2993_vm12, %v2954_v28  ;;  %v5104_v8 = vld [vmem:[#allocation3 + $0x7c] sm:$0xf]  ;;  %v6153_v28 = vrot.slane %v6151_v59, 5 }
 0x2dd   : > { %v5674_v33 = vld [vmem:[#allocation3 + $0x7c] sm:$0xf]  ;;  %9331 = vmatmul.bf16.vlgmr.msrb.gmra.mxu0 %v10482_v44  ;;  %5136 = vst [vmem:[#allocation5 + $0x2f4] sm:$0xf] %v5104_v8  ;;  %v5675_v49 = vld [vmem:[#allocation3 + $0x80] sm:$0x1]  ;;  %v14608_v44 = vpop.f32.mrf.mxu1 }
 0x2de   : > { %v5811_v19 = vrot.slane %v5674_v33, 5  ;;  %v5814_v22 = vrot.slane %v5675_v49, 5  ;;  %v10829_v25 = vld [vmem:[#allocation5 + $0x2d0] sm:$0xf]  ;;  %4548 = vst [vmem:[#allocation3 + $0x9c] sm:$0x1] %v4547_v3  ;;  %v6154_v33 = vor.u32 %v6153_v28, %v6150_v54 }
 0x2df   : > { %v3515_v40 = vpop.permute.xlu1 %3514  ;;  %6784 = vst [vmem:[#allocation5 + $0xa8] sm:$0xf] %v6752_v11  ;;  %v5995_v8 = vld [vmem:[#allocation3 + $0x4c] sm:$0xf]  ;;  %v5292_v49 = vshrl.u32 %v5159_v17, 16  ;;  %v6916_v3 = vrot.slane %v6915_v18, 4 }
 0x2e0   : > { %v5812_v10 = vsel %vm12025_vm3, %v10429_v37, %v5811_v19  ;;  %v5813_v62 = vrot.slane %v5811_v19, 4  ;;  %3583 = vst.msk [vmem:[#allocation4 + $0xe0] sm:$0xf] %vm16005_vm15, %v3515_v40  ;;  %v5295_v37 = vshll.u32 %v5159_v17, 16  ;;  %v5996_v19 = vld [vmem:[#allocation3 + $0x50] sm:$0x1]  ;;  %vm16010_vm15 = vmmov %vm16009_vm13 }
 0x2e1   : > { %5903 = vst [vmem:[#allocation5 + $0x2d8] sm:$0xf] %v5812_v10  ;;  %v1673_v46 = vpop.permute.xlu2 %1672  ;;  %v6157_v40 = vshll.u32 %v5995_v8, 16  ;;  %v6161_v10 = vshrl.u32 %v5995_v8, 16  ;;  %v6819_v23 = vld [vmem:[#allocation3 + $0x34] sm:$0xf] }
 0x2e2   : > { %v5815_v9 = vsel %vm12025_vm3, %v5813_v62, %v5814_v22  ;;  %v2956_v36 = vpop.permute.xlu0 %2955  ;;  %7549 = vst [vmem:[#allocation5 + $0x44] sm:$0xf] %v7410_v63  ;;  %v6167_v22 = vshll.u32 %v5996_v19, 16  ;;  %v6918_v2 = vshll.u32 %v6819_v23, 16  ;;  %v5294_v47 = vrot.slane %v5292_v49, 4 }
 0x2e3   : > { %5904 = vst [vmem:[#allocation5 + $0x2fc] sm:$0xf] %v5815_v9  ;;  %v6163_v9 = vrot.slane %v6161_v10, 4  ;;  %v5297_v1 = vrot.slane %v5295_v37, 5  ;;  %v4540_v6 = vld [vmem:[#allocation3 + $0x84] sm:$0x1] }
 0x2e4   : > { %3023 = vst.msk [vmem:[#allocation4 + $0xe8] sm:$0xf] %vm2993_vm12, %v2956_v36  ;;  %v11502_v58 = vld [vmem:[#allocation5 + $0x2f0] sm:$0xf0]  ;;  %v6169_v63 = vrot.slane %v6167_v22, 5  ;;  %v6930_v8 = vrot.slane %v6928_v43, 5 }
 0x2e5   : > { %3584 = vst.msk [vmem:[#allocation4 + $0xe8] sm:$0xf] %vm16006_vm10, %v3517_v31  ;;  %v10830_v41 = vor.u32 %v11502_v58, %v10829_v25  ;;  %v6159_v31 = vrot.slane %v6157_v40, 5  ;;  %v6155_v25 = vrot.slane %v6154_v33, 4  ;;  %v6922_v58 = vshrl.u32 %v6819_v23, 16 }
 0x2e6   : > { %4603 = vst [vmem:[#allocation3 + $0xa4] sm:$0x1] %v4602_v14  ;;  %v5160_v26 = vld [vmem:[#allocation3 + $0x34] sm:$0xf]  ;;  %v5298_v28 = vor.u32 %v5297_v1, %v5294_v47  ;;  %v7311_v5 = vld [vmem:[#allocation3 + $0x24] sm:$0xe] }
 0x2e7   : > { %9114 = vmatmul.bf16.gmra.mxu2 %v10830_v41  ;;  %v1335_v56 = vpop.permute.xlu1 %1334  ;;  %v10321_v60 = vld [vmem:[#allocation4 + $0xe0] sm:$0xf]  ;;  %5962 = vst [vmem:[#allocation5 + $0x228] sm:$0xf] %v5930_v48  ;;  %v6164_v11 = vor.u32 %v6163_v9, %v6159_v31  ;;  %v6160_v59 = vsel %vm12051_vm6, %v6155_v25, %v6159_v31  ;;  %v6924_v12 = vrot.slane %v6922_v58, 4  ;;  %v5305_v33 = vshrl.u32 %v5160_v26, 16 }
 0x2e8   : > { %1400 = vst.msk [vmem:[#allocation4 + $0xf8] sm:$0xf] %vm16007_vm2, %v1335_v56  ;;  %v10837_v38 = vld [vmem:[#allocation5 + $0x2d8] sm:$0xf]  ;;  %v6920_v56 = vrot.slane %v6918_v2, 5  ;;  %v5299_v37 = vrot.slane %v5298_v28, 4  ;;  %v14646_v2 = vpop.f32.mrf.mxu2 }
 0x2e9   : > { %6785 = vst [vmem:[#allocation5 + $0xcc] sm:$0xf] %v6753_v53  ;;  %v1868_v35 = vpop.permute.xlu2 %1867  ;;  %v11427_v49 = vld [vmem:[#allocation5 + $0x9c] sm:$0xf]  ;;  %vm16013_vm2 = vcmask 1044352  }
 0x2ea   : > { %v11503_v29 = vld [vmem:[#allocation5 + $0x2f8] sm:$0xf0]  ;;  %v1333_v13 = vpop.permute.xlu0 %1332  ;;  %6453 = vst [vmem:[#allocation5 + $0x178] sm:$0xf] %v6160_v59  ;;  %v6921_v39 = vsel %vm12051_vm6, %v6916_v3, %v6920_v56  ;;  %v6925_v48 = vor.u32 %v6924_v12, %v6920_v56  ;;  %v10452_v56 = vrot.slane %v7311_v5, 9 }
 0x2eb   : > { %v10838_v50 = vor.u32 %v11503_v29, %v10837_v38  ;;  %1399 = vst.msk [vmem:[#allocation4 + $0xf0] sm:$0xf] %vm16008_vm8, %v1333_v13  ;;  %v6165_v38 = vrot.slane %v6164_v11, 4  ;;  %v4595_v29 = vld [vmem:[#allocation3 + $0x8c] sm:$0x1] }
 0x2ec   : > { %v11396_v7 = vld [vmem:[#allocation4 + $0xe4] sm:$0xf0]  ;;  %1739 = vst.msk [vmem:[#allocation4 + $0xf0] sm:$0xf] %vm16009_vm13, %v1673_v46  ;;  %v4596_v46 = vsel %vm13132_vm4, 0, %v4595_v29  ;;  %v11590_v29 = vld [vmem:[#allocation6 + $0x130] sm:$0xff]  ;;  %vm16014_vm13 = vmmov %vm16013_vm2 }
 0x2ed   : > { %9292 = vmatmul.bf16.gmra.mxu1 %v10838_v50  ;;  %v10322_v32 = vor.u32 %v11396_v7, %v10321_v60  ;;  %9336 = vmatmul.bf16.gmra.mxu0 %v10518_v15  ;;  %v4541_v60 = vsel %vm13070_vm9, 0, %v4540_v6  ;;  %v6170_v54 = vsel %vm12051_vm6, %v6165_v38, %v6169_v63  ;;  %v10551_v50 = vld [vmem:[#allocation5 + $0xbc] sm:$0xf0]  ;;  %v5301_v7 = vshll.u32 %v5160_v26, 16  ;;  %4597 = vst [vmem:[#allocation3 + $0x8c] sm:$0x1] %v4596_v46 }
 0x2ee   : > { %4542 = vst [vmem:[#allocation3 + $0x84] sm:$0x1] %v4541_v60  ;;  %v5161_v15 = vld [vmem:[#allocation3 + $0x38] sm:$0x1]  ;;  %v3629_v38 = vld [vmem:[#allocation2 + $0xc0] sm:$0xe] }
 0x2ef   : > { %4238 = vmatmul.bf16.gmra.mxu3 %v10322_v32  ;;  %v1866_v62 = vpop.permute.xlu1 %1865  ;;  %6454 = vst [vmem:[#allocation5 + $0x19c] sm:$0xf] %v6170_v54  ;;  %v6926_v32 = vrot.slane %v6925_v48, 4  ;;  %v5303_v19 = vrot.slane %v5301_v7, 5  ;;  %v5311_v23 = vshll.u32 %v5161_v15, 16 }
 0x2f0   : > { %v4229_v20 = vpop.f32.mrf.mxu3  ;;  %1932 = vst.msk [vmem:[#allocation4 + $0xf0] sm:$0xf] %vm1901_vm5, %v1866_v62  ;;  %v10554_v62 = vor.u32 %v11427_v49, %v10551_v50  ;;  %v3630_v26 = vld [vmem:[#allocation2 + $0xc4] sm:$0xf]  ;;  %v3631_v54 = vld [vmem:[#allocation2 + $0xc8] sm:$0x1] }
 0x2f1   : > { %v4230_v36 = vadd.f32 %v14503_v45, %v4229_v20  ;;  %7280 = vst [vmem:[#allocation5 + $0xac] sm:$0xf] %v6921_v39  ;;  %v2764_v22 = vpop.permute.xlu2 %2763  ;;  %v6931_v53 = vsel %vm12051_vm6, %v6926_v32, %v6930_v8  ;;  %v5307_v20 = vrot.slane %v5305_v33, 4  ;;  %v5304_v9 = vsel %vm12051_vm6, %v5299_v37, %v5303_v19  ;;  %v5055_v7 = vld [vmem:[#allocation3 + $0x9c] sm:$0xf]  ;;  %v14673_v37 = vpop.f32.mrf.mxu2 }
 0x2f2   : > { %v1675_v61 = vpop.permute.xlu0 %1674  ;;  %7281 = vst [vmem:[#allocation5 + $0xd0] sm:$0xf] %v6931_v53  ;;  %v5313_v59 = vrot.slane %v5311_v23, 5  ;;  %v10205_v50 = vrot.slane %v3629_v38, 9  ;;  %v3783_v46 = vrot.slane %v3630_v26, 5  ;;  %v3786_v39 = vrot.slane %v3631_v54, 5 }
 0x2f3   : > { %v14614_v41 = vadd.f32 %v14594_v55, %v4230_v36  ;;  %1740 = vst.msk [vmem:[#allocation4 + $0xf8] sm:$0xf] %vm16010_vm15, %v1675_v61  ;;  %v14643_v36 = vld [vmem:[#allocation3 + $0x28] sm:$0xf]  ;;  %v5308_v3 = vor.u32 %v5307_v20, %v5303_v19  ;;  %v11436_v23 = vld [vmem:[#allocation5 + $0xe4] sm:$0xf] }
 0x2f4   : > { %1933 = vst.msk [vmem:[#allocation4 + $0xf8] sm:$0xf] %vm1901_vm5, %v1868_v35  ;;  %vm16011_vm5 = vcmask 781952   ;;  %v7413_v1 = vrot.slane %v14643_v36, 5  ;;  %v3784_v8 = vsel %vm12025_vm3, %v10205_v50, %v3783_v46  ;;  %v3785_v33 = vrot.slane %v3783_v46, 4 }
 0x2f5   : > { %v4418_v55 = vmul.f32 1.442695, %v14614_v41  ;;  %v5309_v47 = vrot.slane %v5308_v3, 4  ;;  %5619 = vst [vmem:[#allocation5 + $0x124] sm:$0xf] %v5304_v9  ;;  %vm16012_vm10 = vmmov %vm16011_vm5 }
 0x2f6   : > { %v7414_v28 = vsel %vm12025_vm3, %v10452_v56, %v7413_v1  ;;  %3855 = vst.msk [vmem:[#allocation4 + $0xe4] sm:$0xf] %vm243_vm0, %v3784_v8  ;;  %v7313_v9 = vld [vmem:[#allocation3 + $0x2c] sm:$0x1]  ;;  %v7415_v36 = vrot.slane %v7413_v1, 4 }
 0x2f7   : > { %11807 = vpow2.f32 %v4418_v55  ;;  %v2429_v13 = vpop.permute.xlu1 %2428  ;;  %v5314_v55 = vsel %vm12051_vm6, %v5309_v47, %v5313_v59  ;;  %7550 = vst [vmem:[#allocation5 + $0x68] sm:$0xf] %v7414_v28  ;;  %v6754_v5 = vld [vmem:[#allocation3 + $0x3c] sm:$0xf]  ;;  %v5997_v47 = vld [vmem:[#allocation3 + $0x54] sm:$0xf] }
 0x2f8   : > { %v4231_v17 = vpop.f32.mrf.mxu3  ;;  %2494 = vst.msk [vmem:[#allocation4 + $0xf8] sm:$0xf] %vm2462_vm7, %v2429_v13  ;;  %v6821_v56 = vld [vmem:[#allocation3 + $0x3c] sm:$0xf]  ;;  %v5059_v1 = vld [vmem:[#allocation3 + $0xa4] sm:$0x1] }
 0x2f9   : > { %v4232_v14 = vadd.f32 %v14503_v45, %v4231_v17  ;;  %5620 = vst [vmem:[#allocation5 + $0x148] sm:$0xf] %v5314_v55  ;;  %v6936_v46 = vshll.u32 %v6821_v56, 16 }
 0x2fa   : > { %v2427_v18 = vpop.permute.xlu0 %2426  ;;  %6786 = vst [vmem:[#allocation5 + $0xf0] sm:$0xf] %v6754_v5 }
 0x2fb   : > { %v14634_v40 = vadd.f32 %v14608_v44, %v4232_v14  ;;  %2493 = vst.msk [vmem:[#allocation4 + $0xf0] sm:$0xf] %vm2462_vm7, %v2427_v18  ;;  %v4219_v10 = vpop.f32.mrf.mxu0  ;;  %vm4362_vm7 = vcmp.gt.f32.partialorder %v14614_v41, 0.0 }
 0x2fc   : > { %v4220_v31 = vadd.f32 %v14503_v45, %v4219_v10  ;;  %2830 = vst.msk [vmem:[#allocation4 + $0xf0] sm:$0xf] %vm16011_vm5, %v2764_v22  ;;  %v10587_v10 = vld [vmem:[#allocation5 + $0x104] sm:$0xf0] }
 0x2fd   : > { %v11808_v44 = vpop.eup %11807  ;;  %v4420_v25 = vmul.f32 1.442695, %v14634_v40  ;;  %9341 = vmatmul.bf16.gmra.mxu0 %v10554_v62  ;;  %v3787_v62 = vsel %vm12025_vm3, %v3785_v33, %v3786_v39  ;;  %v10590_v3 = vor.u32 %v11436_v23, %v10587_v10  ;;  %v3632_v10 = vld [vmem:[#allocation2 + $0xcc] sm:$0xe] }
 0x2fe   : > { %v10411_v61 = vadd.f32 -1.0, %v11808_v44  ;;  %v14649_v11 = vadd.f32 %v14443_v51, %v4220_v31  ;;  %v11591_v51 = vld [vmem:[#allocation6 + $0x138] sm:$0xff]  ;;  %3856 = vst.msk [vmem:[#allocation4 + $0xec] sm:$0xf] %vm243_vm0, %v3787_v62  ;;  %v11589_v31 = vld [vmem:[#allocation6 + $0x128] sm:$0xff] }
 0x2ff   : > { %11809 = vpow2.f32 %v4420_v25  ;;  %v2958_v58 = vpop.permute.xlu1 %2957  ;;  %9412 = vmatpush.bf16.msrb.mxu2 %v11591_v51  ;;  %v6175_v51 = vshll.u32 %v5997_v47, 16  ;;  %v3633_v62 = vld [vmem:[#allocation2 + $0xd0] sm:$0xf] }
 0x300   : > { %v4490_v35 = vsel %vm4362_vm7, %v14614_v41, %v10411_v61  ;;  %v4410_v6 = vmul.f32 1.442695, %v14649_v11  ;;  %3024 = vst.msk [vmem:[#allocation4 + $0xf0] sm:$0xf] %vm2993_vm12, %v2958_v58  ;;  %v2960_v41 = vpop.permute.xlu2 %2959  ;;  %vm4358_vm8 = vcmp.gt.f32.partialorder %v14649_v11, 0.0  ;;  %v11588_v61 = vld [vmem:[#allocation6 + $0x120] sm:$0xff] }
 0x301   : > { %v4640_v63 = vpack.c.bf16 %v4490_v35, %v4490_v35  ;;  %v7416_v35 = vrot.slane %v7313_v9, 5  ;;  %v3790_v9 = vrot.slane %v3633_v62, 5 }
 0x302   : > { %11811 = vpow2.f32 %v4410_v6  ;;  %v2766_v60 = vpop.permute.xlu0 %2765 }
 0x303   : > { %v4853_v12 = vshrl.u32 %v4640_v63, 16  ;;  %2831 = vst.msk [vmem:[#allocation4 + $0xf8] sm:$0xf] %vm16012_vm10, %v2766_v60  ;;  %v4221_v43 = vpop.f32.mrf.mxu0  ;;  %v4856_v15 = vshll.u32 %v4640_v63, 16  ;;  %9413 = vmatpush.bf16.msrb.mxu2 %v11590_v29  ;;  %v6172_v63 = vshrl.u32 %v5997_v47, 16  ;;  %v14689_v29 = vpop.f32.mrf.mxu2 }
 0x304   : > { %v4222_v13 = vadd.f32 %v14503_v45, %v4221_v43  ;;  %3025 = vst.msk [vmem:[#allocation4 + $0xf8] sm:$0xf] %vm2993_vm12, %v2960_v41  ;;  %vm4363_vm12 = vcmp.gt.f32.partialorder %v14634_v40, 0.0  ;;  %v6933_v43 = vshrl.u32 %v6821_v56, 16  ;;  %v5999_v47 = vld [vmem:[#allocation3 + $0x5c] sm:$0x1] }
 0x305   : > { %v11810_v48 = vpop.eup %11809  ;;  %v14663_v17 = vrot.slane %v4853_v12, 7  ;;  %v11587_v12 = vld [vmem:[#allocation6 + $0x118] sm:$0xff]  ;;  %v6174_v50 = vrot.slane %v6172_v63, 4  ;;  %v11445_v63 = vld [vmem:[#allocation5 + $0x12c] sm:$0xf] }
 0x306   : > { %v10412_v14 = vadd.f32 -1.0, %v11810_v48  ;;  %v14666_v32 = vadd.f32 %v14462_v0, %v4222_v13  ;;  %v6822_v56 = vld [vmem:[#allocation3 + $0x40] sm:$0xf] }
 0x307   : > { %v4858_v45 = vor.u32 %v4856_v15, %v14663_v17  ;;  %v3521_v18 = vpop.permute.xlu1 %3520  ;;  %9414 = vmatpush.bf16.msrb.mxu2 %v11589_v31  ;;  %v4859_v38 = vrot.slane %v14663_v17, 4  ;;  %v5041_v17 = vld [vmem:[#allocation3 + $0x84] sm:$0xf]  ;;  %v10206_v31 = vrot.slane %v3632_v10, 9  ;;  %v14717_v10 = vld [vmem:[#allocation3 + $0x10] sm:$0xf] }
 0x308   : > { %v11812_v49 = vpop.eup %11811  ;;  %v4491_v19 = vsel %vm4363_vm12, %v14634_v40, %v10412_v14  ;;  %v4412_v0 = vmul.f32 1.442695, %v14666_v32  ;;  %3586 = vst.msk [vmem:[#allocation4 + $0xf8] sm:$0xf] %vm16013_vm2, %v3521_v18  ;;  %vm4359_vm15 = vcmp.gt.f32.partialorder %v14666_v32, 0.0  ;;  %v6935_v18 = vrot.slane %v6933_v43, 4 }
 0x309   : > { %v5056_v22 = vsel %vm13272_vm11, %v4858_v45, %v5055_v7  ;;  %v4641_v53 = vpack.c.bf16 %v4491_v19, %v4491_v19  ;;  %v10407_v20 = vadd.f32 -1.0, %v11812_v49  ;;  %v6177_v7 = vrot.slane %v6175_v51, 5 }
 0x30a   : > { %5057 = vst [vmem:[#allocation3 + $0x9c] sm:$0xf] %v5056_v22  ;;  %11813 = vpow2.f32 %v4412_v0  ;;  %v3519_v40 = vpop.permute.xlu0 %3518  ;;  %v11586_v0 = vld [vmem:[#allocation6 + $0x110] sm:$0xff]  ;;  %v6755_v22 = vld [vmem:[#allocation3 + $0x40] sm:$0xf]  ;;  %v3791_v5 = vsel %vm12025_vm3, %v10206_v31, %v3790_v9  ;;  %v6191_v51 = vshll.u32 %v5999_v47, 16 }
 0x30b   : > { %v4861_v44 = vshrl.u32 %v4641_v53, 16  ;;  %v4486_v25 = vsel %vm4358_vm8, %v14649_v11, %v10407_v20  ;;  %3585 = vst.msk [vmem:[#allocation4 + $0xf0] sm:$0xf] %vm16014_vm13, %v3519_v40  ;;  %v4864_v59 = vshll.u32 %v4641_v53, 16  ;;  %v7417_v11 = vsel %vm12025_vm3, %v7415_v36, %v7416_v35  ;;  %9415 = vmatpush.bf16.msrb.mxu2 %v11588_v61  ;;  %v3634_v20 = vld [vmem:[#allocation2 + $0xd4] sm:$0x1] }
 0x30c   : > { %v4636_v58 = vpack.c.bf16 %v4486_v25, %v4486_v25  ;;  %7551 = vst [vmem:[#allocation5 + $0x8c] sm:$0xf] %v7417_v11  ;;  %v6938_v53 = vrot.slane %v6936_v46, 5  ;;  %v6178_v40 = vor.u32 %v6177_v7, %v6174_v50  ;;  %v3793_v25 = vrot.slane %v3634_v20, 5  ;;  %v5045_v61 = vld [vmem:[#allocation3 + $0x8c] sm:$0x1] }
 0x30d   : > { %v4863_v6 = vrot.slane %v4861_v44, 7  ;;  %9346 = vmatmul.bf16.gmra.mxu0 %v10590_v3  ;;  %v10623_v44 = vld [vmem:[#allocation5 + $0x14c] sm:$0xf0]  ;;  %v5998_v3 = vld [vmem:[#allocation3 + $0x58] sm:$0xf]  ;;  %v6946_v46 = vshrl.u32 %v6822_v56, 16 }
 0x30e   : > { %v4819_v60 = vshrl.u32 %v4636_v58, 16  ;;  %v4822_v28 = vshll.u32 %v4636_v58, 16  ;;  %v3792_v58 = vrot.slane %v3790_v9, 4  ;;  %v6181_v35 = vshll.u32 %v5998_v3, 16  ;;  %3857 = vst.msk [vmem:[#allocation4 + $0xf4] sm:$0xf] %vm243_vm0, %v3791_v5 }
 0x30f   : > { %v4866_v26 = vor.u32 %v4864_v59, %v4863_v6  ;;  %v4868_v55 = vrot.slane %v4863_v6, 4  ;;  %v11398_v13 = vld [vmem:[#allocation4 + $0xf4] sm:$0xf0]  ;;  %9416 = vmatpush.bf16.msrb.mxu2 %v11587_v12  ;;  %v6185_v6 = vshrl.u32 %v5998_v3, 16  ;;  %v6179_v11 = vrot.slane %v6178_v40, 4 }
 0x310   : > { %v11814_v41 = vpop.eup %11813  ;;  %v14691_v54 = vrot.slane %v4819_v60, 7  ;;  %v3794_v60 = vsel %vm12025_vm3, %v3792_v58, %v3793_v25  ;;  %6787 = vst [vmem:[#allocation5 + $0x114] sm:$0xf] %v6755_v22  ;;  %v11395_v7 = vld [vmem:[#allocation4 + $0xe4] sm:$0xf] }
 0x311   : > { %v4867_v39 = vsel %vm12168_vm14, %v4859_v38, %v4866_v26  ;;  %v5060_v48 = vsel %vm13070_vm9, %v4868_v55, %v5059_v1  ;;  %v10408_v15 = vadd.f32 -1.0, %v11814_v41  ;;  %v6939_v1 = vor.u32 %v6938_v53, %v6935_v18  ;;  %v14708_v55 = vpop.f32.mrf.mxu2  ;;  %3858 = vst.msk [vmem:[#allocation4 + $0xfc] sm:$0xf] %vm243_vm0, %v3794_v60  ;;  %v6823_v41 = vld [vmem:[#allocation3 + $0x44] sm:$0x1] }
 0x312   : > { %5058 = vst [vmem:[#allocation3 + $0xa0] sm:$0xf] %v4867_v39  ;;  %v4824_v14 = vor.u32 %v4822_v28, %v14691_v54  ;;  %v10329_v8 = vld [vmem:[#allocation4 + $0xf0] sm:$0xf]  ;;  %v6183_v38 = vrot.slane %v6181_v35, 5  ;;  %v6187_v26 = vrot.slane %v6185_v6, 4  ;;  %v10626_v28 = vor.u32 %v11445_v63, %v10623_v44 }
 0x313   : > { %5061 = vst [vmem:[#allocation3 + $0xa4] sm:$0x1] %v5060_v48  ;;  %v4487_v33 = vsel %vm4359_vm15, %v14666_v32, %v10408_v15  ;;  %v10330_v45 = vor.u32 %v11398_v13, %v10329_v8  ;;  %v4825_v32 = vrot.slane %v14691_v54, 4  ;;  %9417 = vmatpush.bf16.msrb.mxu2 %v11586_v0  ;;  %v6942_v54 = vshll.u32 %v6822_v56, 16  ;;  %v5162_v39 = vld [vmem:[#allocation3 + $0x3c] sm:$0xf] }
 0x314   : > { %v5042_v49 = vsel %vm13272_vm11, %v4824_v14, %v5041_v17  ;;  %v4637_v19 = vpack.c.bf16 %v4487_v33, %v4487_v33  ;;  %16015 = vst [vmem:[#allocation11_spill] sm:$0xff] %v14708_v55  ;;  %v6184_v13 = vsel %vm12051_vm6, %v6179_v11, %v6183_v38  ;;  %v6188_v50 = vor.u32 %v6187_v26, %v6183_v38  ;;  %v5163_v48 = vld [vmem:[#allocation3 + $0x40] sm:$0xf]  ;;  %v10323_v14 = vld [vmem:[#allocation4 + $0xe8] sm:$0xf0] }
 0x315   : > { %5043 = vst [vmem:[#allocation3 + $0x84] sm:$0xf] %v5042_v49  ;;  %4243 = vmatmul.bf16.gmra.mxu3 %v10330_v45  ;;  %v6193_v33 = vrot.slane %v6191_v51, 5  ;;  %v6940_v45 = vrot.slane %v6939_v1, 4  ;;  %v6944_v49 = vrot.slane %v6942_v54, 5  ;;  %v6952_v0 = vshll.u32 %v6823_v41, 16 }
 0x316   : > { %v4827_v23 = vshrl.u32 %v4637_v19, 16  ;;  %v4830_v36 = vshll.u32 %v4637_v19, 16  ;;  %6455 = vst [vmem:[#allocation5 + $0x1c0] sm:$0xf] %v6184_v13  ;;  %v6189_v18 = vrot.slane %v6188_v50, 4  ;;  %v6948_v19 = vrot.slane %v6946_v46, 4 }
 0x317   : > { %v5316_v62 = vshrl.u32 %v5162_v39, 16  ;;  %v5319_v22 = vshll.u32 %v5162_v39, 16  ;;  %v5325_v53 = vshll.u32 %v5163_v48, 16  ;;  %v6945_v31 = vsel %vm12051_vm6, %v6940_v45, %v6944_v49  ;;  %v5164_v40 = vld [vmem:[#allocation3 + $0x44] sm:$0x1] }
 0x318   : > { %v4829_v59 = vrot.slane %v4827_v23, 7  ;;  %v6194_v20 = vsel %vm12051_vm6, %v6189_v18, %v6193_v33  ;;  %v6949_v9 = vor.u32 %v6948_v19, %v6944_v49  ;;  %v10326_v25 = vor.u32 %v11395_v7, %v10323_v14  ;;  %7282 = vst [vmem:[#allocation5 + $0xf4] sm:$0xf] %v6945_v31  ;;  %v7314_v56 = vld [vmem:[#allocation3 + $0x30] sm:$0xe]  ;;  %v14739_v19 = vpop.f32.mrf.mxu1 }
 0x319   : > { %6456 = vst [vmem:[#allocation5 + $0x1e4] sm:$0xf] %v6194_v20  ;;  %v5321_v44 = vrot.slane %v5319_v22, 5  ;;  %v5327_v5 = vrot.slane %v5325_v53, 5  ;;  %v14723_v58 = vpop.f32.mrf.mxu2  ;;  %v6573_v6 = vrot.slane %v14717_v10, 5  ;;  %v5335_v51 = vshll.u32 %v5164_v40, 16 }
 0x31a   : > { %v4832_v12 = vor.u32 %v4830_v36, %v4829_v59  ;;  %v4834_v43 = vrot.slane %v4829_v59, 4  ;;  %v5318_v36 = vrot.slane %v5316_v62, 4  ;;  %v6950_v3 = vrot.slane %v6949_v9, 4  ;;  %v4549_v7 = vld [vmem:[#allocation3 + $0xa8] sm:$0x1] }
 0x31b   : > { %v5337_v39 = vrot.slane %v5335_v51, 5  ;;  %v10453_v14 = vrot.slane %v7314_v56, 9  ;;  %v4550_v33 = vsel %vm13070_vm9, 0, %v4549_v7  ;;  %v7316_v18 = vld [vmem:[#allocation3 + $0x38] sm:$0x1]  ;;  %v6575_v10 = vrot.slane %v6573_v6, 4 }
 0x31c   : > { %v4833_v17 = vsel %vm12168_vm14, %v4825_v32, %v4832_v12  ;;  %v5046_v15 = vsel %vm13070_vm9, %v4834_v43, %v5045_v61  ;;  %v5105_v8 = vld [vmem:[#allocation3 + $0x84] sm:$0xf]  ;;  %v5329_v32 = vshrl.u32 %v5163_v48, 16  ;;  %v6954_v61 = vrot.slane %v6952_v0, 5  ;;  %v10659_v43 = vld [vmem:[#allocation5 + $0x194] sm:$0xf0] }
 0x31d   : > { %5044 = vst [vmem:[#allocation3 + $0x88] sm:$0xf] %v4833_v17  ;;  %9351 = vmatmul.bf16.gmra.mxu0 %v10626_v28  ;;  %v5676_v23 = vld [vmem:[#allocation3 + $0x84] sm:$0xe]  ;;  %v5322_v47 = vor.u32 %v5321_v44, %v5318_v36  ;;  %v6475_v28 = vld [vmem:[#allocation3 + $0xc] sm:$0xe] }
 0x31e   : > { %5047 = vst [vmem:[#allocation3 + $0x8c] sm:$0x1] %v5046_v15  ;;  %v5331_v35 = vrot.slane %v5329_v32, 4  ;;  %v10430_v59 = vrot.slane %v5676_v23, 9  ;;  %v6955_v63 = vsel %vm12051_vm6, %v6950_v3, %v6954_v61  ;;  %v7315_v48 = vld [vmem:[#allocation3 + $0x34] sm:$0xf] }
 0x31f   : > { %5137 = vst [vmem:[#allocation5 + $0x318] sm:$0xf] %v5105_v8  ;;  %v5323_v12 = vrot.slane %v5322_v47, 4  ;;  %v6477_v17 = vld [vmem:[#allocation3 + $0x14] sm:$0x1]  ;;  %v7420_v49 = vrot.slane %v7315_v48, 5 }
 0x320   : > { %7283 = vst [vmem:[#allocation5 + $0x118] sm:$0xf] %v6955_v63  ;;  %v5332_v11 = vor.u32 %v5331_v35, %v5327_v5  ;;  %v11454_v15 = vld [vmem:[#allocation5 + $0x174] sm:$0xf]  ;;  %v10435_v0 = vrot.slane %v6475_v28, 9  ;;  %v6576_v62 = vrot.slane %v6477_v17, 5 }
 0x321   : > { %v5328_v46 = vsel %vm12051_vm6, %v5323_v12, %v5327_v5  ;;  %v10662_v22 = vor.u32 %v11454_v15, %v10659_v43  ;;  %4551 = vst [vmem:[#allocation3 + $0xa8] sm:$0x1] %v4550_v33  ;;  %v7421_v20 = vsel %vm12025_vm3, %v10453_v14, %v7420_v49  ;;  %v7422_v31 = vrot.slane %v7420_v49, 4  ;;  %v14743_v40 = vpop.f32.mrf.mxu2  ;;  %v6756_v23 = vld [vmem:[#allocation3 + $0x48] sm:$0xf]  ;;  %v11584_v43 = vld [vmem:[#allocation6 + $0x100] sm:$0xff] }
 0x322   : > { %v5333_v54 = vrot.slane %v5332_v11, 4  ;;  %5621 = vst [vmem:[#allocation5 + $0x16c] sm:$0xf] %v5328_v46  ;;  %v7423_v9 = vrot.slane %v7316_v18, 5  ;;  %v11397_v44 = vld [vmem:[#allocation4 + $0xf4] sm:$0xf]  ;;  %v6574_v61 = vsel %vm12025_vm3, %v10435_v0, %v6573_v6  ;;  %v14751_v6 = vpop.f32.mrf.mxu1 }
 0x323   : > { %16016 = vst [vmem:[#allocation12_spill] sm:$0xff] %v14743_v40  ;;  %v10331_v5 = vld [vmem:[#allocation4 + $0xf8] sm:$0xf0]  ;;  %v6757_v28 = vld [vmem:[#allocation3 + $0x4c] sm:$0xf] }
 0x324   : > { %v5106_v1 = vld [vmem:[#allocation3 + $0x88] sm:$0xf]  ;;  %v5338_v45 = vsel %vm12051_vm6, %v5333_v54, %v5337_v39  ;;  %6788 = vst [vmem:[#allocation5 + $0x138] sm:$0xf] %v6756_v23  ;;  %v7424_v3 = vsel %vm12025_vm3, %v7422_v31, %v7423_v9  ;;  %v10334_v56 = vor.u32 %v11397_v44, %v10331_v5  ;;  %v6000_v54 = vld [vmem:[#allocation3 + $0x60] sm:$0xf] }
 0x325   : > { %v5677_v60 = vld [vmem:[#allocation3 + $0x88] sm:$0xf]  ;;  %10385 = vmatmul.msk.bf16.vlgmr.msrb.gmra.mxu3 %vm4111_vm1, %v10326_v25  ;;  %5138 = vst [vmem:[#allocation5 + $0x33c] sm:$0xf] %v5106_v1  ;;  %v5678_v38 = vld [vmem:[#allocation3 + $0x8c] sm:$0x1] }
 0x326   : > { %v5818_v26 = vrot.slane %v5677_v60, 5  ;;  %v5821_v41 = vrot.slane %v5678_v38, 5  ;;  %v10865_v53 = vld [vmem:[#allocation5 + $0x318] sm:$0xf]  ;;  %5622 = vst [vmem:[#allocation5 + $0x190] sm:$0xf] %v5338_v45 }
 0x327   : > { %v6824_v25 = vld [vmem:[#allocation3 + $0x48] sm:$0xf]  ;;  %7552 = vst [vmem:[#allocation5 + $0xb0] sm:$0xf] %v7421_v20  ;;  %v11585_v60 = vld [vmem:[#allocation6 + $0x108] sm:$0xff] }
 0x328   : > { %v5819_v13 = vsel %vm12025_vm3, %v10430_v59, %v5818_v26  ;;  %v5820_v50 = vrot.slane %v5818_v26, 4  ;;  %v6957_v47 = vshrl.u32 %v6824_v25, 16  ;;  %v6960_v35 = vshll.u32 %v6824_v25, 16  ;;  %7553 = vst [vmem:[#allocation5 + $0xd4] sm:$0xf] %v7424_v3  ;;  %9418 = vmatpush.bf16.msrb.mxu2 %v11585_v60 }
 0x329   : > { %5905 = vst [vmem:[#allocation5 + $0x320] sm:$0xf] %v5819_v13  ;;  %v6577_v59 = vsel %vm12025_vm3, %v6575_v10, %v6576_v62  ;;  %v4604_v26 = vld [vmem:[#allocation3 + $0xb0] sm:$0x1]  ;;  %v14753_v12 = vpop.f32.mrf.mxu2  ;;  %v6196_v13 = vshrl.u32 %v6000_v54, 16 }
 0x32a   : > { %v5822_v8 = vsel %vm12025_vm3, %v5820_v50, %v5821_v41  ;;  %6715 = vst [vmem:[#allocation5 + $0x14] sm:$0xf] %v6574_v61  ;;  %v6959_v11 = vrot.slane %v6957_v47, 4  ;;  %v6962_v38 = vrot.slane %v6960_v35, 5  ;;  %v4605_v41 = vsel %vm13132_vm4, 0, %v4604_v26 }
 0x32b   : > { %5906 = vst [vmem:[#allocation5 + $0x344] sm:$0xf] %v5822_v8  ;;  %v6199_v50 = vshll.u32 %v6000_v54, 16  ;;  %v10695_v46 = vld [vmem:[#allocation5 + $0x1dc] sm:$0xf0]  ;;  %v6198_v17 = vrot.slane %v6196_v13, 4 }
 0x32c   : > { %v11511_v32 = vld [vmem:[#allocation5 + $0x338] sm:$0xf0]  ;;  %6716 = vst [vmem:[#allocation5 + $0x38] sm:$0xf] %v6577_v59  ;;  %v6825_v39 = vld [vmem:[#allocation3 + $0x4c] sm:$0xf]  ;;  %v6963_v48 = vor.u32 %v6962_v38, %v6959_v11  ;;  %9419 = vmatpush.bf16.msrb.mxu2 %v11584_v43 }
 0x32d   : > { %9356 = vmatmul.bf16.gmra.mxu0 %v10662_v22  ;;  %v10866_v36 = vor.u32 %v11511_v32, %v10865_v53  ;;  %4606 = vst [vmem:[#allocation3 + $0xb0] sm:$0x1] %v4605_v41  ;;  %v6201_v15 = vrot.slane %v6199_v50, 5  ;;  %v6826_v7 = vld [vmem:[#allocation3 + $0x50] sm:$0x1]  ;;  %v6966_v14 = vshll.u32 %v6825_v39, 16 }
 0x32e   : > { %6789 = vst [vmem:[#allocation5 + $0x15c] sm:$0xf] %v6757_v28  ;;  %v6970_v8 = vshrl.u32 %v6825_v39, 16  ;;  %v6478_v45 = vld [vmem:[#allocation3 + $0x18] sm:$0xe]  ;;  %v6964_v31 = vrot.slane %v6963_v48, 4 }
 0x32f   : > { %9119 = vmatmul.bf16.gmra.mxu2 %v10866_v36  ;;  %v14761_v18 = vld [vmem:[%s15897_s2] ss:$0 sm:$0xff]  ;;  %v11463_v0 = vld [vmem:[#allocation5 + $0x1bc] sm:$0xf]  ;;  %v6968_v10 = vrot.slane %v6966_v14, 5  ;;  %v6976_v9 = vshll.u32 %v6826_v7, 16  ;;  %v6202_v25 = vor.u32 %v6201_v15, %v6198_v17 }
 0x330   : > { %v10873_v63 = vld [vmem:[#allocation5 + $0x320] sm:$0xf]  ;;  %v6972_v62 = vrot.slane %v6970_v8, 4  ;;  %v6479_v22 = vld [vmem:[#allocation3 + $0x1c] sm:$0xf]  ;;  %v10698_v53 = vor.u32 %v11463_v0, %v10695_v46  ;;  %v10436_v61 = vrot.slane %v6478_v45, 9 }
 0x331   : > { %v11414_v20 = vld [vmem:[#allocation5 + $0x30] sm:$0xf0]  ;;  %v6580_v32 = vrot.slane %v6479_v22, 5  ;;  %v10485_v36 = vld [vmem:[#allocation5 + $0x10] sm:$0xf]  ;;  %v6969_v35 = vsel %vm12051_vm6, %v6964_v31, %v6968_v10  ;;  %v6978_v26 = vrot.slane %v6976_v9, 5 }
 0x332   : > { %v11512_v51 = vld [vmem:[#allocation5 + $0x340] sm:$0xf0]  ;;  %v4543_v44 = vld [vmem:[#allocation3 + $0x90] sm:$0x1]  ;;  %v6973_v3 = vor.u32 %v6972_v62, %v6968_v10  ;;  %v6001_v47 = vld [vmem:[#allocation3 + $0x64] sm:$0xf] }
 0x333   : > { %v10874_v1 = vor.u32 %v11512_v51, %v10873_v63  ;;  %v4544_v5 = vsel %vm13070_vm9, 0, %v4543_v44  ;;  %v6480_v59 = vld [vmem:[#allocation3 + $0x20] sm:$0x1]  ;;  %v10486_v51 = vor.u32 %v11414_v20, %v10485_v36  ;;  %v6002_v60 = vld [vmem:[#allocation3 + $0x68] sm:$0x1]  ;;  %v6209_v11 = vshrl.u32 %v6001_v47, 16 }
 0x334   : > { %4545 = vst [vmem:[#allocation3 + $0x90] sm:$0x1] %v4544_v5  ;;  %v6974_v38 = vrot.slane %v6973_v3, 4  ;;  %v6582_v43 = vrot.slane %v6580_v32, 4  ;;  %v6203_v41 = vrot.slane %v6202_v25, 4  ;;  %v6215_v50 = vshll.u32 %v6002_v60, 16 }
 0x335   : > { %9297 = vmatmul.bf16.gmra.mxu1 %v10874_v1  ;;  %10386 = vmatmul.msk.bf16.gmra.mxu3 %vm4111_vm1, %v10334_v56  ;;  %v6205_v56 = vshll.u32 %v6001_v47, 16  ;;  %v14771_v1 = vpop.f32.mrf.mxu2  ;;  %7284 = vst [vmem:[#allocation5 + $0x13c] sm:$0xf] %v6969_v35  ;;  %v6211_v13 = vrot.slane %v6209_v11, 4  ;;  %v6583_v39 = vrot.slane %v6480_v59, 5 }
 0x336   : > { %16017 = vst [vmem:[#allocation13_spill] sm:$0xff] %v14771_v1  ;;  %v6979_v46 = vsel %vm12051_vm6, %v6974_v38, %v6978_v26  ;;  %v4598_v8 = vld [vmem:[#allocation3 + $0x98] sm:$0x1]  ;;  %v6217_v45 = vrot.slane %v6215_v50, 5  ;;  %v10731_v20 = vld [vmem:[#allocation5 + $0x224] sm:$0xf0] }
 0x337   : > { %v6207_v54 = vrot.slane %v6205_v56, 5  ;;  %7285 = vst [vmem:[#allocation5 + $0x160] sm:$0xf] %v6979_v46  ;;  %v6584_v7 = vsel %vm12025_vm3, %v6582_v43, %v6583_v39  ;;  %v4599_v10 = vsel %vm13132_vm4, 0, %v4598_v8  ;;  %v11423_v36 = vld [vmem:[#allocation5 + $0x78] sm:$0xf0] }
 0x338   : > { %v4234_v33 = vpop.f32.mrf.mxu3  ;;  %6718 = vst [vmem:[#allocation5 + $0x80] sm:$0xf] %v6584_v7  ;;  %v5062_v5 = vld [vmem:[#allocation3 + $0xa8] sm:$0xf]  ;;  %v10521_v47 = vld [vmem:[#allocation5 + $0x58] sm:$0xf] }
 0x339   : > { %v4235_v49 = vadd.f32 %v14761_v18, %v4234_v33  ;;  %v6208_v17 = vsel %vm12051_vm6, %v6203_v41, %v6207_v54  ;;  %v6212_v15 = vor.u32 %v6211_v13, %v6207_v54  ;;  %4600 = vst [vmem:[#allocation3 + $0x98] sm:$0x1] %v4599_v10  ;;  %v5931_v56 = vld [vmem:[#allocation3 + $0x6c] sm:$0xf]  ;;  %v5932_v11 = vld [vmem:[#allocation3 + $0x70] sm:$0xf] }
 0x33a   : > { %6457 = vst [vmem:[#allocation5 + $0x208] sm:$0xf] %v6208_v17  ;;  %v7319_v46 = vld [vmem:[#allocation3 + $0x44] sm:$0x1]  ;;  %v6758_v8 = vld [vmem:[#allocation3 + $0x54] sm:$0xf] }
 0x33b   : > { %v4324_v23 = vadd.f32 %v14739_v19, %v4235_v49  ;;  %v6581_v19 = vsel %vm12025_vm3, %v10436_v61, %v6580_v32  ;;  %v6213_v33 = vrot.slane %v6212_v15, 4  ;;  %v11472_v32 = vld [vmem:[#allocation5 + $0x204] sm:$0xf]  ;;  %v7318_v61 = vld [vmem:[#allocation3 + $0x40] sm:$0xf] }
 0x33c   : > { %6717 = vst [vmem:[#allocation5 + $0x5c] sm:$0xf] %v6581_v19  ;;  %v10734_v3 = vor.u32 %v11472_v32, %v10731_v20  ;;  %v7317_v19 = vld [vmem:[#allocation3 + $0x3c] sm:$0xe]  ;;  %v7427_v38 = vrot.slane %v7318_v61, 5 }
 0x33d   : > { %v4422_v63 = vmul.f32 1.442695, %v4324_v23  ;;  %9361 = vmatmul.bf16.gmra.mxu0 %v10698_v53  ;;  %v14783_v62 = vpop.f32.mrf.mxu2  ;;  %v6218_v53 = vsel %vm12051_vm6, %v6213_v33, %v6217_v45  ;;  %vm4364_vm0 = vcmp.gt.f32.partialorder %v4324_v23, 0.0  ;;  %5963 = vst [vmem:[#allocation5 + $0x24c] sm:$0xf] %v5931_v56  ;;  %v7430_v45 = vrot.slane %v7319_v46, 5 }
 0x33e   : > { %6458 = vst [vmem:[#allocation5 + $0x22c] sm:$0xf] %v6218_v53  ;;  %v7429_v17 = vrot.slane %v7427_v38, 4  ;;  %v5066_v53 = vld [vmem:[#allocation3 + $0xb0] sm:$0x1] }
 0x33f   : > { %11815 = vpow2.f32 %v4422_v63  ;;  %9420 = vmatmul.bf16.vlgmr.msrb.gmra.mxu2 %v10486_v51  ;;  %5964 = vst [vmem:[#allocation5 + $0x270] sm:$0xf] %v5932_v11  ;;  %v5935_v11 = vld [vmem:[#allocation3 + $0x84] sm:$0xf] }
 0x340   : > { %v4236_v28 = vpop.f32.mrf.mxu3  ;;  %6790 = vst [vmem:[#allocation5 + $0x180] sm:$0xf] %v6758_v8 }
 0x341   : > { %v4237_v48 = vadd.f32 %v14761_v18, %v4236_v28  ;;  %v5933_v28 = vld [vmem:[#allocation3 + $0x78] sm:$0xf]  ;;  %5967 = vst [vmem:[#allocation5 + $0x2dc] sm:$0xf] %v5935_v11 }
 0x342   : > { %5965 = vst [vmem:[#allocation5 + $0x294] sm:$0xf] %v5933_v28 }
 0x343   : > { %v4326_v14 = vadd.f32 %v14751_v6, %v4237_v48  ;;  %v10454_v48 = vrot.slane %v7317_v19, 9 }
 0x345   : > { %v11816_v49 = vpop.eup %11815  ;;  %v4424_v0 = vmul.f32 1.442695, %v4326_v14  ;;  %vm4365_vm1 = vcmp.gt.f32.partialorder %v4326_v14, 0.0  ;;  %v14792_v41 = vpop.f32.mrf.mxu2  ;;  %v7428_v33 = vsel %vm12025_vm3, %v10454_v48, %v7427_v38  ;;  %v6004_v48 = vld [vmem:[#allocation3 + $0x70] sm:$0xf] }
 0x346   : > { %v10413_v22 = vadd.f32 -1.0, %v11816_v49  ;;  %16018 = vst [vmem:[#allocation14_spill] sm:$0xff] %v14792_v41 }
 0x347   : > { %11817 = vpow2.f32 %v4424_v0  ;;  %7554 = vst [vmem:[#allocation5 + $0xf8] sm:$0xf] %v7428_v33 }
 0x348   : > { %v4492_v6 = vsel %vm4364_vm0, %v4324_v23, %v10413_v22  ;;  %v10522_v23 = vor.u32 %v11423_v36, %v10521_v47  ;;  %v6003_v22 = vld [vmem:[#allocation3 + $0x6c] sm:$0xf]  ;;  %v11432_v47 = vld [vmem:[#allocation5 + $0xc0] sm:$0xf0] }
 0x349   : > { %v4642_v31 = vpack.c.bf16 %v4492_v6, %v4492_v6  ;;  %v6220_v6 = vshrl.u32 %v6003_v22, 16  ;;  %v6223_v20 = vshll.u32 %v6003_v22, 16 }
 0x34a   : > { %v4224_v9 = vpop.f32.mrf.mxu0 }
 0x34b   : > { %v4870_v44 = vshrl.u32 %v4642_v31, 16  ;;  %v4225_v25 = vadd.f32 %v14761_v18, %v4224_v9  ;;  %v4873_v63 = vshll.u32 %v4642_v31, 16  ;;  %v7431_v9 = vsel %vm12025_vm3, %v7429_v17, %v7430_v45  ;;  %v6005_v17 = vld [vmem:[#allocation3 + $0x74] sm:$0x1] }
 0x34c   : > { %7555 = vst [vmem:[#allocation5 + $0x11c] sm:$0xf] %v7431_v9 }
 0x34d   : > { %v11818_v35 = vpop.eup %11817  ;;  %v4872_v59 = vrot.slane %v4870_v44, 7  ;;  %v14789_v51 = vadd.f32 %v14523_v30, %v4225_v25  ;;  %9366 = vmatmul.bf16.gmra.mxu0 %v10734_v3  ;;  %v5934_v30 = vld [vmem:[#allocation3 + $0x7c] sm:$0xf]  ;;  %v14805_v61 = vpop.f32.mrf.mxu2 }
 0x34e   : > { %v10414_v60 = vadd.f32 -1.0, %v11818_v35  ;;  %5966 = vst [vmem:[#allocation5 + $0x2b8] sm:$0xf] %v5934_v30  ;;  %v6222_v35 = vrot.slane %v6220_v6, 4  ;;  %v6759_v30 = vld [vmem:[#allocation3 + $0x58] sm:$0xf] }
 0x34f   : > { %v4875_v26 = vor.u32 %v4873_v63, %v4872_v59  ;;  %v4414_v43 = vmul.f32 1.442695, %v14789_v51  ;;  %9425 = vmatmul.bf16.gmra.mxu2 %v10522_v23  ;;  %v4876_v36 = vrot.slane %v4872_v59, 4  ;;  %v6225_v63 = vrot.slane %v6223_v20, 5  ;;  %v11481_v59 = vld [vmem:[#allocation5 + $0x24c] sm:$0xf] }
 0x350   : > { %v4493_v54 = vsel %vm4365_vm1, %v4326_v14, %v10414_v60  ;;  %v5165_v14 = vld [vmem:[#allocation3 + $0x48] sm:$0xf]  ;;  %vm4360_vm5 = vcmp.gt.f32.partialorder %v14789_v51, 0.0  ;;  %6791 = vst [vmem:[#allocation5 + $0x1a4] sm:$0xf] %v6759_v30  ;;  %v6239_v20 = vshll.u32 %v6005_v17, 16 }
 0x351   : > { %v5063_v13 = vsel %vm13272_vm11, %v4875_v26, %v5062_v5  ;;  %v4643_v50 = vpack.c.bf16 %v4493_v54, %v4493_v54  ;;  %11819 = vpow2.f32 %v4414_v43  ;;  %v5340_v31 = vshrl.u32 %v5165_v14, 16  ;;  %v5936_v54 = vld [vmem:[#allocation3 + $0x88] sm:$0xf] }
 0x352   : > { %5064 = vst [vmem:[#allocation3 + $0xa8] sm:$0xf] %v5063_v13  ;;  %v4226_v39 = vpop.f32.mrf.mxu0  ;;  %v5343_v23 = vshll.u32 %v5165_v14, 16  ;;  %v6226_v28 = vor.u32 %v6225_v63, %v6222_v35  ;;  %v10557_v13 = vld [vmem:[#allocation5 + $0xa0] sm:$0xf] }
 0x353   : > { %v4878_v15 = vshrl.u32 %v4643_v50, 16  ;;  %v4227_v7 = vadd.f32 %v14761_v18, %v4226_v39  ;;  %v4881_v0 = vshll.u32 %v4643_v50, 16  ;;  %v5342_v38 = vrot.slane %v5340_v31, 4  ;;  %5968 = vst [vmem:[#allocation5 + $0x300] sm:$0xf] %v5936_v54 }
 0x354   : > { %v5345_v50 = vrot.slane %v5343_v23, 5  ;;  %v10558_v39 = vor.u32 %v11432_v47, %v10557_v13  ;;  %v6227_v45 = vrot.slane %v6226_v28, 4  ;;  %v6481_v63 = vld [vmem:[#allocation3 + $0x24] sm:$0xe]  ;;  %v5052_v28 = vld [vmem:[#allocation3 + $0x98] sm:$0x1] }
 0x355   : > { %v4880_v49 = vrot.slane %v4878_v15, 7  ;;  %v14800_v10 = vadd.f32 %v14544_v42, %v4227_v7  ;;  %v10767_v42 = vld [vmem:[#allocation5 + $0x26c] sm:$0xf0]  ;;  %v6229_v15 = vshll.u32 %v6004_v48, 16  ;;  %v6233_v7 = vshrl.u32 %v6004_v48, 16 }
 0x356   : > { %v10770_v43 = vor.u32 %v11481_v59, %v10767_v42  ;;  %v10437_v11 = vrot.slane %v6481_v63, 9  ;;  %v10803_v30 = vld [vmem:[#allocation5 + $0x2b4] sm:$0xf0] }
 0x357   : > { %v11820_v32 = vpop.eup %11819  ;;  %v4883_v44 = vor.u32 %v4881_v0, %v4880_v49  ;;  %v4885_v25 = vrot.slane %v4880_v49, 4  ;;  %v4416_v3 = vmul.f32 1.442695, %v14800_v10  ;;  %v5166_v49 = vld [vmem:[#allocation3 + $0x4c] sm:$0xf]  ;;  %v6235_v6 = vrot.slane %v6233_v7, 4 }
 0x358   : > { %v10409_v5 = vadd.f32 -1.0, %v11820_v32  ;;  %v5048_v0 = vld [vmem:[#allocation3 + $0x90] sm:$0xf]  ;;  %vm4361_vm7 = vcmp.gt.f32.partialorder %v14800_v10, 0.0  ;;  %v5349_v9 = vshll.u32 %v5166_v49, 16  ;;  %v14814_v32 = vpop.f32.mrf.mxu2  ;;  %v5353_v35 = vshrl.u32 %v5166_v49, 16 }
 0x359   : > { %v4884_v56 = vsel %vm12168_vm14, %v4876_v36, %v4883_v44  ;;  %v5067_v19 = vsel %vm13070_vm9, %v4885_v25, %v5066_v53  ;;  %11821 = vpow2.f32 %v4416_v3  ;;  %v6231_v53 = vrot.slane %v6229_v15, 5  ;;  %16019 = vst [vmem:[#allocation15_spill] sm:$0xff] %v14814_v32  ;;  %v11490_v15 = vld [vmem:[#allocation5 + $0x294] sm:$0xf]  ;;  %v11441_v7 = vld [vmem:[#allocation5 + $0x108] sm:$0xf0] }
 0x35a   : > { %5065 = vst [vmem:[#allocation3 + $0xac] sm:$0xf] %v4884_v56  ;;  %v4488_v60 = vsel %vm4360_vm5, %v14789_v51, %v10409_v5  ;;  %v5346_v51 = vor.u32 %v5345_v50, %v5342_v38  ;;  %v5351_v47 = vrot.slane %v5349_v9, 5  ;;  %v6241_v56 = vrot.slane %v6239_v20, 5  ;;  %v5109_v20 = vld [vmem:[#allocation3 + $0x9c] sm:$0xf] }
 0x35b   : > { %5068 = vst [vmem:[#allocation3 + $0xb0] sm:$0x1] %v5067_v19  ;;  %v4638_v26 = vpack.c.bf16 %v4488_v60, %v4488_v60  ;;  %v6232_v44 = vsel %vm12051_vm6, %v6227_v45, %v6231_v53  ;;  %v6236_v25 = vor.u32 %v6235_v6, %v6231_v53  ;;  %v14821_v19 = vld [vmem:[#allocation3 + $0x28] sm:$0xf] }
 0x35c   : > { %v5347_v3 = vrot.slane %v5346_v51, 4  ;;  %6459 = vst [vmem:[#allocation5 + $0x250] sm:$0xf] %v6232_v44  ;;  %v6587_v54 = vrot.slane %v14821_v19, 5 }
 0x35d   : > { %v4836_v46 = vshrl.u32 %v4638_v26, 16  ;;  %9371 = vmatmul.bf16.gmra.mxu0 %v10770_v43  ;;  %v4839_v33 = vshll.u32 %v4638_v26, 16  ;;  %v6237_v23 = vrot.slane %v6236_v25, 4  ;;  %v5355_v43 = vrot.slane %v5353_v35, 4  ;;  %5141 = vst [vmem:[#allocation5 + $0x3a8] sm:$0xf] %v5109_v20 }
 0x35e   : > { %v6588_v48 = vsel %vm12025_vm3, %v10437_v11, %v6587_v54  ;;  %v7321_v25 = vld [vmem:[#allocation3 + $0x4c] sm:$0xf]  ;;  %v5940_v20 = vld [vmem:[#allocation3 + $0xa0] sm:$0xf] }
 0x35f   : > { %v11822_v8 = vpop.eup %11821  ;;  %v4838_v14 = vrot.slane %v4836_v46, 7  ;;  %9430 = vmatmul.bf16.gmra.mxu2 %v10558_v39  ;;  %v6242_v60 = vsel %vm12051_vm6, %v6237_v23, %v6241_v56  ;;  %v5167_v39 = vld [vmem:[#allocation3 + $0x50] sm:$0x1]  ;;  %6719 = vst [vmem:[#allocation5 + $0xa4] sm:$0xf] %v6588_v48  ;;  %v5356_v49 = vor.u32 %v5355_v43, %v5351_v47  ;;  %v7434_v43 = vrot.slane %v7321_v25, 5 }
 0x360   : > { %v10410_v22 = vadd.f32 -1.0, %v11822_v8  ;;  %6460 = vst [vmem:[#allocation5 + $0x274] sm:$0xf] %v6242_v60  ;;  %v14832_v17 = vpop.f32.mrf.mxu2  ;;  %v5359_v53 = vshll.u32 %v5167_v39, 16 }
 0x361   : > { %v4841_v31 = vor.u32 %v4839_v33, %v4838_v14  ;;  %v4842_v13 = vrot.slane %v4838_v14, 4  ;;  %v10806_v14 = vor.u32 %v11490_v15, %v10803_v30  ;;  %v10593_v33 = vld [vmem:[#allocation5 + $0xe8] sm:$0xf]  ;;  %v5357_v9 = vrot.slane %v5356_v49, 4  ;;  %5972 = vst [vmem:[#allocation5 + $0x390] sm:$0xf] %v5940_v20 }
 0x362   : > { %v4489_v36 = vsel %vm4361_vm7, %v14800_v10, %v10410_v22  ;;  %v5352_v10 = vsel %vm12051_vm6, %v5347_v3, %v5351_v47  ;;  %v10594_v6 = vor.u32 %v11441_v7, %v10593_v33  ;;  %v5682_v3 = vld [vmem:[#allocation3 + $0x9c] sm:$0xe]  ;;  %v14840_v47 = vpop.f32.mrf.mxu1  ;;  %v11499_v7 = vld [vmem:[#allocation5 + $0x2dc] sm:$0xf] }
 0x363   : > { %v5049_v5 = vsel %vm13272_vm11, %v4841_v31, %v5048_v0  ;;  %v4639_v42 = vpack.c.bf16 %v4489_v36, %v4489_v36  ;;  %5623 = vst [vmem:[#allocation5 + $0x1b4] sm:$0xf] %v5352_v10  ;;  %v14838_v0 = vpop.f32.mrf.mxu0  ;;  %v5110_v31 = vld [vmem:[#allocation3 + $0xa0] sm:$0xf]  ;;  %v5361_v36 = vrot.slane %v5359_v53, 5 }
 0x364   : > { %5050 = vst [vmem:[#allocation3 + $0x90] sm:$0xf] %v5049_v5  ;;  %v5683_v5 = vld [vmem:[#allocation3 + $0xa0] sm:$0xf]  ;;  %v10629_v53 = vld [vmem:[#allocation5 + $0x130] sm:$0xf] }
 0x365   : > { %v4844_v59 = vshrl.u32 %v4639_v42, 16  ;;  %v4847_v26 = vshll.u32 %v4639_v42, 16  ;;  %5142 = vst [vmem:[#allocation5 + $0x3cc] sm:$0xf] %v5110_v31  ;;  %v5684_v42 = vld [vmem:[#allocation3 + $0xa4] sm:$0x1]  ;;  %v5362_v56 = vsel %vm12051_vm6, %v5357_v9, %v5361_v36 }
 0x366   : > { %5624 = vst [vmem:[#allocation5 + $0x1d8] sm:$0xf] %v5362_v56  ;;  %v5835_v15 = vrot.slane %v5684_v42, 5 }
 0x367   : > { %v4846_v38 = vrot.slane %v4844_v59, 7 }
 0x368   : > { %v14844_v59 = vpop.f32.mrf.mxu2 }
 0x369   : > { %v4849_v50 = vor.u32 %v4847_v26, %v4846_v38  ;;  %v4851_v46 = vrot.slane %v4846_v38, 4  ;;  %16020 = vst [vmem:[#allocation16_spill] sm:$0xff] %v14844_v59  ;;  %v10432_v38 = vrot.slane %v5682_v3, 9  ;;  %v5832_v26 = vrot.slane %v5683_v5, 5  ;;  %v6006_v3 = vld [vmem:[#allocation3 + $0x78] sm:$0xf] }
 0x36a   : > { %v14858_v42 = vpop.f32.mrf.mxu1  ;;  %v6244_v56 = vshrl.u32 %v6006_v3, 16 }
 0x36b   : > { %v4850_v51 = vsel %vm12168_vm14, %v4842_v13, %v4849_v50  ;;  %v5053_v8 = vsel %vm13070_vm9, %v4851_v46, %v5052_v28  ;;  %v5107_v45 = vld [vmem:[#allocation3 + $0x90] sm:$0xf]  ;;  %v14846_v28 = vpop.f32.mrf.mxu0  ;;  %v7320_v46 = vld [vmem:[#allocation3 + $0x48] sm:$0xe]  ;;  %v5833_v39 = vsel %vm12025_vm3, %v10432_v38, %v5832_v26  ;;  %v5834_v48 = vrot.slane %v5832_v26, 4 }
 0x36c   : > { %5051 = vst [vmem:[#allocation3 + $0x94] sm:$0xf] %v4850_v51  ;;  %v5937_v22 = vld [vmem:[#allocation3 + $0x90] sm:$0xf]  ;;  %v10839_v51 = vld [vmem:[#allocation5 + $0x2fc] sm:$0xf0] }
 0x36d   : > { %5054 = vst [vmem:[#allocation3 + $0x98] sm:$0x1] %v5053_v8  ;;  %9376 = vmatmul.bf16.gmra.mxu0 %v10806_v14  ;;  %v5679_v44 = vld [vmem:[#allocation3 + $0x90] sm:$0xe]  ;;  %v11450_v8 = vld [vmem:[#allocation5 + $0x150] sm:$0xf0]  ;;  %v5836_v33 = vsel %vm12025_vm3, %v5834_v48, %v5835_v15  ;;  %v10842_v31 = vor.u32 %v11499_v7, %v10839_v51 }
 0x36e   : > { %5139 = vst [vmem:[#allocation5 + $0x360] sm:$0xf] %v5107_v45  ;;  %v10431_v60 = vrot.slane %v5679_v44, 9  ;;  %v7322_v45 = vld [vmem:[#allocation3 + $0x50] sm:$0x1]  ;;  %v10455_v49 = vrot.slane %v7320_v46, 9 }
 0x36f   : > { %9435 = vmatmul.bf16.gmra.mxu2 %v10594_v6  ;;  %5969 = vst [vmem:[#allocation5 + $0x324] sm:$0xf] %v5937_v22  ;;  %v7436_v22 = vrot.slane %v7434_v43, 4  ;;  %v5939_v6 = vld [vmem:[#allocation3 + $0x9c] sm:$0xf]  ;;  %v7437_v5 = vrot.slane %v7322_v45, 5 }
 0x370   : > { %5909 = vst [vmem:[#allocation5 + $0x3b0] sm:$0xf] %v5833_v39  ;;  %v14856_v44 = vpop.f32.mrf.mxu2  ;;  %v6246_v38 = vrot.slane %v6244_v56, 4  ;;  %v6483_v48 = vld [vmem:[#allocation3 + $0x2c] sm:$0x1]  ;;  %v6589_v45 = vrot.slane %v6587_v54, 4 }
 0x371   : > { %5910 = vst [vmem:[#allocation5 + $0x3d4] sm:$0xf] %v5836_v33  ;;  %v5685_v15 = vld [vmem:[#allocation3 + $0xa8] sm:$0xe]  ;;  %v6590_v54 = vrot.slane %v6483_v48, 5 }
 0x372   : > { %5971 = vst [vmem:[#allocation5 + $0x36c] sm:$0xf] %v5939_v6 }
 0x373   : > { %v5108_v35 = vld [vmem:[#allocation3 + $0x94] sm:$0xf] }
 0x374   : > { %v5680_v63 = vld [vmem:[#allocation3 + $0x94] sm:$0xf]  ;;  %5140 = vst [vmem:[#allocation5 + $0x384] sm:$0xf] %v5108_v35  ;;  %v5681_v10 = vld [vmem:[#allocation3 + $0x98] sm:$0x1]  ;;  %v10630_v35 = vor.u32 %v11450_v8, %v10629_v53 }
 0x375   : > { %v5938_v23 = vld [vmem:[#allocation3 + $0x94] sm:$0xf]  ;;  %v5825_v11 = vrot.slane %v5680_v63, 5  ;;  %v5828_v50 = vrot.slane %v5681_v10, 5  ;;  %v10901_v9 = vld [vmem:[#allocation5 + $0x360] sm:$0xf] }
 0x376   : > { %5970 = vst [vmem:[#allocation5 + $0x348] sm:$0xf] %v5938_v23  ;;  %v5111_v63 = vld [vmem:[#allocation3 + $0xa8] sm:$0xf]  ;;  %v5112_v23 = vld [vmem:[#allocation3 + $0xac] sm:$0xf] }
 0x377   : > { %v5826_v30 = vsel %vm12025_vm3, %v10431_v60, %v5825_v11  ;;  %v5827_v13 = vrot.slane %v5825_v11, 4  ;;  %v6247_v10 = vshll.u32 %v6006_v3, 16  ;;  %v7435_v60 = vsel %vm12025_vm3, %v10455_v49, %v7434_v43  ;;  %5143 = vst [vmem:[#allocation5 + $0x3f0] sm:$0xf] %v5111_v63  ;;  %v5686_v43 = vld [vmem:[#allocation3 + $0xac] sm:$0xf]  ;;  %v14872_v3 = vpop.f32.mrf.mxu3 }
 0x378   : > { %5907 = vst [vmem:[#allocation5 + $0x368] sm:$0xf] %v5826_v30  ;;  %v7438_v11 = vsel %vm12025_vm3, %v7436_v22, %v7437_v5  ;;  %v6827_v30 = vld [vmem:[#allocation3 + $0x54] sm:$0xf]  ;;  %v5687_v8 = vld [vmem:[#allocation3 + $0xb0] sm:$0x1] }
 0x379   : > { %v5829_v14 = vsel %vm12025_vm3, %v5827_v13, %v5828_v50  ;;  %5144 = vst [vmem:[#allocation5 + $0x414] sm:$0xf] %v5112_v23  ;;  %v6249_v26 = vrot.slane %v6247_v10, 5  ;;  %v14864_v13 = vpop.f32.mrf.mxu0  ;;  %v6981_v51 = vshrl.u32 %v6827_v30, 16  ;;  %v5839_v33 = vrot.slane %v5686_v43, 5  ;;  %v14874_v23 = vpop.f32.mrf.mxu1 }
 0x37a   : > { %5908 = vst [vmem:[#allocation5 + $0x38c] sm:$0xf] %v5829_v14  ;;  %v10433_v14 = vrot.slane %v5685_v15, 9  ;;  %v5842_v49 = vrot.slane %v5687_v8, 5  ;;  %v6007_v22 = vld [vmem:[#allocation3 + $0x7c] sm:$0xf]  ;;  %v6591_v8 = vsel %vm12025_vm3, %v6589_v45, %v6590_v54 }
 0x37b   : > { %v11520_v36 = vld [vmem:[#allocation5 + $0x380] sm:$0xf0]  ;;  %7556 = vst [vmem:[#allocation5 + $0x140] sm:$0xf] %v7435_v60  ;;  %v6250_v7 = vor.u32 %v6249_v26, %v6246_v38  ;;  %v6008_v53 = vld [vmem:[#allocation3 + $0x80] sm:$0x1] }
 0x37c   : > { %v10902_v25 = vor.u32 %v11520_v36, %v10901_v9  ;;  %7557 = vst [vmem:[#allocation5 + $0x164] sm:$0xf] %v7438_v11  ;;  %v6984_v6 = vshll.u32 %v6827_v30, 16  ;;  %v5840_v20 = vsel %vm12025_vm3, %v10433_v14, %v5839_v33  ;;  %v6253_v9 = vshll.u32 %v6007_v22, 16  ;;  %v6828_v11 = vld [vmem:[#allocation3 + $0x58] sm:$0xf] }
 0x37d   : > { %9381 = vmatmul.bf16.gmra.mxu0 %v10842_v31  ;;  %v5841_v31 = vrot.slane %v5839_v33, 4  ;;  %v6257_v36 = vshrl.u32 %v6007_v22, 16  ;;  %v10875_v5 = vld [vmem:[#allocation5 + $0x344] sm:$0xf0]  ;;  %5911 = vst [vmem:[#allocation5 + $0x3f8] sm:$0xf] %v5840_v20 }
 0x37e   : > { %9124 = vmatmul.bf16.vlgmr.msra.gmra.mxu3 %v10902_v25  ;;  %v14870_v25 = vpop.f32.mrf.mxu2  ;;  %v6263_v63 = vshll.u32 %v6008_v53, 16  ;;  %v6983_v19 = vrot.slane %v6981_v51, 4  ;;  %v6255_v10 = vrot.slane %v6253_v9, 5  ;;  %v6829_v38 = vld [vmem:[#allocation3 + $0x5c] sm:$0x1] }
 0x37f   : > { %9440 = vmatmul.bf16.gmra.mxu2 %v10630_v35  ;;  %v10909_v50 = vld [vmem:[#allocation5 + $0x368] sm:$0xf]  ;;  %16021 = vst [vmem:[#allocation17_spill] sm:$0xff] %v14870_v25  ;;  %v6251_v35 = vrot.slane %v6250_v7, 4  ;;  %v5843_v56 = vsel %vm12025_vm3, %v5841_v31, %v5842_v49  ;;  %v6259_v60 = vrot.slane %v6257_v36, 4  ;;  %v7000_v7 = vshll.u32 %v6829_v38, 16 }
 0x380   : > { %v11508_v26 = vld [vmem:[#allocation5 + $0x324] sm:$0xf]  ;;  %v11459_v30 = vld [vmem:[#allocation5 + $0x198] sm:$0xf0]  ;;  %5912 = vst [vmem:[#allocation5 + $0x41c] sm:$0xf] %v5843_v56 }
 0x381   : > { %v11521_v46 = vld [vmem:[#allocation5 + $0x388] sm:$0xf0]  ;;  %v6256_v43 = vsel %vm12051_vm6, %v6251_v35, %v6255_v10  ;;  %v6260_v48 = vor.u32 %v6259_v60, %v6255_v10  ;;  %v5168_v51 = vld [vmem:[#allocation3 + $0x54] sm:$0xf]  ;;  %v14882_v14 = vpop.f32.mrf.mxu0  ;;  %v10937_v20 = vld [vmem:[#allocation5 + $0x3a8] sm:$0xf] }
 0x382   : > { %v10910_v39 = vor.u32 %v11521_v46, %v10909_v50  ;;  %v6986_v50 = vrot.slane %v6984_v6, 5  ;;  %v6990_v46 = vshll.u32 %v6828_v11, 16  ;;  %v11529_v15 = vld [vmem:[#allocation5 + $0x3c8] sm:$0xf0]  ;;  %16022 = vst [vmem:[#allocation18_spill] sm:$0xff] %v14882_v14  ;;  %v5364_v53 = vshrl.u32 %v5168_v51, 16 }
 0x383   : > { %6461 = vst [vmem:[#allocation5 + $0x298] sm:$0xf] %v6256_v43  ;;  %v10878_v6 = vor.u32 %v11508_v26, %v10875_v5  ;;  %v6261_v31 = vrot.slane %v6260_v48, 4  ;;  %v6265_v9 = vrot.slane %v6263_v63, 5  ;;  %v5367_v36 = vshll.u32 %v5168_v51, 16  ;;  %v14890_v43 = vpop.f32.mrf.mxu3 }
 0x384   : > { %9302 = vmatmul.bf16.gmra.mxu1 %v10910_v39  ;;  %v6994_v39 = vshrl.u32 %v6828_v11, 16  ;;  %v6987_v33 = vor.u32 %v6986_v50, %v6983_v19  ;;  %v6992_v49 = vrot.slane %v6990_v46, 5  ;;  %v10938_v56 = vor.u32 %v11529_v15, %v10937_v20  ;;  %v10665_v35 = vld [vmem:[#allocation5 + $0x178] sm:$0xf]  ;;  %6720 = vst [vmem:[#allocation5 + $0xc8] sm:$0xf] %v6591_v8 }
 0x385   : > { %v5366_v11 = vrot.slane %v5364_v53, 4  ;;  %v10666_v45 = vor.u32 %v11459_v30, %v10665_v35  ;;  %v11530_v54 = vld [vmem:[#allocation5 + $0x3d0] sm:$0xf0]  ;;  %v6266_v19 = vsel %vm12051_vm6, %v6261_v31, %v6265_v9  ;;  %v5369_v38 = vrot.slane %v5367_v36, 5  ;;  %v7323_v50 = vld [vmem:[#allocation3 + $0x54] sm:$0xe]  ;;  %v14894_v53 = vpop.f32.mrf.mxu1 }
 0x386   : > { %v6996_v22 = vrot.slane %v6994_v39, 4  ;;  %v6988_v10 = vrot.slane %v6987_v33, 4  ;;  %v14886_v46 = vpop.f32.mrf.mxu2  ;;  %6462 = vst [vmem:[#allocation5 + $0x2bc] sm:$0xf] %v6266_v19  ;;  %v7002_v26 = vrot.slane %v7000_v7, 5  ;;  %v10456_v20 = vrot.slane %v7323_v50, 9 }
 0x387   : > { %v5169_v39 = vld [vmem:[#allocation3 + $0x58] sm:$0xf]  ;;  %v5170_v15 = vld [vmem:[#allocation3 + $0x5c] sm:$0x1]  ;;  %v5370_v30 = vor.u32 %v5369_v38, %v5366_v11  ;;  %v10945_v48 = vld [vmem:[#allocation5 + $0x3b0] sm:$0xf] }
 0x388   : > { %v6997_v60 = vor.u32 %v6996_v22, %v6992_v49  ;;  %v6993_v5 = vsel %vm12051_vm6, %v6988_v10, %v6992_v49  ;;  %v5373_v8 = vshll.u32 %v5169_v39, 16  ;;  %v5377_v33 = vshrl.u32 %v5169_v39, 16  ;;  %v7324_v22 = vld [vmem:[#allocation3 + $0x58] sm:$0xf]  ;;  %v7325_v7 = vld [vmem:[#allocation3 + $0x5c] sm:$0x1] }
 0x389   : > { %7286 = vst [vmem:[#allocation5 + $0x184] sm:$0xf] %v6993_v5  ;;  %v5371_v49 = vrot.slane %v5370_v30, 4  ;;  %v5383_v36 = vshll.u32 %v5170_v15, 16  ;;  %v6485_v35 = vld [vmem:[#allocation3 + $0x34] sm:$0xf]  ;;  %v14896_v11 = vpop.f32.mrf.mxu0 }
 0x38a   : > { %v6998_v63 = vrot.slane %v6997_v60, 4  ;;  %v5375_v31 = vrot.slane %v5373_v8, 5  ;;  %v5379_v9 = vrot.slane %v5377_v33, 4  ;;  %v6484_v10 = vld [vmem:[#allocation3 + $0x30] sm:$0xe]  ;;  %v6594_v60 = vrot.slane %v6485_v35, 5 }
 0x38b   : > { %16023 = vst [vmem:[#allocation19_spill] sm:$0xff] %v14896_v11  ;;  %v6486_v5 = vld [vmem:[#allocation3 + $0x38] sm:$0x1]  ;;  %v7444_v50 = vrot.slane %v7325_v7, 5  ;;  %v5385_v15 = vrot.slane %v5383_v36, 5  ;;  %v10438_v30 = vrot.slane %v6484_v10, 9 }
 0x38c   : > { %v7003_v51 = vsel %vm12051_vm6, %v6998_v63, %v7002_v26  ;;  %v5380_v19 = vor.u32 %v5379_v9, %v5375_v31  ;;  %v6596_v63 = vrot.slane %v6594_v60, 4  ;;  %v4552_v26 = vld [vmem:[#allocation3 + $0xb4] sm:$0x1]  ;;  %v6597_v8 = vrot.slane %v6486_v5, 5  ;;  %v11517_v36 = vld [vmem:[#allocation5 + $0x36c] sm:$0xf] }
 0x38d   : > { %9386 = vmatmul.bf16.gmra.mxu0 %v10878_v6  ;;  %v10946_v6 = vor.u32 %v11530_v54, %v10945_v48  ;;  %7287 = vst [vmem:[#allocation5 + $0x1a8] sm:$0xf] %v7003_v51  ;;  %v4553_v48 = vsel %vm13070_vm9, 0, %v4552_v26  ;;  %v6595_v7 = vsel %vm12025_vm3, %v10438_v30, %v6594_v60  ;;  %v10973_v10 = vld [vmem:[#allocation5 + $0x3f0] sm:$0xf]  ;;  %v11567_v26 = vld [vmem:[#allocation6 + $0x78] sm:$0xff] }
 0x38e   : > { %9129 = vmatmul.bf16.gmra.mxu3 %v10938_v56  ;;  %v7441_v56 = vrot.slane %v7324_v22, 5  ;;  %v5381_v39 = vrot.slane %v5380_v19, 4  ;;  %v14906_v33 = vpop.f32.mrf.mxu2  ;;  %4554 = vst [vmem:[#allocation3 + $0xb4] sm:$0x1] %v4553_v48  ;;  %v6598_v9 = vsel %vm12025_vm3, %v6596_v63, %v6597_v8  ;;  %v10701_v19 = vld [vmem:[#allocation5 + $0x1c0] sm:$0xf] }
 0x38f   : > { %9445 = vmatmul.bf16.gmra.mxu2 %v10666_v45  ;;  %v5376_v45 = vsel %vm12051_vm6, %v5371_v49, %v5375_v31  ;;  %16024 = vst [vmem:[#allocation20_spill] sm:$0xff] %v14906_v33  ;;  %v11538_v31 = vld [vmem:[#allocation5 + $0x410] sm:$0xf0]  ;;  %v11539_v60 = vld [vmem:[#allocation5 + $0x418] sm:$0xf0]  ;;  %9145 = vmatpush.bf16.msrb.mxu3 %v11567_v26 }
 0x390   : > { %v7442_v54 = vsel %vm12025_vm3, %v10456_v20, %v7441_v56  ;;  %v7443_v38 = vrot.slane %v7441_v56, 4  ;;  %5625 = vst [vmem:[#allocation5 + $0x1fc] sm:$0xf] %v5376_v45  ;;  %v5386_v49 = vsel %vm12051_vm6, %v5381_v39, %v5385_v15  ;;  %v14914_v20 = vpop.f32.mrf.mxu1  ;;  %v11468_v56 = vld [vmem:[#allocation5 + $0x1e0] sm:$0xf0]  ;;  %v10974_v45 = vor.u32 %v11538_v31, %v10973_v10 }
 0x391   : > { %7558 = vst [vmem:[#allocation5 + $0x188] sm:$0xf] %v7442_v54  ;;  %v10702_v54 = vor.u32 %v11468_v56, %v10701_v19  ;;  %v10981_v5 = vld [vmem:[#allocation5 + $0x3f8] sm:$0xf]  ;;  %v5941_v39 = vld [vmem:[#allocation3 + $0xa8] sm:$0xf] }
 0x392   : > { %v7445_v51 = vsel %vm12025_vm3, %v7443_v38, %v7444_v50  ;;  %16025 = vst [vmem:[#allocation21_spill] sm:$0xff] %v14914_v20  ;;  %v14918_v38 = vpop.f32.mrf.mxu0  ;;  %v5942_v15 = vld [vmem:[#allocation3 + $0xac] sm:$0xf]  ;;  %v10982_v30 = vor.u32 %v11539_v60, %v10981_v5  ;;  %v4607_v48 = vld [vmem:[#allocation3 + $0xbc] sm:$0x1]  ;;  %v11599_v20 = vld [vmem:[#allocation6 + $0x178] sm:$0xff] }
 0x393   : > { %5626 = vst [vmem:[#allocation5 + $0x220] sm:$0xf] %v5386_v49  ;;  %v6760_v8 = vld [vmem:[#allocation3 + $0x60] sm:$0xf]  ;;  %v4240_v49 = vadd.f32 %v14761_v18, %v14872_v3  ;;  %v6761_v60 = vld [vmem:[#allocation3 + $0x64] sm:$0xf] }
 0x394   : > { %9307 = vmatmul.bf16.gmra.mxu1 %v10946_v6  ;;  %v10911_v6 = vld [vmem:[#allocation5 + $0x38c] sm:$0xf0]  ;;  %7559 = vst [vmem:[#allocation5 + $0x1ac] sm:$0xf] %v7445_v51  ;;  %v4608_v51 = vsel %vm13132_vm4, 0, %v4607_v48 }
 0x395   : > { %v10914_v35 = vor.u32 %v11517_v36, %v10911_v6  ;;  %6721 = vst [vmem:[#allocation5 + $0xec] sm:$0xf] %v6595_v7  ;;  %v4555_v10 = vld [vmem:[#allocation3 + $0xc0] sm:$0x1] }
 0x396   : > { %6722 = vst [vmem:[#allocation5 + $0x110] sm:$0xf] %v6598_v9  ;;  %v14920_v50 = vpop.f32.mrf.mxu2  ;;  %v11477_v9 = vld [vmem:[#allocation5 + $0x228] sm:$0xf0]  ;;  %v10737_v3 = vld [vmem:[#allocation5 + $0x208] sm:$0xf] }
 0x397   : > { %16026 = vst [vmem:[#allocation22_spill] sm:$0xff] %v14918_v38  ;;  %v5171_v48 = vld [vmem:[#allocation3 + $0x60] sm:$0xf]  ;;  %v11604_v38 = vld [vmem:[#allocation6 + $0x1a0] sm:$0xff] }
 0x398   : > { %v14908_v22 = vpop.f32.mrf.mxu3  ;;  %5973 = vst [vmem:[#allocation5 + $0x3b4] sm:$0xf] %v5941_v39  ;;  %v14926_v6 = vpop.f32.mrf.mxu1 }
 0x399   : > { %5974 = vst [vmem:[#allocation5 + $0x3d8] sm:$0xf] %v5942_v15  ;;  %v10738_v15 = vor.u32 %v11477_v9, %v10737_v3 }
 0x39a   : > { %16027 = vst [vmem:[#allocation23_spill] sm:$0xff] %v14926_v6  ;;  %v14930_v7 = vpop.f32.mrf.mxu0 }
 0x39b   : > { %4609 = vst [vmem:[#allocation3 + $0xbc] sm:$0x1] %v4608_v51  ;;  %v4242_v51 = vadd.f32 %v14761_v18, %v14890_v43 }
 0x39c   : > { %6792 = vst [vmem:[#allocation5 + $0x1c8] sm:$0xf] %v6760_v8 }
 0x39d   : > { %9391 = vmatmul.bf16.gmra.mxu0 %v10914_v35  ;;  %16028 = vst [vmem:[#allocation24_spill] sm:$0xff] %v14930_v7  ;;  %v11566_v35 = vld [vmem:[#allocation6 + $0x70] sm:$0xff] }
 0x39e   : > { %9134 = vmatmul.bf16.gmra.mxu3 %v10974_v45  ;;  %v14932_v45 = vpop.f32.mrf.mxu2  ;;  %6793 = vst [vmem:[#allocation5 + $0x1ec] sm:$0xf] %v6761_v60 }
 0x39f   : > { %9450 = vmatmul.bf16.gmra.mxu2 %v10702_v54  ;;  %16029 = vst [vmem:[#allocation25_spill] sm:$0xff] %v14932_v45  ;;  %v11526_v19 = vld [vmem:[#allocation5 + $0x3b4] sm:$0xf]  ;;  %v4556_v54 = vsel %vm13070_vm9, 0, %v4555_v10  ;;  %9146 = vmatpush.bf16.msrb.mxu3 %v11566_v35  ;;  %v11565_v10 = vld [vmem:[#allocation6 + $0x68] sm:$0xff]  ;;  %v5388_v35 = vshrl.u32 %v5171_v48, 16 }
 0x3a0   : > { %v14922_v63 = vpop.f32.mrf.mxu3  ;;  %v10947_v56 = vld [vmem:[#allocation5 + $0x3d4] sm:$0xf0]  ;;  %4557 = vst [vmem:[#allocation3 + $0xc0] sm:$0x1] %v4556_v54  ;;  %v14936_v39 = vpop.f32.mrf.mxu1 }
 0x3a1   : > { %v10950_v26 = vor.u32 %v11526_v19, %v10947_v56  ;;  %16030 = vst [vmem:[#allocation26_spill] sm:$0xff] %v14936_v39  ;;  %v4610_v56 = vld [vmem:[#allocation3 + $0xc8] sm:$0x1]  ;;  %v5391_v19 = vshll.u32 %v5171_v48, 16  ;;  %v5390_v45 = vrot.slane %v5388_v35, 4 }
 0x3a2   : > { %v4611_v60 = vsel %vm13132_vm4, 0, %v4610_v56  ;;  %v14942_v9 = vpop.f32.mrf.mxu0  ;;  %v6832_v56 = vld [vmem:[#allocation3 + $0x68] sm:$0x1] }
 0x3a3   : > { %16031 = vst [vmem:[#allocation27_spill] sm:$0xff] %v14942_v9  ;;  %9147 = vmatpush.bf16.msrb.mxu3 %v11565_v10  ;;  %v5393_v48 = vrot.slane %v5391_v19, 5  ;;  %v10773_v35 = vld [vmem:[#allocation5 + $0x250] sm:$0xf]  ;;  %v7024_v1 = vshll.u32 %v6832_v56, 16 }
 0x3a4   : > { %9312 = vmatmul.bf16.gmra.mxu1 %v10982_v30  ;;  %v6830_v30 = vld [vmem:[#allocation3 + $0x60] sm:$0xf]  ;;  %4612 = vst [vmem:[#allocation3 + $0xc8] sm:$0x1] %v4611_v60 }
 0x3a5   : > { %v7005_v8 = vshrl.u32 %v6830_v30, 16  ;;  %v7026_v34 = vrot.slane %v7024_v1, 5 }
 0x3a8   : > { %v4328_v31 = vpop.f32.mrf.mxu3  ;;  %v14946_v33 = vpop.f32.mrf.mxu1 }
 0x3a9   : > { %v4329_v36 = vadd.f32 %v4328_v31, %v4240_v49  ;;  %v7008_v49 = vshll.u32 %v6830_v30, 16  ;;  %16032 = vst [vmem:[#allocation28_spill] sm:$0xff] %v14946_v33 }
 0x3aa   : > { %v14961_v7 = vpop.f32.mrf.mxu0 }
 0x3ab   : > { %v4426_v5 = vmul.f32 1.442695, %v4329_v36  ;;  %vm4366_vm10 = vcmp.gt.f32.partialorder %v4329_v36, 0.0  ;;  %16033 = vst [vmem:[#allocation29_spill] sm:$0xff] %v14961_v7  ;;  %v11605_v7 = vld [vmem:[#allocation6 + $0x1a8] sm:$0xff] }
 0x3ad   : > { %11823 = vpow2.f32 %v4426_v5  ;;  %9396 = vmatmul.bf16.gmra.mxu0 %v10950_v26  ;;  %v7007_v5 = vrot.slane %v7005_v8, 4  ;;  %v7010_v26 = vrot.slane %v7008_v49, 5  ;;  %v11907_v8 = vld [vmem:[%s15897_s2] ss:$0 sm:$0xff] }
 0x3ae   : > { %v4245_v49 = vadd.f32 %v11907_v8, %v14908_v22  ;;  %v14956_v22 = vld [vmem:[#allocation3 + $0x64] sm:$0xf] }
 0x3af   : > { %9455 = vmatmul.bf16.gmra.mxu2 %v10738_v15  ;;  %v7011_v30 = vor.u32 %v7010_v26, %v7007_v5  ;;  %v5394_v26 = vor.u32 %v5393_v48, %v5390_v45  ;;  %v5069_v45 = vld [vmem:[#allocation3 + $0xb4] sm:$0xf]  ;;  %v11606_v48 = vld [vmem:[#allocation6 + $0x1b0] sm:$0xff] }
 0x3b0   : > { %v4330_v31 = vpop.f32.mrf.mxu3  ;;  %v14970_v39 = vpop.f32.mrf.mxu1  ;;  %9591 = vmatpush.bf16.msra.mxu1 %v11606_v48 }
 0x3b1   : > { %v4331_v54 = vadd.f32 %v4330_v31, %v4242_v51  ;;  %v6831_v31 = vld [vmem:[#allocation3 + $0x64] sm:$0xf]  ;;  %v7012_v19 = vrot.slane %v7011_v30, 4  ;;  %16034 = vst [vmem:[#allocation30_spill] sm:$0xff] %v14970_v39 }
 0x3b2   : > { %v14944_v3 = vpop.f32.mrf.mxu2  ;;  %v7014_v60 = vshll.u32 %v6831_v31, 16  ;;  %v7018_v25 = vshrl.u32 %v6831_v31, 16  ;;  %v11613_v39 = vld [vmem:[#allocation6 + $0x1e8] sm:$0xff] }
 0x3b3   : > { %v11824_v18 = vpop.eup %11823  ;;  %v4428_v43 = vmul.f32 1.442695, %v4331_v54  ;;  %vm4367_vm12 = vcmp.gt.f32.partialorder %v4331_v54, 0.0 }
 0x3b4   : > { %v10415_v15 = vadd.f32 -1.0, %v11824_v18  ;;  %v11486_v18 = vld [vmem:[#allocation5 + $0x270] sm:$0xf0]  ;;  %v7016_v32 = vrot.slane %v7014_v60, 5  ;;  %v7020_v41 = vrot.slane %v7018_v25, 4  ;;  %v11615_v25 = vld [vmem:[#allocation6 + $0x1f8] sm:$0xff]  ;;  %9592 = vmatpush.bf16.msra.mxu1 %v11605_v7 }
 0x3b5   : > { %11825 = vpow2.f32 %v4428_v43  ;;  %9679 = vmatpush.bf16.msra.mxu0 %v11615_v25 }
 0x3b6   : > { %v4494_v51 = vsel %vm4366_vm10, %v4329_v36, %v10415_v15  ;;  %v11564_v36 = vld [vmem:[#allocation6 + $0x60] sm:$0xff]  ;;  %v7017_v56 = vsel %vm12051_vm6, %v7012_v19, %v7016_v32  ;;  %v7021_v60 = vor.u32 %v7020_v41, %v7016_v32  ;;  %v4247_v41 = vadd.f32 %v11907_v8, %v14922_v63  ;;  %v6009_v19 = vld [vmem:[#allocation3 + $0x84] sm:$0xf]  ;;  %v11614_v8 = vld [vmem:[#allocation6 + $0x1f0] sm:$0xff] }
 0x3b7   : > { %v4644_v10 = vpack.c.bf16 %v4494_v51, %v4494_v51  ;;  %9148 = vmatpush.bf16.msrb.mxu3 %v11564_v36  ;;  %7288 = vst [vmem:[#allocation5 + $0x1cc] sm:$0xf] %v7017_v56  ;;  %v11562_v36 = vld [vmem:[#allocation6 + $0x50] sm:$0xff]  ;;  %v6271_v1 = vshll.u32 %v6009_v19, 16 }
 0x3b8   : > { %v4333_v59 = vpop.f32.mrf.mxu3  ;;  %9593 = vmatpush.bf16.msra.mxu1 %v11604_v38 }
 0x3b9   : > { %v4887_v43 = vshrl.u32 %v4644_v10, 16  ;;  %v14952_v5 = vadd.f32 %v4333_v59, %v4245_v49  ;;  %v4890_v31 = vshll.u32 %v4644_v10, 16  ;;  %v10774_v59 = vor.u32 %v11486_v18, %v10773_v35  ;;  %v11563_v49 = vld [vmem:[#allocation6 + $0x58] sm:$0xff]  ;;  %9680 = vmatpush.bf16.msra.mxu0 %v11614_v8 }
 0x3ba   : > { %v14954_v15 = vpop.f32.mrf.mxu2  ;;  %v14966_v10 = vrot.slane %v5394_v26, 4  ;;  %v6010_v26 = vld [vmem:[#allocation3 + $0x88] sm:$0xf]  ;;  %v11603_v8 = vld [vmem:[#allocation6 + $0x198] sm:$0xff] }
 0x3bb   : > { %v11826_v51 = vpop.eup %11825  ;;  %v14958_v9 = vrot.slane %v4887_v43, 7  ;;  %v4430_v33 = vmul.f32 1.442695, %v14952_v5  ;;  %9149 = vmatpush.bf16.msrb.mxu3 %v11563_v49  ;;  %v6277_v25 = vshll.u32 %v6010_v26, 16  ;;  %v6281_v56 = vshrl.u32 %v6010_v26, 16  ;;  %v11561_v49 = vld [vmem:[#allocation6 + $0x48] sm:$0xff] }
 0x3bc   : > { %v10416_v30 = vadd.f32 -1.0, %v11826_v51  ;;  %v7022_v51 = vrot.slane %v7021_v60, 4  ;;  %vm4368_vm2 = vcmp.gt.f32.partialorder %v14952_v5, 0.0  ;;  %9594 = vmatpush.bf16.msra.mxu1 %v11603_v8 }
 0x3bd   : > { %v4892_v43 = vor.u32 %v4890_v31, %v14958_v9  ;;  %11827 = vpow2.f32 %v4430_v33  ;;  %v4893_v60 = vrot.slane %v14958_v9, 4  ;;  %v6283_v48 = vrot.slane %v6281_v56, 4  ;;  %9681 = vmatpush.bf16.msra.mxu0 %v11613_v39 }
 0x3be   : > { %v4495_v35 = vsel %vm4367_vm12, %v4331_v54, %v10416_v30  ;;  %v6011_v54 = vld [vmem:[#allocation3 + $0x8c] sm:$0x1]  ;;  %v6268_v30 = vshrl.u32 %v6009_v19, 16 }
 0x3bf   : > { %v5070_v32 = vsel %vm13272_vm11, %v4892_v43, %v5069_v45  ;;  %v4645_v33 = vpack.c.bf16 %v4495_v35, %v4495_v35  ;;  %9460 = vmatmul.bf16.gmra.mxu2 %v10774_v59  ;;  %v6273_v43 = vrot.slane %v6271_v1, 5  ;;  %v14981_v35 = vrot.slane %v6277_v25, 5  ;;  %9150 = vmatpush.bf16.msrb.mxu3 %v11562_v36  ;;  %v5147_v1 = vld [vmem:[#allocation3] sm:$0xf]  ;;  %v14987_v36 = vpop.f32.mrf.mxu0 }
 0x3c0   : > { %5071 = vst [vmem:[#allocation3 + $0xb4] sm:$0xf] %v5070_v32  ;;  %v4335_v31 = vpop.f32.mrf.mxu3  ;;  %v6270_v45 = vrot.slane %v6268_v30, 4  ;;  %v6287_v9 = vshll.u32 %v6011_v54, 16  ;;  %v7027_v25 = vsel %vm12051_vm6, %v7022_v51, %v7026_v34  ;;  %v11495_v34 = vld [vmem:[#allocation5 + $0x2b8] sm:$0xf0] }
 0x3c1   : > { %v4895_v40 = vshrl.u32 %v4645_v33, 16  ;;  %v14977_v63 = vadd.f32 %v4335_v31, %v4247_v41  ;;  %v4898_v18 = vshll.u32 %v4645_v33, 16  ;;  %v5073_v41 = vld [vmem:[#allocation3 + $0xbc] sm:$0x1]  ;;  %v6284_v30 = vor.u32 %v6283_v48, %v14981_v35  ;;  %7289 = vst [vmem:[#allocation5 + $0x1f0] sm:$0xf] %v7027_v25 }
 0x3c2   : > { %v14979_v59 = vpop.f32.mrf.mxu2  ;;  %v6274_v6 = vor.u32 %v6273_v43, %v6270_v45  ;;  %v5196_v33 = vshrl.u32 %v5147_v1, 16  ;;  %16035 = vst [vmem:[#allocation31_spill] sm:$0xff] %v14987_v36  ;;  %v11560_v45 = vld [vmem:[#allocation6 + $0x40] sm:$0xff]  ;;  %v5148_v43 = vld [vmem:[#allocation3 + $0x4] sm:$0xf]  ;;  %v5199_v48 = vshll.u32 %v5147_v1, 16  ;;  %v14996_v1 = vpop.f32.mrf.mxu1 }
 0x3c3   : > { %v11828_v32 = vpop.eup %11827  ;;  %v4897_v19 = vrot.slane %v4895_v40, 7  ;;  %v4432_v26 = vmul.f32 1.442695, %v14977_v63  ;;  %v6285_v7 = vrot.slane %v6284_v30, 4  ;;  %9151 = vmatpush.bf16.msrb.mxu3 %v11561_v49  ;;  %v11612_v25 = vld [vmem:[#allocation6 + $0x1e0] sm:$0xff]  ;;  %16036 = vst [vmem:[#allocation32_spill] sm:$0xff] %v14996_v1 }
 0x3c4   : > { %v10417_v31 = vadd.f32 -1.0, %v11828_v32  ;;  %v5149_v36 = vld [vmem:[#allocation3 + $0x8] sm:$0x1]  ;;  %v5198_v30 = vrot.slane %v5196_v33, 4  ;;  %v5205_v49 = vshll.u32 %v5148_v43, 16  ;;  %9682 = vmatpush.bf16.msra.mxu0 %v11612_v25  ;;  %vm4369_vm8 = vcmp.gt.f32.partialorder %v14977_v63, 0.0 }
 0x3c5   : > { %v4900_v56 = vor.u32 %v4898_v18, %v4897_v19  ;;  %v4902_v40 = vrot.slane %v4897_v19, 4  ;;  %11829 = vpow2.f32 %v4432_v26  ;;  %v6275_v26 = vrot.slane %v6274_v6, 4  ;;  %v5076_v6 = vld [vmem:[#allocation3 + $0xc0] sm:$0xf] }
 0x3c6   : > { %v4496_v54 = vsel %vm4368_vm2, %v14952_v5, %v10417_v31  ;;  %v6289_v31 = vrot.slane %v6287_v9, 5  ;;  %v5209_v9 = vshrl.u32 %v5148_v43, 16  ;;  %v5215_v33 = vshll.u32 %v5149_v36, 16  ;;  %v11611_v43 = vld [vmem:[#allocation6 + $0x1d8] sm:$0xff] }
 0x3c7   : > { %v4901_v32 = vsel %vm12168_vm14, %v4893_v60, %v4900_v56  ;;  %v5074_v18 = vsel %vm13070_vm9, %v4902_v40, %v5073_v41  ;;  %v4646_v51 = vpack.c.bf16 %v4496_v54, %v4496_v54  ;;  %v5113_v19 = vld [vmem:[#allocation3 + $0xb4] sm:$0xf]  ;;  %v10809_v56 = vld [vmem:[#allocation5 + $0x298] sm:$0xf]  ;;  %v6280_v41 = vsel %vm12051_vm6, %v6275_v26, %v14981_v35  ;;  %9152 = vmatpush.bf16.msrb.mxu3 %v11560_v45 }
 0x3c8   : > { %5072 = vst [vmem:[#allocation3 + $0xb8] sm:$0xf] %v4901_v32  ;;  %v5943_v5 = vld [vmem:[#allocation3 + $0xb4] sm:$0xf]  ;;  %v5201_v40 = vrot.slane %v5199_v48, 5  ;;  %v6290_v38 = vsel %vm12051_vm6, %v6285_v7, %v6289_v31  ;;  %v5207_v48 = vrot.slane %v5205_v49, 5  ;;  %v10810_v11 = vor.u32 %v11495_v34, %v10809_v56  ;;  %9683 = vmatpush.bf16.msra.mxu0 %v11611_v43  ;;  %v15016_v49 = vpop.f32.mrf.mxu0 }
 0x3c9   : > { %5075 = vst [vmem:[#allocation3 + $0xbc] sm:$0x1] %v5074_v18  ;;  %v4904_v60 = vshrl.u32 %v4646_v51, 16  ;;  %v5688_v54 = vld [vmem:[#allocation3 + $0xb4] sm:$0xe]  ;;  %v4907_v1 = vshll.u32 %v4646_v51, 16 }
 0x3ca   : > { %v15001_v39 = vpop.f32.mrf.mxu2  ;;  %5145 = vst [vmem:[#allocation5 + $0x438] sm:$0xf] %v5113_v19  ;;  %v5202_v35 = vor.u32 %v5201_v40, %v5198_v30  ;;  %v11602_v19 = vld [vmem:[#allocation6 + $0x190] sm:$0xff]  ;;  %v5211_v55 = vrot.slane %v5209_v9, 4  ;;  %v16037_v51 = vshll.u32 %v14956_v22, 16  ;;  %v11601_v34 = vld [vmem:[#allocation6 + $0x188] sm:$0xff] }
 0x3cb   : > { %v11830_v32 = vpop.eup %11829  ;;  %v15005_v18 = vrot.slane %v4904_v60, 7  ;;  %5975 = vst [vmem:[#allocation5 + $0x3fc] sm:$0xf] %v5943_v5  ;;  %v10434_v5 = vrot.slane %v5688_v54, 9  ;;  %v5217_v8 = vrot.slane %v5215_v33, 5  ;;  %9501 = vmatpush.bf16.msra.mxu3 %v11599_v20  ;;  %9595 = vmatpush.bf16.msra.mxu1 %v11602_v19  ;;  %v16040_v9 = vshrl.u32 %v14956_v22, 16 }
 0x3cc   : > { %v10418_v26 = vadd.f32 -1.0, %v11830_v32  ;;  %6463 = vst [vmem:[#allocation5 + $0x2e0] sm:$0xf] %v6280_v41  ;;  %v5203_v36 = vrot.slane %v5202_v35, 4  ;;  %v15011_v45 = vrot.slane %v16037_v51, 5  ;;  %v5212_v31 = vor.u32 %v5211_v55, %v5207_v48  ;;  %v15018_v55 = vpop.f32.mrf.mxu1  ;;  %v11600_v22 = vld [vmem:[#allocation6 + $0x180] sm:$0xff] }
 0x3cd   : > { %v4909_v7 = vor.u32 %v4907_v1, %v15005_v18  ;;  %6464 = vst [vmem:[#allocation5 + $0x304] sm:$0xf] %v6290_v38  ;;  %v6012_v30 = vld [vmem:[#allocation3 + $0x90] sm:$0xf]  ;;  %v15024_v33 = vrot.slane %v16040_v9, 4  ;;  %v4910_v32 = vrot.slane %v15005_v18, 4 }
 0x3ce   : > { %v4497_v25 = vsel %vm4369_vm8, %v14977_v63, %v10418_v26  ;;  %16038 = vst [vmem:[#allocation33_spill] sm:$0xff] %v15016_v49  ;;  %v5213_v54 = vrot.slane %v5212_v31, 4  ;;  %v5208_v21 = vsel %vm12051_vm6, %v5203_v36, %v5207_v48  ;;  %v5080_v35 = vld [vmem:[#allocation3 + $0xc8] sm:$0x1]  ;;  %v6292_v36 = vshrl.u32 %v6012_v30, 16 }
 0x3cf   : > { %v5077_v1 = vsel %vm13272_vm11, %v4909_v7, %v5076_v6  ;;  %v4647_v60 = vpack.c.bf16 %v4497_v25, %v4497_v25  ;;  %9465 = vmatmul.bf16.gmra.mxu2 %v10810_v11  ;;  %v5114_v56 = vld [vmem:[#allocation3 + $0xb8] sm:$0xf]  ;;  %16039 = vst [vmem:[#allocation34_spill] sm:$0xff] %v15018_v55  ;;  %v6013_v6 = vld [vmem:[#allocation3 + $0x94] sm:$0xf]  ;;  %9596 = vmatpush.bf16.msra.mxu1 %v11601_v34 }
 0x3d0   : > { %v5944_v41 = vld [vmem:[#allocation3 + $0xb8] sm:$0xf]  ;;  %5078 = vst [vmem:[#allocation3 + $0xc0] sm:$0xf] %v5077_v1  ;;  %v5690_v38 = vld [vmem:[#allocation3 + $0xbc] sm:$0x1]  ;;  %v5218_v48 = vsel %vm12051_vm6, %v5213_v54, %v5217_v8 }
 0x3d1   : > { %v5689_v40 = vld [vmem:[#allocation3 + $0xb8] sm:$0xf]  ;;  %v4912_v20 = vshrl.u32 %v4647_v60, 16  ;;  %5146 = vst [vmem:[#allocation5 + $0x45c] sm:$0xf] %v5114_v56  ;;  %v5849_v43 = vrot.slane %v5690_v38, 5 }
 0x3d2   : > { %v5846_v63 = vrot.slane %v5689_v40, 5  ;;  %v5173_v11 = vld [vmem:[#allocation3 + $0x68] sm:$0x1]  ;;  %v15027_v26 = vpop.f32.mrf.mxu2  ;;  %5976 = vst [vmem:[#allocation5 + $0x420] sm:$0xf] %v5944_v41  ;;  %v4915_v25 = vshll.u32 %v4647_v60, 16 }
 0x3d3   : > { %v4914_v51 = vrot.slane %v4912_v20, 7  ;;  %5611 = vst [vmem:[#allocation5 + $0x4] sm:$0xf] %v5208_v21  ;;  %v6014_v31 = vld [vmem:[#allocation3 + $0x98] sm:$0x1]  ;;  %v6295_v1 = vshll.u32 %v6012_v30, 16  ;;  %9597 = vmatpush.bf16.msra.mxu1 %v11600_v22 }
 0x3d4   : > { %v5847_v19 = vsel %vm12025_vm3, %v10434_v5, %v5846_v63  ;;  %v5848_v7 = vrot.slane %v5846_v63, 4  ;;  %v6301_v56 = vshll.u32 %v6013_v6, 16  ;;  %v5400_v5 = vsel %vm12051_vm6, %v14966_v10, %v15011_v45  ;;  %v11610_v8 = vld [vmem:[#allocation6 + $0x1d0] sm:$0xff]  ;;  %v11623_v38 = vld [vmem:[#allocation6 + $0x238] sm:$0xff]  ;;  %5612 = vst [vmem:[#allocation5 + $0x28] sm:$0xf] %v5218_v48  ;;  %v15045_v48 = vpop.f32.mrf.mxu0 }
 0x3d5   : > { %5913 = vst [vmem:[#allocation5 + $0x440] sm:$0xf] %v5847_v19  ;;  %v4917_v60 = vor.u32 %v4915_v25, %v4914_v51  ;;  %v4919_v41 = vrot.slane %v4914_v51, 4  ;;  %v6294_v40 = vrot.slane %v6292_v36, 4  ;;  %v11009_v63 = vld [vmem:[#allocation5 + $0x438] sm:$0xf]  ;;  %9684 = vmatpush.bf16.msra.mxu0 %v11610_v8  ;;  %9768 = vmatpush.bf16.msra.mxu2 %v11623_v38 }
 0x3d6   : > { %v5850_v18 = vsel %vm12025_vm3, %v5848_v7, %v5849_v43  ;;  %v6297_v54 = vrot.slane %v6295_v1, 5  ;;  %v6303_v20 = vrot.slane %v6301_v56, 5  ;;  %v6305_v34 = vshrl.u32 %v6013_v6, 16  ;;  %v11609_v10 = vld [vmem:[#allocation6 + $0x1c8] sm:$0xff]  ;;  %5627 = vst [vmem:[#allocation5 + $0x244] sm:$0xf] %v5400_v5  ;;  %v15049_v5 = vpop.f32.mrf.mxu1 }
 0x3d7   : > { %5914 = vst [vmem:[#allocation5 + $0x464] sm:$0xf] %v5850_v18  ;;  %v5407_v21 = vshll.u32 %v5173_v11, 16  ;;  %v4918_v30 = vsel %vm12168_vm14, %v4910_v32, %v4917_v60  ;;  %v5081_v9 = vsel %vm13070_vm9, %v4919_v41, %v5080_v35  ;;  %v5945_v19 = vld [vmem:[#allocation3 + $0xc0] sm:$0xf]  ;;  %v5404_v7 = vor.u32 %v15024_v33, %v15011_v45 }
 0x3d8   : > { %5079 = vst [vmem:[#allocation3 + $0xc4] sm:$0xf] %v4918_v30  ;;  %v11547_v43 = vld [vmem:[#allocation5 + $0x458] sm:$0xf0]  ;;  %v6298_v51 = vor.u32 %v6297_v54, %v6294_v40  ;;  %v6307_v6 = vrot.slane %v6305_v34, 4  ;;  %v6311_v11 = vshll.u32 %v6014_v31, 16 }
 0x3d9   : > { %5082 = vst [vmem:[#allocation3 + $0xc8] sm:$0x1] %v5081_v9  ;;  %v11010_v52 = vor.u32 %v11547_v43, %v11009_v63  ;;  %v11535_v32 = vld [vmem:[#allocation5 + $0x3fc] sm:$0xf]  ;;  %v10983_v25 = vld [vmem:[#allocation5 + $0x41c] sm:$0xf0]  ;;  %9685 = vmatpush.bf16.msra.mxu0 %v11609_v10 }
 0x3da   : > { %16041 = vst [vmem:[#allocation35_spill] sm:$0xff] %v15045_v48  ;;  %v10986_v35 = vor.u32 %v11535_v32, %v10983_v25  ;;  %v15047_v36 = vpop.f32.mrf.mxu2  ;;  %v10845_v18 = vld [vmem:[#allocation5 + $0x2e0] sm:$0xf]  ;;  %v11504_v1 = vld [vmem:[#allocation5 + $0x300] sm:$0xf0]  ;;  %v6299_v45 = vrot.slane %v6298_v51, 4  ;;  %v6308_v33 = vor.u32 %v6307_v6, %v6303_v20 }
 0x3db   : > { %16042 = vst [vmem:[#allocation36_spill] sm:$0xff] %v15047_v36  ;;  %v5409_v56 = vrot.slane %v5407_v21, 5  ;;  %9139 = vmatmul.bf16.gmra.mxu3 %v11010_v52  ;;  %v11608_v31 = vld [vmem:[#allocation6 + $0x1c0] sm:$0xff]  ;;  %v6762_v60 = vld [vmem:[#allocation3 + $0x6c] sm:$0xf]  ;;  %v5405_v41 = vrot.slane %v5404_v7, 4  ;;  %v10846_v9 = vor.u32 %v11504_v1, %v10845_v18 }
 0x3dc   : > { %5977 = vst [vmem:[#allocation5 + $0x444] sm:$0xf] %v5945_v19  ;;  %v11017_v22 = vld [vmem:[#allocation5 + $0x440] sm:$0xf]  ;;  %v15051_v40 = vld [vmem:[#allocation3 + $0x3c] sm:$0xe]  ;;  %9401 = vmatmul.bf16.gmra.mxu0 %v10986_v35  ;;  %v6304_v38 = vsel %vm12051_vm6, %v6299_v45, %v6303_v20 }
 0x3dd   : > { %16043 = vst [vmem:[#allocation37_spill] sm:$0xff] %v15049_v5  ;;  %v6309_v63 = vrot.slane %v6308_v33, 4  ;;  %v6313_v54 = vrot.slane %v6311_v11, 5  ;;  %v6015_v34 = vld [vmem:[#allocation3 + $0x9c] sm:$0xf]  ;;  %v5410_v35 = vsel %vm12051_vm6, %v5405_v41, %v5409_v56  ;;  %9686 = vmatpush.bf16.msra.mxu0 %v11608_v31 }
 0x3de   : > { %v11548_v8 = vld [vmem:[#allocation5 + $0x460] sm:$0xf0]  ;;  %v15055_v30 = vld [vmem:[#allocation3 + $0x60] sm:$0xe]  ;;  %6465 = vst [vmem:[#allocation5 + $0x328] sm:$0xf] %v6304_v38  ;;  %v15068_v41 = vpop.f32.mrf.mxu1 }
 0x3df   : > { %v11018_v21 = vor.u32 %v11548_v8, %v11017_v22  ;;  %v6016_v19 = vld [vmem:[#allocation3 + $0xa0] sm:$0xf]  ;;  %v6763_v10 = vld [vmem:[#allocation3 + $0x70] sm:$0xf]  ;;  %v7327_v43 = vld [vmem:[#allocation3 + $0x64] sm:$0xf]  ;;  %v6314_v7 = vsel %vm12051_vm6, %v6309_v63, %v6313_v54  ;;  %9470 = vmatmul.bf16.gmra.mxu2 %v10846_v9 }
 0x3e0   : > { %v15057_v51 = vld [vmem:[#allocation3 + $0x68] sm:$0x1]  ;;  %v6017_v6 = vld [vmem:[#allocation3 + $0xa4] sm:$0x1]  ;;  %v6316_v52 = vshrl.u32 %v6015_v34, 16  ;;  %v6319_v32 = vshll.u32 %v6015_v34, 16 }
 0x3e1   : > { %6794 = vst [vmem:[#allocation5 + $0x210] sm:$0xf] %v6762_v60  ;;  %9317 = vmatmul.bf16.gmra.mxu1 %v11018_v21  ;;  %v5946_v20 = vld [vmem:[#allocation3 + $0xc4] sm:$0xf]  ;;  %v6325_v11 = vshll.u32 %v6016_v19, 16  ;;  %v6329_v25 = vshrl.u32 %v6016_v19, 16 }
 0x3e2   : > { %6466 = vst [vmem:[#allocation5 + $0x34c] sm:$0xf] %v6314_v7  ;;  %v6318_v18 = vrot.slane %v6316_v52, 4  ;;  %v6321_v1 = vrot.slane %v6319_v32, 5  ;;  %v6335_v8 = vshll.u32 %v6017_v6, 16  ;;  %v10457_v60 = vrot.slane %v15055_v30, 9  ;;  %v15065_v38 = vpop.f32.mrf.mxu2  ;;  %v15070_v7 = vpop.f32.mrf.mxu0 }
 0x3e3   : > { %5978 = vst [vmem:[#allocation5 + $0x468] sm:$0xf] %v5946_v20  ;;  %v6327_v33 = vrot.slane %v6325_v11, 5  ;;  %v6331_v22 = vrot.slane %v6329_v25, 4  ;;  %v11408_v63 = vld [vmem:[#allocation5 + $0x4] sm:$0xf] }
 0x3e4   : > { %6795 = vst [vmem:[#allocation5 + $0x234] sm:$0xf] %v6763_v10  ;;  %v6322_v54 = vor.u32 %v6321_v1, %v6318_v18  ;;  %v7448_v34 = vrot.slane %v7327_v43, 5  ;;  %v7451_v56 = vrot.slane %v15057_v51, 5  ;;  %v6833_v21 = vld [vmem:[#allocation3 + $0x6c] sm:$0xf] }
 0x3e5   : > { %16044 = vst [vmem:[#allocation38_spill] sm:$0xff] %v15065_v38  ;;  %v6332_v31 = vor.u32 %v6331_v22, %v6327_v33  ;;  %v6834_v9 = vld [vmem:[#allocation3 + $0x70] sm:$0xf]  ;;  %v6835_v19 = vld [vmem:[#allocation3 + $0x74] sm:$0x1]  ;;  %v7029_v52 = vshrl.u32 %v6833_v21, 16 }
 0x3e6   : > { %5628 = vst [vmem:[#allocation5 + $0x268] sm:$0xf] %v5410_v35  ;;  %v10471_v6 = vld [vmem:[#allocation5 + $0x24] sm:$0xf0]  ;;  %v6323_v10 = vrot.slane %v6322_v54, 4  ;;  %v7032_v30 = vshll.u32 %v6833_v21, 16 }
 0x3e7   : > { %16045 = vst [vmem:[#allocation39_spill] sm:$0xff] %v15068_v41  ;;  %v7038_v32 = vshll.u32 %v6834_v9, 16  ;;  %v6333_v20 = vrot.slane %v6332_v31, 4  ;;  %v6337_v11 = vrot.slane %v6335_v8, 5  ;;  %v7042_v25 = vshrl.u32 %v6834_v9, 16 }
 0x3e8   : > { %16046 = vst [vmem:[#allocation40_spill] sm:$0xff] %v15070_v7  ;;  %v7048_v35 = vshll.u32 %v6835_v19, 16  ;;  %v15072_v43 = vld [vmem:[#allocation3 + $0x40] sm:$0xf]  ;;  %v11544_v51 = vld [vmem:[#allocation5 + $0x444] sm:$0xf]  ;;  %v6328_v18 = vsel %vm12051_vm6, %v6323_v10, %v6327_v33  ;;  %v10474_v57 = vor.u32 %v11408_v63, %v10471_v6  ;;  %v7449_v8 = vsel %vm12025_vm3, %v10457_v60, %v7448_v34 }
 0x3e9   : > { %v7031_v1 = vrot.slane %v7029_v52, 4  ;;  %v7034_v22 = vrot.slane %v7032_v30, 5  ;;  %v7040_v45 = vrot.slane %v7038_v32, 5  ;;  %v11415_v41 = vld [vmem:[#allocation5 + $0x38] sm:$0xf0]  ;;  %v6338_v54 = vsel %vm12051_vm6, %v6333_v20, %v6337_v11  ;;  %v11598_v60 = vld [vmem:[#allocation6 + $0x170] sm:$0xff] }
 0x3ea   : > { %v11019_v7 = vld [vmem:[#allocation5 + $0x464] sm:$0xf0]  ;;  %6467 = vst [vmem:[#allocation5 + $0x370] sm:$0xf] %v6328_v18  ;;  %v7044_v31 = vrot.slane %v7042_v25, 4  ;;  %v7450_v48 = vrot.slane %v7448_v34, 4  ;;  %v15081_v32 = vpop.f32.mrf.mxu2  ;;  %9502 = vmatpush.bf16.msra.mxu3 %v11598_v60 }
 0x3eb   : > { %v11022_v21 = vor.u32 %v11544_v51, %v11019_v7  ;;  %6468 = vst [vmem:[#allocation5 + $0x394] sm:$0xf] %v6338_v54  ;;  %v7035_v9 = vor.u32 %v7034_v22, %v7031_v1  ;;  %v5174_v19 = vld [vmem:[#allocation3 + $0x6c] sm:$0xf]  ;;  %v10881_v10 = vld [vmem:[#allocation5 + $0x328] sm:$0xf]  ;;  %9153 = vmatmul.bf16.vlgmr.msrb.gmra.mxu3 %v10474_v57 }
 0x3ec   : > { %v11513_v52 = vld [vmem:[#allocation5 + $0x348] sm:$0xf0]  ;;  %v10493_v63 = vld [vmem:[#allocation5 + $0x18] sm:$0xf]  ;;  %v7045_v6 = vor.u32 %v7044_v31, %v7040_v45  ;;  %16047 = vst [vmem:[#allocation41_spill] sm:$0xff] %v15081_v32  ;;  %v7050_v11 = vrot.slane %v7048_v35, 5  ;;  %v7452_v35 = vsel %vm12025_vm3, %v7450_v48, %v7451_v56 }
 0x3ed   : > { %v5175_v30 = vld [vmem:[#allocation3 + $0x70] sm:$0xf]  ;;  %v7036_v20 = vrot.slane %v7035_v9, 4  ;;  %v5412_v25 = vshrl.u32 %v5174_v19, 16  ;;  %v5415_v18 = vshll.u32 %v5174_v19, 16  ;;  %9406 = vmatmul.bf16.gmra.mxu0 %v11022_v21  ;;  %v10882_v22 = vor.u32 %v11513_v52, %v10881_v10  ;;  %v15087_v9 = vpop.f32.mrf.mxu1  ;;  %v15089_v21 = vpop.f32.mrf.mxu0 }
 0x3ee   : > { %7560 = vst [vmem:[#allocation5 + $0x1d0] sm:$0xf] %v7449_v8  ;;  %v7046_v7 = vrot.slane %v7045_v6, 4  ;;  %v5176_v51 = vld [vmem:[#allocation3 + $0x74] sm:$0x1]  ;;  %v5421_v1 = vshll.u32 %v5175_v30, 16  ;;  %v10494_v54 = vor.u32 %v11415_v41, %v10493_v63 }
 0x3ef   : > { %v5425_v34 = vshrl.u32 %v5175_v30, 16  ;;  %v6018_v33 = vld [vmem:[#allocation3 + $0xa8] sm:$0xf]  ;;  %v6019_v5 = vld [vmem:[#allocation3 + $0xac] sm:$0xf]  ;;  %v7041_v49 = vsel %vm12051_vm6, %v7036_v20, %v7040_v45  ;;  %16048 = vst [vmem:[#allocation42_spill] sm:$0xff] %v15087_v9  ;;  %9475 = vmatmul.bf16.gmra.mxu2 %v10882_v22 }
 0x3f0   : > { %v6020_v31 = vld [vmem:[#allocation3 + $0xb0] sm:$0x1]  ;;  %v6340_v57 = vshrl.u32 %v6018_v33, 16  ;;  %v6343_v8 = vshll.u32 %v6018_v33, 16  ;;  %v6349_v19 = vshll.u32 %v6019_v5, 16  ;;  %v6353_v6 = vshrl.u32 %v6019_v5, 16 }
 0x3f1   : > { %7290 = vst [vmem:[#allocation5 + $0x214] sm:$0xf] %v7041_v49  ;;  %v6359_v41 = vshll.u32 %v6020_v31, 16  ;;  %v7051_v10 = vsel %vm12051_vm6, %v7046_v7, %v7050_v11  ;;  %v5414_v52 = vrot.slane %v5412_v25, 4  ;;  %v5417_v63 = vrot.slane %v5415_v18, 5  ;;  %9598 = vmatmul.bf16.vlgmr.msra.gmra.mxu1 %v10494_v54  ;;  %v11622_v20 = vld [vmem:[#allocation6 + $0x230] sm:$0xff] }
 0x3f2   : > { %16049 = vst [vmem:[#allocation43_spill] sm:$0xff] %v15089_v21  ;;  %v6342_v45 = vrot.slane %v6340_v57, 4  ;;  %v6345_v48 = vrot.slane %v6343_v8, 5  ;;  %v6351_v56 = vrot.slane %v6349_v19, 5  ;;  %v6355_v30 = vrot.slane %v6353_v6, 4  ;;  %v15099_v18 = vpop.f32.mrf.mxu2  ;;  %9769 = vmatpush.bf16.msra.mxu2 %v11622_v20 }
 0x3f3   : > { %7291 = vst [vmem:[#allocation5 + $0x238] sm:$0xf] %v7051_v10  ;;  %v5418_v33 = vor.u32 %v5417_v63, %v5414_v52  ;;  %v5423_v60 = vrot.slane %v5421_v1, 5  ;;  %v5431_v5 = vshll.u32 %v5176_v51, 16  ;;  %v5427_v21 = vrot.slane %v5425_v34, 4 }
 0x3f4   : > { %v6346_v49 = vor.u32 %v6345_v48, %v6342_v45  ;;  %v6356_v9 = vor.u32 %v6355_v30, %v6351_v56  ;;  %7561 = vst [vmem:[#allocation5 + $0x1f4] sm:$0xf] %v7452_v35  ;;  %v16050_v31 = vrot.slane %v15072_v43, 5  ;;  %v16051_v11 = vrot.slane %v15051_v40, 9  ;;  %v7329_v22 = vld [vmem:[#allocation3 + $0x6c] sm:$0xe] }
 0x3f5   : > { %16052 = vst [vmem:[#allocation44_spill] sm:$0xff] %v15099_v18  ;;  %v5419_v7 = vrot.slane %v5418_v33, 4  ;;  %v7330_v54 = vld [vmem:[#allocation3 + $0x70] sm:$0xf]  ;;  %v6361_v51 = vrot.slane %v6359_v41, 5  ;;  %v5428_v8 = vor.u32 %v5427_v21, %v5423_v60  ;;  %v5433_v35 = vrot.slane %v5431_v5, 5  ;;  %v15103_v40 = vpop.f32.mrf.mxu1 }
 0x3f6   : > { %v6602_v25 = vsel %vm12025_vm3, %v16051_v11, %v16050_v31  ;;  %v6347_v57 = vrot.slane %v6346_v49, 4  ;;  %v6357_v1 = vrot.slane %v6356_v9, 4  ;;  %v7331_v19 = vld [vmem:[#allocation3 + $0x74] sm:$0x1]  ;;  %v7455_v6 = vrot.slane %v7330_v54, 5  ;;  %16053 = vst [vmem:[#allocation45_spill] sm:$0xff] %v15103_v40  ;;  %v15113_v49 = vpop.f32.mrf.mxu0 }
 0x3f7   : > { %v5424_v34 = vsel %vm12051_vm6, %v5419_v7, %v5423_v60  ;;  %6723 = vst [vmem:[#allocation5 + $0x134] sm:$0xf] %v6602_v25  ;;  %v10507_v10 = vld [vmem:[#allocation5 + $0x6c] sm:$0xf0]  ;;  %v5429_v45 = vrot.slane %v5428_v8, 4  ;;  %v10458_v9 = vrot.slane %v7329_v22, 9 }
 0x3f8   : > { %v6352_v52 = vsel %vm12051_vm6, %v6347_v57, %v6351_v56  ;;  %v6362_v63 = vsel %vm12051_vm6, %v6357_v1, %v6361_v51  ;;  %5629 = vst [vmem:[#allocation5 + $0x28c] sm:$0xf] %v5424_v34  ;;  %v11417_v21 = vld [vmem:[#allocation5 + $0x4c] sm:$0xf]  ;;  %v10495_v41 = vld [vmem:[#allocation5 + $0x3c] sm:$0xf0] }
 0x3f9   : > { %6469 = vst [vmem:[#allocation5 + $0x3b8] sm:$0xf] %v6352_v52  ;;  %v7457_v48 = vrot.slane %v7455_v6, 4  ;;  %v7458_v30 = vrot.slane %v7331_v19, 5  ;;  %v11411_v20 = vld [vmem:[#allocation5 + $0x1c] sm:$0xf]  ;;  %v5434_v5 = vsel %vm12051_vm6, %v5429_v45, %v5433_v35  ;;  %v7456_v56 = vsel %vm12025_vm3, %v10458_v9, %v7455_v6 }
 0x3fa   : > { %v11522_v33 = vld [vmem:[#allocation5 + $0x390] sm:$0xf0]  ;;  %v11424_v60 = vld [vmem:[#allocation5 + $0x80] sm:$0xf0]  ;;  %6470 = vst [vmem:[#allocation5 + $0x3dc] sm:$0xf] %v6362_v63  ;;  %v10510_v7 = vor.u32 %v11417_v21, %v10507_v10  ;;  %v15117_v1 = vpop.f32.mrf.mxu2  ;;  %v10498_v51 = vor.u32 %v11411_v20, %v10495_v41 }
 0x3fb   : > { %16054 = vst [vmem:[#allocation46_spill] sm:$0xff] %v15113_v49  ;;  %v6764_v31 = vld [vmem:[#allocation3 + $0x78] sm:$0xf]  ;;  %v7459_v25 = vsel %vm12025_vm3, %v7457_v48, %v7458_v30  ;;  %v10917_v8 = vld [vmem:[#allocation5 + $0x370] sm:$0xf] }
 0x3fc   : > { %5630 = vst [vmem:[#allocation5 + $0x2b0] sm:$0xf] %v5434_v5  ;;  %v6836_v11 = vld [vmem:[#allocation3 + $0x78] sm:$0xf]  ;;  %9158 = vmatmul.bf16.gmra.mxu3 %v10510_v7  ;;  %v10918_v52 = vor.u32 %v11522_v33, %v10917_v8  ;;  %v6021_v45 = vld [vmem:[#allocation3 + $0xb4] sm:$0xf] }
 0x3fd   : > { %6796 = vst [vmem:[#allocation5 + $0x258] sm:$0xf] %v6764_v31  ;;  %v7053_v22 = vshrl.u32 %v6836_v11, 16  ;;  %v7056_v54 = vshll.u32 %v6836_v11, 16  ;;  %v5177_v57 = vld [vmem:[#allocation3 + $0x78] sm:$0xf]  ;;  %9687 = vmatmul.bf16.vlgmr.msra.gmra.mxu0 %v10498_v51  ;;  %v15121_v7 = vpop.f32.mrf.mxu1 }
 0x3fe   : > { %16055 = vst [vmem:[#allocation47_spill] sm:$0xff] %v15117_v1  ;;  %v10529_v19 = vld [vmem:[#allocation5 + $0x60] sm:$0xf]  ;;  %v5436_v6 = vshrl.u32 %v5177_v57, 16  ;;  %v6023_v9 = vld [vmem:[#allocation3 + $0xbc] sm:$0x1] }
 0x3ff   : > { %7562 = vst [vmem:[#allocation5 + $0x218] sm:$0xf] %v7456_v56  ;;  %v7055_v34 = vrot.slane %v7053_v22, 4  ;;  %v7058_v35 = vrot.slane %v7056_v54, 5  ;;  %v10530_v63 = vor.u32 %v11424_v60, %v10529_v19  ;;  %v6022_v10 = vld [vmem:[#allocation3 + $0xb8] sm:$0xf]  ;;  %9480 = vmatmul.bf16.gmra.mxu2 %v10918_v52 }
 0x400   : > { %7563 = vst [vmem:[#allocation5 + $0x23c] sm:$0xf] %v7459_v25  ;;  %v6364_v21 = vshrl.u32 %v6021_v45, 16  ;;  %v6367_v48 = vshll.u32 %v6021_v45, 16  ;;  %v6373_v30 = vshll.u32 %v6022_v10, 16  ;;  %v6377_v5 = vshrl.u32 %v6022_v10, 16 }
 0x401   : > { %v6489_v31 = vld [vmem:[#allocation3 + $0x44] sm:$0x1]  ;;  %v6383_v41 = vshll.u32 %v6023_v9, 16  ;;  %v5439_v20 = vshll.u32 %v5177_v57, 16  ;;  %v16056_v56 = vrot.slane %v15072_v43, 5  ;;  %16057 = vst [vmem:[#allocation48_spill] sm:$0xff] %v15121_v7  ;;  %9603 = vmatmul.bf16.gmra.mxu1 %v10530_v63  ;;  %v7059_v22 = vor.u32 %v7058_v35, %v7055_v34  ;;  %v15123_v9 = vpop.f32.mrf.mxu0 }
 0x402   : > { %v6366_v25 = vrot.slane %v6364_v21, 4  ;;  %v6369_v33 = vrot.slane %v6367_v48, 5  ;;  %v6375_v60 = vrot.slane %v6373_v30, 5  ;;  %v6379_v54 = vrot.slane %v6377_v5, 4  ;;  %v6765_v51 = vld [vmem:[#allocation3 + $0x7c] sm:$0xf]  ;;  %v15125_v57 = vpop.f32.mrf.mxu2 }
 0x403   : > { %v6603_v11 = vrot.slane %v16056_v56, 4  ;;  %v6604_v8 = vrot.slane %v6489_v31, 5  ;;  %6797 = vst [vmem:[#allocation5 + $0x27c] sm:$0xf] %v6765_v51  ;;  %v6837_v45 = vld [vmem:[#allocation3 + $0x7c] sm:$0xf] }
 0x404   : > { %v6370_v19 = vor.u32 %v6369_v33, %v6366_v25  ;;  %v5438_v10 = vrot.slane %v5436_v6, 4  ;;  %16058 = vst [vmem:[#allocation49_spill] sm:$0xff] %v15123_v9  ;;  %v6380_v43 = vor.u32 %v6379_v54, %v6375_v60  ;;  %v6385_v56 = vrot.slane %v6383_v41, 5  ;;  %v6838_v7 = vld [vmem:[#allocation3 + $0x80] sm:$0x1] }
 0x405   : > { %16059 = vst [vmem:[#allocation50_spill] sm:$0xff] %v15125_v57  ;;  %v7062_v52 = vshll.u32 %v6837_v45, 16  ;;  %v5178_v63 = vld [vmem:[#allocation3 + $0x7c] sm:$0xf]  ;;  %v6605_v21 = vsel %vm12025_vm3, %v6603_v11, %v6604_v8  ;;  %v7060_v35 = vrot.slane %v7059_v22, 4  ;;  %v7066_v48 = vshrl.u32 %v6837_v45, 16 }
 0x406   : > { %v6371_v34 = vrot.slane %v6370_v19, 4  ;;  %v5441_v30 = vrot.slane %v5439_v20, 5  ;;  %v10543_v5 = vld [vmem:[#allocation5 + $0xb4] sm:$0xf0]  ;;  %v6381_v31 = vrot.slane %v6380_v43, 4  ;;  %v5445_v6 = vshll.u32 %v5178_v63, 16  ;;  %v15135_v19 = vpop.f32.mrf.mxu1 }
 0x407   : > { %v7064_v25 = vrot.slane %v7062_v52, 5  ;;  %v5449_v33 = vshrl.u32 %v5178_v63, 16  ;;  %v7068_v54 = vrot.slane %v7066_v48, 4  ;;  %v7072_v41 = vshll.u32 %v6838_v7, 16  ;;  %v5179_v9 = vld [vmem:[#allocation3 + $0x80] sm:$0x1] }
 0x408   : > { %v6376_v51 = vsel %vm12051_vm6, %v6371_v34, %v6375_v60  ;;  %v5442_v49 = vor.u32 %v5441_v30, %v5438_v10  ;;  %6724 = vst [vmem:[#allocation5 + $0x158] sm:$0xf] %v6605_v21  ;;  %v11426_v40 = vld [vmem:[#allocation5 + $0x94] sm:$0xf]  ;;  %v10531_v55 = vld [vmem:[#allocation5 + $0x84] sm:$0xf0]  ;;  %v6386_v11 = vsel %vm12051_vm6, %v6381_v31, %v6385_v56 }
 0x409   : > { %6471 = vst [vmem:[#allocation5 + $0x400] sm:$0xf] %v6376_v51  ;;  %v7065_v20 = vsel %vm12051_vm6, %v7060_v35, %v7064_v25  ;;  %v5447_v22 = vrot.slane %v5445_v6, 5  ;;  %v5451_v8 = vrot.slane %v5449_v33, 4  ;;  %v7069_v60 = vor.u32 %v7068_v54, %v7064_v25  ;;  %v6491_v7 = vld [vmem:[#allocation3 + $0x4c] sm:$0xf] }
 0x40a   : > { %16060 = vst [vmem:[#allocation51_spill] sm:$0xff] %v15135_v19  ;;  %v5443_v45 = vrot.slane %v5442_v49, 4  ;;  %v11420_v43 = vld [vmem:[#allocation5 + $0x64] sm:$0xf]  ;;  %v11621_v10 = vld [vmem:[#allocation6 + $0x228] sm:$0xff]  ;;  %v5455_v63 = vshll.u32 %v5179_v9, 16  ;;  %v10546_v21 = vor.u32 %v11426_v40, %v10543_v5  ;;  %v15139_v31 = vpop.f32.mrf.mxu2  ;;  %v15141_v5 = vpop.f32.mrf.mxu0 }
 0x40b   : > { %6472 = vst [vmem:[#allocation5 + $0x424] sm:$0xf] %v6386_v11  ;;  %v5452_v52 = vor.u32 %v5451_v8, %v5447_v22  ;;  %v11531_v34 = vld [vmem:[#allocation5 + $0x3d8] sm:$0xf0]  ;;  %v10565_v56 = vld [vmem:[#allocation5 + $0xa8] sm:$0xf]  ;;  %v10534_v6 = vor.u32 %v11420_v43, %v10531_v55  ;;  %9770 = vmatpush.bf16.msra.mxu2 %v11621_v10 }
 0x40c   : > { %7292 = vst [vmem:[#allocation5 + $0x25c] sm:$0xf] %v7065_v20  ;;  %v11433_v48 = vld [vmem:[#allocation5 + $0xc8] sm:$0xf0]  ;;  %v7070_v30 = vrot.slane %v7069_v60, 4  ;;  %v5448_v35 = vsel %vm12051_vm6, %v5443_v45, %v5447_v22  ;;  %v7074_v49 = vrot.slane %v7072_v41, 5  ;;  %9163 = vmatmul.bf16.gmra.mxu3 %v10546_v21 }
 0x40d   : > { %16061 = vst [vmem:[#allocation52_spill] sm:$0xff] %v15139_v31  ;;  %v10953_v33 = vld [vmem:[#allocation5 + $0x3b8] sm:$0xf]  ;;  %v5453_v25 = vrot.slane %v5452_v52, 4  ;;  %v6608_v51 = vrot.slane %v6491_v7, 5  ;;  %v11597_v54 = vld [vmem:[#allocation6 + $0x168] sm:$0xff]  ;;  %9692 = vmatmul.bf16.gmra.mxu0 %v10534_v6  ;;  %v10566_v11 = vor.u32 %v11433_v48, %v10565_v56 }
 0x40e   : > { %5631 = vst [vmem:[#allocation5 + $0x2d4] sm:$0xf] %v5448_v35  ;;  %v6490_v9 = vld [vmem:[#allocation3 + $0x48] sm:$0xe]  ;;  %v6492_v40 = vld [vmem:[#allocation3 + $0x50] sm:$0x1]  ;;  %v7075_v55 = vsel %vm12051_vm6, %v7070_v30, %v7074_v49  ;;  %v10954_v45 = vor.u32 %v11531_v34, %v10953_v33  ;;  %9503 = vmatpush.bf16.msra.mxu3 %v11597_v54  ;;  %v15149_v54 = vpop.f32.mrf.mxu1 }
 0x40f   : > { %16062 = vst [vmem:[#allocation53_spill] sm:$0xff] %v15141_v5  ;;  %v11620_v20 = vld [vmem:[#allocation6 + $0x220] sm:$0xff]  ;;  %v6024_v8 = vld [vmem:[#allocation3 + $0xc0] sm:$0xf]  ;;  %v6025_v22 = vld [vmem:[#allocation3 + $0xc4] sm:$0xf] }
 0x410   : > { %v5457_v60 = vrot.slane %v5455_v63, 5  ;;  %v6026_v41 = vld [vmem:[#allocation3 + $0xc8] sm:$0x1]  ;;  %v6388_v43 = vshrl.u32 %v6024_v8, 16  ;;  %v6391_v7 = vshll.u32 %v6024_v8, 16  ;;  %v6610_v10 = vrot.slane %v6608_v51, 4  ;;  %9771 = vmatpush.bf16.msra.mxu2 %v11620_v20 }
 0x411   : > { %v6397_v52 = vshll.u32 %v6025_v22, 16  ;;  %v6401_v21 = vshrl.u32 %v6025_v22, 16  ;;  %v10440_v56 = vrot.slane %v6490_v9, 9  ;;  %9485 = vmatmul.bf16.gmra.mxu2 %v10954_v45  ;;  %9608 = vmatmul.bf16.gmra.mxu1 %v10566_v11  ;;  %v11619_v5 = vld [vmem:[#allocation6 + $0x218] sm:$0xff]  ;;  %7293 = vst [vmem:[#allocation5 + $0x280] sm:$0xf] %v7075_v55 }
 0x412   : > { %v5458_v35 = vsel %vm12051_vm6, %v5453_v25, %v5457_v60  ;;  %v6390_v48 = vrot.slane %v6388_v43, 4  ;;  %v6393_v6 = vrot.slane %v6391_v7, 5  ;;  %v6611_v63 = vrot.slane %v6492_v40, 5  ;;  %16063 = vst [vmem:[#allocation54_spill] sm:$0xff] %v15149_v54  ;;  %v15153_v9 = vpop.f32.mrf.mxu2  ;;  %v11618_v8 = vld [vmem:[#allocation6 + $0x210] sm:$0xff]  ;;  %v15157_v7 = vpop.f32.mrf.mxu0  ;;  %v16183_v4 = vld [vmem:[#allocation48_spill] sm:$0xff] }
 0x413   : > { %v6399_v34 = vrot.slane %v6397_v52, 5  ;;  %v6403_v30 = vrot.slane %v6401_v21, 4  ;;  %v6407_v33 = vshll.u32 %v6026_v41, 16  ;;  %v6609_v49 = vsel %vm12025_vm3, %v10440_v56, %v6608_v51  ;;  %5632 = vst [vmem:[#allocation5 + $0x2f8] sm:$0xf] %v5458_v35 }
 0x414   : > { %v6394_v20 = vor.u32 %v6393_v6, %v6390_v48  ;;  %v6612_v25 = vsel %vm12025_vm3, %v6610_v10, %v6611_v63  ;;  %16064 = vst [vmem:[#allocation55_spill] sm:$0xff] %v15153_v9  ;;  %9772 = vmatpush.bf16.msra.mxu2 %v11619_v5  ;;  %v7332_v40 = vld [vmem:[#allocation3 + $0x78] sm:$0xe]  ;;  %v7333_v41 = vld [vmem:[#allocation3 + $0x7c] sm:$0xf]  ;;  %v11617_v5 = vld [vmem:[#allocation6 + $0x208] sm:$0xff] }
 0x415   : > { %v6404_v11 = vor.u32 %v6403_v30, %v6399_v34  ;;  %6725 = vst [vmem:[#allocation5 + $0x17c] sm:$0xf] %v6609_v49  ;;  %v6409_v60 = vrot.slane %v6407_v33, 5  ;;  %v10579_v45 = vld [vmem:[#allocation5 + $0xfc] sm:$0xf0]  ;;  %v10459_v52 = vrot.slane %v7332_v40, 9 }
 0x416   : > { %v6395_v22 = vrot.slane %v6394_v20, 4  ;;  %6726 = vst [vmem:[#allocation5 + $0x1a0] sm:$0xf] %v6612_v25  ;;  %v7334_v43 = vld [vmem:[#allocation3 + $0x80] sm:$0x1]  ;;  %v7462_v21 = vrot.slane %v7333_v41, 5 }
 0x417   : > { %v6405_v55 = vrot.slane %v6404_v11, 4  ;;  %16065 = vst [vmem:[#allocation56_spill] sm:$0xff] %v15157_v7  ;;  %v10567_v35 = vld [vmem:[#allocation5 + $0xcc] sm:$0xf0]  ;;  %v11435_v56 = vld [vmem:[#allocation5 + $0xdc] sm:$0xf] }
 0x418   : > { %v6400_v51 = vsel %vm12051_vm6, %v6395_v22, %v6399_v34  ;;  %9773 = vmatpush.bf16.msra.mxu2 %v11618_v8  ;;  %v7463_v48 = vsel %vm12025_vm3, %v10459_v52, %v7462_v21  ;;  %v7464_v6 = vrot.slane %v7462_v21, 4  ;;  %v7465_v63 = vrot.slane %v7334_v43, 5  ;;  %v15163_v34 = vpop.f32.mrf.mxu1  ;;  %v11429_v33 = vld [vmem:[#allocation5 + $0xac] sm:$0xf]  ;;  %v11540_v20 = vld [vmem:[#allocation5 + $0x420] sm:$0xf0]  ;;  %v15173_v43 = vpop.f32.mrf.mxu3 }
 0x419   : > { %v6410_v10 = vsel %vm12051_vm6, %v6405_v55, %v6409_v60  ;;  %6473 = vst [vmem:[#allocation5 + $0x448] sm:$0xf] %v6400_v51  ;;  %v10582_v30 = vor.u32 %v11435_v56, %v10579_v45  ;;  %v10570_v49 = vor.u32 %v11429_v33, %v10567_v35  ;;  %v11442_v25 = vld [vmem:[#allocation5 + $0x110] sm:$0xf0]  ;;  %v10989_v22 = vld [vmem:[#allocation5 + $0x400] sm:$0xf] }
 0x41a   : > { %6474 = vst [vmem:[#allocation5 + $0x46c] sm:$0xf] %v6410_v10  ;;  %v7466_v11 = vsel %vm12025_vm3, %v7464_v6, %v7465_v63  ;;  %v15167_v8 = vpop.f32.mrf.mxu2  ;;  %v10601_v40 = vld [vmem:[#allocation5 + $0xf0] sm:$0xf]  ;;  %v11616_v55 = vld [vmem:[#allocation6 + $0x200] sm:$0xff]  ;;  %v10990_v60 = vor.u32 %v11540_v20, %v10989_v22  ;;  %v15169_v45 = vpop.f32.mrf.mxu0 }
 0x41b   : > { %16066 = vst [vmem:[#allocation57_spill] sm:$0xff] %v15163_v34  ;;  %v10602_v51 = vor.u32 %v11442_v25, %v10601_v40  ;;  %v10603_v52 = vld [vmem:[#allocation5 + $0x114] sm:$0xf0]  ;;  %v11444_v21 = vld [vmem:[#allocation5 + $0x124] sm:$0xf] }
 0x41c   : > { %7564 = vst [vmem:[#allocation5 + $0x260] sm:$0xf] %v7463_v48  ;;  %9774 = vmatpush.bf16.msra.mxu2 %v11617_v5  ;;  %9168 = vmatmul.bf16.gmra.mxu3 %v10582_v30  ;;  %v10615_v5 = vld [vmem:[#allocation5 + $0x144] sm:$0xf0]  ;;  %v11438_v56 = vld [vmem:[#allocation5 + $0xf4] sm:$0xf] }
 0x41d   : > { %16067 = vst [vmem:[#allocation58_spill] sm:$0xff] %v15167_v8  ;;  %9697 = vmatmul.bf16.gmra.mxu0 %v10570_v49  ;;  %v10618_v35 = vor.u32 %v11444_v21, %v10615_v5  ;;  %v10606_v6 = vor.u32 %v11438_v56, %v10603_v52  ;;  %v11451_v30 = vld [vmem:[#allocation5 + $0x158] sm:$0xf0]  ;;  %v11596_v49 = vld [vmem:[#allocation6 + $0x160] sm:$0xff]  ;;  %v11425_v34 = vld [vmem:[#allocation5 + $0x88] sm:$0xf0] }
 0x41e   : > { %7565 = vst [vmem:[#allocation5 + $0x284] sm:$0xf] %v7466_v11  ;;  %v6493_v20 = vld [vmem:[#allocation3 + $0x54] sm:$0xe]  ;;  %v10637_v11 = vld [vmem:[#allocation5 + $0x138] sm:$0xf]  ;;  %9504 = vmatpush.bf16.msra.mxu3 %v11596_v49 }
 0x41f   : > { %16068 = vst [vmem:[#allocation59_spill] sm:$0xff] %v15169_v45  ;;  %v10638_v40 = vor.u32 %v11451_v30, %v10637_v11  ;;  %v10441_v5 = vrot.slane %v6493_v20, 9  ;;  %v10651_v20 = vld [vmem:[#allocation5 + $0x18c] sm:$0xf0]  ;;  %v10639_v11 = vld [vmem:[#allocation5 + $0x15c] sm:$0xf0] }
 0x420   : > { %9775 = vmatpush.bf16.msra.mxu2 %v11616_v55  ;;  %v15171_v41 = vpop.f32.mrf.mxu1  ;;  %v11025_v25 = vld [vmem:[#allocation5 + $0x448] sm:$0xf]  ;;  %v6494_v55 = vld [vmem:[#allocation3 + $0x58] sm:$0xf]  ;;  %v6767_v19 = vld [vmem:[#allocation3 + $0x88] sm:$0xf] }
 0x421   : > { %9490 = vmatmul.bf16.gmra.mxu2 %v10990_v60  ;;  %9613 = vmatmul.bf16.gmra.mxu1 %v10602_v51  ;;  %16069 = vst [vmem:[#allocation60_spill] sm:$0xff] %v15171_v41  ;;  %v11549_v63 = vld [vmem:[#allocation5 + $0x468] sm:$0xf0]  ;;  %v6495_v60 = vld [vmem:[#allocation3 + $0x5c] sm:$0x1]  ;;  %v15181_v51 = vpop.f32.mrf.mxu3  ;;  %v6615_v21 = vrot.slane %v6494_v55, 5 }
 0x422   : > { %v15175_v10 = vpop.f32.mrf.mxu2  ;;  %v15177_v48 = vpop.f32.mrf.mxu0  ;;  %v11026_v22 = vor.u32 %v11549_v63, %v11025_v25  ;;  %16073 = vst [vmem:[#allocation64_spill] sm:$0xff] %v15181_v51  ;;  %v6770_v25 = vld [vmem:[#allocation3 + $0x9c] sm:$0xf]  ;;  %v10537_v54 = vld [vmem:[#allocation5 + $0x68] sm:$0xf] }
 0x423   : > { %16070 = vst [vmem:[#allocation61_spill] sm:$0xff] %v15175_v10  ;;  %v6617_v56 = vrot.slane %v6615_v21, 4  ;;  %v11416_v51 = vld [vmem:[#allocation5 + $0x40] sm:$0xf0]  ;;  %v5182_v8 = vld [vmem:[#allocation3 + $0x8c] sm:$0x1] }
 0x424   : > { %16071 = vst [vmem:[#allocation62_spill] sm:$0xff] %v15177_v48  ;;  %v6766_v48 = vld [vmem:[#allocation3 + $0x84] sm:$0xf] }
 0x425   : > { %6802 = vst [vmem:[#allocation5 + $0x330] sm:$0xf] %v6770_v25  ;;  %v6771_v25 = vld [vmem:[#allocation3 + $0xa0] sm:$0xf] }
 0x426   : > { %6803 = vst [vmem:[#allocation5 + $0x354] sm:$0xf] %v6771_v25  ;;  %v11462_v25 = vld [vmem:[#allocation5 + $0x1b4] sm:$0xf] }
 0x427   : > { %6798 = vst [vmem:[#allocation5 + $0x2a0] sm:$0xf] %v6766_v48  ;;  %v11456_v48 = vld [vmem:[#allocation5 + $0x184] sm:$0xf] }
 0x428   : > { %v15179_v33 = vpop.f32.mrf.mxu1  ;;  %6799 = vst [vmem:[#allocation5 + $0x2c4] sm:$0xf] %v6767_v19 }
 0x429   : > { %16072 = vst [vmem:[#allocation63_spill] sm:$0xff] %v15179_v33 }
 0x42a   : > { %v15183_v52 = vpop.f32.mrf.mxu2  ;;  %v15189_v30 = vpop.f32.mrf.mxu0 }
 0x42b   : > { %16074 = vst [vmem:[#allocation65_spill] sm:$0xff] %v15183_v52  ;;  %v11595_v52 = vld [vmem:[#allocation6 + $0x158] sm:$0xff] }
 0x42c   : > { %9173 = vmatmul.bf16.gmra.mxu3 %v10618_v35  ;;  %v6616_v35 = vsel %vm12025_vm3, %v10441_v5, %v6615_v21  ;;  %16075 = vst [vmem:[#allocation66_spill] sm:$0xff] %v15189_v30 }
 0x42d   : > { %9702 = vmatmul.bf16.gmra.mxu0 %v10606_v6  ;;  %v6618_v6 = vrot.slane %v6495_v60, 5  ;;  %6727 = vst [vmem:[#allocation5 + $0x1c4] sm:$0xf] %v6616_v35  ;;  %v11447_v60 = vld [vmem:[#allocation5 + $0x13c] sm:$0xf]  ;;  %9505 = vmatpush.bf16.msra.mxu3 %v11595_v52 }
 0x42e   : > { %v10642_v21 = vor.u32 %v11447_v60, %v10639_v11  ;;  %v11460_v35 = vld [vmem:[#allocation5 + $0x1a0] sm:$0xf0] }
 0x42f   : > { %v6619_v63 = vsel %vm12025_vm3, %v6617_v56, %v6618_v6  ;;  %v10673_v56 = vld [vmem:[#allocation5 + $0x180] sm:$0xf] }
 0x430   : > { %6728 = vst [vmem:[#allocation5 + $0x1e8] sm:$0xf] %v6619_v63  ;;  %v15191_v49 = vpop.f32.mrf.mxu1  ;;  %v10501_v6 = vld [vmem:[#allocation5 + $0x20] sm:$0xf] }
 0x431   : > { %9495 = vmatmul.bf16.gmra.mxu2 %v11026_v22  ;;  %9618 = vmatmul.bf16.gmra.mxu1 %v10638_v40  ;;  %16076 = vst [vmem:[#allocation67_spill] sm:$0xff] %v15191_v49  ;;  %v15193_v22 = vpop.f32.mrf.mxu3  ;;  %v11453_v40 = vld [vmem:[#allocation5 + $0x16c] sm:$0xf]  ;;  %v10674_v49 = vor.u32 %v11460_v35, %v10673_v56  ;;  %v10502_v30 = vor.u32 %v11416_v51, %v10501_v6 }
 0x432   : > { %v15195_v55 = vpop.f32.mrf.mxu2  ;;  %v10654_v5 = vor.u32 %v11453_v40, %v10651_v20  ;;  %v15199_v33 = vpop.f32.mrf.mxu0  ;;  %v6839_v20 = vld [vmem:[#allocation3 + $0x84] sm:$0xf] }
 0x433   : > { %16077 = vst [vmem:[#allocation68_spill] sm:$0xff] %v15195_v55  ;;  %v5180_v40 = vld [vmem:[#allocation3 + $0x84] sm:$0xf]  ;;  %v7080_v60 = vshll.u32 %v6839_v20, 16  ;;  %v10538_v55 = vor.u32 %v11425_v34, %v10537_v54  ;;  %v5186_v54 = vld [vmem:[#allocation3 + $0x9c] sm:$0xf] }
 0x434   : > { %16079 = vst [vmem:[#allocation70_spill] sm:$0xff] %v15199_v33  ;;  %v5463_v41 = vshll.u32 %v5180_v40, 16  ;;  %v10675_v33 = vld [vmem:[#allocation5 + $0x1a4] sm:$0xf0]  ;;  %v5508_v52 = vshrl.u32 %v5186_v54, 16 }
 0x435   : > { %v7082_v51 = vrot.slane %v7080_v60, 5 }
 0x436   : > { %v5465_v6 = vrot.slane %v5463_v41, 5  ;;  %v6841_v41 = vld [vmem:[#allocation3 + $0x8c] sm:$0x1] }
 0x437   : > { %v7096_v10 = vshll.u32 %v6841_v41, 16 }
 0x438   : > { %v15197_v63 = vpop.f32.mrf.mxu1 }
 0x439   : > { %16078 = vst [vmem:[#allocation69_spill] sm:$0xff] %v15197_v63  ;;  %v15201_v11 = vpop.f32.mrf.mxu3  ;;  %v10687_v63 = vld [vmem:[#allocation5 + $0x1d4] sm:$0xf0] }
 0x43a   : > { %16080 = vst [vmem:[#allocation71_spill] sm:$0xff] %v15201_v11  ;;  %v15203_v45 = vpop.f32.mrf.mxu2  ;;  %v15207_v7 = vpop.f32.mrf.mxu0  ;;  %v10709_v11 = vld [vmem:[#allocation5 + $0x1c8] sm:$0xf] }
 0x43b   : > { %16081 = vst [vmem:[#allocation72_spill] sm:$0xff] %v15203_v45  ;;  %v6840_v45 = vld [vmem:[#allocation3 + $0x88] sm:$0xf] }
 0x43c   : > { %9178 = vmatmul.bf16.gmra.mxu3 %v10654_v5  ;;  %v7077_v5 = vshrl.u32 %v6839_v20, 16  ;;  %16083 = vst [vmem:[#allocation74_spill] sm:$0xff] %v15207_v7  ;;  %v11469_v20 = vld [vmem:[#allocation5 + $0x1e8] sm:$0xf0]  ;;  %v5181_v7 = vld [vmem:[#allocation3 + $0x88] sm:$0xf] }
 0x43d   : > { %9707 = vmatmul.bf16.gmra.mxu0 %v10642_v21  ;;  %v5460_v21 = vshrl.u32 %v5180_v40, 16  ;;  %v10690_v40 = vor.u32 %v11462_v25, %v10687_v63  ;;  %v5469_v31 = vshll.u32 %v5181_v7, 16 }
 0x43e   : > { %v7079_v35 = vrot.slane %v7077_v5, 4 }
 0x43f   : > { %v5462_v56 = vrot.slane %v5460_v21, 4  ;;  %v10678_v21 = vor.u32 %v11456_v48, %v10675_v33 }
 0x441   : > { %9623 = vmatmul.bf16.gmra.mxu1 %v10674_v49  ;;  %9776 = vmatmul.bf16.vlgmr.msra.gmra.mxu2 %v10502_v30  ;;  %v7083_v49 = vor.u32 %v7082_v51, %v7079_v35  ;;  %v15205_v30 = vpop.f32.mrf.mxu1  ;;  %v5466_v60 = vor.u32 %v5465_v6, %v5462_v56  ;;  %v7086_v35 = vshll.u32 %v6840_v45, 16  ;;  %v7090_v51 = vshrl.u32 %v6840_v45, 16  ;;  %v15209_v9 = vpop.f32.mrf.mxu3  ;;  %v6845_v56 = vld [vmem:[#allocation3 + $0x9c] sm:$0xf] }
 0x442   : > { %16082 = vst [vmem:[#allocation73_spill] sm:$0xff] %v15205_v30  ;;  %v10710_v30 = vor.u32 %v11469_v20, %v10709_v11  ;;  %v15211_v33 = vpop.f32.mrf.mxu2  ;;  %v5479_v45 = vshll.u32 %v5182_v8, 16  ;;  %v7125_v6 = vshrl.u32 %v6845_v56, 16  ;;  %v7128_v11 = vshll.u32 %v6845_v56, 16 }
 0x443   : > { %v7084_v5 = vrot.slane %v7083_v49, 4  ;;  %v7088_v63 = vrot.slane %v7086_v35, 5  ;;  %v7092_v25 = vrot.slane %v7090_v51, 4  ;;  %v5473_v49 = vshrl.u32 %v5181_v7, 16  ;;  %16084 = vst [vmem:[#allocation75_spill] sm:$0xff] %v15211_v33 }
 0x444   : > { %v5467_v19 = vrot.slane %v5466_v60, 4  ;;  %v5471_v20 = vrot.slane %v5469_v31, 5  ;;  %v7098_v7 = vrot.slane %v7096_v10, 5  ;;  %v7127_v41 = vrot.slane %v7125_v6, 4  ;;  %v15219_v31 = vpop.f32.mrf.mxu0  ;;  %v6847_v6 = vld [vmem:[#allocation3 + $0xa4] sm:$0x1] }
 0x445   : > { %v7089_v34 = vsel %vm12051_vm6, %v7084_v5, %v7088_v63  ;;  %v7093_v48 = vor.u32 %v7092_v25, %v7088_v63  ;;  %v7130_v35 = vrot.slane %v7128_v11, 5  ;;  %v5511_v56 = vshll.u32 %v5186_v54, 16  ;;  %16086 = vst [vmem:[#allocation77_spill] sm:$0xff] %v15219_v31  ;;  %v10723_v11 = vld [vmem:[#allocation5 + $0x21c] sm:$0xf0] }
 0x446   : > { %7294 = vst [vmem:[#allocation5 + $0x2a4] sm:$0xf] %v7089_v34  ;;  %v5472_v8 = vsel %vm12051_vm6, %v5467_v19, %v5471_v20  ;;  %v5510_v63 = vrot.slane %v5508_v52, 4  ;;  %v5481_v10 = vrot.slane %v5479_v45, 5  ;;  %v11434_v31 = vld [vmem:[#allocation5 + $0xd0] sm:$0xf0] }
 0x447   : > { %v7094_v60 = vrot.slane %v7093_v48, 4  ;;  %5633 = vst [vmem:[#allocation5 + $0x31c] sm:$0xf] %v5472_v8  ;;  %v7131_v5 = vor.u32 %v7130_v35, %v7127_v41  ;;  %v5513_v25 = vrot.slane %v5511_v56, 5  ;;  %v5187_v48 = vld [vmem:[#allocation3 + $0xa0] sm:$0xf] }
 0x448   : > { %v5517_v35 = vshll.u32 %v5187_v48, 16  ;;  %v5521_v8 = vshrl.u32 %v5187_v48, 16  ;;  %v6498_v48 = vld [vmem:[#allocation3 + $0x68] sm:$0x1]  ;;  %v11478_v33 = vld [vmem:[#allocation5 + $0x230] sm:$0xf0] }
 0x449   : > { %v5514_v41 = vor.u32 %v5513_v25, %v5510_v63  ;;  %v15225_v52 = vpop.f32.mrf.mxu3 }
 0x44a   : > { %16087 = vst [vmem:[#allocation78_spill] sm:$0xff] %v15225_v52  ;;  %v15227_v56 = vpop.f32.mrf.mxu2  ;;  %v5523_v25 = vrot.slane %v5521_v8, 4  ;;  %v6497_v52 = vld [vmem:[#allocation3 + $0x64] sm:$0xf] }
 0x44b   : > { %16088 = vst [vmem:[#allocation79_spill] sm:$0xff] %v15227_v56 }
 0x44c   : > { %9183 = vmatmul.bf16.gmra.mxu3 %v10690_v40  ;;  %v5475_v40 = vrot.slane %v5473_v49, 4  ;;  %v6846_v49 = vld [vmem:[#allocation3 + $0xa0] sm:$0xf]  ;;  %v15237_v8 = vpop.f32.mrf.mxu0 }
 0x44d   : > { %9712 = vmatmul.bf16.gmra.mxu0 %v10678_v21  ;;  %v15215_v21 = vpop.f32.mrf.mxu1  ;;  %v7134_v34 = vshll.u32 %v6846_v49, 16  ;;  %v7138_v54 = vshrl.u32 %v6846_v49, 16  ;;  %v11465_v49 = vld [vmem:[#allocation5 + $0x1cc] sm:$0xf]  ;;  %16090 = vst [vmem:[#allocation81_spill] sm:$0xff] %v15237_v8 }
 0x44e   : > { %16085 = vst [vmem:[#allocation76_spill] sm:$0xff] %v15215_v21  ;;  %v5476_v51 = vor.u32 %v5475_v40, %v5471_v20  ;;  %v7132_v20 = vrot.slane %v7131_v5, 4  ;;  %v5188_v40 = vld [vmem:[#allocation3 + $0xa4] sm:$0x1]  ;;  %v10711_v21 = vld [vmem:[#allocation5 + $0x1ec] sm:$0xf0] }
 0x44f   : > { %v7140_v45 = vrot.slane %v7138_v54, 4 }
 0x451   : > { %9628 = vmatmul.bf16.gmra.mxu1 %v10710_v30  ;;  %9781 = vmatmul.bf16.gmra.mxu2 %v10538_v55  ;;  %v7099_v30 = vsel %vm12051_vm6, %v7094_v60, %v7098_v7  ;;  %v5477_v55 = vrot.slane %v5476_v51, 4  ;;  %v7136_v7 = vrot.slane %v7134_v34, 5  ;;  %v7144_v60 = vshll.u32 %v6847_v6, 16  ;;  %v6496_v51 = vld [vmem:[#allocation3 + $0x60] sm:$0xe] }
 0x452   : > { %7295 = vst [vmem:[#allocation5 + $0x2c8] sm:$0xf] %v7099_v30  ;;  %v11471_v30 = vld [vmem:[#allocation5 + $0x1fc] sm:$0xf]  ;;  %v10442_v56 = vrot.slane %v6496_v51, 9 }
 0x453   : > { %v5482_v19 = vsel %vm12051_vm6, %v5477_v55, %v5481_v10  ;;  %v5515_v55 = vrot.slane %v5514_v41, 4  ;;  %v5519_v10 = vrot.slane %v5517_v35, 5  ;;  %v7137_v5 = vsel %vm12051_vm6, %v7132_v20, %v7136_v7  ;;  %v10745_v20 = vld [vmem:[#allocation5 + $0x210] sm:$0xf] }
 0x454   : > { %5634 = vst [vmem:[#allocation5 + $0x340] sm:$0xf] %v5482_v19  ;;  %v7141_v63 = vor.u32 %v7140_v45, %v7136_v7  ;;  %v5527_v19 = vshll.u32 %v5188_v40, 16  ;;  %v10726_v6 = vor.u32 %v11471_v30, %v10723_v11  ;;  %v6622_v41 = vrot.slane %v6497_v52, 5  ;;  %v10573_v40 = vld [vmem:[#allocation5 + $0xb0] sm:$0xf] }
 0x455   : > { %v15231_v34 = vpop.f32.mrf.mxu1  ;;  %7298 = vst [vmem:[#allocation5 + $0x334] sm:$0xf] %v7137_v5  ;;  %v5520_v54 = vsel %vm12051_vm6, %v5515_v55, %v5519_v10  ;;  %v10714_v35 = vor.u32 %v11465_v49, %v10711_v21  ;;  %v7146_v1 = vrot.slane %v7144_v60, 5  ;;  %v5524_v18 = vor.u32 %v5523_v25, %v5519_v10  ;;  %v7335_v30 = vld [vmem:[#allocation3 + $0x84] sm:$0xe] }
 0x456   : > { %16089 = vst [vmem:[#allocation80_spill] sm:$0xff] %v15231_v34  ;;  %v7142_v57 = vrot.slane %v7141_v63, 4  ;;  %v6623_v7 = vsel %vm12025_vm3, %v10442_v56, %v6622_v41  ;;  %v6624_v11 = vrot.slane %v6622_v41, 4  ;;  %v6625_v45 = vrot.slane %v6498_v48, 5  ;;  %v7336_v5 = vld [vmem:[#allocation3 + $0x88] sm:$0xf] }
 0x457   : > { %5637 = vst [vmem:[#allocation5 + $0x3ac] sm:$0xf] %v5520_v54  ;;  %v5525_v21 = vrot.slane %v5524_v18, 4  ;;  %v5529_v51 = vrot.slane %v5527_v19, 5  ;;  %v10746_v60 = vor.u32 %v11478_v33, %v10745_v20  ;;  %v10574_v55 = vor.u32 %v11434_v31, %v10573_v40  ;;  %v7337_v63 = vld [vmem:[#allocation3 + $0x8c] sm:$0x1]  ;;  %v15255_v54 = vpop.f32.mrf.mxu0 }
 0x458   : > { %v7147_v52 = vsel %vm12051_vm6, %v7142_v57, %v7146_v1  ;;  %6729 = vst [vmem:[#allocation5 + $0x20c] sm:$0xf] %v6623_v7  ;;  %v6626_v10 = vsel %vm12025_vm3, %v6624_v11, %v6625_v45  ;;  %v10460_v18 = vrot.slane %v7335_v30, 9  ;;  %v7469_v1 = vrot.slane %v7336_v5, 5  ;;  %v15247_v57 = vpop.f32.mrf.mxu2  ;;  %v10759_v41 = vld [vmem:[#allocation5 + $0x264] sm:$0xf0] }
 0x459   : > { %7299 = vst [vmem:[#allocation5 + $0x358] sm:$0xf] %v7147_v52  ;;  %v5530_v56 = vsel %vm12051_vm6, %v5525_v21, %v5529_v51  ;;  %v7472_v25 = vrot.slane %v7337_v63, 5  ;;  %v11480_v20 = vld [vmem:[#allocation5 + $0x244] sm:$0xf]  ;;  %v11594_v30 = vld [vmem:[#allocation6 + $0x150] sm:$0xff] }
 0x45a   : > { %6730 = vst [vmem:[#allocation5 + $0x230] sm:$0xf] %v6626_v10  ;;  %v7470_v33 = vsel %vm12025_vm3, %v10460_v18, %v7469_v1  ;;  %v7471_v31 = vrot.slane %v7469_v1, 4  ;;  %v10762_v40 = vor.u32 %v11480_v20, %v10759_v41  ;;  %v11474_v7 = vld [vmem:[#allocation5 + $0x214] sm:$0xf]  ;;  %9506 = vmatpush.bf16.msra.mxu3 %v11594_v30 }
 0x45b   : > { %5638 = vst [vmem:[#allocation5 + $0x3d0] sm:$0xf] %v5530_v56  ;;  %v11487_v45 = vld [vmem:[#allocation5 + $0x278] sm:$0xf0]  ;;  %v15262_v21 = vld [vmem:[%s15899_s4] ss:$0 sm:$0xff] }
 0x45c   : > { %9188 = vmatmul.bf16.gmra.mxu3 %v10726_v6  ;;  %16091 = vst [vmem:[#allocation82_spill] sm:$0xff] %v15247_v57  ;;  %v7473_v6 = vsel %vm12025_vm3, %v7471_v31, %v7472_v25  ;;  %v11443_v52 = vld [vmem:[#allocation5 + $0x118] sm:$0xf0]  ;;  %v9066_v10 = vadd.f32 %v15262_v21, %v14603_v27  ;;  %v6768_v31 = vld [vmem:[#allocation3 + $0x90] sm:$0xf] }
 0x45d   : > { %9717 = vmatmul.bf16.gmra.mxu0 %v10714_v35  ;;  %7566 = vst [vmem:[#allocation5 + $0x2a8] sm:$0xf] %v7470_v33  ;;  %v15251_v19 = vpop.f32.mrf.mxu1  ;;  %v10747_v35 = vld [vmem:[#allocation5 + $0x234] sm:$0xf0]  ;;  %v6769_v25 = vld [vmem:[#allocation3 + $0x94] sm:$0xf] }
 0x45e   : > { %v15243_v49 = vpop.f32.mrf.mxu3  ;;  %16092 = vst [vmem:[#allocation83_spill] sm:$0xff] %v15251_v19  ;;  %v10750_v11 = vor.u32 %v11474_v7, %v10747_v35  ;;  %v10795_v35 = vld [vmem:[#allocation5 + $0x2ac] sm:$0xf0]  ;;  %v6500_v20 = vld [vmem:[#allocation3 + $0x70] sm:$0xf] }
 0x45f   : > { %7567 = vst [vmem:[#allocation5 + $0x2cc] sm:$0xf] %v7473_v6  ;;  %v15272_v33 = vpop.f32.mrf.mxu0  ;;  %v6499_v6 = vld [vmem:[#allocation3 + $0x6c] sm:$0xe]  ;;  %v11489_v30 = vld [vmem:[#allocation5 + $0x28c] sm:$0xf] }
 0x460   : > { %16093 = vst [vmem:[#allocation84_spill] sm:$0xff] %v15255_v54  ;;  %v15264_v51 = vpop.f32.mrf.mxu2  ;;  %v10645_v19 = vld [vmem:[#allocation5 + $0x140] sm:$0xf] }
 0x461   : > { %9633 = vmatmul.bf16.gmra.mxu1 %v10746_v60  ;;  %9786 = vmatmul.bf16.gmra.mxu2 %v10574_v55  ;;  %16094 = vst [vmem:[#allocation85_spill] sm:$0xff] %v15264_v51  ;;  %v10781_v60 = vld [vmem:[#allocation5 + $0x258] sm:$0xf] }
 0x462   : > { %v10609_v55 = vld [vmem:[#allocation5 + $0xf8] sm:$0xf]  ;;  %v10782_v5 = vor.u32 %v11487_v45, %v10781_v60  ;;  %16096 = vst [vmem:[#allocation87_spill] sm:$0xff] %v15272_v33  ;;  %v10443_v45 = vrot.slane %v6499_v6, 9  ;;  %v10798_v60 = vor.u32 %v11489_v30, %v10795_v35  ;;  %v11496_v33 = vld [vmem:[#allocation5 + $0x2c0] sm:$0xf0] }
 0x463   : > { %v10610_v63 = vor.u32 %v11443_v52, %v10609_v55  ;;  %6800 = vst [vmem:[#allocation5 + $0x2e8] sm:$0xf] %v6768_v31  ;;  %v6629_v52 = vrot.slane %v6500_v20, 5  ;;  %v11483_v55 = vld [vmem:[#allocation5 + $0x25c] sm:$0xf] }
 0x464   : > { %6801 = vst [vmem:[#allocation5 + $0x30c] sm:$0xf] %v6769_v25  ;;  %v6843_v6 = vld [vmem:[#allocation3 + $0x94] sm:$0xf]  ;;  %v6844_v20 = vld [vmem:[#allocation3 + $0x98] sm:$0x1] }
 0x465   : > { %v15268_v56 = vpop.f32.mrf.mxu1 }
 0x466   : > { %v15257_v48 = vpop.f32.mrf.mxu3  ;;  %16095 = vst [vmem:[#allocation86_spill] sm:$0xff] %v15268_v56  ;;  %v10817_v56 = vld [vmem:[#allocation5 + $0x2a0] sm:$0xf] }
 0x467   : > { %v15282_v31 = vpop.f32.mrf.mxu0 }
 0x468   : > { %v15274_v41 = vpop.f32.mrf.mxu2  ;;  %16099 = vst [vmem:[#allocation90_spill] sm:$0xff] %v15282_v31  ;;  %v7120_v31 = vshll.u32 %v6844_v20, 16  ;;  %v10831_v20 = vld [vmem:[#allocation5 + $0x2f4] sm:$0xf0] }
 0x469   : > { %16097 = vst [vmem:[#allocation88_spill] sm:$0xff] %v15274_v41 }
 0x46c   : > { %9193 = vmatmul.bf16.gmra.mxu3 %v10762_v40  ;;  %v6501_v40 = vld [vmem:[#allocation3 + $0x74] sm:$0x1] }
 0x46d   : > { %9722 = vmatmul.bf16.gmra.mxu0 %v10750_v11  ;;  %v15278_v7 = vpop.f32.mrf.mxu1  ;;  %v10783_v11 = vld [vmem:[#allocation5 + $0x27c] sm:$0xf0] }
 0x46e   : > { %v9154_v18 = vpop.f32.mrf.mxu3  ;;  %16098 = vst [vmem:[#allocation89_spill] sm:$0xff] %v15278_v7  ;;  %v10786_v25 = vor.u32 %v11483_v55, %v10783_v11  ;;  %v6842_v7 = vld [vmem:[#allocation3 + $0x90] sm:$0xf]  ;;  %v10818_v11 = vor.u32 %v11496_v33, %v10817_v56  ;;  %v7122_v56 = vrot.slane %v7120_v31, 5 }
 0x46f   : > { %v15270_v1 = vadd.f32 %v9154_v18, %v9066_v10  ;;  %v11452_v10 = vld [vmem:[#allocation5 + $0x160] sm:$0xf0]  ;;  %v6632_v18 = vrot.slane %v6501_v40, 5  ;;  %v7101_v30 = vshrl.u32 %v6842_v7, 16  ;;  %v7104_v54 = vshll.u32 %v6842_v7, 16 }
 0x470   : > { %v9071_v40 = vadd.f32 %v15262_v21, %v14646_v2  ;;  %v10646_v55 = vor.u32 %v11452_v10, %v10645_v19  ;;  %v15288_v51 = vpop.f32.mrf.mxu2 }
 0x471   : > { %9638 = vmatmul.bf16.gmra.mxu1 %v10782_v5  ;;  %9791 = vmatmul.bf16.gmra.mxu2 %v10610_v63  ;;  %v6630_v5 = vsel %vm12025_vm3, %v10443_v45, %v6629_v52  ;;  %v6631_v63 = vrot.slane %v6629_v52, 4  ;;  %v7110_v45 = vshll.u32 %v6843_v6, 16  ;;  %v7114_v52 = vshrl.u32 %v6843_v6, 16  ;;  %16100 = vst [vmem:[#allocation91_spill] sm:$0xff] %v15288_v51  ;;  %v15294_v6 = vpop.f32.mrf.mxu0 }
 0x472   : > { %6731 = vst [vmem:[#allocation5 + $0x254] sm:$0xf] %v6630_v5  ;;  %v7106_v34 = vrot.slane %v7104_v54, 5 }
 0x473   : > { %v6633_v35 = vsel %vm12025_vm3, %v6631_v63, %v6632_v18  ;;  %v7112_v8 = vrot.slane %v7110_v45, 5  ;;  %v7116_v41 = vrot.slane %v7114_v52, 4  ;;  %16102 = vst [vmem:[#allocation93_spill] sm:$0xff] %v15294_v6 }
 0x474   : > { %6732 = vst [vmem:[#allocation5 + $0x278] sm:$0xf] %v6633_v35  ;;  %v10819_v35 = vld [vmem:[#allocation5 + $0x2c4] sm:$0xf0] }
 0x475   : > { %v7117_v18 = vor.u32 %v7116_v41, %v7112_v8  ;;  %v11492_v41 = vld [vmem:[#allocation5 + $0x2a4] sm:$0xf] }
 0x476   : > { %v15276_v27 = vpop.f32.mrf.mxu3 }
 0x477   : > { %v7118_v19 = vrot.slane %v7117_v18, 4 }
 0x478   : > { %v15304_v52 = vpop.f32.mrf.mxu2 }
 0x479   : > { %v7123_v33 = vsel %vm12051_vm6, %v7118_v19, %v7122_v56  ;;  %16104 = vst [vmem:[#allocation95_spill] sm:$0xff] %v15304_v52  ;;  %v10681_v19 = vld [vmem:[#allocation5 + $0x188] sm:$0xf] }
 0x47a   : > { %7297 = vst [vmem:[#allocation5 + $0x310] sm:$0xf] %v7123_v33  ;;  %v15306_v33 = vpop.f32.mrf.mxu0 }
 0x47b   : > { %16105 = vst [vmem:[#allocation96_spill] sm:$0xff] %v15306_v33 }
 0x47c   : > { %9198 = vmatmul.bf16.gmra.mxu3 %v10798_v60  ;;  %v7103_v60 = vrot.slane %v7101_v30, 4  ;;  %v11461_v30 = vld [vmem:[#allocation5 + $0x1a8] sm:$0xf0] }
 0x47d   : > { %9727 = vmatmul.bf16.gmra.mxu0 %v10786_v25  ;;  %v15292_v25 = vpop.f32.mrf.mxu1  ;;  %v10682_v52 = vor.u32 %v11461_v30, %v10681_v19 }
 0x47e   : > { %v7107_v7 = vor.u32 %v7106_v34, %v7103_v60  ;;  %16101 = vst [vmem:[#allocation92_spill] sm:$0xff] %v15292_v25  ;;  %v11498_v34 = vld [vmem:[#allocation5 + $0x2d4] sm:$0xf] }
 0x47f   : > { %v9159_v5 = vpop.f32.mrf.mxu3  ;;  %v10834_v31 = vor.u32 %v11498_v34, %v10831_v20  ;;  %v9076_v34 = vadd.f32 %v15262_v21, %v14689_v29 }
 0x480   : > { %v15290_v63 = vadd.f32 %v9159_v5, %v9071_v40  ;;  %v7108_v2 = vrot.slane %v7107_v7, 4  ;;  %v10822_v40 = vor.u32 %v11492_v41, %v10819_v35  ;;  %v11505_v5 = vld [vmem:[#allocation5 + $0x308] sm:$0xf0] }
 0x481   : > { %9643 = vmatmul.bf16.gmra.mxu1 %v10818_v11  ;;  %9796 = vmatmul.bf16.gmra.mxu2 %v10646_v55  ;;  %v5183_v11 = vld [vmem:[#allocation3 + $0x90] sm:$0xf]  ;;  %v5185_v55 = vld [vmem:[#allocation3 + $0x98] sm:$0x1] }
 0x482   : > { %v7113_v54 = vsel %vm12051_vm6, %v7108_v2, %v7112_v8  ;;  %v5184_v8 = vld [vmem:[#allocation3 + $0x94] sm:$0xf]  ;;  %v5484_v60 = vshrl.u32 %v5183_v11, 16  ;;  %v5487_v7 = vshll.u32 %v5183_v11, 16  ;;  %v5503_v56 = vshll.u32 %v5185_v55, 16 }
 0x483   : > { %7296 = vst [vmem:[#allocation5 + $0x2ec] sm:$0xf] %v7113_v54  ;;  %v5493_v18 = vshll.u32 %v5184_v8, 16  ;;  %v5497_v2 = vshrl.u32 %v5184_v8, 16  ;;  %v11593_v54 = vld [vmem:[#allocation6 + $0x148] sm:$0xff] }
 0x484   : > { %v5486_v25 = vrot.slane %v5484_v60, 4  ;;  %v5489_v6 = vrot.slane %v5487_v7, 5  ;;  %9507 = vmatpush.bf16.msra.mxu3 %v11593_v54  ;;  %v5505_v33 = vrot.slane %v5503_v56, 5  ;;  %v6772_v60 = vld [vmem:[#allocation3 + $0xa8] sm:$0xf]  ;;  %v15320_v56 = vpop.f32.mrf.mxu0 }
 0x485   : > { %v15302_v45 = vpop.f32.mrf.mxu1  ;;  %v5495_v20 = vrot.slane %v5493_v18, 5  ;;  %v5499_v35 = vrot.slane %v5497_v2, 4  ;;  %6804 = vst [vmem:[#allocation5 + $0x378] sm:$0xf] %v6772_v60 }
 0x486   : > { %16103 = vst [vmem:[#allocation94_spill] sm:$0xff] %v15302_v45  ;;  %v10853_v45 = vld [vmem:[#allocation5 + $0x2e8] sm:$0xf]  ;;  %v5490_v8 = vor.u32 %v5489_v6, %v5486_v25  ;;  %v15318_v25 = vpop.f32.mrf.mxu2  ;;  %v6848_v6 = vld [vmem:[#allocation3 + $0xa8] sm:$0xf] }
 0x487   : > { %v15300_v10 = vpop.f32.mrf.mxu3  ;;  %v10854_v41 = vor.u32 %v11505_v5, %v10853_v45  ;;  %v6773_v45 = vld [vmem:[#allocation3 + $0xac] sm:$0xf]  ;;  %16108 = vst [vmem:[#allocation99_spill] sm:$0xff] %v15318_v25  ;;  %v5189_v5 = vld [vmem:[#allocation3 + $0xa8] sm:$0xf]  ;;  %v7152_v18 = vshll.u32 %v6848_v6, 16 }
 0x488   : > { %v5491_v55 = vrot.slane %v5490_v8, 4  ;;  %v5532_v2 = vshrl.u32 %v5189_v5, 16  ;;  %v5535_v19 = vshll.u32 %v5189_v5, 16  ;;  %6805 = vst [vmem:[#allocation5 + $0x39c] sm:$0xf] %v6773_v45 }
 0x489   : > { %16109 = vst [vmem:[#allocation100_spill] sm:$0xff] %v15320_v56  ;;  %v11507_v8 = vld [vmem:[#allocation5 + $0x31c] sm:$0xf]  ;;  %v10717_v45 = vld [vmem:[#allocation5 + $0x1d0] sm:$0xf] }
 0x48a   : > { %v5496_v7 = vsel %vm12051_vm6, %v5491_v55, %v5495_v20  ;;  %v7341_v55 = vld [vmem:[#allocation3 + $0x9c] sm:$0xe]  ;;  %v11470_v5 = vld [vmem:[#allocation5 + $0x1f0] sm:$0xf0]  ;;  %v6850_v25 = vld [vmem:[#allocation3 + $0xb0] sm:$0x1] }
 0x48b   : > { %5635 = vst [vmem:[#allocation5 + $0x364] sm:$0xf] %v5496_v7  ;;  %v11501_v7 = vld [vmem:[#allocation5 + $0x2ec] sm:$0xf]  ;;  %v6849_v56 = vld [vmem:[#allocation3 + $0xac] sm:$0xf] }
 0x48c   : > { %9203 = vmatmul.bf16.gmra.mxu3 %v10834_v31  ;;  %v5500_v31 = vor.u32 %v5499_v35, %v5495_v20  ;;  %v7154_v35 = vrot.slane %v7152_v18, 5  ;;  %v7168_v57 = vshll.u32 %v6850_v25, 16  ;;  %v15335_v36 = vpop.f32.mrf.mxu0 }
 0x48d   : > { %9732 = vmatmul.bf16.gmra.mxu0 %v10822_v40  ;;  %v15316_v30 = vpop.f32.mrf.mxu1  ;;  %16113 = vst [vmem:[#allocation104_spill] sm:$0xff] %v15335_v36 }
 0x48e   : > { %v5501_v40 = vrot.slane %v5500_v31, 4  ;;  %16107 = vst [vmem:[#allocation98_spill] sm:$0xff] %v15316_v30  ;;  %v7170_v25 = vrot.slane %v7168_v57, 5 }
 0x48f   : > { %v9164_v11 = vpop.f32.mrf.mxu3 }
 0x490   : > { %v15310_v51 = vadd.f32 %v9164_v11, %v9076_v34  ;;  %v5506_v29 = vsel %vm12051_vm6, %v5501_v40, %v5505_v33  ;;  %v10867_v33 = vld [vmem:[#allocation5 + $0x33c] sm:$0xf0]  ;;  %v5534_v34 = vrot.slane %v5532_v2, 4  ;;  %v10855_v11 = vld [vmem:[#allocation5 + $0x30c] sm:$0xf0] }
 0x491   : > { %9648 = vmatmul.bf16.gmra.mxu1 %v10854_v41  ;;  %9801 = vmatmul.bf16.gmra.mxu2 %v10682_v52  ;;  %5636 = vst [vmem:[#allocation5 + $0x388] sm:$0xf] %v5506_v29  ;;  %v7149_v52 = vshrl.u32 %v6848_v6, 16  ;;  %v5537_v41 = vrot.slane %v5535_v19, 5  ;;  %v15324_v40 = vld [vmem:[#allocation3 + $0x78] sm:$0xe]  ;;  %v10870_v60 = vor.u32 %v11507_v8, %v10867_v33  ;;  %v10858_v29 = vor.u32 %v11501_v7, %v10855_v11  ;;  %v15331_v8 = vpop.f32.mrf.mxu2 }
 0x492   : > { %16106 = vst [vmem:[#allocation97_spill] sm:$0xff] %v15310_v51  ;;  %v11514_v6 = vld [vmem:[#allocation5 + $0x350] sm:$0xf0]  ;;  %v10444_v18 = vrot.slane %v15324_v40, 9  ;;  %v10889_v2 = vld [vmem:[#allocation5 + $0x330] sm:$0xf]  ;;  %v9081_v33 = vadd.f32 %v15262_v21, %v14723_v58 }
 0x493   : > { %v7151_v20 = vrot.slane %v7149_v52, 4  ;;  %v5538_v30 = vor.u32 %v5537_v41, %v5534_v34  ;;  %v10462_v52 = vrot.slane %v7341_v55, 9  ;;  %16111 = vst [vmem:[#allocation102_spill] sm:$0xff] %v15331_v8  ;;  %v10890_v34 = vor.u32 %v11514_v6, %v10889_v2  ;;  %v5191_v7 = vld [vmem:[#allocation3 + $0xb0] sm:$0x1] }
 0x494   : > { %v10718_v41 = vor.u32 %v11470_v5, %v10717_v45  ;;  %v7342_v55 = vld [vmem:[#allocation3 + $0xa0] sm:$0xf]  ;;  %v5551_v2 = vshll.u32 %v5191_v7, 16  ;;  %v7343_v8 = vld [vmem:[#allocation3 + $0xa4] sm:$0x1] }
 0x495   : > { %v7155_v31 = vor.u32 %v7154_v35, %v7151_v20  ;;  %v7158_v20 = vshll.u32 %v6849_v56, 16  ;;  %v7162_v35 = vshrl.u32 %v6849_v56, 16  ;;  %v15329_v11 = vpop.f32.mrf.mxu1  ;;  %v5539_v38 = vrot.slane %v5538_v30, 4  ;;  %v6774_v30 = vld [vmem:[#allocation3 + $0xb4] sm:$0xf] }
 0x496   : > { %v7483_v56 = vrot.slane %v7342_v55, 5  ;;  %6806 = vst [vmem:[#allocation5 + $0x3c0] sm:$0xf] %v6774_v30  ;;  %v11516_v30 = vld [vmem:[#allocation5 + $0x364] sm:$0xf] }
 0x497   : > { %v15322_v54 = vpop.f32.mrf.mxu3  ;;  %v7156_v19 = vrot.slane %v7155_v31, 4  ;;  %v7160_v40 = vrot.slane %v7158_v20, 5  ;;  %v6503_v20 = vld [vmem:[#allocation3 + $0x7c] sm:$0xf] }
 0x498   : > { %16110 = vst [vmem:[#allocation101_spill] sm:$0xff] %v15322_v54  ;;  %v6636_v55 = vrot.slane %v6503_v20, 5 }
 0x499   : > { %v7161_v6 = vsel %vm12051_vm6, %v7156_v19, %v7160_v40  ;;  %v7485_v19 = vrot.slane %v7483_v56, 4 }
 0x49a   : > { %7300 = vst [vmem:[#allocation5 + $0x37c] sm:$0xf] %v7161_v6 }
 0x49c   : > { %9208 = vmatmul.bf16.gmra.mxu3 %v10870_v60  ;;  %v5190_v60 = vld [vmem:[#allocation3 + $0xac] sm:$0xf] }
 0x49d   : > { %9737 = vmatmul.bf16.gmra.mxu0 %v10858_v29  ;;  %v7164_v29 = vrot.slane %v7162_v35, 4  ;;  %v5541_v31 = vshll.u32 %v5190_v60, 16  ;;  %v5545_v58 = vshrl.u32 %v5190_v60, 16  ;;  %v6775_v35 = vld [vmem:[#allocation3 + $0xb8] sm:$0xf]  ;;  %v7486_v60 = vrot.slane %v7343_v8, 5 }
 0x49e   : > { %6807 = vst [vmem:[#allocation5 + $0x3e4] sm:$0xf] %v6775_v35  ;;  %v5553_v8 = vrot.slane %v5551_v2, 5  ;;  %v15359_v2 = vpop.f32.mrf.mxu0 }
 0x49f   : > { %v9169_v32 = vpop.f32.mrf.mxu3  ;;  %v7165_v45 = vor.u32 %v7164_v29, %v7160_v40  ;;  %v5543_v5 = vrot.slane %v5541_v31, 5  ;;  %v7487_v29 = vsel %vm12025_vm3, %v7485_v19, %v7486_v60  ;;  %v6638_v31 = vrot.slane %v6636_v55, 4  ;;  %v11592_v19 = vld [vmem:[#allocation6 + $0x140] sm:$0xff]  ;;  %v6851_v60 = vld [vmem:[#allocation3 + $0xb4] sm:$0xf] }
 0x4a0   : > { %v15333_v54 = vadd.f32 %v9169_v32, %v9081_v33  ;;  %v5547_v33 = vrot.slane %v5545_v58, 4  ;;  %7571 = vst [vmem:[#allocation5 + $0x35c] sm:$0xf] %v7487_v29  ;;  %9508 = vmatpush.bf16.msra.mxu3 %v11592_v19 }
 0x4a1   : > { %9653 = vmatmul.bf16.gmra.mxu1 %v10890_v34  ;;  %9806 = vmatmul.bf16.gmra.mxu2 %v10718_v41  ;;  %v7166_v32 = vrot.slane %v7165_v45, 4  ;;  %v5544_v57 = vsel %vm12051_vm6, %v5539_v38, %v5543_v5  ;;  %v6504_v34 = vld [vmem:[#allocation3 + $0x80] sm:$0x1]  ;;  %v7484_v41 = vsel %vm12025_vm3, %v10462_v52, %v7483_v56  ;;  %v6637_v38 = vsel %vm12025_vm3, %v10444_v18, %v6636_v55  ;;  %v15351_v45 = vpop.f32.mrf.mxu1  ;;  %v7338_v55 = vld [vmem:[#allocation3 + $0x90] sm:$0xe] }
 0x4a2   : > { %16112 = vst [vmem:[#allocation103_spill] sm:$0xff] %v15333_v54  ;;  %v5548_v40 = vor.u32 %v5547_v33, %v5543_v5  ;;  %v6639_v58 = vrot.slane %v6504_v34, 5  ;;  %v10903_v52 = vld [vmem:[#allocation5 + $0x384] sm:$0xf0]  ;;  %v10891_v5 = vld [vmem:[#allocation5 + $0x354] sm:$0xf0] }
 0x4a3   : > { %v7171_v7 = vsel %vm12051_vm6, %v7166_v32, %v7170_v25  ;;  %5639 = vst [vmem:[#allocation5 + $0x3f4] sm:$0xf] %v5544_v57  ;;  %v15353_v25 = vpop.f32.mrf.mxu2  ;;  %v10906_v35 = vor.u32 %v11516_v30, %v10903_v52  ;;  %v11510_v32 = vld [vmem:[#allocation5 + $0x334] sm:$0xf]  ;;  %v11479_v57 = vld [vmem:[#allocation5 + $0x238] sm:$0xf0] }
 0x4a4   : > { %7301 = vst [vmem:[#allocation5 + $0x3a0] sm:$0xf] %v7171_v7  ;;  %v5549_v56 = vrot.slane %v5548_v40, 4  ;;  %v6640_v20 = vsel %vm12025_vm3, %v6638_v31, %v6639_v58  ;;  %v10894_v33 = vor.u32 %v11510_v32, %v10891_v5  ;;  %v11523_v34 = vld [vmem:[#allocation5 + $0x398] sm:$0xf0]  ;;  %v9086_v7 = vadd.f32 %v15262_v21, %v14753_v12 }
 0x4a5   : > { %7570 = vst [vmem:[#allocation5 + $0x338] sm:$0xf] %v7484_v41  ;;  %v10753_v41 = vld [vmem:[#allocation5 + $0x218] sm:$0xf]  ;;  %v6853_v31 = vld [vmem:[#allocation3 + $0xbc] sm:$0x1] }
 0x4a6   : > { %16115 = vst [vmem:[#allocation106_spill] sm:$0xff] %v15353_v25  ;;  %v5554_v18 = vsel %vm12051_vm6, %v5549_v56, %v5553_v8  ;;  %v10925_v40 = vld [vmem:[#allocation5 + $0x378] sm:$0xf]  ;;  %v10754_v29 = vor.u32 %v11479_v57, %v10753_v41  ;;  %v7173_v52 = vshrl.u32 %v6851_v60, 16  ;;  %v7176_v56 = vshll.u32 %v6851_v60, 16 }
 0x4a7   : > { %v15349_v6 = vpop.f32.mrf.mxu3  ;;  %6733 = vst [vmem:[#allocation5 + $0x29c] sm:$0xf] %v6637_v38  ;;  %v6852_v38 = vld [vmem:[#allocation3 + $0xb8] sm:$0xf]  ;;  %v10926_v58 = vor.u32 %v11523_v34, %v10925_v40  ;;  %v7339_v5 = vld [vmem:[#allocation3 + $0x94] sm:$0xf] }
 0x4a8   : > { %16114 = vst [vmem:[#allocation105_spill] sm:$0xff] %v15349_v6  ;;  %v7182_v8 = vshll.u32 %v6852_v38, 16  ;;  %v7476_v32 = vrot.slane %v7339_v5, 5  ;;  %v7175_v12 = vrot.slane %v7173_v52, 4  ;;  %v7192_v25 = vshll.u32 %v6853_v31, 16  ;;  %v15373_v31 = vpop.f32.mrf.mxu0 }
 0x4a9   : > { %5640 = vst [vmem:[#allocation5 + $0x418] sm:$0xf] %v5554_v18  ;;  %v7340_v18 = vld [vmem:[#allocation3 + $0x98] sm:$0x1]  ;;  %v15365_v19 = vpop.f32.mrf.mxu1  ;;  %v6776_v6 = vld [vmem:[#allocation3 + $0xc0] sm:$0xf] }
 0x4aa   : > { %6734 = vst [vmem:[#allocation5 + $0x2c0] sm:$0xf] %v6640_v20  ;;  %v7186_v20 = vshrl.u32 %v6852_v38, 16  ;;  %v7184_v57 = vrot.slane %v7182_v8, 5  ;;  %v7478_v34 = vrot.slane %v7476_v32, 4 }
 0x4ab   : > { %16117 = vst [vmem:[#allocation108_spill] sm:$0xff] %v15365_v19  ;;  %v15367_v60 = vpop.f32.mrf.mxu2  ;;  %v6777_v38 = vld [vmem:[#allocation3 + $0xc4] sm:$0xf] }
 0x4ac   : > { %9213 = vmatmul.bf16.gmra.mxu3 %v10906_v35  ;;  %v10461_v35 = vrot.slane %v7338_v55, 9  ;;  %v7188_v41 = vrot.slane %v7186_v20, 4  ;;  %16118 = vst [vmem:[#allocation109_spill] sm:$0xff] %v15367_v60  ;;  %v10939_v20 = vld [vmem:[#allocation5 + $0x3cc] sm:$0xf0] }
 0x4ad   : > { %9742 = vmatmul.bf16.gmra.mxu0 %v10894_v33  ;;  %v7178_v33 = vrot.slane %v7176_v56, 5  ;;  %6808 = vst [vmem:[#allocation5 + $0x408] sm:$0xf] %v6776_v6  ;;  %v7194_v56 = vrot.slane %v7192_v25, 5  ;;  %v5192_v25 = vld [vmem:[#allocation3 + $0xb4] sm:$0xf] }
 0x4ae   : > { %v7477_v55 = vsel %vm12025_vm3, %v10461_v35, %v7476_v32  ;;  %v7189_v5 = vor.u32 %v7188_v41, %v7184_v57  ;;  %6809 = vst [vmem:[#allocation5 + $0x42c] sm:$0xf] %v6777_v38  ;;  %v11525_v35 = vld [vmem:[#allocation5 + $0x3ac] sm:$0xf]  ;;  %v11519_v32 = vld [vmem:[#allocation5 + $0x37c] sm:$0xf] }
 0x4af   : > { %v9174_v30 = vpop.f32.mrf.mxu3  ;;  %v7179_v40 = vor.u32 %v7178_v33, %v7175_v12  ;;  %7568 = vst [vmem:[#allocation5 + $0x2f0] sm:$0xf] %v7477_v55  ;;  %v11488_v12 = vld [vmem:[#allocation5 + $0x280] sm:$0xf0]  ;;  %v10942_v33 = vor.u32 %v11525_v35, %v10939_v20  ;;  %v10789_v38 = vld [vmem:[#allocation5 + $0x260] sm:$0xf] }
 0x4b0   : > { %v15363_v36 = vadd.f32 %v9174_v30, %v9086_v7  ;;  %v7479_v7 = vrot.slane %v7340_v18, 5  ;;  %v7190_v52 = vrot.slane %v7189_v5, 4  ;;  %v10927_v18 = vld [vmem:[#allocation5 + $0x39c] sm:$0xf0]  ;;  %v11532_v41 = vld [vmem:[#allocation5 + $0x3e0] sm:$0xf0]  ;;  %v9091_v5 = vadd.f32 %v15262_v21, %v14783_v62  ;;  %v15387_v62 = vpop.f32.mrf.mxu0 }
 0x4b1   : > { %9658 = vmatmul.bf16.gmra.mxu1 %v10926_v58  ;;  %9811 = vmatmul.bf16.gmra.mxu2 %v10754_v29  ;;  %v7180_v29 = vrot.slane %v7179_v40, 4  ;;  %v10930_v40 = vor.u32 %v11519_v32, %v10927_v18  ;;  %v5556_v55 = vshrl.u32 %v5192_v25, 16  ;;  %v6854_v20 = vld [vmem:[#allocation3 + $0xc0] sm:$0xf]  ;;  %v10790_v35 = vor.u32 %v11488_v12, %v10789_v38  ;;  %v6855_v60 = vld [vmem:[#allocation3 + $0xc4] sm:$0xf] }
 0x4b2   : > { %16116 = vst [vmem:[#allocation107_spill] sm:$0xff] %v15363_v36  ;;  %v7480_v58 = vsel %vm12025_vm3, %v7478_v34, %v7479_v7  ;;  %v7195_v6 = vsel %vm12051_vm6, %v7190_v52, %v7194_v56  ;;  %v5193_v34 = vld [vmem:[#allocation3 + $0xb8] sm:$0xf]  ;;  %v5559_v7 = vshll.u32 %v5192_v25, 16  ;;  %v7197_v54 = vshrl.u32 %v6854_v20, 16 }
 0x4b3   : > { %v7185_v8 = vsel %vm12051_vm6, %v7180_v29, %v7184_v57  ;;  %7569 = vst [vmem:[#allocation5 + $0x314] sm:$0xf] %v7480_v58  ;;  %v5194_v57 = vld [vmem:[#allocation3 + $0xbc] sm:$0x1]  ;;  %v15383_v29 = vpop.f32.mrf.mxu1  ;;  %v15385_v58 = vpop.f32.mrf.mxu2  ;;  %v10961_v52 = vld [vmem:[#allocation5 + $0x3c0] sm:$0xf] }
 0x4b4   : > { %7302 = vst [vmem:[#allocation5 + $0x3c4] sm:$0xf] %v7185_v8  ;;  %v5565_v56 = vshll.u32 %v5193_v34, 16  ;;  %v5569_v8 = vshrl.u32 %v5193_v34, 16  ;;  %v5558_v18 = vrot.slane %v5556_v55, 4  ;;  %v5561_v32 = vrot.slane %v5559_v7, 5 }
 0x4b5   : > { %7303 = vst [vmem:[#allocation5 + $0x3e8] sm:$0xf] %v7195_v6  ;;  %v10962_v6 = vor.u32 %v11532_v41, %v10961_v52  ;;  %v5575_v36 = vshll.u32 %v5194_v57, 16  ;;  %v7206_v14 = vshll.u32 %v6855_v60, 16  ;;  %v7210_v19 = vshrl.u32 %v6855_v60, 16 }
 0x4b6   : > { %16120 = vst [vmem:[#allocation111_spill] sm:$0xff] %v15383_v29  ;;  %v5571_v25 = vrot.slane %v5569_v8, 4  ;;  %v5562_v51 = vor.u32 %v5561_v32, %v5558_v18  ;;  %v7199_v41 = vrot.slane %v7197_v54, 4  ;;  %v11534_v32 = vld [vmem:[#allocation5 + $0x3f4] sm:$0xf] }
 0x4b7   : > { %v15377_v30 = vpop.f32.mrf.mxu3  ;;  %16121 = vst [vmem:[#allocation112_spill] sm:$0xff] %v15385_v58  ;;  %v6856_v58 = vld [vmem:[#allocation3 + $0xc8] sm:$0x1]  ;;  %v7208_v55 = vrot.slane %v7206_v14, 5  ;;  %v7212_v7 = vrot.slane %v7210_v19, 4  ;;  %v5577_v52 = vrot.slane %v5575_v36, 5 }
 0x4b8   : > { %16119 = vst [vmem:[#allocation110_spill] sm:$0xff] %v15377_v30  ;;  %v5567_v30 = vrot.slane %v5565_v56, 5  ;;  %v7216_v56 = vshll.u32 %v6856_v58, 16  ;;  %v10975_v36 = vld [vmem:[#allocation5 + $0x414] sm:$0xf0] }
 0x4ba   : > { %v5572_v12 = vor.u32 %v5571_v25, %v5567_v30  ;;  %v7218_v54 = vrot.slane %v7216_v56, 5  ;;  %v10978_v25 = vor.u32 %v11534_v32, %v10975_v36 }
 0x4bb   : > { %v15397_v14 = vpop.f32.mrf.mxu2 }
 0x4bc   : > { %9218 = vmatmul.bf16.gmra.mxu3 %v10942_v33  ;;  %v7200_v33 = vshll.u32 %v6854_v20, 16  ;;  %v5573_v57 = vrot.slane %v5572_v12, 4  ;;  %v7213_v20 = vor.u32 %v7212_v7, %v7208_v55  ;;  %16122 = vst [vmem:[#allocation113_spill] sm:$0xff] %v15397_v14  ;;  %v10825_v7 = vld [vmem:[#allocation5 + $0x2a8] sm:$0xf] }
 0x4bd   : > { %9747 = vmatmul.bf16.gmra.mxu0 %v10930_v40  ;;  %v5563_v40 = vrot.slane %v5562_v51, 4  ;;  %v15395_v51 = vpop.f32.mrf.mxu1 }
 0x4be   : > { %v7202_v38 = vrot.slane %v7200_v33, 5  ;;  %v5578_v60 = vsel %vm12051_vm6, %v5573_v57, %v5577_v52  ;;  %v11528_v33 = vld [vmem:[#allocation5 + $0x3c4] sm:$0xf] }
 0x4bf   : > { %v9179_v29 = vpop.f32.mrf.mxu3  ;;  %v5568_v8 = vsel %vm12051_vm6, %v5563_v40, %v5567_v30  ;;  %5642 = vst [vmem:[#allocation5 + $0x460] sm:$0xf] %v5578_v60  ;;  %v11497_v40 = vld [vmem:[#allocation5 + $0x2c8] sm:$0xf0] }
 0x4c0   : > { %v15389_v34 = vadd.f32 %v9179_v29, %v9091_v5  ;;  %v7203_v18 = vor.u32 %v7202_v38, %v7199_v41  ;;  %5641 = vst [vmem:[#allocation5 + $0x43c] sm:$0xf] %v5568_v8  ;;  %v7214_v29 = vrot.slane %v7213_v20, 4  ;;  %v11541_v41 = vld [vmem:[#allocation5 + $0x428] sm:$0xf0]  ;;  %v10826_v52 = vor.u32 %v11497_v40, %v10825_v7 }
 0x4c1   : > { %9663 = vmatmul.bf16.gmra.mxu1 %v10962_v6  ;;  %9816 = vmatmul.bf16.gmra.mxu2 %v10790_v35  ;;  %v10963_v6 = vld [vmem:[#allocation5 + $0x3e4] sm:$0xf0]  ;;  %v15405_v35 = vpop.f32.mrf.mxu0  ;;  %v10861_v40 = vld [vmem:[#allocation5 + $0x2f0] sm:$0xf] }
 0x4c2   : > { %v7204_v5 = vrot.slane %v7203_v18, 4  ;;  %v7219_v58 = vsel %vm12051_vm6, %v7214_v29, %v7218_v54  ;;  %v10966_v12 = vor.u32 %v11528_v33, %v10963_v6  ;;  %v10997_v38 = vld [vmem:[#allocation5 + $0x408] sm:$0xf]  ;;  %v6511_v6 = vld [vmem:[#allocation3 + $0x9c] sm:$0xe] }
 0x4c3   : > { %7305 = vst [vmem:[#allocation5 + $0x430] sm:$0xf] %v7219_v58  ;;  %v10998_v57 = vor.u32 %v11541_v41, %v10997_v38  ;;  %v15411_v18 = vpop.f32.mrf.mxu2  ;;  %v6512_v33 = vld [vmem:[#allocation3 + $0xa0] sm:$0xf]  ;;  %v10447_v38 = vrot.slane %v6511_v6, 9 }
 0x4c4   : > { %v7209_v30 = vsel %vm12051_vm6, %v7204_v5, %v7208_v55  ;;  %v9096_v55 = vadd.f32 %v15262_v21, %v14805_v61  ;;  %16123 = vst [vmem:[#allocation114_spill] sm:$0xff] %v15411_v18  ;;  %v6657_v7 = vrot.slane %v6512_v33, 5  ;;  %v7345_v6 = vld [vmem:[#allocation3 + $0xac] sm:$0xf] }
 0x4c5   : > { %7304 = vst [vmem:[#allocation5 + $0x40c] sm:$0xf] %v7209_v30  ;;  %v15409_v8 = vpop.f32.mrf.mxu1 }
 0x4c6   : > { %v11011_v29 = vld [vmem:[#allocation5 + $0x45c] sm:$0xf0] }
 0x4c7   : > { %v15399_v19 = vpop.f32.mrf.mxu3  ;;  %v11543_v36 = vld [vmem:[#allocation5 + $0x43c] sm:$0xf] }
 0x4c8   : > { %v11014_v61 = vor.u32 %v11543_v36, %v11011_v29  ;;  %v6659_v29 = vrot.slane %v6657_v7, 4 }
 0x4c9   : > { %v15415_v60 = vpop.f32.mrf.mxu0 }
 0x4ca   : > { %v10999_v54 = vld [vmem:[#allocation5 + $0x42c] sm:$0xf0] }
 0x4cb   : > { %v15419_v30 = vpop.f32.mrf.mxu2 }
 0x4cc   : > { %9223 = vmatmul.bf16.gmra.mxu3 %v10978_v25  ;;  %16124 = vst [vmem:[#allocation115_spill] sm:$0xff] %v15419_v30  ;;  %v11537_v58 = vld [vmem:[#allocation5 + $0x40c] sm:$0xf]  ;;  %v11506_v25 = vld [vmem:[#allocation5 + $0x310] sm:$0xf0] }
 0x4cd   : > { %9752 = vmatmul.bf16.gmra.mxu0 %v10966_v12  ;;  %v11002_v32 = vor.u32 %v11537_v58, %v10999_v54  ;;  %v6513_v12 = vld [vmem:[#allocation3 + $0xa4] sm:$0x1]  ;;  %v10897_v30 = vld [vmem:[#allocation5 + $0x338] sm:$0xf] }
 0x4ce   : > { %v6660_v54 = vrot.slane %v6513_v12, 5 }
 0x4cf   : > { %v9184_v56 = vpop.f32.mrf.mxu3 }
 0x4d0   : > { %v15413_v20 = vadd.f32 %v9184_v56, %v9096_v55  ;;  %v9101_v55 = vadd.f32 %v15262_v21, %v14832_v17  ;;  %v6658_v56 = vsel %vm12025_vm3, %v10447_v38, %v6657_v7  ;;  %v6661_v58 = vsel %vm12025_vm3, %v6659_v29, %v6660_v54  ;;  %v6505_v7 = vld [vmem:[#allocation3 + $0x84] sm:$0xe]  ;;  %v6507_v29 = vld [vmem:[#allocation3 + $0x8c] sm:$0x1] }
 0x4d1   : > { %9668 = vmatmul.bf16.gmra.mxu1 %v10998_v57  ;;  %9821 = vmatmul.bf16.gmra.mxu2 %v10826_v52  ;;  %v15421_v41 = vpop.f32.mrf.mxu0  ;;  %v10862_v57 = vor.u32 %v11506_v25, %v10861_v40  ;;  %6739 = vst [vmem:[#allocation5 + $0x374] sm:$0xf] %v6658_v56  ;;  %v7490_v17 = vrot.slane %v7345_v6, 5  ;;  %v6506_v56 = vld [vmem:[#allocation3 + $0x88] sm:$0xf]  ;;  %v10445_v54 = vrot.slane %v6505_v7, 9 }
 0x4d2   : > { %6740 = vst [vmem:[#allocation5 + $0x398] sm:$0xf] %v6661_v58  ;;  %v11410_v58 = vld [vmem:[#allocation5 + $0x14] sm:$0xf] }
 0x4d3   : > { %v15431_v25 = vpop.f32.mrf.mxu2  ;;  %v7492_v38 = vrot.slane %v7490_v17, 4 }
 0x4d4   : > { %16125 = vst [vmem:[#allocation116_spill] sm:$0xff] %v15431_v25  ;;  %v11515_v25 = vld [vmem:[#allocation5 + $0x358] sm:$0xf0] }
 0x4d5   : > { %v10898_v7 = vor.u32 %v11515_v25, %v10897_v30 }
 0x4d7   : > { %v15417_v5 = vpop.f32.mrf.mxu3 }
 0x4dc   : > { %9228 = vmatmul.bf16.gmra.mxu3 %v11014_v61  ;;  %v7344_v61 = vld [vmem:[#allocation3 + $0xa8] sm:$0xe] }
 0x4dd   : > { %9757 = vmatmul.bf16.gmra.mxu0 %v11002_v32  ;;  %v7346_v32 = vld [vmem:[#allocation3 + $0xb0] sm:$0x1]  ;;  %v10463_v33 = vrot.slane %v7344_v61, 9  ;;  %v6643_v61 = vrot.slane %v6506_v56, 5  ;;  %v7347_v56 = vld [vmem:[#allocation3 + $0xb4] sm:$0xe] }
 0x4de   : > { %v7493_v12 = vrot.slane %v7346_v32, 5  ;;  %v6646_v32 = vrot.slane %v6507_v29, 5  ;;  %v7348_v29 = vld [vmem:[#allocation3 + $0xb8] sm:$0xf] }
 0x4df   : > { %v9189_v52 = vpop.f32.mrf.mxu3  ;;  %v7491_v40 = vsel %vm12025_vm3, %v10463_v33, %v7490_v17  ;;  %v6644_v33 = vsel %vm12025_vm3, %v10445_v54, %v6643_v61  ;;  %v6645_v17 = vrot.slane %v6643_v61, 4  ;;  %v7349_v54 = vld [vmem:[#allocation3 + $0xbc] sm:$0x1]  ;;  %v10464_v61 = vrot.slane %v7347_v56, 9 }
 0x4e0   : > { %v15427_v36 = vadd.f32 %v9189_v52, %v9101_v55  ;;  %7572 = vst [vmem:[#allocation5 + $0x380] sm:$0xf] %v7491_v40  ;;  %v7494_v52 = vsel %vm12025_vm3, %v7492_v38, %v7493_v12  ;;  %v9106_v38 = vadd.f32 %v15262_v21, %v14856_v44  ;;  %v15445_v12 = vpop.f32.mrf.mxu2  ;;  %v10523_v44 = vld [vmem:[#allocation5 + $0x7c] sm:$0xf0]  ;;  %v9111_v56 = vadd.f32 %v15262_v21, %v14886_v46  ;;  %v10559_v46 = vld [vmem:[#allocation5 + $0xc4] sm:$0xf0] }
 0x4e1   : > { %9826 = vmatmul.bf16.gmra.mxu2 %v10862_v57  ;;  %v10487_v57 = vld [vmem:[#allocation5 + $0x34] sm:$0xf0]  ;;  %7573 = vst [vmem:[#allocation5 + $0x3a4] sm:$0xf] %v7494_v52  ;;  %v6647_v40 = vsel %vm12025_vm3, %v6645_v17, %v6646_v32  ;;  %v7500_v17 = vrot.slane %v7349_v54, 5 }
 0x4e2   : > { %v10490_v6 = vor.u32 %v11410_v58, %v10487_v57  ;;  %6735 = vst [vmem:[#allocation5 + $0x2e4] sm:$0xf] %v6644_v33  ;;  %v7497_v58 = vrot.slane %v7348_v29, 5 }
 0x4e3   : > { %6736 = vst [vmem:[#allocation5 + $0x308] sm:$0xf] %v6647_v40  ;;  %v11419_v40 = vld [vmem:[#allocation5 + $0x5c] sm:$0xf] }
 0x4e4   : > { %v7499_v33 = vrot.slane %v7497_v58, 4 }
 0x4e6   : > { %v7501_v30 = vsel %vm12025_vm3, %v7499_v33, %v7500_v17  ;;  %v7351_v33 = vld [vmem:[#allocation3 + $0xc4] sm:$0xf]  ;;  %v7352_v17 = vld [vmem:[#allocation3 + $0xc8] sm:$0x1] }
 0x4e7   : > { %v15435_v55 = vpop.f32.mrf.mxu3  ;;  %7575 = vst [vmem:[#allocation5 + $0x3ec] sm:$0xf] %v7501_v30  ;;  %v7504_v30 = vrot.slane %v7351_v33, 5 }
 0x4e8   : > { %v15455_v25 = vpop.f32.mrf.mxu2 }
 0x4ec   : > { %9509 = vmatmul.bf16.vlgmr.msra.gmra.mxu3 %v10490_v6  ;;  %v7498_v6 = vsel %vm12025_vm3, %v10464_v61, %v7497_v58 }
 0x4ed   : > { %7574 = vst [vmem:[#allocation5 + $0x3c8] sm:$0xf] %v7498_v6  ;;  %v7350_v6 = vld [vmem:[#allocation3 + $0xc0] sm:$0xe] }
 0x4ee   : > { %v10465_v18 = vrot.slane %v7350_v6, 9 }
 0x4ef   : > { %v9194_v57 = vpop.f32.mrf.mxu3 }
 0x4f0   : > { %v15447_v52 = vadd.f32 %v9194_v57, %v9106_v38  ;;  %v10526_v38 = vor.u32 %v11419_v40, %v10523_v44  ;;  %v10933_v57 = vld [vmem:[#allocation5 + $0x380] sm:$0xf]  ;;  %v15461_v58 = vpop.f32.mrf.mxu2  ;;  %v7505_v44 = vsel %vm12025_vm3, %v10465_v18, %v7504_v30  ;;  %v7506_v40 = vrot.slane %v7504_v30, 4 }
 0x4f1   : > { %9831 = vmatmul.bf16.gmra.mxu2 %v10898_v7  ;;  %v11524_v7 = vld [vmem:[#allocation5 + $0x3a0] sm:$0xf0]  ;;  %7576 = vst [vmem:[#allocation5 + $0x410] sm:$0xf] %v7505_v44  ;;  %v9116_v18 = vadd.f32 %v15262_v21, %v14920_v50 }
 0x4f2   : > { %v10934_v29 = vor.u32 %v11524_v7, %v10933_v57  ;;  %v11428_v57 = vld [vmem:[#allocation5 + $0xa4] sm:$0xf] }
 0x4f4   : > { %v10969_v6 = vld [vmem:[#allocation5 + $0x3c8] sm:$0xf] }
 0x4f7   : > { %v15451_v32 = vpop.f32.mrf.mxu3 }
 0x4f8   : > { %16126 = vst [vmem:[#allocation117_spill] sm:$0xff] %v15451_v32 }
 0x4fc   : > { %9514 = vmatmul.bf16.gmra.mxu3 %v10526_v38  ;;  %v7507_v38 = vrot.slane %v7352_v17, 5 }
 0x4fe   : > { %v7508_v7 = vsel %vm12025_vm3, %v7506_v40, %v7507_v38  ;;  %v10595_v40 = vld [vmem:[#allocation5 + $0x10c] sm:$0xf0]  ;;  %v11437_v38 = vld [vmem:[#allocation5 + $0xec] sm:$0xf] }
 0x4ff   : > { %v9199_v54 = vpop.f32.mrf.mxu3  ;;  %7577 = vst [vmem:[#allocation5 + $0x434] sm:$0xf] %v7508_v7 }
 0x500   : > { %v15459_v61 = vadd.f32 %v9199_v54, %v9111_v56  ;;  %v10562_v56 = vor.u32 %v11428_v57, %v10559_v46  ;;  %v15469_v54 = vpop.f32.mrf.mxu2  ;;  %v10598_v46 = vor.u32 %v11437_v38, %v10595_v40  ;;  %v11005_v57 = vld [vmem:[#allocation5 + $0x410] sm:$0xf]  ;;  %v9123_v40 = vadd.f32 %v15262_v21, %v14954_v15 }
 0x501   : > { %9836 = vmatmul.bf16.gmra.mxu2 %v10934_v29  ;;  %v11533_v29 = vld [vmem:[#allocation5 + $0x3e8] sm:$0xf0]  ;;  %v15496_v15 = vld [vmem:[%s15899_s4] ss:$0 sm:$0xff] }
 0x502   : > { %16127 = vst [vmem:[#allocation118_spill] sm:$0xff] %v15459_v61  ;;  %v10970_v33 = vor.u32 %v11533_v29, %v10969_v6 }
 0x506   : > { %v11542_v7 = vld [vmem:[#allocation5 + $0x430] sm:$0xf0] }
 0x507   : > { %v15465_v14 = vpop.f32.mrf.mxu3  ;;  %v11006_v61 = vor.u32 %v11542_v7, %v11005_v57 }
 0x508   : > { %16128 = vst [vmem:[#allocation119_spill] sm:$0xff] %v15465_v14  ;;  %v15475_v44 = vpop.f32.mrf.mxu2 }
 0x50c   : > { %9519 = vmatmul.bf16.gmra.mxu3 %v10562_v56  ;;  %v9121_v56 = vadd.f32 %v15262_v21, %v14944_v3  ;;  %v9126_v21 = vadd.f32 %v15496_v15, %v15173_v43 }
 0x50f   : > { %v9204_v17 = vpop.f32.mrf.mxu3 }
 0x510   : > { %v15473_v30 = vadd.f32 %v9204_v17, %v9116_v18  ;;  %v15481_v29 = vpop.f32.mrf.mxu2  ;;  %v6514_v18 = vld [vmem:[#allocation3 + $0xa8] sm:$0xe]  ;;  %v6516_v17 = vld [vmem:[#allocation3 + $0xb0] sm:$0x1] }
 0x511   : > { %9841 = vmatmul.bf16.gmra.mxu2 %v10970_v33  ;;  %v6515_v33 = vld [vmem:[#allocation3 + $0xac] sm:$0xf]  ;;  %v6667_v57 = vrot.slane %v6516_v17, 5  ;;  %v6510_v17 = vld [vmem:[#allocation3 + $0x98] sm:$0x1] }
 0x512   : > { %16129 = vst [vmem:[#allocation120_spill] sm:$0xff] %v15473_v30  ;;  %v6664_v30 = vrot.slane %v6515_v33, 5  ;;  %v6509_v33 = vld [vmem:[#allocation3 + $0x94] sm:$0xf] }
 0x514   : > { %v6666_v7 = vrot.slane %v6664_v30, 4 }
 0x517   : > { %v15477_v14 = vpop.f32.mrf.mxu3 }
 0x518   : > { %16130 = vst [vmem:[#allocation121_spill] sm:$0xff] %v15477_v14  ;;  %v10448_v14 = vrot.slane %v6514_v18, 9  ;;  %v6508_v18 = vld [vmem:[#allocation3 + $0x90] sm:$0xe] }
 0x51a   : > { %v6665_v3 = vsel %vm12025_vm3, %v10448_v14, %v6664_v30 }
 0x51b   : > { %6741 = vst [vmem:[#allocation5 + $0x3bc] sm:$0xf] %v6665_v3  ;;  %v6650_v3 = vrot.slane %v6509_v33, 5  ;;  %v10703_v33 = vld [vmem:[#allocation5 + $0x1e4] sm:$0xf0] }
 0x51c   : > { %9524 = vmatmul.bf16.gmra.mxu3 %v10598_v46  ;;  %v10631_v46 = vld [vmem:[#allocation5 + $0x154] sm:$0xf0] }
 0x51f   : > { %v9209_v50 = vpop.f32.mrf.mxu3 }
 0x520   : > { %v15483_v6 = vadd.f32 %v9209_v50, %v9121_v56  ;;  %v11446_v56 = vld [vmem:[#allocation5 + $0x134] sm:$0xf] }
 0x521   : > { %9846 = vmatmul.bf16.gmra.mxu2 %v11006_v61  ;;  %v6668_v61 = vsel %vm12025_vm3, %v6666_v7, %v6667_v57  ;;  %v10634_v50 = vor.u32 %v11446_v56, %v10631_v46  ;;  %v10446_v46 = vrot.slane %v6508_v18, 9  ;;  %v11455_v7 = vld [vmem:[#allocation5 + $0x17c] sm:$0xf]  ;;  %v6652_v56 = vrot.slane %v6650_v3, 4 }
 0x522   : > { %6742 = vst [vmem:[#allocation5 + $0x3e0] sm:$0xf] %v6668_v61  ;;  %v6653_v61 = vrot.slane %v6510_v17, 5  ;;  %v9136_v17 = vadd.f32 %v15496_v15, %v15209_v9  ;;  %v9244_v9 = vadd.f32 %v14840_v47, %v15270_v1 }
 0x523   : > { %v6651_v57 = vsel %vm12025_vm3, %v10446_v46, %v6650_v3 }
 0x524   : > { %6737 = vst [vmem:[#allocation5 + $0x32c] sm:$0xf] %v6651_v57  ;;  %v6654_v43 = vsel %vm12025_vm3, %v6652_v56, %v6653_v61  ;;  %v10739_v57 = vld [vmem:[#allocation5 + $0x22c] sm:$0xf0]  ;;  %v11473_v56 = vld [vmem:[#allocation5 + $0x20c] sm:$0xf]  ;;  %v9141_v61 = vadd.f32 %v15496_v15, %v15243_v49 }
 0x525   : > { %6738 = vst [vmem:[#allocation5 + $0x350] sm:$0xf] %v6654_v43 }
 0x527   : > { %v9211_v38 = vpop.f32.mrf.mxu3 }
 0x528   : > { %v15489_v32 = vadd.f32 %v9211_v38, %v9123_v40  ;;  %v10667_v38 = vld [vmem:[#allocation5 + $0x19c] sm:$0xf0] }
 0x52c   : > { %9529 = vmatmul.bf16.gmra.mxu3 %v10634_v50  ;;  %v10670_v50 = vor.u32 %v11455_v7, %v10667_v38 }
 0x52f   : > { %v9214_v14 = vpop.f32.mrf.mxu3 }
 0x530   : > { %v15500_v30 = vadd.f32 %v9214_v14, %v9126_v21  ;;  %v9131_v21 = vadd.f32 %v15496_v15, %v15193_v22  ;;  %v10742_v22 = vor.u32 %v11473_v56, %v10739_v57  ;;  %v9333_v57 = vadd.f32 %v14838_v0, %v9244_v9  ;;  %v15549_v9 = vpop.f32.mrf.mxu2 }
 0x531   : > { %v9249_v0 = vadd.f32 %v14874_v23, %v15290_v63 }
 0x532   : > { %16131 = vst [vmem:[#allocation122_spill] sm:$0xff] %v15500_v30  ;;  %v11464_v30 = vld [vmem:[#allocation5 + $0x1c4] sm:$0xf] }
 0x533   : > { %v10706_v46 = vor.u32 %v11464_v30, %v10703_v33  ;;  %v9143_v30 = vadd.f32 %v15496_v15, %v15257_v48  ;;  %v9068_v33 = vadd.f32 %v15496_v15, %v14619_v24  ;;  %v9422_v48 = vadd.f32 %v14979_v59, %v9333_v57  ;;  %v15538_v24 = vpop.f32.mrf.mxu1 }
 0x534   : > { %v9073_v59 = vadd.f32 %v15496_v15, %v14673_v37  ;;  %v9338_v23 = vadd.f32 %v14864_v13, %v9249_v0  ;;  %v16133_v13 = vld [vmem:[#allocation108_spill] sm:$0xff] }
 0x535   : > { %v16137_v0 = vld [vmem:[#allocation36_spill] sm:$0xff] }
 0x537   : > { %v15502_v40 = vpop.f32.mrf.mxu3 }
 0x538   : > { %16132 = vst [vmem:[#allocation123_spill] sm:$0xff] %v15502_v40 }
 0x53c   : > { %9534 = vmatmul.bf16.gmra.mxu3 %v10670_v50 }
 0x53f   : > { %v9219_v14 = vpop.f32.mrf.mxu3 }
 0x540   : > { %v15510_v40 = vadd.f32 %v9219_v14, %v9131_v21  ;;  %v10775_v14 = vld [vmem:[#allocation5 + $0x274] sm:$0xf0] }
 0x547   : > { %v15512_v18 = vpop.f32.mrf.mxu3 }
 0x54c   : > { %9539 = vmatmul.bf16.gmra.mxu3 %v10706_v46 }
 0x54f   : > { %v9224_v38 = vpop.f32.mrf.mxu3 }
 0x550   : > { %v15516_v3 = vadd.f32 %v9224_v38, %v9136_v17  ;;  %v11482_v17 = vld [vmem:[#allocation5 + $0x254] sm:$0xf]  ;;  %v9157_v38 = vadd.f32 %v15276_v27, %v9068_v33 }
 0x551   : > { %v10778_v49 = vor.u32 %v11482_v17, %v10775_v14  ;;  %v9162_v14 = vadd.f32 %v15300_v10, %v9073_v59  ;;  %v10847_v59 = vld [vmem:[#allocation5 + $0x304] sm:$0xf0] }
 0x552   : > { %v9246_v56 = vadd.f32 %v14858_v42, %v9157_v38 }
 0x553   : > { %v9251_v37 = vadd.f32 %v14894_v53, %v9162_v14 }
 0x557   : > { %v15518_v7 = vpop.f32.mrf.mxu3 }
 0x55c   : > { %9544 = vmatmul.bf16.gmra.mxu3 %v10742_v22 }
 0x55f   : > { %v9229_v50 = vpop.f32.mrf.mxu3 }
 0x560   : > { %v15522_v43 = vadd.f32 %v9229_v50, %v9141_v61  ;;  %v9335_v61 = vadd.f32 %v14846_v28, %v9246_v56  ;;  %v10811_v28 = vld [vmem:[#allocation5 + $0x2bc] sm:$0xf0] }
 0x562   : > { %v9424_v42 = vadd.f32 %v15001_v39, %v9335_v61  ;;  %v15555_v39 = vpop.f32.mrf.mxu1  ;;  %v16135_v61 = vld [vmem:[#allocation97_spill] sm:$0xff] }
 0x567   : > { %v9231_v21 = vpop.f32.mrf.mxu3 }
 0x568   : > { %v15530_v46 = vadd.f32 %v9231_v21, %v9143_v30  ;;  %v15541_v30 = vpop.f32.mrf.mxu0 }
 0x56c   : > { %9549 = vmatmul.bf16.gmra.mxu3 %v10778_v49  ;;  %v9427_v49 = vadd.f32 %v15027_v26, %v9338_v23 }
 0x56f   : > { %v9510_v22 = vpop.f32.mrf.mxu3 }
 0x570   : > { %v9511_v47 = vadd.f32 %v9510_v22, %v9422_v48  ;;  %v15560_v10 = vpop.f32.mrf.mxu0  ;;  %v15562_v48 = vpop.f32.mrf.mxu2  ;;  %v16134_v22 = vld [vmem:[#allocation18_spill] sm:$0xff] }
 0x572   : > { %v9600_v1 = vadd.f32 %v15329_v11, %v9511_v47  ;;  %v9340_v47 = vadd.f32 %v16134_v22, %v9251_v37 }
 0x574   : > { %v9689_v50 = vadd.f32 %v15359_v2, %v9600_v1  ;;  %v11491_v2 = vld [vmem:[#allocation5 + $0x29c] sm:$0xf] }
 0x575   : > { %v10814_v38 = vor.u32 %v11491_v2, %v10811_v28 }
 0x576   : > { %v9778_v27 = vadd.f32 %v15445_v12, %v9689_v50  ;;  %v16136_v50 = vld [vmem:[#allocation21_spill] sm:$0xff] }
 0x577   : > { %v9512_v11 = vpop.f32.mrf.mxu3 }
 0x578   : > { %v9513_v21 = vadd.f32 %v9512_v11, %v9424_v42  ;;  %v9889_v33 = vmul.f32 1.442695, %v9778_v27  ;;  %v9429_v42 = vadd.f32 %v16137_v0, %v9340_v47  ;;  %v16138_v11 = vld [vmem:[#allocation11_spill] sm:$0xff]  ;;  %vm9857_vm14 = vcmp.gt.f32.partialorder %v9778_v27, 0.0  ;;  %v16143_v0 = vld [vmem:[#allocation38_spill] sm:$0xff] }
 0x579   : > { %v9078_v28 = vadd.f32 %v15496_v15, %v16138_v11 }
 0x57a   : > { %v9602_v17 = vadd.f32 %v15351_v45, %v9513_v21  ;;  %11831 = vpow2.f32 %v9889_v33  ;;  %v15575_v21 = vpop.f32.mrf.mxu1 }
 0x57c   : > { %v9691_v63 = vadd.f32 %v15373_v31, %v9602_v17  ;;  %9554 = vmatmul.bf16.gmra.mxu3 %v10814_v38  ;;  %v16139_v38 = vld [vmem:[#allocation101_spill] sm:$0xff] }
 0x57d   : > { %v9167_v23 = vadd.f32 %v16139_v38, %v9078_v28  ;;  %v6517_v28 = vld [vmem:[#allocation3 + $0xb4] sm:$0xe] }
 0x57e   : > { %v9780_v12 = vadd.f32 %v15455_v25, %v9691_v63  ;;  %v9254_v25 = vadd.f32 %v16136_v50, %v16135_v61  ;;  %v15578_v63 = vpop.f32.mrf.mxu0  ;;  %v16142_v61 = vld [vmem:[#allocation23_spill] sm:$0xff]  ;;  %v10449_v38 = vrot.slane %v6517_v28, 9  ;;  %v16149_v28 = vld [vmem:[#allocation105_spill] sm:$0xff] }
 0x57f   : > { %v9515_v57 = vpop.f32.mrf.mxu3  ;;  %v9256_v50 = vadd.f32 %v16142_v61, %v9167_v23  ;;  %v16148_v61 = vld [vmem:[#allocation12_spill] sm:$0xff] }
 0x580   : > { %v9891_v56 = vmul.f32 1.442695, %v9780_v12  ;;  %v9516_v45 = vadd.f32 %v9515_v57, %v9427_v49  ;;  %v11832_v1 = vpop.eup %11831  ;;  %vm9858_vm11 = vcmp.gt.f32.partialorder %v9780_v12, 0.0  ;;  %v16140_v57 = vld [vmem:[#allocation111_spill] sm:$0xff] }
 0x581   : > { %v11331_v14 = vadd.f32 -1.0, %v11832_v1 }
 0x582   : > { %11833 = vpow2.f32 %v9891_v56  ;;  %v9605_v31 = vadd.f32 %v16133_v13, %v9516_v45  ;;  %v16141_v45 = vld [vmem:[#allocation19_spill] sm:$0xff] }
 0x583   : > { %v9343_v13 = vadd.f32 %v16141_v45, %v9254_v25  ;;  %v9985_v22 = vsel %vm9857_vm14, %v9778_v27, %v11331_v14  ;;  %v15597_v14 = vpop.f32.mrf.mxu1  ;;  %v16145_v45 = vld [vmem:[#allocation103_spill] sm:$0xff] }
 0x584   : > { %v9694_v53 = vadd.f32 %v15387_v62, %v9605_v31  ;;  %v11500_v62 = vld [vmem:[#allocation5 + $0x2e4] sm:$0xf]  ;;  %v15583_v31 = vpop.f32.mrf.mxu2 }
 0x585   : > { %v10850_v37 = vor.u32 %v11500_v62, %v10847_v59  ;;  %v9432_v27 = vadd.f32 %v16143_v0, %v9343_v13 }
 0x586   : > { %v15570_v26 = vadd.f32 %v15461_v58, %v9694_v53  ;;  %v15601_v62 = vpop.f32.mrf.mxu0 }
 0x587   : > { %v9517_v2 = vpop.f32.mrf.mxu3 }
 0x588   : > { %v11834_v33 = vpop.eup %11833  ;;  %v9518_v17 = vadd.f32 %v9517_v2, %v9429_v42  ;;  %v9893_v49 = vmul.f32 1.442695, %v15570_v26  ;;  %v16144_v2 = vld [vmem:[#allocation22_spill] sm:$0xff]  ;;  %vm9859_vm13 = vcmp.gt.f32.partialorder %v15570_v26, 0.0 }
 0x589   : > { %v11332_v58 = vadd.f32 -1.0, %v11834_v33  ;;  %v6518_v33 = vld [vmem:[#allocation3 + $0xb8] sm:$0xf] }
 0x58a   : > { %v9607_v56 = vadd.f32 %v16140_v57, %v9518_v17  ;;  %11835 = vpow2.f32 %v9893_v49  ;;  %v6519_v17 = vld [vmem:[#allocation3 + $0xbc] sm:$0x1]  ;;  %v6671_v23 = vrot.slane %v6518_v33, 5 }
 0x58b   : > { %v9986_v47 = vsel %vm9858_vm11, %v9780_v12, %v11332_v58 }
 0x58c   : > { %v11627_v1 = vpack.c.bf16 %v9986_v47, %v9985_v22  ;;  %v9696_v53 = vadd.f32 %v15405_v35, %v9607_v56  ;;  %9559 = vmatmul.bf16.gmra.mxu3 %v10850_v37  ;;  %v9345_v35 = vadd.f32 %v16144_v2, %v9256_v50  ;;  %v15604_v37 = vpop.f32.mrf.mxu2  ;;  %v6672_v49 = vsel %vm12025_vm3, %v10449_v38, %v6671_v23  ;;  %v16147_v47 = vld [vmem:[#allocation41_spill] sm:$0xff] }
 0x58d   : > { %v6673_v57 = vrot.slane %v6671_v23, 4  ;;  %v6674_v56 = vrot.slane %v6519_v17, 5  ;;  %6743 = vst [vmem:[#allocation5 + $0x404] sm:$0xf] %v6672_v49  ;;  %v16150_v17 = vld [vmem:[#allocation24_spill] sm:$0xff]  ;;  %v15623_v23 = vpop.f32.mrf.mxu1 }
 0x58e   : > { %11628 = vst [vmem:[%s15590_s13] sm:$0xff] %v11627_v1   ;;  %v9785_v25 = vadd.f32 %v15469_v54, %v9696_v53  ;;  %v9434_v1 = vadd.f32 %v16147_v47, %v9345_v35  ;;  %v10883_v53 = vld [vmem:[#allocation5 + $0x34c] sm:$0xf0] }
 0x58f   : > { %v9520_v42 = vpop.f32.mrf.mxu3 }
 0x590   : > { %v9895_v59 = vmul.f32 1.442695, %v9785_v25  ;;  %v9521_v11 = vadd.f32 %v9520_v42, %v9432_v27  ;;  %v11836_v54 = vpop.eup %11835  ;;  %v6675_v27 = vsel %vm12025_vm3, %v6673_v57, %v6674_v56  ;;  %vm9860_vm15 = vcmp.gt.f32.partialorder %v9785_v25, 0.0  ;;  %v15627_v56 = vpop.f32.mrf.mxu0 }
 0x591   : > { %v11333_v50 = vadd.f32 -1.0, %v11836_v54  ;;  %6744 = vst [vmem:[#allocation5 + $0x428] sm:$0xf] %v6675_v27  ;;  %v6522_v27 = vld [vmem:[#allocation3 + $0xc8] sm:$0x1] }
 0x592   : > { %11837 = vpow2.f32 %v9895_v59  ;;  %v9610_v12 = vadd.f32 %v15395_v51, %v9521_v11  ;;  %v16146_v51 = vld [vmem:[#allocation26_spill] sm:$0xff] }
 0x593   : > { %v9259_v13 = vadd.f32 %v16146_v51, %v16145_v45  ;;  %v11509_v11 = vld [vmem:[#allocation5 + $0x32c] sm:$0xf]  ;;  %v9987_v54 = vsel %vm9859_vm13, %v15570_v26, %v11333_v50  ;;  %v16151_v45 = vld [vmem:[#allocation28_spill] sm:$0xff] }
 0x594   : > { %v9699_v58 = vadd.f32 %v15415_v60, %v9610_v12  ;;  %v9083_v60 = vadd.f32 %v15496_v15, %v16148_v61  ;;  %v10886_v2 = vor.u32 %v11509_v11, %v10883_v53 }
 0x595   : > { %v9348_v38 = vadd.f32 %v16150_v17, %v9259_v13  ;;  %v15633_v13 = vpop.f32.mrf.mxu2 }
 0x596   : > { %v15611_v22 = vadd.f32 %v15475_v44, %v9699_v58  ;;  %v9172_v12 = vadd.f32 %v16149_v28, %v9083_v60  ;;  %v16153_v60 = vld [vmem:[#allocation27_spill] sm:$0xff]  ;;  %v15638_v28 = vpop.f32.mrf.mxu1 }
 0x597   : > { %v9522_v0 = vpop.f32.mrf.mxu3 }
 0x598   : > { %v11838_v42 = vpop.eup %11837  ;;  %v9523_v59 = vadd.f32 %v9522_v0, %v9434_v1  ;;  %v9897_v35 = vmul.f32 1.442695, %v15611_v22  ;;  %v9261_v51 = vadd.f32 %v16151_v45, %v9172_v12  ;;  %v6521_v0 = vld [vmem:[#allocation3 + $0xc4] sm:$0xf]  ;;  %vm9861_vm0 = vcmp.gt.f32.partialorder %v15611_v22, 0.0 }
 0x599   : > { %v11334_v44 = vadd.f32 -1.0, %v11838_v42 }
 0x59a   : > { %v9612_v33 = vadd.f32 %v15409_v8, %v9523_v59  ;;  %11839 = vpow2.f32 %v9897_v35  ;;  %v16152_v8 = vld [vmem:[#allocation44_spill] sm:$0xff]  ;;  %v9350_v50 = vadd.f32 %v16153_v60, %v9261_v51  ;;  %v6678_v59 = vrot.slane %v6521_v0, 5  ;;  %v16154_v35 = vld [vmem:[#allocation107_spill] sm:$0xff] }
 0x59b   : > { %v9988_v58 = vsel %vm9860_vm15, %v9785_v25, %v11334_v44  ;;  %v9437_v1 = vadd.f32 %v16152_v8, %v9348_v38  ;;  %v6520_v25 = vld [vmem:[#allocation3 + $0xc0] sm:$0xe]  ;;  %v16156_v38 = vld [vmem:[#allocation47_spill] sm:$0xff] }
 0x59c   : > { %v11632_v49 = vpack.c.bf16 %v9988_v58, %v9987_v54  ;;  %v9701_v57 = vadd.f32 %v15421_v41, %v9612_v33  ;;  %9564 = vmatmul.bf16.gmra.mxu3 %v10886_v2  ;;  %v10450_v42 = vrot.slane %v6520_v25, 9  ;;  %v6680_v44 = vrot.slane %v6678_v59, 4  ;;  %v16155_v33 = vld [vmem:[#allocation30_spill] sm:$0xff]  ;;  %v10919_v58 = vld [vmem:[#allocation5 + $0x394] sm:$0xf0] }
 0x59d   : > { %v6681_v2 = vrot.slane %v6522_v27, 5  ;;  %v9264_v17 = vadd.f32 %v16155_v33, %v16154_v35  ;;  %v9439_v54 = vadd.f32 %v16156_v38, %v9350_v50  ;;  %v15655_v25 = vpop.f32.mrf.mxu2  ;;  %v16159_v27 = vld [vmem:[#allocation29_spill] sm:$0xff]  ;;  %v16161_v33 = vld [vmem:[#allocation50_spill] sm:$0xff] }
 0x59e   : > { %11704 = vst [vmem:[%s15590_s13 + $0x8] sm:$0xff] %v11632_v49   ;;  %v9790_v47 = vadd.f32 %v15481_v29, %v9701_v57  ;;  %v6679_v12 = vsel %vm12025_vm3, %v10450_v42, %v6678_v59  ;;  %v16157_v49 = vld [vmem:[#allocation13_spill] sm:$0xff]  ;;  %v15650_v57 = vpop.f32.mrf.mxu0 }
 0x59f   : > { %v9525_v53 = vpop.f32.mrf.mxu3  ;;  %6745 = vst [vmem:[#allocation5 + $0x44c] sm:$0xf] %v6679_v12  ;;  %v6682_v8 = vsel %vm12025_vm3, %v6680_v44, %v6681_v2  ;;  %v9353_v42 = vadd.f32 %v16159_v27, %v9264_v17  ;;  %v16160_v44 = vld [vmem:[#allocation32_spill] sm:$0xff] }
 0x5a0   : > { %v9899_v61 = vmul.f32 1.442695, %v9790_v47  ;;  %v9526_v26 = vadd.f32 %v9525_v53, %v9437_v1  ;;  %v11840_v11 = vpop.eup %11839  ;;  %6746 = vst [vmem:[#allocation5 + $0x470] sm:$0xf] %v6682_v8  ;;  %vm9862_vm1 = vcmp.gt.f32.partialorder %v9790_v47, 0.0 }
 0x5a1   : > { %v11335_v45 = vadd.f32 -1.0, %v11840_v11  ;;  %v9442_v38 = vadd.f32 %v16161_v33, %v9353_v42  ;;  %v11527_v27 = vld [vmem:[#allocation5 + $0x3bc] sm:$0xf] }
 0x5a2   : > { %11841 = vpow2.f32 %v9899_v61  ;;  %v9615_v41 = vadd.f32 %v15538_v24, %v9526_v26  ;;  %v11518_v61 = vld [vmem:[#allocation5 + $0x374] sm:$0xf] }
 0x5a3   : > { %v10922_v60 = vor.u32 %v11518_v61, %v10919_v58  ;;  %v9989_v59 = vsel %vm9861_vm0, %v15611_v22, %v11335_v45 }
 0x5a4   : > { %v9704_v29 = vadd.f32 %v15541_v30, %v9615_v41  ;;  %v9088_v30 = vadd.f32 %v15496_v15, %v16157_v49 }
 0x5a6   : > { %v15645_v24 = vadd.f32 %v15549_v9, %v9704_v29  ;;  %v16158_v9 = vld [vmem:[#allocation110_spill] sm:$0xff]  ;;  %v15669_v49 = vpop.f32.mrf.mxu0 }
 0x5a7   : > { %v9527_v51 = vpop.f32.mrf.mxu3  ;;  %v9177_v26 = vadd.f32 %v16158_v9, %v9088_v30  ;;  %v15673_v30 = vpop.f32.mrf.mxu2  ;;  %v10955_v9 = vld [vmem:[#allocation5 + $0x3dc] sm:$0xf0] }
 0x5a8   : > { %v11842_v1 = vpop.eup %11841  ;;  %v9528_v53 = vadd.f32 %v9527_v51, %v9439_v54  ;;  %v9901_v50 = vmul.f32 1.442695, %v15645_v24  ;;  %v15667_v54 = vpop.f32.mrf.mxu1  ;;  %vm9863_vm5 = vcmp.gt.f32.partialorder %v15645_v24, 0.0 }
 0x5a9   : > { %v11336_v41 = vadd.f32 -1.0, %v11842_v1  ;;  %v9266_v2 = vadd.f32 %v16160_v44, %v9177_v26  ;;  %v16165_v26 = vld [vmem:[#allocation14_spill] sm:$0xff] }
 0x5aa   : > { %v9617_v0 = vadd.f32 %v15555_v39, %v9528_v53  ;;  %11843 = vpow2.f32 %v9901_v50  ;;  %v16164_v53 = vld [vmem:[#allocation52_spill] sm:$0xff] }
 0x5ab   : > { %v9990_v11 = vsel %vm9862_vm1, %v9790_v47, %v11336_v41  ;;  %v9093_v41 = vadd.f32 %v15496_v15, %v16165_v26 }
 0x5ac   : > { %v11637_v29 = vpack.c.bf16 %v9990_v11, %v9989_v59  ;;  %v9706_v12 = vadd.f32 %v15560_v10, %v9617_v0  ;;  %9569 = vmatmul.bf16.gmra.mxu3 %v10922_v60  ;;  %v16162_v10 = vld [vmem:[#allocation31_spill] sm:$0xff] }
 0x5ad   : > { %v9355_v47 = vadd.f32 %v16162_v10, %v9266_v2  ;;  %v9182_v42 = vadd.f32 %v15399_v19, %v9093_v41  ;;  %v16171_v41 = vld [vmem:[#allocation58_spill] sm:$0xff] }
 0x5ae   : > { %11705 = vst [vmem:[%s15590_s13 + $0x10] sm:$0xff] %v11637_v29   ;;  %v9795_v35 = vadd.f32 %v15562_v48, %v9706_v12  ;;  %v16163_v48 = vld [vmem:[#allocation34_spill] sm:$0xff]  ;;  %v16166_v29 = vld [vmem:[#allocation33_spill] sm:$0xff]  ;;  %v15688_v44 = vpop.f32.mrf.mxu0 }
 0x5af   : > { %v9530_v39 = vpop.f32.mrf.mxu3  ;;  %v9269_v8 = vadd.f32 %v16163_v48, %v15389_v34  ;;  %v9444_v61 = vadd.f32 %v16164_v53, %v9355_v47 }
 0x5b0   : > { %v9903_v58 = vmul.f32 1.442695, %v9795_v35  ;;  %v9531_v17 = vadd.f32 %v9530_v39, %v9442_v38  ;;  %v11844_v45 = vpop.eup %11843  ;;  %v15683_v59 = vpop.f32.mrf.mxu1  ;;  %vm9864_vm7 = vcmp.gt.f32.partialorder %v9795_v35, 0.0 }
 0x5b1   : > { %v11337_v60 = vadd.f32 -1.0, %v11844_v45  ;;  %v9358_v12 = vadd.f32 %v16166_v29, %v9269_v8  ;;  %v15692_v39 = vpop.f32.mrf.mxu2 }
 0x5b2   : > { %11845 = vpow2.f32 %v9903_v58  ;;  %v9620_v22 = vadd.f32 %v15575_v21, %v9531_v17  ;;  %v16167_v58 = vld [vmem:[#allocation37_spill] sm:$0xff] }
 0x5b3   : > { %v9991_v2 = vsel %vm9863_vm5, %v15645_v24, %v11337_v60  ;;  %v9271_v17 = vadd.f32 %v16167_v58, %v9182_v42 }
 0x5b4   : > { %v9709_v51 = vadd.f32 %v15578_v63, %v9620_v22  ;;  %v10958_v63 = vor.u32 %v11527_v27, %v10955_v9  ;;  %v16170_v9 = vld [vmem:[#allocation39_spill] sm:$0xff] }
 0x5b6   : > { %v9798_v1 = vadd.f32 %v15583_v31, %v9709_v51 }
 0x5b7   : > { %v9532_v21 = vpop.f32.mrf.mxu3 }
 0x5b8   : > { %v11846_v50 = vpop.eup %11845  ;;  %v9533_v0 = vadd.f32 %v9532_v21, %v9444_v61  ;;  %v9905_v31 = vmul.f32 1.442695, %v9798_v1  ;;  %v15703_v61 = vpop.f32.mrf.mxu0  ;;  %v10991_v21 = vld [vmem:[#allocation5 + $0x424] sm:$0xf0]  ;;  %vm9865_vm10 = vcmp.gt.f32.partialorder %v9798_v1, 0.0 }
 0x5b9   : > { %v11338_v34 = vadd.f32 -1.0, %v11846_v50  ;;  %v16172_v50 = vld [vmem:[#allocation15_spill] sm:$0xff] }
 0x5ba   : > { %v9622_v11 = vadd.f32 %v15597_v14, %v9533_v0  ;;  %11847 = vpow2.f32 %v9905_v31  ;;  %v16168_v14 = vld [vmem:[#allocation55_spill] sm:$0xff]  ;;  %v15713_v0 = vpop.f32.mrf.mxu2  ;;  %v11536_v31 = vld [vmem:[#allocation5 + $0x404] sm:$0xf] }
 0x5bb   : > { %v9992_v33 = vsel %vm9864_vm7, %v9795_v35, %v11338_v34  ;;  %v9447_v10 = vadd.f32 %v16168_v14, %v9358_v12  ;;  %v16169_v35 = vld [vmem:[#allocation35_spill] sm:$0xff]  ;;  %v16173_v12 = vld [vmem:[#allocation40_spill] sm:$0xff]  ;;  %v16174_v14 = vld [vmem:[#allocation42_spill] sm:$0xff] }
 0x5bc   : > { %v11642_v38 = vpack.c.bf16 %v9992_v33, %v9991_v2  ;;  %v9711_v19 = vadd.f32 %v15601_v62, %v9622_v11  ;;  %9574 = vmatmul.bf16.gmra.mxu3 %v10958_v63  ;;  %v9360_v48 = vadd.f32 %v16169_v35, %v9271_v17  ;;  %v15700_v62 = vpop.f32.mrf.mxu1  ;;  %v10994_v11 = vor.u32 %v11536_v31, %v10991_v21  ;;  %v6779_v21 = vld [vmem:[#allocation3 + $0xd0] sm:$0xf] }
 0x5bd   : > { %6811 = vst [vmem:[#allocation5 + $0x474] sm:$0xf] %v6779_v21 }
 0x5be   : > { %11706 = vst [vmem:[%s15590_s13 + $0x18] sm:$0xff] %v11642_v38   ;;  %v9800_v22 = vadd.f32 %v15604_v37, %v9711_v19  ;;  %v9274_v37 = vadd.f32 %v16170_v9, %v15413_v20  ;;  %v9449_v60 = vadd.f32 %v16171_v41, %v9360_v48 }
 0x5bf   : > { %v9535_v47 = vpop.f32.mrf.mxu3 }
 0x5c0   : > { %v9907_v45 = vmul.f32 1.442695, %v9800_v22  ;;  %v9536_v51 = vadd.f32 %v9535_v47, %v9447_v10  ;;  %v11848_v8 = vpop.eup %11847  ;;  %vm9866_vm12 = vcmp.gt.f32.partialorder %v9800_v22, 0.0  ;;  %v9363_v2 = vadd.f32 %v16173_v12, %v9274_v37  ;;  %v16175_v47 = vld [vmem:[#allocation61_spill] sm:$0xff] }
 0x5c1   : > { %v11339_v27 = vadd.f32 -1.0, %v11848_v8  ;;  %v4558_v8 = vld [vmem:[#allocation3 + $0xcc] sm:$0x1] }
 0x5c2   : > { %11849 = vpow2.f32 %v9907_v45  ;;  %v9625_v24 = vadd.f32 %v15623_v23, %v9536_v51  ;;  %v9098_v23 = vadd.f32 %v15496_v15, %v16172_v50  ;;  %v9452_v45 = vadd.f32 %v16175_v47, %v9363_v2  ;;  %v7353_v51 = vld [vmem:[#allocation3 + $0xcc] sm:$0xe]  ;;  %v6858_v50 = vld [vmem:[#allocation3 + $0xd0] sm:$0xf] }
 0x5c3   : > { %v9993_v33 = vsel %vm9865_vm10, %v9798_v1, %v11339_v27  ;;  %v10466_v48 = vrot.slane %v7353_v51, 9  ;;  %v7234_v31 = vshrl.u32 %v6858_v50, 16  ;;  %v11545_v51 = vld [vmem:[#allocation5 + $0x44c] sm:$0xf] }
 0x5c4   : > { %v9714_v53 = vadd.f32 %v15627_v56, %v9625_v24  ;;  %v9187_v20 = vadd.f32 %v15417_v5, %v9098_v23  ;;  %v15720_v17 = vpop.f32.mrf.mxu1  ;;  %v15728_v24 = vpop.f32.mrf.mxu0 }
 0x5c6   : > { %v15708_v26 = vadd.f32 %v15633_v13, %v9714_v53  ;;  %v9276_v10 = vadd.f32 %v16174_v14, %v9187_v20  ;;  %v16179_v20 = vld [vmem:[#allocation16_spill] sm:$0xff] }
 0x5c7   : > { %v9537_v42 = vpop.f32.mrf.mxu3 }
 0x5c8   : > { %v11850_v34 = vpop.eup %11849  ;;  %v9909_v56 = vmul.f32 1.442695, %v15708_v26  ;;  %v9538_v63 = vadd.f32 %v9537_v42, %v9449_v60  ;;  %v4559_v60 = vsel %vm13070_vm9, 0, %v4558_v8  ;;  %v16178_v42 = vld [vmem:[#allocation43_spill] sm:$0xff]  ;;  %vm9867_vm9 = vcmp.gt.f32.partialorder %v15708_v26, 0.0 }
 0x5c9   : > { %v11340_v13 = vadd.f32 -1.0, %v11850_v34  ;;  %v9365_v34 = vadd.f32 %v16178_v42, %v9276_v10  ;;  %4560 = vst [vmem:[#allocation3 + $0xcc] sm:$0x1] %v4559_v60 }
 0x5ca   : > { %v9627_v29 = vadd.f32 %v15638_v28, %v9538_v63  ;;  %11851 = vpow2.f32 %v9909_v56  ;;  %v4613_v28 = vld [vmem:[#allocation3 + $0xd4] sm:$0x1]  ;;  %v7230_v63 = vshll.u32 %v6858_v50, 16 }
 0x5cb   : > { %v9994_v38 = vsel %vm9866_vm12, %v9800_v22, %v11340_v13  ;;  %v4614_v35 = vsel %vm13132_vm4, 0, %v4613_v28  ;;  %v9103_v13 = vadd.f32 %v15496_v15, %v16179_v20 }
 0x5cc   : > { %v11647_v19 = vpack.c.bf16 %v9994_v38, %v9993_v33  ;;  %v9716_v58 = vadd.f32 %v15650_v57, %v9627_v29  ;;  %9579 = vmatmul.bf16.gmra.mxu3 %v10994_v11  ;;  %v7354_v57 = vld [vmem:[#allocation3 + $0xd0] sm:$0xf]  ;;  %4615 = vst [vmem:[#allocation3 + $0xd4] sm:$0x1] %v4614_v35  ;;  %v16180_v29 = vld [vmem:[#allocation45_spill] sm:$0xff]  ;;  %v15746_v33 = vrot.slane %v7230_v63, 5 }
 0x5cd   : > { %v7511_v37 = vrot.slane %v7354_v57, 5  ;;  %v9279_v12 = vadd.f32 %v16180_v29, %v15427_v36  ;;  %v7236_v38 = vrot.slane %v7234_v31, 4  ;;  %v9192_v47 = vadd.f32 %v15435_v55, %v9103_v13 }
 0x5ce   : > { %11707 = vst [vmem:[%s15590_s13 + $0x20] sm:$0xff] %v11647_v19   ;;  %v15725_v5 = vadd.f32 %v15655_v25, %v9716_v58  ;;  %v15733_v25 = vpop.f32.mrf.mxu2  ;;  %v16181_v58 = vld [vmem:[#allocation65_spill] sm:$0xff] }
 0x5cf   : > { %v9540_v1 = vpop.f32.mrf.mxu3  ;;  %v7512_v56 = vsel %vm12025_vm3, %v10466_v48, %v7511_v37  ;;  %v9454_v14 = vadd.f32 %v16181_v58, %v9365_v34  ;;  %v7513_v10 = vrot.slane %v7511_v37, 4  ;;  %v7237_v36 = vor.u32 %v7236_v38, %v15746_v33  ;;  %v15757_v48 = vpop.f32.mrf.mxu0  ;;  %v16182_v37 = vld [vmem:[#allocation46_spill] sm:$0xff] }
 0x5d0   : > { %v9911_v53 = vmul.f32 1.442695, %v15725_v5  ;;  %v9541_v9 = vadd.f32 %v9540_v1, %v9452_v45  ;;  %v11852_v23 = vpop.eup %11851  ;;  %7578 = vst [vmem:[#allocation5 + $0x458] sm:$0xf] %v7512_v56  ;;  %v15753_v45 = vpop.f32.mrf.mxu1  ;;  %vm9868_vm4 = vcmp.gt.f32.partialorder %v15725_v5, 0.0  ;;  %v9368_v41 = vadd.f32 %v16182_v37, %v9279_v12  ;;  %v16184_v12 = vld [vmem:[#allocation68_spill] sm:$0xff] }
 0x5d1   : > { %v11341_v2 = vadd.f32 -1.0, %v11852_v23  ;;  %v7238_v34 = vrot.slane %v7237_v36, 4 }
 0x5d2   : > { %11853 = vpow2.f32 %v9911_v53  ;;  %v9630_v27 = vadd.f32 %v15667_v54, %v9541_v9  ;;  %v11027_v54 = vld [vmem:[#allocation5 + $0x46c] sm:$0xf0]  ;;  %v6778_v53 = vld [vmem:[#allocation3 + $0xcc] sm:$0xf] }
 0x5d3   : > { %v7355_v28 = vld [vmem:[#allocation3 + $0xd4] sm:$0x1]  ;;  %v11030_v57 = vor.u32 %v11545_v51, %v11027_v54  ;;  %v9995_v8 = vsel %vm9867_vm9, %v15708_v26, %v11341_v2  ;;  %v6857_v9 = vld [vmem:[#allocation3 + $0xcc] sm:$0xf]  ;;  %6810 = vst [vmem:[#allocation5 + $0x450] sm:$0xf] %v6778_v53  ;;  %v9457_v2 = vadd.f32 %v16184_v12, %v9368_v41 }
 0x5d4   : > { %v9719_v11 = vadd.f32 %v15669_v49, %v9630_v27  ;;  %v7514_v35 = vrot.slane %v7355_v28, 5  ;;  %v7221_v23 = vshrl.u32 %v6857_v9, 16  ;;  %v7224_v42 = vshll.u32 %v6857_v9, 16  ;;  %v16186_v9 = vld [vmem:[#allocation51_spill] sm:$0xff]  ;;  %v16187_v41 = vld [vmem:[#allocation72_spill] sm:$0xff] }
 0x5d6   : > { %v15749_v19 = vadd.f32 %v15673_v30, %v9719_v11  ;;  %v6859_v30 = vld [vmem:[#allocation3 + $0xd4] sm:$0x1]  ;;  %v7515_v50 = vsel %vm12025_vm3, %v7513_v10, %v7514_v35  ;;  %v15766_v27 = vpop.f32.mrf.mxu2  ;;  %v7223_v20 = vrot.slane %v7221_v23, 4  ;;  %v9281_v11 = vadd.f32 %v16183_v4, %v9192_v47 }
 0x5d7   : > { %v9542_v49 = vpop.f32.mrf.mxu3  ;;  %7579 = vst [vmem:[#allocation5 + $0x47c] sm:$0xf] %v7515_v50  ;;  %v7240_v56 = vshll.u32 %v6859_v30, 16  ;;  %v15780_v35 = vpop.f32.mrf.mxu0 }
 0x5d8   : > { %v11854_v1 = vpop.eup %11853  ;;  %v9543_v22 = vadd.f32 %v9542_v49, %v9454_v14  ;;  %v9913_v60 = vmul.f32 1.442695, %v15749_v19  ;;  %v15776_v49 = vpop.f32.mrf.mxu1  ;;  %vm9869_vm3 = vcmp.gt.f32.partialorder %v15749_v19, 0.0 }
 0x5d9   : > { %v11342_v55 = vadd.f32 -1.0, %v11854_v1  ;;  %v7242_v13 = vrot.slane %v7240_v56, 5  ;;  %v16185_v1 = vld [vmem:[#allocation49_spill] sm:$0xff] }
 0x5da   : > { %v9632_v21 = vadd.f32 %v15683_v59, %v9543_v22  ;;  %v7226_v59 = vrot.slane %v7224_v42, 5  ;;  %11855 = vpow2.f32 %v9913_v60  ;;  %v11033_v28 = vld [vmem:[#allocation5 + $0x450] sm:$0xf]  ;;  %v9370_v22 = vadd.f32 %v16185_v1, %v9281_v11  ;;  %v16189_v42 = vld [vmem:[#allocation117_spill] sm:$0xff]  ;;  %v16194_v1 = vld [vmem:[#allocation118_spill] sm:$0xff] }
 0x5db   : > { %v9996_v26 = vsel %vm9868_vm4, %v15725_v5, %v11342_v55  ;;  %v11550_v5 = vld [vmem:[#allocation5 + $0x470] sm:$0xf0]  ;;  %v7243_v38 = vsel %vm12051_vm6, %v7238_v34, %v7242_v13 }
 0x5dc   : > { %v11652_v63 = vpack.c.bf16 %v9996_v26, %v9995_v8  ;;  %v9721_v31 = vadd.f32 %v15688_v44, %v9632_v21  ;;  %9584 = vmatmul.bf16.gmra.mxu3 %v11030_v57  ;;  %v7227_v54 = vor.u32 %v7226_v59, %v7223_v20  ;;  %v11041_v44 = vld [vmem:[#allocation5 + $0x458] sm:$0xf]  ;;  %7307 = vst [vmem:[#allocation5 + $0x478] sm:$0xf] %v7243_v38  ;;  %v16188_v21 = vld [vmem:[#allocation17_spill] sm:$0xff] }
 0x5dd   : > { %v11034_v36 = vor.u32 %v11550_v5, %v11033_v28  ;;  %v9459_v60 = vadd.f32 %v16187_v41, %v9370_v22  ;;  %v9108_v50 = vadd.f32 %v15496_v15, %v16188_v21  ;;  %v16195_v22 = vld [vmem:[#allocation57_spill] sm:$0xff] }
 0x5de   : > { %11708 = vst [vmem:[%s15590_s13 + $0x28] sm:$0xff] %v11652_v63   ;;  %v9810_v29 = vadd.f32 %v15692_v39, %v9721_v31  ;;  %v7228_v47 = vrot.slane %v7227_v54, 4  ;;  %v11551_v51 = vld [vmem:[#allocation5 + $0x478] sm:$0xf0]  ;;  %v15786_v53 = vpop.f32.mrf.mxu2  ;;  %v16190_v63 = vld [vmem:[#allocation53_spill] sm:$0xff]  ;;  %v16191_v54 = vld [vmem:[#allocation54_spill] sm:$0xff] }
 0x5df   : > { %v9545_v58 = vpop.f32.mrf.mxu3  ;;  %v11042_v57 = vor.u32 %v11551_v51, %v11041_v44  ;;  %9673 = vmatmul.bf16.gmra.mxu1 %v11034_v36  ;;  %v9197_v34 = vadd.f32 %v16189_v42, %v9108_v50  ;;  %v9733_v5 = vpop.f32.mrf.mxu0  ;;  %v16198_v50 = vld [vmem:[#allocation119_spill] sm:$0xff] }
 0x5e0   : > { %v9915_v14 = vmul.f32 1.442695, %v9810_v29  ;;  %v9546_v10 = vadd.f32 %v9545_v58, %v9457_v2  ;;  %v7233_v30 = vsel %vm12051_vm6, %v7228_v47, %v15746_v33  ;;  %v11856_v8 = vpop.eup %11855  ;;  %vm9870_vm6 = vcmp.gt.f32.partialorder %v9810_v29, 0.0  ;;  %v9644_v20 = vpop.f32.mrf.mxu1  ;;  %v16193_v47 = vld [vmem:[#allocation56_spill] sm:$0xff] }
 0x5e1   : > { %7306 = vst [vmem:[#allocation5 + $0x454] sm:$0xf] %v7233_v30  ;;  %9851 = vmatmul.bf16.gmra.mxu2 %v11042_v57  ;;  %v11343_v16 = vadd.f32 -1.0, %v11856_v8  ;;  %v9286_v38 = vadd.f32 %v16191_v54, %v9197_v34  ;;  %v9289_v57 = vadd.f32 %v16195_v22, %v16194_v1  ;;  %v16196_v30 = vld [vmem:[#allocation79_spill] sm:$0xff] }
 0x5e2   : > { %11857 = vpow2.f32 %v9915_v14  ;;  %v9635_v39 = vadd.f32 %v15700_v62, %v9546_v10  ;;  %v9284_v62 = vadd.f32 %v16186_v9, %v15447_v52 }
 0x5e3   : > { %v11035_v56 = vld [vmem:[#allocation5 + $0x474] sm:$0xf0]  ;;  %v9997_v59 = vsel %vm9869_vm3, %v15749_v19, %v11343_v16  ;;  %v9375_v51 = vadd.f32 %v16193_v47, %v9286_v38  ;;  %v16206_v47 = vld [vmem:[#allocation25_spill] sm:$0xff] }
 0x5e4   : > { %v9724_v55 = vadd.f32 %v15703_v61, %v9635_v39  ;;  %v9373_v31 = vadd.f32 %v16190_v63, %v9284_v62 }
 0x5e5   : > { %v9464_v8 = vadd.f32 %v16196_v30, %v9375_v51  ;;  %v9118_v51 = vadd.f32 %v15496_v15, %v16206_v47 }
 0x5e6   : > { %v9813_v37 = vadd.f32 %v15713_v0, %v9724_v55  ;;  %v9822_v44 = vpop.f32.mrf.mxu2  ;;  %v16197_v55 = vld [vmem:[#allocation20_spill] sm:$0xff] }
 0x5e7   : > { %v9547_v33 = vpop.f32.mrf.mxu3  ;;  %v9113_v9 = vadd.f32 %v15496_v15, %v16197_v55  ;;  %v9735_v62 = vpop.f32.mrf.mxu0 }
 0x5e8   : > { %v11858_v23 = vpop.eup %11857  ;;  %v9548_v26 = vadd.f32 %v9547_v33, %v9459_v60  ;;  %v9917_v52 = vmul.f32 1.442695, %v9813_v37  ;;  %v11546_v4 = vld [vmem:[#allocation5 + $0x454] sm:$0xf]  ;;  %v9646_v39 = vpop.f32.mrf.mxu1  ;;  %vm9871_vm2 = vcmp.gt.f32.partialorder %v9813_v37, 0.0 }
 0x5e9   : > { %v11344_v61 = vadd.f32 -1.0, %v11858_v23  ;;  %v11038_v12 = vor.u32 %v11546_v4, %v11035_v56  ;;  %v9202_v16 = vadd.f32 %v16198_v50, %v9113_v9  ;;  %v16208_v9 = vld [vmem:[#allocation66_spill] sm:$0xff] }
 0x5ea   : > { %v9637_v0 = vadd.f32 %v15720_v17, %v9548_v26  ;;  %11859 = vpow2.f32 %v9917_v52  ;;  %v16192_v17 = vld [vmem:[#allocation75_spill] sm:$0xff] }
 0x5eb   : > { %v9998_v13 = vsel %vm9870_vm6, %v9810_v29, %v11344_v61  ;;  %9762 = vmatmul.bf16.gmra.mxu0 %v11038_v12  ;;  %v9462_v14 = vadd.f32 %v16192_v17, %v9373_v31  ;;  %v16199_v26 = vld [vmem:[#allocation59_spill] sm:$0xff] }
 0x5ec   : > { %v11657_v11 = vpack.c.bf16 %v9998_v13, %v9997_v59  ;;  %v9726_v2 = vadd.f32 %v15728_v24, %v9637_v0  ;;  %v9378_v42 = vadd.f32 %v16199_v26, %v9289_v57  ;;  %v16200_v0 = vld [vmem:[#allocation60_spill] sm:$0xff]  ;;  %v16201_v59 = vld [vmem:[#allocation82_spill] sm:$0xff]  ;;  %v16207_v57 = vld [vmem:[#allocation121_spill] sm:$0xff] }
 0x5ed   : > { %v9291_v63 = vadd.f32 %v16200_v0, %v9202_v16  ;;  %v9207_v30 = vadd.f32 %v16207_v57, %v9118_v51  ;;  %v16209_v16 = vld [vmem:[#allocation67_spill] sm:$0xff] }
 0x5ee   : > { %11709 = vst [vmem:[%s15590_s13 + $0x30] sm:$0xff] %v11657_v11   ;;  %v9815_v58 = vadd.f32 %v15733_v25, %v9726_v2  ;;  %v9467_v13 = vadd.f32 %v16201_v59, %v9378_v42 }
 0x5ef   : > { %v9550_v10 = vpop.f32.mrf.mxu3 }
 0x5f0   : > { %v9919_v28 = vmul.f32 1.442695, %v9815_v58  ;;  %v9551_v19 = vadd.f32 %v9550_v10, %v9462_v14  ;;  %v11860_v24 = vpop.eup %11859  ;;  %vm9872_vm8 = vcmp.gt.f32.partialorder %v9815_v58, 0.0  ;;  %v9649_v4 = vpop.f32.mrf.mxu1  ;;  %v16203_v14 = vld [vmem:[#allocation120_spill] sm:$0xff]  ;;  %v16204_v10 = vld [vmem:[#allocation63_spill] sm:$0xff] }
 0x5f1   : > { %v11345_v41 = vadd.f32 -1.0, %v11860_v24 }
 0x5f2   : > { %11861 = vpow2.f32 %v9919_v28  ;;  %v9640_v29 = vadd.f32 %v15753_v45, %v9551_v19  ;;  %v9294_v28 = vadd.f32 %v16204_v10, %v16203_v14  ;;  %v16214_v14 = vld [vmem:[#allocation74_spill] sm:$0xff] }
 0x5f3   : > { %v9999_v34 = vsel %vm9871_vm2, %v9813_v37, %v11345_v41  ;;  %v16202_v37 = vld [vmem:[#allocation62_spill] sm:$0xff] }
 0x5f4   : > { %v9729_v36 = vadd.f32 %v15757_v48, %v9640_v29  ;;  %v9824_v48 = vpop.f32.mrf.mxu2  ;;  %v9380_v38 = vadd.f32 %v16202_v37, %v9291_v63  ;;  %v16205_v29 = vld [vmem:[#allocation85_spill] sm:$0xff] }
 0x5f6   : > { %v9818_v25 = vadd.f32 %v15766_v27, %v9729_v36 }
 0x5f7   : > { %v9552_v60 = vpop.f32.mrf.mxu3 }
 0x5f8   : > { %v11862_v45 = vpop.eup %11861  ;;  %v9553_v21 = vadd.f32 %v9552_v60, %v9464_v8  ;;  %v9921_v23 = vmul.f32 1.442695, %v9818_v25  ;;  %vm9873_vm14 = vcmp.gt.f32.partialorder %v9818_v25, 0.0 }
 0x5f9   : > { %v11346_v33 = vadd.f32 -1.0, %v11862_v45 }
 0x5fa   : > { %v9642_v27 = vadd.f32 %v15776_v49, %v9553_v21  ;;  %11863 = vpow2.f32 %v9921_v23  ;;  %v9738_v49 = vpop.f32.mrf.mxu0 }
 0x5fb   : > { %v10000_v61 = vsel %vm9872_vm8, %v9815_v58, %v11346_v33  ;;  %v9296_v33 = vadd.f32 %v16209_v16, %v9207_v30 }
 0x5fc   : > { %v11662_v56 = vpack.c.bf16 %v10000_v61, %v9999_v34  ;;  %v9731_v52 = vadd.f32 %v15780_v35, %v9642_v27  ;;  %v9827_v58 = vpop.f32.mrf.mxu2  ;;  %v16210_v27 = vld [vmem:[#allocation88_spill] sm:$0xff] }
 0x5fe   : > { %11710 = vst [vmem:[%s15590_s13 + $0x38] sm:$0xff] %v11662_v56   ;;  %v9820_v31 = vadd.f32 %v15786_v53, %v9731_v52  ;;  %v9469_v53 = vadd.f32 %v16205_v29, %v9380_v38  ;;  %v16211_v56 = vld [vmem:[#allocation70_spill] sm:$0xff] }
 0x5ff   : > { %v9555_v11 = vpop.f32.mrf.mxu3  ;;  %v9385_v52 = vadd.f32 %v16211_v56, %v9296_v33 }
 0x600   : > { %v9923_v12 = vmul.f32 1.442695, %v9820_v31  ;;  %v9556_v2 = vadd.f32 %v9555_v11, %v9467_v13  ;;  %v11864_v17 = vpop.eup %11863  ;;  %vm9874_vm11 = vcmp.gt.f32.partialorder %v9820_v31, 0.0  ;;  %v16213_v11 = vld [vmem:[#allocation91_spill] sm:$0xff] }
 0x601   : > { %v11347_v24 = vadd.f32 -1.0, %v11864_v17 }
 0x602   : > { %11865 = vpow2.f32 %v9923_v12  ;;  %v9645_v54 = vadd.f32 %v9644_v20, %v9556_v2  ;;  %v9651_v20 = vpop.f32.mrf.mxu1  ;;  %v9740_v41 = vpop.f32.mrf.mxu0  ;;  %v9474_v12 = vadd.f32 %v16213_v11, %v9385_v52 }
 0x603   : > { %v10001_v60 = vsel %vm9873_vm14, %v9818_v25, %v11347_v24  ;;  %v16216_v24 = vld [vmem:[#allocation95_spill] sm:$0xff] }
 0x604   : > { %v9734_v35 = vadd.f32 %v9733_v5, %v9645_v54  ;;  %v9829_v50 = vpop.f32.mrf.mxu2 }
 0x606   : > { %v9823_v19 = vadd.f32 %v9822_v44, %v9734_v35  ;;  %v9383_v44 = vadd.f32 %v16208_v9, %v9294_v28 }
 0x607   : > { %v9557_v36 = vpop.f32.mrf.mxu3 }
 0x608   : > { %v11866_v1 = vpop.eup %11865  ;;  %v9558_v22 = vadd.f32 %v9557_v36, %v9469_v53  ;;  %v9925_v5 = vmul.f32 1.442695, %v9823_v19  ;;  %v9472_v26 = vadd.f32 %v16210_v27, %v9383_v44  ;;  %vm9875_vm13 = vcmp.gt.f32.partialorder %v9823_v19, 0.0  ;;  %v16215_v53 = vld [vmem:[#allocation73_spill] sm:$0xff]  ;;  %v16218_v44 = vld [vmem:[#allocation122_spill] sm:$0xff] }
 0x609   : > { %v11348_v8 = vadd.f32 -1.0, %v11866_v1  ;;  %v9301_v47 = vadd.f32 %v16215_v53, %v15489_v32  ;;  %v16227_v53 = vld [vmem:[#allocation83_spill] sm:$0xff] }
 0x60a   : > { %v9647_v55 = vadd.f32 %v9646_v39, %v9558_v22  ;;  %11867 = vpow2.f32 %v9925_v5  ;;  %v9654_v0 = vpop.f32.mrf.mxu1 }
 0x60b   : > { %v10002_v45 = vsel %vm9874_vm11, %v9820_v31, %v11348_v8  ;;  %v9743_v31 = vpop.f32.mrf.mxu0 }
 0x60c   : > { %v11667_v21 = vpack.c.bf16 %v10002_v45, %v10001_v60  ;;  %v9736_v15 = vadd.f32 %v9735_v62, %v9647_v55  ;;  %v16212_v62 = vld [vmem:[#allocation69_spill] sm:$0xff]  ;;  %v16220_v45 = vld [vmem:[#allocation99_spill] sm:$0xff] }
 0x60d   : > { %v9299_v59 = vadd.f32 %v16212_v62, %v15483_v6 }
 0x60e   : > { %11711 = vst [vmem:[%s15590_s13 + $0x40] sm:$0xff] %v11667_v21   ;;  %v9825_v23 = vadd.f32 %v9824_v48, %v9736_v15  ;;  %v9832_v48 = vpop.f32.mrf.mxu2  ;;  %v15848_v15 = vld [vmem:[%s15899_s4] ss:$0 sm:$0xff] }
 0x60f   : > { %v9560_v42 = vpop.f32.mrf.mxu3 }
 0x610   : > { %v9927_v34 = vmul.f32 1.442695, %v9825_v23  ;;  %v9561_v61 = vadd.f32 %v9560_v42, %v9472_v26  ;;  %v11868_v25 = vpop.eup %11867  ;;  %vm9876_vm15 = vcmp.gt.f32.partialorder %v9825_v23, 0.0 }
 0x611   : > { %v11349_v2 = vadd.f32 -1.0, %v11868_v25  ;;  %v16223_v25 = vld [vmem:[#allocation81_spill] sm:$0xff] }
 0x612   : > { %11869 = vpow2.f32 %v9927_v34  ;;  %v9650_v39 = vadd.f32 %v9649_v4, %v9561_v61  ;;  %v16222_v34 = vld [vmem:[#allocation123_spill] sm:$0xff] }
 0x613   : > { %v10003_v10 = vsel %vm9875_vm13, %v9823_v19, %v11349_v2  ;;  %v9745_v1 = vpop.f32.mrf.mxu0  ;;  %v16217_v19 = vld [vmem:[#allocation77_spill] sm:$0xff] }
 0x614   : > { %v9739_v63 = vadd.f32 %v9738_v49, %v9650_v39  ;;  %v9388_v49 = vadd.f32 %v16214_v14, %v9299_v59  ;;  %v9390_v5 = vadd.f32 %v16217_v19, %v9301_v47  ;;  %v9309_v47 = vadd.f32 %v16227_v53, %v15510_v40  ;;  %v16238_v53 = vld [vmem:[#allocation92_spill] sm:$0xff] }
 0x616   : > { %v9828_v13 = vadd.f32 %v9827_v58, %v9739_v63  ;;  %v9656_v58 = vpop.f32.mrf.mxu1  ;;  %v9477_v36 = vadd.f32 %v16216_v24, %v9388_v49  ;;  %v9479_v21 = vadd.f32 %v16220_v45, %v9390_v5  ;;  %v16228_v24 = vld [vmem:[#allocation106_spill] sm:$0xff] }
 0x617   : > { %v9562_v54 = vpop.f32.mrf.mxu3 }
 0x618   : > { %v11870_v37 = vpop.eup %11869  ;;  %v9563_v38 = vadd.f32 %v9562_v54, %v9474_v12  ;;  %v9929_v17 = vmul.f32 1.442695, %v9828_v13  ;;  %vm9877_vm0 = vcmp.gt.f32.partialorder %v9828_v13, 0.0 }
 0x619   : > { %v11350_v4 = vadd.f32 -1.0, %v11870_v37  ;;  %v16225_v37 = vld [vmem:[#allocation102_spill] sm:$0xff] }
 0x61a   : > { %v9652_v35 = vadd.f32 %v9651_v20, %v9563_v38  ;;  %11871 = vpow2.f32 %v9929_v17  ;;  %v9834_v20 = vpop.f32.mrf.mxu2 }
 0x61b   : > { %v10004_v28 = vsel %vm9876_vm15, %v9825_v23, %v11350_v4  ;;  %v9748_v39 = vpop.f32.mrf.mxu0 }
 0x61c   : > { %v11672_v29 = vpack.c.bf16 %v10004_v28, %v10003_v10  ;;  %v9741_v6 = vadd.f32 %v9740_v41, %v9652_v35  ;;  %v16219_v41 = vld [vmem:[#allocation76_spill] sm:$0xff] }
 0x61d   : > { %v9304_v60 = vadd.f32 %v16219_v41, %v16218_v44  ;;  %v16226_v10 = vld [vmem:[#allocation84_spill] sm:$0xff]  ;;  %v16230_v44 = vld [vmem:[#allocation87_spill] sm:$0xff] }
 0x61e   : > { %11712 = vst [vmem:[%s15590_s13 + $0x48] sm:$0xff] %v11672_v29   ;;  %v9830_v51 = vadd.f32 %v9829_v50, %v9741_v6  ;;  %v16221_v50 = vld [vmem:[#allocation64_spill] sm:$0xff]  ;;  %v9659_v33 = vpop.f32.mrf.mxu1  ;;  %v9398_v40 = vadd.f32 %v16230_v44, %v9309_v47 }
 0x61f   : > { %v9565_v22 = vpop.f32.mrf.mxu3  ;;  %v9128_v16 = vadd.f32 %v15848_v15, %v16221_v50  ;;  %v9393_v63 = vadd.f32 %v16223_v25, %v9304_v60 }
 0x620   : > { %v9931_v57 = vmul.f32 1.442695, %v9830_v51  ;;  %v9566_v30 = vadd.f32 %v9565_v22, %v9477_v36  ;;  %v11872_v55 = vpop.eup %11871  ;;  %vm9878_vm1 = vcmp.gt.f32.partialorder %v9830_v51, 0.0 }
 0x621   : > { %v11351_v23 = vadd.f32 -1.0, %v11872_v55  ;;  %v9217_v61 = vadd.f32 %v16222_v34, %v9128_v16  ;;  %v9482_v38 = vadd.f32 %v16225_v37, %v9393_v63 }
 0x622   : > { %11873 = vpow2.f32 %v9931_v57  ;;  %v9655_v8 = vadd.f32 %v9654_v0, %v9566_v30 }
 0x623   : > { %v10005_v62 = vsel %vm9877_vm0, %v9828_v13, %v11351_v23  ;;  %v9750_v29 = vpop.f32.mrf.mxu0 }
 0x624   : > { %v9744_v9 = vadd.f32 %v9743_v31, %v9655_v8  ;;  %v9837_v31 = vpop.f32.mrf.mxu2 }
 0x626   : > { %v9833_v32 = vadd.f32 %v9832_v48, %v9744_v9  ;;  %v16224_v48 = vld [vmem:[#allocation80_spill] sm:$0xff]  ;;  %v9661_v14 = vpop.f32.mrf.mxu1 }
 0x627   : > { %v9567_v27 = vpop.f32.mrf.mxu3  ;;  %v9306_v2 = vadd.f32 %v16224_v48, %v9217_v61  ;;  %v16236_v48 = vld [vmem:[#allocation78_spill] sm:$0xff] }
 0x628   : > { %v11874_v26 = vpop.eup %11873  ;;  %v9568_v42 = vadd.f32 %v9567_v27, %v9479_v21  ;;  %v9933_v52 = vmul.f32 1.442695, %v9833_v32  ;;  %vm9879_vm5 = vcmp.gt.f32.partialorder %v9833_v32, 0.0 }
 0x629   : > { %v11352_v56 = vadd.f32 -1.0, %v11874_v26  ;;  %v9395_v28 = vadd.f32 %v16226_v10, %v9306_v2  ;;  %v16232_v26 = vld [vmem:[#allocation109_spill] sm:$0xff]  ;;  %v9138_v2 = vadd.f32 %v15848_v15, %v16236_v48 }
 0x62a   : > { %v9657_v0 = vadd.f32 %v9656_v58, %v9568_v42  ;;  %11875 = vpow2.f32 %v9933_v52  ;;  %v16233_v52 = vld [vmem:[#allocation90_spill] sm:$0xff] }
 0x62b   : > { %v10006_v59 = vsel %vm9878_vm1, %v9830_v51, %v11352_v56  ;;  %v9484_v36 = vadd.f32 %v16228_v24, %v9395_v28  ;;  %v9753_v16 = vpop.f32.mrf.mxu0  ;;  %v16237_v28 = vld [vmem:[#allocation93_spill] sm:$0xff] }
 0x62c   : > { %v11677_v11 = vpack.c.bf16 %v10006_v59, %v10005_v62  ;;  %v9746_v12 = vadd.f32 %v9745_v1, %v9657_v0  ;;  %v9839_v58 = vpop.f32.mrf.mxu2  ;;  %v16229_v1 = vld [vmem:[#allocation71_spill] sm:$0xff] }
 0x62d   : > { %v9133_v22 = vadd.f32 %v15848_v15, %v16229_v1 }
 0x62e   : > { %11713 = vst [vmem:[%s15590_s13 + $0x50] sm:$0xff] %v11677_v11   ;;  %v9835_v54 = vadd.f32 %v9834_v20, %v9746_v12  ;;  %v9664_v41 = vpop.f32.mrf.mxu1  ;;  %v16235_v11 = vld [vmem:[#allocation112_spill] sm:$0xff] }
 0x62f   : > { %v9570_v4 = vpop.f32.mrf.mxu3  ;;  %v9222_v19 = vadd.f32 %v15512_v18, %v9133_v22  ;;  %v9487_v18 = vadd.f32 %v16232_v26, %v9398_v40  ;;  %v16241_v40 = vld [vmem:[#allocation114_spill] sm:$0xff] }
 0x630   : > { %v9935_v17 = vmul.f32 1.442695, %v9835_v54  ;;  %v9571_v35 = vadd.f32 %v9570_v4, %v9482_v38  ;;  %v11876_v13 = vpop.eup %11875  ;;  %vm9880_vm7 = vcmp.gt.f32.partialorder %v9835_v54, 0.0 }
 0x631   : > { %v11353_v57 = vadd.f32 -1.0, %v11876_v13 }
 0x632   : > { %11877 = vpow2.f32 %v9935_v17  ;;  %v9660_v49 = vadd.f32 %v9659_v33, %v9571_v35  ;;  %v16231_v33 = vld [vmem:[#allocation86_spill] sm:$0xff]  ;;  %v9227_v35 = vadd.f32 %v15518_v7, %v9138_v2 }
 0x633   : > { %v10007_v60 = vsel %vm9879_vm5, %v9833_v32, %v11353_v57  ;;  %v9311_v23 = vadd.f32 %v16231_v33, %v9222_v19  ;;  %v16240_v19 = vld [vmem:[#allocation96_spill] sm:$0xff]  ;;  %v16242_v33 = vld [vmem:[#allocation94_spill] sm:$0xff] }
 0x634   : > { %v9749_v6 = vadd.f32 %v9748_v39, %v9660_v49  ;;  %v9842_v42 = vpop.f32.mrf.mxu2  ;;  %v9316_v47 = vadd.f32 %v16238_v53, %v9227_v35 }
 0x635   : > { %v9400_v0 = vadd.f32 %v16233_v52, %v9311_v23  ;;  %v9319_v23 = vadd.f32 %v16242_v33, %v15522_v43  ;;  %v16244_v43 = vld [vmem:[#allocation98_spill] sm:$0xff] }
 0x636   : > { %v9838_v51 = vadd.f32 %v9837_v31, %v9749_v6  ;;  %v9666_v63 = vpop.f32.mrf.mxu1  ;;  %v16234_v31 = vld [vmem:[#allocation89_spill] sm:$0xff] }
 0x637   : > { %v9572_v30 = vpop.f32.mrf.mxu3  ;;  %v9314_v62 = vadd.f32 %v16234_v31, %v15516_v3  ;;  %v9489_v12 = vadd.f32 %v16235_v11, %v9400_v0  ;;  %v16245_v11 = vld [vmem:[#allocation115_spill] sm:$0xff] }
 0x638   : > { %v11878_v20 = vpop.eup %11877  ;;  %v9573_v8 = vadd.f32 %v9572_v30, %v9484_v36  ;;  %v9937_v55 = vmul.f32 1.442695, %v9838_v51  ;;  %vm9881_vm10 = vcmp.gt.f32.partialorder %v9838_v51, 0.0  ;;  %v16239_v36 = vld [vmem:[#allocation113_spill] sm:$0xff] }
 0x639   : > { %v11354_v5 = vadd.f32 -1.0, %v11878_v20 }
 0x63a   : > { %v9662_v9 = vadd.f32 %v9661_v14, %v9573_v8  ;;  %11879 = vpow2.f32 %v9937_v55 }
 0x63b   : > { %v10008_v45 = vsel %vm9880_vm7, %v9835_v54, %v11354_v5  ;;  %v9755_v54 = vpop.f32.mrf.mxu0  ;;  %v9405_v5 = vadd.f32 %v16240_v19, %v9316_v47 }
 0x63c   : > { %v11682_v21 = vpack.c.bf16 %v10008_v45, %v10007_v60  ;;  %v9751_v50 = vadd.f32 %v9750_v29, %v9662_v9  ;;  %v9844_v14 = vpop.f32.mrf.mxu2  ;;  %v9403_v29 = vadd.f32 %v16237_v28, %v9314_v62  ;;  %v9321_v62 = vadd.f32 %v16244_v43, %v15530_v46 }
 0x63e   : > { %11714 = vst [vmem:[%s15590_s13 + $0x58] sm:$0xff] %v11682_v21   ;;  %v9840_v27 = vadd.f32 %v9839_v58, %v9751_v50  ;;  %v9492_v1 = vadd.f32 %v16239_v36, %v9403_v29  ;;  %v9669_v7 = vpop.f32.mrf.mxu1 }
 0x63f   : > { %v9575_v34 = vpop.f32.mrf.mxu3 }
 0x640   : > { %v9939_v61 = vmul.f32 1.442695, %v9840_v27  ;;  %v9576_v39 = vadd.f32 %v9575_v34, %v9487_v18  ;;  %v11880_v32 = vpop.eup %11879  ;;  %vm9882_vm12 = vcmp.gt.f32.partialorder %v9840_v27, 0.0 }
 0x641   : > { %v11355_v37 = vadd.f32 -1.0, %v11880_v32  ;;  %v16243_v32 = vld [vmem:[#allocation100_spill] sm:$0xff] }
 0x642   : > { %11881 = vpow2.f32 %v9939_v61  ;;  %v9665_v56 = vadd.f32 %v9664_v41, %v9576_v39  ;;  %v9494_v41 = vadd.f32 %v16241_v40, %v9405_v5 }
 0x643   : > { %v10009_v13 = vsel %vm9881_vm10, %v9838_v51, %v11355_v37  ;;  %v9758_v20 = vpop.f32.mrf.mxu0 }
 0x644   : > { %v9754_v25 = vadd.f32 %v9753_v16, %v9665_v56  ;;  %v9847_v51 = vpop.f32.mrf.mxu2 }
 0x646   : > { %v9843_v59 = vadd.f32 %v9842_v42, %v9754_v25  ;;  %v9671_v16 = vpop.f32.mrf.mxu1  ;;  %v9408_v25 = vadd.f32 %v16243_v32, %v9319_v23 }
 0x647   : > { %v9577_v38 = vpop.f32.mrf.mxu3 }
 0x648   : > { %v11882_v4 = vpop.eup %11881  ;;  %v9578_v17 = vadd.f32 %v9577_v38, %v9489_v12  ;;  %v9941_v10 = vmul.f32 1.442695, %v9843_v59  ;;  %vm9883_vm9 = vcmp.gt.f32.partialorder %v9843_v59, 0.0  ;;  %v9497_v12 = vadd.f32 %v16245_v11, %v9408_v25 }
 0x649   : > { %v11356_v49 = vadd.f32 -1.0, %v11882_v4 }
 0x64a   : > { %v9667_v3 = vadd.f32 %v9666_v63, %v9578_v17  ;;  %11883 = vpow2.f32 %v9941_v10 }
 0x64b   : > { %v10010_v6 = vsel %vm9882_vm12, %v9840_v27, %v11356_v49  ;;  %v9760_v42 = vpop.f32.mrf.mxu0  ;;  %v16247_v49 = vld [vmem:[#allocation116_spill] sm:$0xff] }
 0x64c   : > { %v11687_v58 = vpack.c.bf16 %v10010_v6, %v10009_v13  ;;  %v9756_v15 = vadd.f32 %v9755_v54, %v9667_v3  ;;  %v9849_v52 = vpop.f32.mrf.mxu2  ;;  %v16246_v54 = vld [vmem:[#allocation104_spill] sm:$0xff] }
 0x64d   : > { %v9410_v37 = vadd.f32 %v16246_v54, %v9321_v62 }
 0x64e   : > { %11715 = vst [vmem:[%s15590_s13 + $0x60] sm:$0xff] %v11687_v58   ;;  %v9845_v24 = vadd.f32 %v9844_v14, %v9756_v15 }
 0x64f   : > { %v9580_v22 = vpop.f32.mrf.mxu3  ;;  %v9499_v10 = vadd.f32 %v16247_v49, %v9410_v37 }
 0x650   : > { %v9943_v57 = vmul.f32 1.442695, %v9845_v24  ;;  %v9581_v30 = vadd.f32 %v9580_v22, %v9492_v1  ;;  %v11884_v55 = vpop.eup %11883  ;;  %vm9884_vm4 = vcmp.gt.f32.partialorder %v9845_v24, 0.0 }
 0x651   : > { %v11357_v60 = vadd.f32 -1.0, %v11884_v55 }
 0x652   : > { %11885 = vpow2.f32 %v9943_v57  ;;  %v9670_v8 = vadd.f32 %v9669_v7, %v9581_v30 }
 0x653   : > { %v10011_v34 = vsel %vm9883_vm9, %v9843_v59, %v11357_v60 }
 0x654   : > { %v9759_v9 = vadd.f32 %v9758_v20, %v9670_v8 }
 0x656   : > { %v9848_v44 = vadd.f32 %v9847_v51, %v9759_v9 }
 0x657   : > { %v9582_v45 = vpop.f32.mrf.mxu3 }
 0x658   : > { %v11886_v21 = vpop.eup %11885  ;;  %v9583_v50 = vadd.f32 %v9582_v45, %v9494_v41  ;;  %v9945_v26 = vmul.f32 1.442695, %v9848_v44  ;;  %vm9885_vm3 = vcmp.gt.f32.partialorder %v9848_v44, 0.0 }
 0x659   : > { %v11358_v27 = vadd.f32 -1.0, %v11886_v21 }
 0x65a   : > { %v9672_v18 = vadd.f32 %v9671_v16, %v9583_v50  ;;  %11887 = vpow2.f32 %v9945_v26 }
 0x65b   : > { %v10012_v61 = vsel %vm9884_vm4, %v9845_v24, %v11358_v27 }
 0x65c   : > { %v11692_v39 = vpack.c.bf16 %v10012_v61, %v10011_v34  ;;  %v9761_v56 = vadd.f32 %v9760_v42, %v9672_v18  ;;  %v9674_v59 = vpop.f32.mrf.mxu1 }
 0x65e   : > { %11716 = vst [vmem:[%s15590_s13 + $0x68] sm:$0xff] %v11692_v39   ;;  %v9850_v0 = vadd.f32 %v9849_v52, %v9761_v56 }
 0x65f   : > { %v9585_v63 = vpop.f32.mrf.mxu3 }
 0x660   : > { %v9947_v31 = vmul.f32 1.442695, %v9850_v0  ;;  %v11888_v48 = vpop.eup %11887  ;;  %v9586_v2 = vadd.f32 %v9585_v63, %v9497_v12  ;;  %vm9886_vm6 = vcmp.gt.f32.partialorder %v9850_v0, 0.0 }
 0x661   : > { %v11359_v38 = vadd.f32 -1.0, %v11888_v48 }
 0x662   : > { %11889 = vpow2.f32 %v9947_v31  ;;  %v9675_v17 = vadd.f32 %v9674_v59, %v9586_v2 }
 0x663   : > { %v10013_v3 = vsel %vm9885_vm3, %v9848_v44, %v11359_v38 }
 0x664   : > { %v9852_v29 = vpop.f32.mrf.mxu2  ;;  %v9676_v53 = vpop.f32.mrf.mxu1 }
 0x667   : > { %v9587_v14 = vpop.f32.mrf.mxu3 }
 0x668   : > { %v11890_v4 = vpop.eup %11889  ;;  %v9763_v28 = vpop.f32.mrf.mxu0  ;;  %v9588_v58 = vadd.f32 %v9587_v14, %v9499_v10 }
 0x669   : > { %v11360_v35 = vadd.f32 -1.0, %v11890_v4  ;;  %v9764_v6 = vadd.f32 %v9763_v28, %v9675_v17 }
 0x66a   : > { %v9677_v47 = vadd.f32 %v9676_v53, %v9588_v58 }
 0x66b   : > { %v10014_v46 = vsel %vm9886_vm6, %v9850_v0, %v11360_v35  ;;  %v9853_v15 = vadd.f32 %v9852_v29, %v9764_v6 }
 0x66c   : > { %v11697_v13 = vpack.c.bf16 %v10014_v46, %v10013_v3  ;;  %v9854_v7 = vpop.f32.mrf.mxu2 }
 0x66d   : > { %v9949_v24 = vmul.f32 1.442695, %v9853_v15  ;;  %vm9887_vm2 = vcmp.gt.f32.partialorder %v9853_v15, 0.0 }
 0x66e   : > { %11717 = vst [vmem:[%s15590_s13 + $0x70] sm:$0xff] %v11697_v13  }
 0x66f   : > { %11891 = vpow2.f32 %v9949_v24 }
 0x670   : > { %v9765_v36 = vpop.f32.mrf.mxu0 }
 0x671   : > { %v9766_v1 = vadd.f32 %v9765_v36, %v9677_v47 }
 0x673   : > { %v9855_v22 = vadd.f32 %v9854_v7, %v9766_v1 }
 0x675   : > { %v9951_v57 = vmul.f32 1.442695, %v9855_v22  ;;  %v11892_v30 = vpop.eup %11891  ;;  %vm9888_vm8 = vcmp.gt.f32.partialorder %v9855_v22, 0.0 }
 0x676   : > { %v11361_v20 = vadd.f32 -1.0, %v11892_v30 }
 0x677   : > { %11893 = vpow2.f32 %v9951_v57 }
 0x678   : > { %v10015_v5 = vsel %vm9887_vm2, %v9853_v15, %v11361_v20 }
 0x67d   : > { %v11894_v8 = vpop.eup %11893 }
 0x67e   : > { %v11362_v19 = vadd.f32 -1.0, %v11894_v8 }
 0x680   : > { %v10016_v51 = vsel %vm9888_vm8, %v9855_v22, %v11362_v19 }
 0x681   : > { %v11702_v55 = vpack.c.bf16 %v10016_v51, %v10015_v5 }
 0x683   : > { %11718 = vst [vmem:[%s15590_s13 + $0x78] sm:$0xff] %v11702_v55  }
 0x684 PF: > { %s16_s18 = sadd.s32 1, %s11950_s18  }
 0x685   : > { %p13_p7 = scmp.ge.s32.totalorder %s16_s18, 4  }
 0x687   :  { %15 = sbr.rel (!%p13_p7) target bundleno = 1 (0x1), region = 80 }
 0x68c   :  { %10102 = vsyncpa [#allocation7], 1 }
 0x68d   :  { %10104 = vsyncpa [#allocation7 + $0x1], 1 }

</bundles_post_ra>
